<compile_context>
chip_gen: v7x
topology: tpu7x:2x2x1
jax: 0.10.0
libtpu: 0.0.40
codegen_flags: <defaults>
</compile_context>

<pallas_src>
import functools
import math

import jax
import jax.numpy as jnp
from jax.experimental import pallas as pl
from jax.experimental.pallas import tpu as pltpu

_INV_SQRT2 = 0.7071067811865475


def _round_up(n, m):
    return ((n + m - 1) // m) * m


def _erf_approx(z):
    # Abramowitz & Stegun 7.1.26 rational approximation of erf, |abs err| < 1.5e-7.
    # Built only from add/mul/exp/abs/where/reciprocal so it lowers cleanly in Mosaic.
    a1, a2, a3, a4, a5 = (0.254829592, -0.284496736, 1.421413741,
                          -1.453152027, 1.061405429)
    p = 0.3275911
    s = jnp.where(z < 0.0, -1.0, 1.0)
    az = jnp.abs(z)
    d = 1.0 + p * az
    # Route the divide through the EUP (approx reciprocal) and refine with one
    # Newton step so accuracy matches an exact divide while freeing VPU slots
    # (matters most on v5e, where the f32 epilogue is closest to the critical path).
    r = pl.reciprocal(d, approx=True)
    t = r * (2.0 - d * r)
    poly = ((((a5 * t + a4) * t + a3) * t + a2) * t + a1) * t
    return s * (1.0 - poly * jnp.exp(-az * az))


def _gelu_erf(h):
    # x * 0.5 * (1 + erf(x / sqrt(2)))  -- the module's exact-formula gelu.
    return h * 0.5 * (1.0 + _erf_approx(h * _INV_SQRT2))


def _head_transform_kernel(x_ref, w_ref, b_ref, gamma_ref, beta_ref, o_ref,
                           *, eps, compute_dtype):
    # MXU matmul with compute_dtype (bf16) operands and f32 accumulation.
    x = x_ref[...].astype(compute_dtype)
    h = jnp.dot(x, w_ref[...], preferred_element_type=jnp.float32)
    # f32 epilogue: bias + gelu + LayerNorm (hidden under the matmul when possible).
    h = h + b_ref[...]
    h = _gelu_erf(h)
    # One-pass moments: mean(h) and mean(h*h) have no data dependence between
    # them, so the two cross-lane (XLU) reductions can overlap.
    mu = jnp.mean(h, axis=-1, keepdims=True)
    msq = jnp.mean(h * h, axis=-1, keepdims=True)
    var = jnp.maximum(msq - mu * mu, 0.0)
    inv = jax.lax.rsqrt(var + eps)
    o_ref[...] = ((h - mu) * inv * gamma_ref[...] + beta_ref[...]).astype(o_ref.dtype)


def _select_row_tile(B, H, x_itemsize, out_itemsize, w_itemsize,
                     tb_max=1024, vmem_budget_bytes=24 << 20):
    """Pick the row tile (multiple of 128) and an explicit scoped-VMEM request.

    Budget: single-buffered constants (W + 3 vectors) + double-buffered x and
    output tiles + f32 matmul/epilogue intermediates.  24 MiB is comfortable
    under v7x's 64 MiB physical VMEM and v5e/v6e's 128 MiB, and we raise the
    scoped limit explicitly so the bigger tiles don't trip the 16/32 MiB defaults.
    """
    const_bytes = H * H * w_itemsize + 3 * 8 * _round_up(H, 128) * 4
    per_row_bytes = 2 * H * x_itemsize + 2 * H * out_itemsize + 2 * H * 4
    avail = max(vmem_budget_bytes - const_bytes, 128 * per_row_bytes)
    tb = max(128, min(tb_max, (avail // per_row_bytes) // 128 * 128))
    # Don't pad a small batch up to a giant tile.
    if B >= 128:
        tb = min(tb, _round_up(B, 128))
    else:
        tb = _round_up(max(B, 1), 8)
    # v7x has 2 TensorCores sharded over the parallel grid axis: keep the grid
    # length >= 2 whenever the batch can be split, instead of grid=(1,).
    if B >= 256 and pl.cdiv(B, tb) < 2:
        tb = max(128, _round_up(pl.cdiv(B, 2), 128))
    # Worst-case request (everything double-buffered, for the non-Buffered(1)
    # fallback) plus compiler headroom, clamped under v7x's 64 MiB physical.
    vmem_limit = 2 * const_bytes + tb * per_row_bytes + (8 << 20)
    vmem_limit = min(max(vmem_limit, 16 << 20), 48 << 20)
    return tb, vmem_limit


def prediction_head_transform(hidden_states, w, b, gamma, beta, *, eps=1e-12,
                              tb_max=1024, compute_dtype=jnp.bfloat16,
                              vmem_budget_bytes=24 << 20):
    """Fused dense -> exact-erf gelu -> LayerNorm.

    hidden_states: (..., H).  Its dtype drives both the input DMA and the output
        dtype, so a bf16 producer/consumer halves HBM traffic with no wrapper
        casts (this kernel is HBM-bandwidth-bound).
    w: (H, H) pre-transposed so y = x @ w + b.  Pass it already cast to
        compute_dtype (cache the bf16 copy at parameter-load time) to avoid a
        per-call HBM cast round-trip.
    b, gamma, beta: (H,).
    """
    orig_shape = hidden_states.shape
    H = orig_shape[-1]
    x2 = hidden_states.reshape(-1, H)
    B = x2.shape[0]
    out_dtype = hidden_states.dtype

    if w.dtype != compute_dtype:
        # TODO(synk): callers should cache the compute_dtype weight once at
        # parameter-load time; this per-call cast costs an extra H*H HBM pass.
        w = w.astype(compute_dtype)

    tb, vmem_limit = _select_row_tile(
        B, H,
        x_itemsize=x2.dtype.itemsize,
        out_itemsize=jnp.dtype(out_dtype).itemsize,
        w_itemsize=jnp.dtype(compute_dtype).itemsize,
        tb_max=tb_max, vmem_budget_bytes=vmem_budget_bytes)

    num_tiles = pl.cdiv(B, tb)
    Bp = num_tiles * tb
    if Bp != B:
        # Zero tail rows: they hit rsqrt(eps) inside LayerNorm but stay finite
        # in f32/bf16 and are sliced off before returning.
        x2 = jnp.pad(x2, ((0, Bp - B), (0, 0)))

    b2 = b.reshape(1, H).astype(jnp.float32)
    g2 = gamma.reshape(1, H).astype(jnp.float32)
    be2 = beta.reshape(1, H).astype(jnp.float32)

    kernel = functools.partial(_head_transform_kernel, eps=eps,
                               compute_dtype=compute_dtype)

    cost = pl.CostEstimate(
        flops=2 * Bp * H * H + 16 * Bp * H,
        transcendentals=2 * Bp * H + Bp,       # exp + reciprocal per elem, rsqrt per row
        bytes_accessed=(Bp * H * x2.dtype.itemsize
                        + H * H * jnp.dtype(compute_dtype).itemsize
                        + 3 * H * 4
                        + Bp * H * jnp.dtype(out_dtype).itemsize),
    )

    def build_and_run(single_buffer_consts):
        if single_buffer_consts:
            # Constant-index blocks never re-DMA; single-buffering them spends
            # the reclaimed VMEM on bigger row tiles (v7x / large H).
            def const_spec(shape):
                return pl.BlockSpec(shape, lambda i: (0, 0),
                                    pipeline_mode=pl.Buffered(1))
        else:
            def const_spec(shape):
                return pl.BlockSpec(shape, lambda i: (0, 0))
        return pl.pallas_call(
            kernel,
            out_shape=jax.ShapeDtypeStruct((Bp, H), out_dtype),
            grid_spec=pl.GridSpec(
                grid=(num_tiles,),
                in_specs=[
                    pl.BlockSpec((tb, H), lambda i: (i, 0)),   # x row tile
                    const_spec((H, H)),                        # W (resident)
                    const_spec((1, H)),                        # bias
                    const_spec((1, H)),                        # LayerNorm gamma
                    const_spec((1, H)),                        # LayerNorm beta
                ],
                out_specs=pl.BlockSpec((tb, H), lambda i: (i, 0)),
            ),
            compiler_params=pltpu.CompilerParams(
                dimension_semantics=("parallel",),   # row tiles shard across TCs
                vmem_limit_bytes=vmem_limit,
            ),
            cost_estimate=cost,
        )(x2, w, b2, g2, be2)

    try:
        out = build_and_run(True)
    except Exception:
        # Fallback for jax versions where pipeline_mode=pl.Buffered(1) is not
        # accepted on a top-level pallas_call BlockSpec.  Genuine kernel errors
        # still surface from this retry.
        out = build_and_run(False)

    if Bp != B:
        out = out[:B]
    return out.reshape(orig_shape)


def _reference(hidden_states, w, b, gamma, beta, *, eps, compute_dtype):
    # Pure-JAX reference (exact erf gelu; same bf16 matmul quantization as the kernel).
    H = hidden_states.shape[-1]
    x2 = hidden_states.reshape(-1, H)
    h = jnp.dot(x2.astype(compute_dtype), w.astype(compute_dtype),
                preferred_element_type=jnp.float32) + b.reshape(1, H)
    g = h * 0.5 * (1.0 + jax.lax.erf(h * _INV_SQRT2))
    mu = g.mean(-1, keepdims=True)
    var = ((g - mu) ** 2).mean(-1, keepdims=True)
    o = (g - mu) * jax.lax.rsqrt(var + eps) * gamma.reshape(1, H) + beta.reshape(1, H)
    return o.reshape(hidden_states.shape).astype(hidden_states.dtype)


if __name__ == "__main__":
    # hidden multiple of 128 -> lane-dense tiles; 4*128 = 512 rows -> the tile
    # selector picks tb=256 so the parallel grid has length 2 (keeps both of
    # v7x's TensorCores busy).  Realistic-size benchmarking should be done with
    # xprof min-of-runs at >= ~8K rows / H >= 512.
    batch, seq, hidden = 4, 128, 256
    key = jax.random.PRNGKey(0)
    kx, kw, kb = jax.random.split(key, 3)

    x = jax.random.normal(kx, (batch, seq, hidden), dtype=jnp.float32)

    # nn.Linear-style init; dense weight stored pre-transposed as (in, out).
    bound = 1.0 / math.sqrt(hidden)
    w = jax.random.uniform(kw, (hidden, hidden), jnp.float32, -bound, bound)
    b = jax.random.uniform(kb, (hidden,), jnp.float32, -bound, bound)
    gamma = jnp.ones((hidden,), jnp.float32)   # LayerNorm defaults
    beta = jnp.zeros((hidden,), jnp.float32)

    # Cache the bf16 weight once ("parameter load" time) so there is no
    # per-call wrapper-side cast (review feedback).
    w_bf16 = w.astype(jnp.bfloat16)

    out = prediction_head_transform(x, w_bf16, b, gamma, beta)
    out = jax.block_until_ready(out)

    ref = _reference(x, w, b, gamma, beta, eps=1e-12, compute_dtype=jnp.bfloat16)
    assert out.shape == x.shape
    assert jnp.allclose(out, ref, atol=1e-4, rtol=1e-4), (
        f"mismatch vs reference: max|diff|={jnp.max(jnp.abs(out - ref))}")

    print("KERNEL_OK")
</pallas_src>

<mosaic_0001>
module attributes {stable_mosaic.version = 11 : i64} {
  func.func @_head_transform_kernel(%arg0: i32, %arg1: memref<256x256xf32, #tpu.memory_space<vmem>>, %arg2: memref<256x256xbf16, #tpu.memory_space<vmem>>, %arg3: memref<1x256xf32, #tpu.memory_space<vmem>>, %arg4: memref<1x256xf32, #tpu.memory_space<vmem>>, %arg5: memref<1x256xf32, #tpu.memory_space<vmem>>, %arg6: memref<256x256xf32, #tpu.memory_space<vmem>>) attributes {dimension_semantics = [#tpu.dimension_semantics<parallel>], iteration_bounds = array<i64: 2>, scalar_prefetch = 0 : i64, scratch_operands = 0 : i64, tpu.core_type = #tpu.core_type<tc>, window_params = [{transform_indices = @transform_0, window_bounds = array<i64: 256, 256>}, {pipeline_mode = #tpu.pipeline_mode<synchronous>, transform_indices = @transform_1, window_bounds = array<i64: 256, 256>}, {pipeline_mode = #tpu.pipeline_mode<synchronous>, transform_indices = @transform_2, window_bounds = array<i64: 1, 256>}, {pipeline_mode = #tpu.pipeline_mode<synchronous>, transform_indices = @transform_3, window_bounds = array<i64: 1, 256>}, {pipeline_mode = #tpu.pipeline_mode<synchronous>, transform_indices = @transform_4, window_bounds = array<i64: 1, 256>}, {transform_indices = @transform_5, window_bounds = array<i64: 256, 256>}]} {
    %c0 = arith.constant 0 : index
    %c0_0 = arith.constant 0 : index
    %0 = vector.load %arg1[%c0, %c0_0] : memref<256x256xf32, #tpu.memory_space<vmem>>, vector<256x256xf32>
    %1 = arith.truncf %0 : vector<256x256xf32> to vector<256x256xbf16>
    %c0_1 = arith.constant 0 : index
    %c0_2 = arith.constant 0 : index
    %2 = vector.load %arg2[%c0_1, %c0_2] : memref<256x256xbf16, #tpu.memory_space<vmem>>, vector<256x256xbf16>
    %cst = arith.constant dense<0.000000e+00> : vector<256x256xf32>
    %3 = tpu.matmul %1, %2, %cst {dimension_numbers = #tpu.dot_dimension_numbers<[1], [0], [0], [1], [0, 0, 1, 1], [], []>} : vector<256x256xbf16>, vector<256x256xbf16>, vector<256x256xf32> -> vector<256x256xf32>
    %c0_3 = arith.constant 0 : index
    %c0_4 = arith.constant 0 : index
    %4 = vector.load %arg3[%c0_3, %c0_4] : memref<1x256xf32, #tpu.memory_space<vmem>>, vector<1x256xf32>
    %5 = vector.broadcast %4 : vector<1x256xf32> to vector<256x256xf32>
    %6 = arith.addf %3, %5 : vector<256x256xf32>
    %cst_5 = arith.constant 5.000000e-01 : f32
    %7 = vector.broadcast %cst_5 : f32 to vector<256x256xf32>
    %8 = arith.mulf %6, %7 : vector<256x256xf32>
    %cst_6 = arith.constant 0.707106769 : f32
    %9 = vector.broadcast %cst_6 : f32 to vector<256x256xf32>
    %10 = arith.mulf %6, %9 : vector<256x256xf32>
    %cst_7 = arith.constant 0.000000e+00 : f32
    %11 = vector.broadcast %cst_7 : f32 to vector<256x256xf32>
    %12 = arith.cmpf olt, %10, %11 : vector<256x256xf32>
    %cst_8 = arith.constant -1.000000e+00 : f32
    %cst_9 = arith.constant 1.000000e+00 : f32
    %13 = vector.broadcast %cst_8 : f32 to vector<256x256xf32>
    %14 = vector.broadcast %cst_9 : f32 to vector<256x256xf32>
    %15 = arith.select %12, %13, %14 : vector<256x256xi1>, vector<256x256xf32>
    %16 = math.absf %10 : vector<256x256xf32>
    %cst_10 = arith.constant 0.327591091 : f32
    %17 = vector.broadcast %cst_10 : f32 to vector<256x256xf32>
    %18 = arith.mulf %17, %16 : vector<256x256xf32>
    %cst_11 = arith.constant 1.000000e+00 : f32
    %19 = vector.broadcast %cst_11 : f32 to vector<256x256xf32>
    %20 = arith.addf %19, %18 : vector<256x256xf32>
    %21 = tpu.reciprocal %20 {approx = true} : vector<256x256xf32> -> vector<256x256xf32>
    %22 = arith.mulf %20, %21 : vector<256x256xf32>
    %cst_12 = arith.constant 2.000000e+00 : f32
    %23 = vector.broadcast %cst_12 : f32 to vector<256x256xf32>
    %24 = arith.subf %23, %22 : vector<256x256xf32>
    %25 = arith.mulf %21, %24 : vector<256x256xf32>
    %cst_13 = arith.constant 1.06140542 : f32
    %26 = vector.broadcast %cst_13 : f32 to vector<256x256xf32>
    %27 = arith.mulf %26, %25 : vector<256x256xf32>
    %cst_14 = arith.constant -1.45315206 : f32
    %28 = vector.broadcast %cst_14 : f32 to vector<256x256xf32>
    %29 = arith.addf %27, %28 : vector<256x256xf32>
    %30 = arith.mulf %29, %25 : vector<256x256xf32>
    %cst_15 = arith.constant 1.42141378 : f32
    %31 = vector.broadcast %cst_15 : f32 to vector<256x256xf32>
    %32 = arith.addf %30, %31 : vector<256x256xf32>
    %33 = arith.mulf %32, %25 : vector<256x256xf32>
    %cst_16 = arith.constant -0.284496725 : f32
    %34 = vector.broadcast %cst_16 : f32 to vector<256x256xf32>
    %35 = arith.addf %33, %34 : vector<256x256xf32>
    %36 = arith.mulf %35, %25 : vector<256x256xf32>
    %cst_17 = arith.constant 0.254829586 : f32
    %37 = vector.broadcast %cst_17 : f32 to vector<256x256xf32>
    %38 = arith.addf %36, %37 : vector<256x256xf32>
    %39 = arith.mulf %38, %25 : vector<256x256xf32>
    %cst_18 = arith.constant 0.000000e+00 : f32
    %40 = vector.broadcast %cst_18 : f32 to vector<256x256xf32>
    %41 = arith.subf %40, %16 : vector<256x256xf32>
    %42 = arith.mulf %41, %16 : vector<256x256xf32>
    %43 = math.exp %42 : vector<256x256xf32>
    %44 = arith.mulf %39, %43 : vector<256x256xf32>
    %cst_19 = arith.constant 1.000000e+00 : f32
    %45 = vector.broadcast %cst_19 : f32 to vector<256x256xf32>
    %46 = arith.subf %45, %44 : vector<256x256xf32>
    %47 = arith.mulf %15, %46 : vector<256x256xf32>
    %cst_20 = arith.constant 1.000000e+00 : f32
    %48 = vector.broadcast %cst_20 : f32 to vector<256x256xf32>
    %49 = arith.addf %48, %47 : vector<256x256xf32>
    %50 = arith.mulf %8, %49 : vector<256x256xf32>
    %cst_21 = arith.constant dense<0.000000e+00> : vector<256xf32>
    %51 = vector.multi_reduction <add>, %50, %cst_21 [1] : vector<256x256xf32> to vector<256xf32>
    %52 = vector.shape_cast %51 : vector<256xf32> to vector<256x1xf32>
    %cst_22 = arith.constant 2.560000e+02 : f32
    %53 = vector.broadcast %cst_22 : f32 to vector<256x1xf32>
    %54 = arith.divf %52, %53 : vector<256x1xf32>
    %55 = arith.mulf %50, %50 : vector<256x256xf32>
    %cst_23 = arith.constant dense<0.000000e+00> : vector<256xf32>
    %56 = vector.multi_reduction <add>, %55, %cst_23 [1] : vector<256x256xf32> to vector<256xf32>
    %57 = vector.shape_cast %56 : vector<256xf32> to vector<256x1xf32>
    %cst_24 = arith.constant 2.560000e+02 : f32
    %58 = vector.broadcast %cst_24 : f32 to vector<256x1xf32>
    %59 = arith.divf %57, %58 : vector<256x1xf32>
    %60 = arith.mulf %54, %54 : vector<256x1xf32>
    %61 = arith.subf %59, %60 : vector<256x1xf32>
    %cst_25 = arith.constant 0.000000e+00 : f32
    %62 = vector.broadcast %cst_25 : f32 to vector<256x1xf32>
    %63 = arith.maximumf %61, %62 : vector<256x1xf32>
    %cst_26 = arith.constant 9.99999996E-13 : f32
    %64 = vector.broadcast %cst_26 : f32 to vector<256x1xf32>
    %65 = arith.addf %63, %64 : vector<256x1xf32>
    %66 = math.rsqrt %65 : vector<256x1xf32>
    %67 = vector.broadcast %54 : vector<256x1xf32> to vector<256x256xf32>
    %68 = arith.subf %50, %67 : vector<256x256xf32>
    %69 = vector.broadcast %66 : vector<256x1xf32> to vector<256x256xf32>
    %70 = arith.mulf %68, %69 : vector<256x256xf32>
    %c0_27 = arith.constant 0 : index
    %c0_28 = arith.constant 0 : index
    %71 = vector.load %arg4[%c0_27, %c0_28] : memref<1x256xf32, #tpu.memory_space<vmem>>, vector<1x256xf32>
    %72 = vector.broadcast %71 : vector<1x256xf32> to vector<256x256xf32>
    %73 = arith.mulf %70, %72 : vector<256x256xf32>
    %c0_29 = arith.constant 0 : index
    %c0_30 = arith.constant 0 : index
    %74 = vector.load %arg5[%c0_29, %c0_30] : memref<1x256xf32, #tpu.memory_space<vmem>>, vector<1x256xf32>
    %75 = vector.broadcast %74 : vector<1x256xf32> to vector<256x256xf32>
    %76 = arith.addf %73, %75 : vector<256x256xf32>
    %c0_31 = arith.constant 0 : index
    %c0_32 = arith.constant 0 : index
    %77 = vector.load %arg6[%c0_31, %c0_32] : memref<256x256xf32, #tpu.memory_space<vmem>>, vector<256x256xf32>
    tpu.vector_store %arg6[%c0_31, %c0_32], %76 {strides = array<i32>} : memref<256x256xf32, #tpu.memory_space<vmem>>, vector<256x256xf32>,
    return
  }
  func.func @transform_0(%arg0: i32) -> (i32, i32) {
    %c0_i32 = arith.constant 0 : i32
    %c0_i32_0 = arith.constant 0 : i32
    return %arg0, %c0_i32 : i32, i32
  }
  func.func @transform_1(%arg0: i32) -> (i32, i32) {
    %c0_i32 = arith.constant 0 : i32
    %c0_i32_0 = arith.constant 0 : i32
    %c0_i32_1 = arith.constant 0 : i32
    return %c0_i32, %c0_i32_0 : i32, i32
  }
  func.func @transform_2(%arg0: i32) -> (i32, i32) {
    %c0_i32 = arith.constant 0 : i32
    %c0_i32_0 = arith.constant 0 : i32
    %c0_i32_1 = arith.constant 0 : i32
    return %c0_i32, %c0_i32_0 : i32, i32
  }
  func.func @transform_3(%arg0: i32) -> (i32, i32) {
    %c0_i32 = arith.constant 0 : i32
    %c0_i32_0 = arith.constant 0 : i32
    %c0_i32_1 = arith.constant 0 : i32
    return %c0_i32, %c0_i32_0 : i32, i32
  }
  func.func @transform_4(%arg0: i32) -> (i32, i32) {
    %c0_i32 = arith.constant 0 : i32
    %c0_i32_0 = arith.constant 0 : i32
    %c0_i32_1 = arith.constant 0 : i32
    return %c0_i32, %c0_i32_0 : i32, i32
  }
  func.func @transform_5(%arg0: i32) -> (i32, i32) {
    %c0_i32 = arith.constant 0 : i32
    %c0_i32_0 = arith.constant 0 : i32
    return %arg0, %c0_i32 : i32, i32
  }
}

module attributes {stable_mosaic.version = 11 : i64} {
  func.func @_head_transform_kernel(%arg0: i32, %arg1: memref<256x256xf32, #tpu.memory_space<vmem>>, %arg2: memref<256x256xbf16, #tpu.memory_space<vmem>>, %arg3: memref<1x256xf32, #tpu.memory_space<vmem>>, %arg4: memref<1x256xf32, #tpu.memory_space<vmem>>, %arg5: memref<1x256xf32, #tpu.memory_space<vmem>>, %arg6: memref<256x256xf32, #tpu.memory_space<vmem>>) attributes {dimension_semantics = [#tpu.dimension_semantics<parallel>], iteration_bounds = array<i64: 2>, scalar_prefetch = 0 : i64, scratch_operands = 0 : i64, tpu.core_type = #tpu.core_type<tc>, window_params = [{transform_indices = @transform_0, window_bounds = array<i64: 256, 256>}, {pipeline_mode = #tpu.pipeline_mode<synchronous>, transform_indices = @transform_1, window_bounds = array<i64: 256, 256>}, {pipeline_mode = #tpu.pipeline_mode<synchronous>, transform_indices = @transform_2, window_bounds = array<i64: 1, 256>}, {pipeline_mode = #tpu.pipeline_mode<synchronous>, transform_indices = @transform_3, window_bounds = array<i64: 1, 256>}, {pipeline_mode = #tpu.pipeline_mode<synchronous>, transform_indices = @transform_4, window_bounds = array<i64: 1, 256>}, {transform_indices = @transform_5, window_bounds = array<i64: 256, 256>}]} {
    %c0 = arith.constant 0 : index
    %c0_0 = arith.constant 0 : index
    %0 = vector.load %arg1[%c0, %c0_0] : memref<256x256xf32, #tpu.memory_space<vmem>>, vector<256x256xf32>
    %1 = arith.truncf %0 : vector<256x256xf32> to vector<256x256xbf16>
    %c0_1 = arith.constant 0 : index
    %c0_2 = arith.constant 0 : index
    %2 = vector.load %arg2[%c0_1, %c0_2] : memref<256x256xbf16, #tpu.memory_space<vmem>>, vector<256x256xbf16>
    %cst = arith.constant dense<0.000000e+00> : vector<256x256xf32>
    %3 = tpu.matmul %1, %2, %cst {dimension_numbers = #tpu.dot_dimension_numbers<[1], [0], [0], [1], [0, 0, 1, 1], [], []>} : vector<256x256xbf16>, vector<256x256xbf16>, vector<256x256xf32> -> vector<256x256xf32>
    %c0_3 = arith.constant 0 : index
    %c0_4 = arith.constant 0 : index
    %4 = vector.load %arg3[%c0_3, %c0_4] : memref<1x256xf32, #tpu.memory_space<vmem>>, vector<1x256xf32>
    %5 = vector.broadcast %4 : vector<1x256xf32> to vector<256x256xf32>
    %6 = arith.addf %3, %5 : vector<256x256xf32>
    %cst_5 = arith.constant 5.000000e-01 : f32
    %7 = vector.broadcast %cst_5 : f32 to vector<256x256xf32>
    %8 = arith.mulf %6, %7 : vector<256x256xf32>
    %cst_6 = arith.constant 0.707106769 : f32
    %9 = vector.broadcast %cst_6 : f32 to vector<256x256xf32>
    %10 = arith.mulf %6, %9 : vector<256x256xf32>
    %cst_7 = arith.constant 0.000000e+00 : f32
    %11 = vector.broadcast %cst_7 : f32 to vector<256x256xf32>
    %12 = arith.cmpf olt, %10, %11 : vector<256x256xf32>
    %cst_8 = arith.constant -1.000000e+00 : f32
    %cst_9 = arith.constant 1.000000e+00 : f32
    %13 = vector.broadcast %cst_8 : f32 to vector<256x256xf32>
    %14 = vector.broadcast %cst_9 : f32 to vector<256x256xf32>
    %15 = arith.select %12, %13, %14 : vector<256x256xi1>, vector<256x256xf32>
    %16 = math.absf %10 : vector<256x256xf32>
    %cst_10 = arith.constant 0.327591091 : f32
    %17 = vector.broadcast %cst_10 : f32 to vector<256x256xf32>
    %18 = arith.mulf %17, %16 : vector<256x256xf32>
    %cst_11 = arith.constant 1.000000e+00 : f32
    %19 = vector.broadcast %cst_11 : f32 to vector<256x256xf32>
    %20 = arith.addf %19, %18 : vector<256x256xf32>
    %21 = tpu.reciprocal %20 {approx = true} : vector<256x256xf32> -> vector<256x256xf32>
    %22 = arith.mulf %20, %21 : vector<256x256xf32>
    %cst_12 = arith.constant 2.000000e+00 : f32
    %23 = vector.broadcast %cst_12 : f32 to vector<256x256xf32>
    %24 = arith.subf %23, %22 : vector<256x256xf32>
    %25 = arith.mulf %21, %24 : vector<256x256xf32>
    %cst_13 = arith.constant 1.06140542 : f32
    %26 = vector.broadcast %cst_13 : f32 to vector<256x256xf32>
    %27 = arith.mulf %26, %25 : vector<256x256xf32>
    %cst_14 = arith.constant -1.45315206 : f32
    %28 = vector.broadcast %cst_14 : f32 to vector<256x256xf32>
    %29 = arith.addf %27, %28 : vector<256x256xf32>
    %30 = arith.mulf %29, %25 : vector<256x256xf32>
    %cst_15 = arith.constant 1.42141378 : f32
    %31 = vector.broadcast %cst_15 : f32 to vector<256x256xf32>
    %32 = arith.addf %30, %31 : vector<256x256xf32>
    %33 = arith.mulf %32, %25 : vector<256x256xf32>
    %cst_16 = arith.constant -0.284496725 : f32
    %34 = vector.broadcast %cst_16 : f32 to vector<256x256xf32>
    %35 = arith.addf %33, %34 : vector<256x256xf32>
    %36 = arith.mulf %35, %25 : vector<256x256xf32>
    %cst_17 = arith.constant 0.254829586 : f32
    %37 = vector.broadcast %cst_17 : f32 to vector<256x256xf32>
    %38 = arith.addf %36, %37 : vector<256x256xf32>
    %39 = arith.mulf %38, %25 : vector<256x256xf32>
    %cst_18 = arith.constant 0.000000e+00 : f32
    %40 = vector.broadcast %cst_18 : f32 to vector<256x256xf32>
    %41 = arith.subf %40, %16 : vector<256x256xf32>
    %42 = arith.mulf %41, %16 : vector<256x256xf32>
    %43 = math.exp %42 : vector<256x256xf32>
    %44 = arith.mulf %39, %43 : vector<256x256xf32>
    %cst_19 = arith.constant 1.000000e+00 : f32
    %45 = vector.broadcast %cst_19 : f32 to vector<256x256xf32>
    %46 = arith.subf %45, %44 : vector<256x256xf32>
    %47 = arith.mulf %15, %46 : vector<256x256xf32>
    %cst_20 = arith.constant 1.000000e+00 : f32
    %48 = vector.broadcast %cst_20 : f32 to vector<256x256xf32>
    %49 = arith.addf %48, %47 : vector<256x256xf32>
    %50 = arith.mulf %8, %49 : vector<256x256xf32>
    %cst_21 = arith.constant dense<0.000000e+00> : vector<256xf32>
    %51 = vector.multi_reduction <add>, %50, %cst_21 [1] : vector<256x256xf32> to vector<256xf32>
    %52 = vector.shape_cast %51 : vector<256xf32> to vector<256x1xf32>
    %cst_22 = arith.constant 2.560000e+02 : f32
    %53 = vector.broadcast %cst_22 : f32 to vector<256x1xf32>
    %54 = arith.divf %52, %53 : vector<256x1xf32>
    %55 = arith.mulf %50, %50 : vector<256x256xf32>
    %cst_23 = arith.constant dense<0.000000e+00> : vector<256xf32>
    %56 = vector.multi_reduction <add>, %55, %cst_23 [1] : vector<256x256xf32> to vector<256xf32>
    %57 = vector.shape_cast %56 : vector<256xf32> to vector<256x1xf32>
    %cst_24 = arith.constant 2.560000e+02 : f32
    %58 = vector.broadcast %cst_24 : f32 to vector<256x1xf32>
    %59 = arith.divf %57, %58 : vector<256x1xf32>
    %60 = arith.mulf %54, %54 : vector<256x1xf32>
    %61 = arith.subf %59, %60 : vector<256x1xf32>
    %cst_25 = arith.constant 0.000000e+00 : f32
    %62 = vector.broadcast %cst_25 : f32 to vector<256x1xf32>
    %63 = arith.maximumf %61, %62 : vector<256x1xf32>
    %cst_26 = arith.constant 9.99999996E-13 : f32
    %64 = vector.broadcast %cst_26 : f32 to vector<256x1xf32>
    %65 = arith.addf %63, %64 : vector<256x1xf32>
    %66 = math.rsqrt %65 : vector<256x1xf32>
    %67 = vector.broadcast %54 : vector<256x1xf32> to vector<256x256xf32>
    %68 = arith.subf %50, %67 : vector<256x256xf32>
    %69 = vector.broadcast %66 : vector<256x1xf32> to vector<256x256xf32>
    %70 = arith.mulf %68, %69 : vector<256x256xf32>
    %c0_27 = arith.constant 0 : index
    %c0_28 = arith.constant 0 : index
    %71 = vector.load %arg4[%c0_27, %c0_28] : memref<1x256xf32, #tpu.memory_space<vmem>>, vector<1x256xf32>
    %72 = vector.broadcast %71 : vector<1x256xf32> to vector<256x256xf32>
    %73 = arith.mulf %70, %72 : vector<256x256xf32>
    %c0_29 = arith.constant 0 : index
    %c0_30 = arith.constant 0 : index
    %74 = vector.load %arg5[%c0_29, %c0_30] : memref<1x256xf32, #tpu.memory_space<vmem>>, vector<1x256xf32>
    %75 = vector.broadcast %74 : vector<1x256xf32> to vector<256x256xf32>
    %76 = arith.addf %73, %75 : vector<256x256xf32>
    %c0_31 = arith.constant 0 : index
    %c0_32 = arith.constant 0 : index
    %77 = vector.load %arg6[%c0_31, %c0_32] : memref<256x256xf32, #tpu.memory_space<vmem>>, vector<256x256xf32>
    tpu.vector_store %arg6[%c0_31, %c0_32], %76 {strides = array<i32>} : memref<256x256xf32, #tpu.memory_space<vmem>>, vector<256x256xf32>,
    return
  }
  func.func @transform_0(%arg0: i32) -> (i32, i32) {
    %c0_i32 = arith.constant 0 : i32
    %c0_i32_0 = arith.constant 0 : i32
    return %arg0, %c0_i32 : i32, i32
  }
  func.func @transform_1(%arg0: i32) -> (i32, i32) {
    %c0_i32 = arith.constant 0 : i32
    %c0_i32_0 = arith.constant 0 : i32
    %c0_i32_1 = arith.constant 0 : i32
    return %c0_i32, %c0_i32_0 : i32, i32
  }
  func.func @transform_2(%arg0: i32) -> (i32, i32) {
    %c0_i32 = arith.constant 0 : i32
    %c0_i32_0 = arith.constant 0 : i32
    %c0_i32_1 = arith.constant 0 : i32
    return %c0_i32, %c0_i32_0 : i32, i32
  }
  func.func @transform_3(%arg0: i32) -> (i32, i32) {
    %c0_i32 = arith.constant 0 : i32
    %c0_i32_0 = arith.constant 0 : i32
    %c0_i32_1 = arith.constant 0 : i32
    return %c0_i32, %c0_i32_0 : i32, i32
  }
  func.func @transform_4(%arg0: i32) -> (i32, i32) {
    %c0_i32 = arith.constant 0 : i32
    %c0_i32_0 = arith.constant 0 : i32
    %c0_i32_1 = arith.constant 0 : i32
    return %c0_i32, %c0_i32_0 : i32, i32
  }
  func.func @transform_5(%arg0: i32) -> (i32, i32) {
    %c0_i32 = arith.constant 0 : i32
    %c0_i32_0 = arith.constant 0 : i32
    return %arg0, %c0_i32 : i32, i32
  }
}

</mosaic_0001>

<bundles_post_ra>
// kernel: tpu_custom_call.1
= control target key start
LH: loop header
LB: loop body
LE: loop exit
PB: predicated region body
PF: predicated region fallthrough
CT: control target
= control target key end

     0   :  { %10 = vsyncpa [#allocation3], 0  ;;  %s7645_s0 = inlined_call_operand.hbm [shape: f32[512,256], index: 0, kind: input, shape index: {}]   ;;  %s7646_s1 = inlined_call_operand.hbm [shape: bf16[256,256], index: 1, kind: input, shape index: {}]   ;;  %s7647_s2 = inlined_call_operand.vmem [shape: f32[1,256], index: 2, kind: input, shape index: {}]   ;;  %s7648_s3 = inlined_call_operand.vmem [shape: f32[1,256], index: 3, kind: input, shape index: {}]   ;;  %s7649_s4 = inlined_call_operand.vmem [shape: f32[1,256], index: 4, kind: input, shape index: {}]   ;;  %s7650_s5 = inlined_call_operand.hbm [shape: f32[512,256], index: 5, kind: output, shape index: {}]  }
   0x1   :  { %12 = vsyncpa [#allocation3 + $0x1], 0 }
   0x2   :  { %13 = vsyncpa [#allocation6], 0 }
   0x3   :  { %14 = vsyncpa [#allocation4], 0 }
   0x4   :  { %16 = vsyncpa [#allocation4 + $0x1], 0  ;;  %s4221_s18 = smov 0   ;;  %s4223_s19 = smov 0  }
   0x5   :  { %s4225_s20 = smov 0   ;;  %s4227_s21 = smov 0  }
   0x6 LB: > { %s4242_s22 = sadd.s32 4294967295, %s4179_s21   ;;  %s3533_s23 = sadd.s32 4294967294, %s4179_s21   ;;  %s4179_s21 = sphi %s4227_s21, %s8152_s21   ;;  %s4175_s20 = sphi %s4225_s20, %s8151_s20   ;;  %s4171_s19 = sphi %s4223_s19, %s8150_s19   ;;  %s4167_s18 = sphi %s4221_s18, %s8149_s18  }
   0x7   : > { %p42_p0 = scmp.ne.s32.totalorder %s4171_s19, %s4167_s18  ;;  %p7651_p1 = scmp.eq.s32.totalorder %s4242_s22, 0 }
   0x8   : > { %p156_p3 = scmp.eq.s32.totalorder %s3533_s23, 1  ;;  %p3534_p5 = scmp.ge.s32.totalorder %s4179_s21, 1 }
   0x9   : > { %p4251_p4 = por %p7651_p1, %p42_p0  ;;  %p163_p7 = scmp.lt.s32.totalorder %s4179_s21, 3 }
   0xa   : > { %p4256_p6 = por %p156_p3, %p42_p0  ;;  %s4181_s27 = smov [#allocation5]  }
   0xb   : > { %s7777_s24 = scalar_select %p4251_p4, 1, 0 }
   0xc   : > { %s7778_s25 = scalar_select %p4256_p6, 1, 0 }
   0xd   : > { %p4261_p8 = pnand %p3534_p5, %p163_p7  ;;  %s175_s28 = sshll.u32 %s4181_s27, 4  ;;  %s4265_s28 = int_to_ptr.vmem [resolvable:$true] %s175_s28 }
   0xe   : > { %s4277_s30 = sadd.s32 1, %s4179_s21   ;;  %s29_s6 = sadd.s32 1, %s4175_s20 }
   0xf   : > { %s7779_s26 = scalar_select %p4261_p8, 1, 0 }
  0x10   : > { %p3627_p9 = pneg %p4261_p8  ;;  %s26_s7 = ssub.s32 %s4179_s21, %s4277_s30 }
  0x11   : > { %s4051_s10 = scalar_lea.hbm %s7646_s1, 4096 }
  0x12   : > { %p4272_p11 = pnand %p3627_p9, %p7651_p1  ;;  %p4052_p12 = scmp.ne.s32.totalorder %s7646_s1, %s4051_s10 }
  0x13   : > { %p4058_p5 = scmp.lt.u32.totalorder %s4051_s10, %s7646_s1 }
  0x14   : > { %p4053_p13 = pneg %p4272_p11 }
  0x16   : > { %p4054_p0 = pnand %p4053_p13, %p4052_p12 }
  0x18   : > { %p4055_p3 = pneg %p4054_p0 }
  0x1a   : > { %p4060_p7 = pnand %p4058_p5, %p4055_p3 }
  0x1c   : > { %4063 = shalt.err (!%p4060_p7)
}
  0x1d   : > { %s4064_s15 = scalar_lea.vmem %s4265_s28, 4096  ;;  %p4072_p2 = scmp.lt.s32.totalorder %s4265_s28, %s4265_s28 }
  0x1e   : > { %p4065_p9 = scmp.ne.s32.totalorder %s4265_s28, %s4064_s15  ;;  %p4073_p6 = scmp.lt.s32.totalorder %s4064_s15, %s4064_s15 }
  0x20   : > { %p4067_p10 = pnand %p4065_p9, %p4053_p13  ;;  %p4074_p4 = por %p4073_p6, %p4072_p2 }
  0x22   : > { %p4068_p1 = pneg %p4067_p10 }
  0x24   : > { %p4075_p8 = pnand %p4074_p4, %p4068_p1 }
  0x26   : > { %4078 = shalt.err (!%p4075_p8)
}
  0x27   : > { %s4182_s16 = smov 128   ;;  %s4183_s17 = smov 8  }
  0x28   : > { %3630 = dma.hbm_to_vmem [thread:$0]  (!%p4272_p11), %s7646_s1, 4096, %s4265_s28, [#allocation6], %s4182_s16, %s4182_s16, %s4183_s17  }
  0x29   : > { %p27_p2 = scmp.eq.s32.totalorder %s26_s7, 0  ;;  %p36_p1 = scmp.ne.s32.totalorder %s4175_s20, %s4171_s19 }
  0x2a   : > { %p37_p4 = scmp.eq.s32.totalorder %s4179_s21, 0  ;;  %p3640_p6 = scmp.lt.s32.totalorder %s4179_s21, 2 }
  0x2b   : > { %s4308_s8 = scalar_select %p27_p2, %s4175_s20, %s29_s6  }
  0x2c   : > { %p38_p8 = por %p37_p4, %p36_p1  ;;  %p7781_p10 = scmp.eq.s32.totalorder %s4242_s22, 1 }
  0x2d   : > { %s198_s10 = sand.u32 1, %s4175_s20   ;;  %s3584_s11 = sshll.u32 %s4179_s21, 13 }
  0x2e   : > { %p4312_p12 = por %p7781_p10, %p36_p1  ;;  %s3537_s12 = sshll.u32 %s198_s10, 9 }
  0x2f   : > { %s4321_s14 = scalar_lea.hbm %s7645_s0, %s3584_s11  ;;  %s202_s28 = scalar_lea.vmem [#allocation2], %s3537_s12 }
  0x30   : > { %s210_s6 = sshll.u32 %s202_s28, 4  ;;  %p4323_p11 = pnand %p3640_p6, %p38_p8  ;;  %s4327_s6 = int_to_ptr.vmem [resolvable:$true] %s210_s6 }
  0x31   : > { %s4329_s15 = scalar_lea.sflag [#allocation3], %s198_s10  ;;  %s4079_s16 = scalar_lea.hbm %s4321_s14, 8192 }
  0x32   : > { %p4080_p13 = scmp.ne.s32.totalorder %s4321_s14, %s4079_s16  ;;  %p4081_p0 = pneg %p4323_p11 }
  0x33   : > { %s4084_s27 = scalar_lea.hbm %s7645_s0, 16384  ;;  %p4085_p7 = scmp.lt.u32.totalorder %s4321_s14, %s7645_s0 }
  0x34   : > { %p4082_p3 = pnand %p4081_p0, %p4080_p13  ;;  %p4086_p9 = scmp.lt.u32.totalorder %s4084_s27, %s4079_s16 }
  0x35   : > { %p4088_p1 = scmp.lt.u32.totalorder %s4079_s16, %s4321_s14 }
  0x36   : > { %p4083_p5 = pneg %p4082_p3  ;;  %p4087_p2 = por %p4086_p9, %p4085_p7 }
  0x38   : > { %p4089_p4 = por %p4088_p1, %p4087_p2 }
  0x3a   : > { %p4090_p6 = pnand %p4089_p4, %p4083_p5 }
  0x3c   : > { %4093 = shalt.err (!%p4090_p6)
}
  0x3d   : > { %s4094_s10 = scalar_lea.vmem %s4327_s6, 8192  ;;  %s4184_s29 = smov [#allocation2]  }
  0x3e   : > { %p4095_p8 = scmp.ne.s32.totalorder %s4327_s6, %s4094_s10  ;;  %s4099_s13 = sshll.u32 %s4184_s29, 4  ;;  %s4100_s13 = int_to_ptr.vmem [resolvable:$false] %s4099_s13 }
  0x3f   : > { %s4101_s28 = scalar_lea.vmem %s4100_s13, 16384  ;;  %p4102_p3 = scmp.lt.s32.totalorder %s4327_s6, %s4100_s13 }
  0x40   : > { %p4097_p10 = pnand %p4095_p8, %p4081_p0  ;;  %p4103_p7 = scmp.lt.s32.totalorder %s4101_s28, %s4094_s10 }
  0x42   : > { %p4098_p13 = pneg %p4097_p10  ;;  %p4104_p9 = por %p4103_p7, %p4102_p3 }
  0x44   : > { %p4105_p2 = pnand %p4104_p9, %p4098_p13 }
  0x46   : > { %4108 = shalt.err (!%p4105_p2)
}
  0x47   : > { %s4185_s16 = smov 256   ;;  %s4186_s17 = smov 16  }
  0x48   : > { %3634 = dma.hbm_to_vmem [thread:$0]  (!%p4323_p11), %s4321_s14, 8192, %s4327_s6, %s4329_s15, %s4185_s16, %s4185_s16, %s4186_s17  }
  0x49   : > { %p7784_p0 = scmp.ne.s32.totalorder %s7779_s26, 0 }
  0x4b   : > { %222 = sbr.rel (%p7784_p0) target bundleno = 1085 (0x43d), region = 40 }
  0x52   : > { %s4360_s23 = sand.u32 1, %s4171_s19   ;;  %p7785_p5 = scmp.ne.s32.totalorder %s7777_s24, 0 }
  0x53   : > { %s3542_s27 = sshll.u32 %s4360_s23, 9  ;;  %s225_s11 = scalar_lea.sflag [#allocation3], %s4360_s23 }
  0x54   : > { %s4366_s12 = scalar_lea.vmem [#allocation2], %s3542_s27 }
  0x55   : > { %4154 = dma.done.wait (%p7785_p5), %s225_s11, 8192  }
  0x56   : > { %4156 = vsyncadd (%p7785_p5), %s225_s11, 4294959104  ;;  %p7786_p11 = scmp.eq.s32.totalorder %s4242_s22, 0 }
  0x58   : > { %4158 = dma.done.wait (%p7786_p11), [#allocation6], 4096   ;;  %p7787_p1 = pmov %p7786_p11 }
  0x59   : > { %v3683_v0 = vld [vmem:[#allocation5 + $0x4] ss:$8 sps:$4 sm:$0xff]   ;;  %v3685_v1 = vld [vmem:[#allocation5] ss:$8 sps:$4 sm:$0xff]   ;;  %v3686_v2 = vld [vmem:[#allocation5 + $0x14] ss:$8 sps:$4 sm:$0xff]  }
  0x5a   : > { %4160 = vsyncadd (%p7787_p1), [#allocation6], 4294963200  ;;  %561 = vmatprep.subr.bf16.mxu0 %v3683_v0  ;;  %3587 = vmatprep.subr.bf16.mxu1 %v3683_v0  ;;  %v3688_v3 = vld [vmem:[#allocation5 + $0x10] ss:$8 sps:$4 sm:$0xff]   ;;  %v3689_v4 = vld [vmem:[#allocation5 + $0x24] ss:$8 sps:$4 sm:$0xff]  }
  0x5b   : > { %562 = vmatpush1.bf16.msra.mxu0 %v3685_v1  ;;  %3603 = vmatpush1.bf16.msra.mxu1 %v3685_v1  ;;  %v3691_v5 = vld [vmem:[#allocation5 + $0x20] ss:$8 sps:$4 sm:$0xff]   ;;  %v3692_v6 = vld [vmem:[#allocation5 + $0x34] ss:$8 sps:$4 sm:$0xff]   ;;  %v3694_v7 = vld [vmem:[#allocation5 + $0x30] ss:$8 sps:$4 sm:$0xff]  }
  0x5c   : > { %563 = vmatprep.subr.bf16.mxu0 %v3686_v2  ;;  %3588 = vmatprep.subr.bf16.mxu1 %v3686_v2  ;;  %v3695_v8 = vld [vmem:[#allocation5 + $0x44] ss:$8 sps:$4 sm:$0xff]   ;;  %v3697_v9 = vld [vmem:[#allocation5 + $0x40] ss:$8 sps:$4 sm:$0xff]   ;;  %v3698_v10 = vld [vmem:[#allocation5 + $0x54] ss:$8 sps:$4 sm:$0xff]  }
  0x5d   : > { %v3700_v11 = vld [vmem:[#allocation5 + $0x50] ss:$8 sps:$4 sm:$0xff]   ;;  %v3701_v12 = vld [vmem:[#allocation5 + $0x64] ss:$8 sps:$4 sm:$0xff]   ;;  %v3703_v18 = vld [vmem:[#allocation5 + $0x60] ss:$8 sps:$4 sm:$0xff]  }
  0x5e   : > { %v262_v13 = vld [vmem:[%s4366_s12 + $0x8] sm:$0xff]  ;;  %v264_v14 = vld [vmem:[%s4366_s12 + $0x18] sm:$0xff]  ;;  %v261_v38 = vld [vmem:[%s4366_s12] sm:$0xff]  ;;  %s7194_s10 = scalar_lea.vmem [#allocation7], %s3542_s27  ;;  %s3586_s29 = sshll.u32 %s4242_s22, 13 }
  0x5f   : > { %564 = vmatpush1.bf16.msra.mxu0 %v3688_v3  ;;  %3604 = vmatpush1.bf16.msra.mxu1 %v3688_v3  ;;  %v326_v15 = vpack.c.bf16 %v264_v14, %v262_v13  ;;  %v294_v16 = vld [vmem:[%s4366_s12 + $0x108] sm:$0xff]  ;;  %v296_v17 = vld [vmem:[%s4366_s12 + $0x118] sm:$0xff]  ;;  %v263_v39 = vld [vmem:[%s4366_s12 + $0x10] sm:$0xff]  ;;  %s3450_s13 = sshll.u32 %s7194_s10, 4  ;;  %s7593_s16 = scalar_lea.hbm %s7650_s5, %s3586_s29  ;;  %s7595_s13 = int_to_ptr.vmem [resolvable:$true] %s3450_s13 }
  0x60   : > { %565 = vmatprep.subr.bf16.mxu0 %v3689_v4  ;;  %3589 = vmatprep.subr.bf16.mxu1 %v3689_v4  ;;  %v342_v19 = vpack.c.bf16 %v296_v17, %v294_v16  ;;  %v3704_v20 = vld [vmem:[#allocation5 + $0x74] ss:$8 sps:$4 sm:$0xff]   ;;  %v3706_v21 = vld [vmem:[#allocation5 + $0x70] ss:$8 sps:$4 sm:$0xff]   ;;  %v3707_v22 = vld [vmem:[#allocation5 + $0x84] ss:$8 sps:$4 sm:$0xff]   ;;  %v325_v46 = vpack.c.bf16 %v263_v39, %v261_v38 }
  0x61   : > { %593 = vmatprep.mubr.bf16.mxu0 %v326_v15  ;;  %v3709_v23 = vld [vmem:[#allocation5 + $0x80] ss:$8 sps:$4 sm:$0xff]   ;;  %v3710_v24 = vld [vmem:[#allocation5 + $0x94] ss:$8 sps:$4 sm:$0xff]   ;;  %v3712_v25 = vld [vmem:[#allocation5 + $0x90] ss:$8 sps:$4 sm:$0xff]  }
  0x62   : > { %673 = vmatprep.mubr.bf16.mxu1 %v342_v19  ;;  %v3713_v26 = vld [vmem:[#allocation5 + $0xa4] ss:$8 sps:$4 sm:$0xff]   ;;  %v3715_v27 = vld [vmem:[#allocation5 + $0xa0] ss:$8 sps:$4 sm:$0xff]   ;;  %v3716_v28 = vld [vmem:[#allocation5 + $0xb4] ss:$8 sps:$4 sm:$0xff]  }
  0x63   : > { %566 = vmatpush1.bf16.msra.mxu0 %v3691_v5  ;;  %3605 = vmatpush1.bf16.msra.mxu1 %v3691_v5  ;;  %v3718_v29 = vld [vmem:[#allocation5 + $0xb0] ss:$8 sps:$4 sm:$0xff]   ;;  %v3719_v30 = vld [vmem:[#allocation5 + $0xc4] ss:$8 sps:$4 sm:$0xff]   ;;  %v3721_v31 = vld [vmem:[#allocation5 + $0xc0] ss:$8 sps:$4 sm:$0xff]  }
  0x64   : > { %567 = vmatprep.subr.bf16.mxu0 %v3692_v6  ;;  %3590 = vmatprep.subr.bf16.mxu1 %v3692_v6  ;;  %v3722_v32 = vld [vmem:[#allocation5 + $0xd4] ss:$8 sps:$4 sm:$0xff]   ;;  %v3724_v33 = vld [vmem:[#allocation5 + $0xd0] ss:$8 sps:$4 sm:$0xff]   ;;  %v3725_v34 = vld [vmem:[#allocation5 + $0xe4] ss:$8 sps:$4 sm:$0xff]  }
  0x65   : > { %v3727_v35 = vld [vmem:[#allocation5 + $0xe0] ss:$8 sps:$4 sm:$0xff]   ;;  %v3728_v36 = vld [vmem:[#allocation5 + $0xf4] ss:$8 sps:$4 sm:$0xff]   ;;  %v3730_v37 = vld [vmem:[#allocation5 + $0xf0] ss:$8 sps:$4 sm:$0xff]  }
  0x66   : > { %v293_v40 = vld [vmem:[%s4366_s12 + $0x100] sm:$0xff]  ;;  %v295_v41 = vld [vmem:[%s4366_s12 + $0x110] sm:$0xff]  ;;  %v266_v42 = vld [vmem:[%s4366_s12 + $0x28] sm:$0xff]  ;;  %s3436_s17 = scalar_lea.sflag [#allocation4], %s4360_s23  ;;  %s4109_s27 = scalar_lea.vmem %s7595_s13, 8192 }
  0x67   : > { %568 = vmatpush1.bf16.msra.mxu0 %v3694_v7  ;;  %3606 = vmatpush1.bf16.msra.mxu1 %v3694_v7  ;;  %v268_v43 = vld [vmem:[%s4366_s12 + $0x38] sm:$0xff]  ;;  %v298_v44 = vld [vmem:[%s4366_s12 + $0x128] sm:$0xff]  ;;  %v341_v47 = vpack.c.bf16 %v295_v41, %v293_v40  ;;  %v265_v50 = vld [vmem:[%s4366_s12 + $0x20] sm:$0xff]  ;;  %p4110_p4 = scmp.ne.s32.totalorder %s7595_s13, %s4109_s27  ;;  %s4188_s11 = smov [#allocation7]  }
  0x68   : > { %569 = vmatprep.subr.bf16.mxu0 %v3695_v8  ;;  %3591 = vmatprep.subr.bf16.mxu1 %v3695_v8  ;;  %v300_v45 = vld [vmem:[%s4366_s12 + $0x138] sm:$0xff]  ;;  %v328_v48 = vpack.c.bf16 %v268_v43, %v266_v42  ;;  %v267_v51 = vld [vmem:[%s4366_s12 + $0x30] sm:$0xff]  ;;  %v297_v52 = vld [vmem:[%s4366_s12 + $0x120] sm:$0xff] }
  0x69   : > { %v344_v49 = vpack.c.bf16 %v300_v45, %v298_v44  ;;  %v299_v53 = vld [vmem:[%s4366_s12 + $0x130] sm:$0xff]  ;;  %v270_v54 = vld [vmem:[%s4366_s12 + $0x48] sm:$0xff]  ;;  %v272_v55 = vld [vmem:[%s4366_s12 + $0x58] sm:$0xff]  ;;  %v327_v58 = vpack.c.bf16 %v267_v51, %v265_v50  ;;  %p4111_p6 = pnand %p4110_p4, %p4312_p12 }
  0x6a   : > { %v302_v56 = vld [vmem:[%s4366_s12 + $0x148] sm:$0xff]  ;;  %v304_v57 = vld [vmem:[%s4366_s12 + $0x158] sm:$0xff]  ;;  %v343_v59 = vpack.c.bf16 %v299_v53, %v297_v52  ;;  %v330_v60 = vpack.c.bf16 %v272_v55, %v270_v54  ;;  %v269_v62 = vld [vmem:[%s4366_s12 + $0x40] sm:$0xff] }
  0x6b   : > { %570 = vmatpush1.bf16.msra.mxu0 %v3697_v9  ;;  %3607 = vmatpush1.bf16.msra.mxu1 %v3697_v9  ;;  %v346_v61 = vpack.c.bf16 %v304_v57, %v302_v56  ;;  %v271_v63 = vld [vmem:[%s4366_s12 + $0x50] sm:$0xff]  ;;  %v301_v0 = vld [vmem:[%s4366_s12 + $0x140] sm:$0xff]  ;;  %v274_v2 = vld [vmem:[%s4366_s12 + $0x68] sm:$0xff]  ;;  %p4112_p8 = pneg %p4111_p6 }
  0x6c   : > { %571 = vmatprep.subr.bf16.mxu0 %v3698_v10  ;;  %3592 = vmatprep.subr.bf16.mxu1 %v3698_v10  ;;  %v303_v1 = vld [vmem:[%s4366_s12 + $0x150] sm:$0xff]  ;;  %v276_v3 = vld [vmem:[%s4366_s12 + $0x78] sm:$0xff]  ;;  %v306_v4 = vld [vmem:[%s4366_s12 + $0x168] sm:$0xff]  ;;  %v329_v6 = vpack.c.bf16 %v271_v63, %v269_v62 }
  0x6d   : > { %v308_v5 = vld [vmem:[%s4366_s12 + $0x178] sm:$0xff]  ;;  %v345_v7 = vpack.c.bf16 %v303_v1, %v301_v0  ;;  %v332_v8 = vpack.c.bf16 %v276_v3, %v274_v2  ;;  %v273_v10 = vld [vmem:[%s4366_s12 + $0x60] sm:$0xff]  ;;  %v307_v13 = vld [vmem:[%s4366_s12 + $0x170] sm:$0xff] }
  0x6e   : > { %v348_v9 = vpack.c.bf16 %v308_v5, %v306_v4  ;;  %v278_v14 = vld [vmem:[%s4366_s12 + $0x88] sm:$0xff]  ;;  %v280_v15 = vld [vmem:[%s4366_s12 + $0x98] sm:$0xff] }
  0x6f   : > { %572 = vmatpush1.bf16.msra.mxu0 %v3700_v11  ;;  %3608 = vmatpush1.bf16.msra.mxu1 %v3700_v11  ;;  %v275_v11 = vld [vmem:[%s4366_s12 + $0x70] sm:$0xff]  ;;  %v310_v16 = vld [vmem:[%s4366_s12 + $0x188] sm:$0xff]  ;;  %v312_v17 = vld [vmem:[%s4366_s12 + $0x198] sm:$0xff] }
  0x70   : > { %573 = vmatprep.subr.bf16.mxu0 %v3701_v12  ;;  %3593 = vmatprep.subr.bf16.mxu1 %v3701_v12  ;;  %v305_v12 = vld [vmem:[%s4366_s12 + $0x160] sm:$0xff]  ;;  %v286_v38 = vld [vmem:[%s4366_s12 + $0xc8] sm:$0xff]  ;;  %v288_v39 = vld [vmem:[%s4366_s12 + $0xd8] sm:$0xff] }
  0x71   : > { %v347_v19 = vpack.c.bf16 %v307_v13, %v305_v12  ;;  %v318_v40 = vld [vmem:[%s4366_s12 + $0x1c8] sm:$0xff]  ;;  %v320_v41 = vld [vmem:[%s4366_s12 + $0x1d8] sm:$0xff]  ;;  %v338_v44 = vpack.c.bf16 %v288_v39, %v286_v38 }
  0x72   : > { %v354_v45 = vpack.c.bf16 %v320_v41, %v318_v40  ;;  %v290_v50 = vld [vmem:[%s4366_s12 + $0xe8] sm:$0xff]  ;;  %v292_v51 = vld [vmem:[%s4366_s12 + $0xf8] sm:$0xff] }
  0x73   : > { %574 = vmatpush1.bf16.msra.mxu0 %v3703_v18  ;;  %3609 = vmatpush1.bf16.msra.mxu1 %v3703_v18  ;;  %v331_v18 = vpack.c.bf16 %v275_v11, %v273_v10  ;;  %v322_v52 = vld [vmem:[%s4366_s12 + $0x1e8] sm:$0xff]  ;;  %v324_v53 = vld [vmem:[%s4366_s12 + $0x1f8] sm:$0xff]  ;;  %v340_v56 = vpack.c.bf16 %v292_v51, %v290_v50 }
  0x74   : > { %575 = vmatprep.subr.bf16.mxu0 %v3704_v20  ;;  %3594 = vmatprep.subr.bf16.mxu1 %v3704_v20  ;;  %v334_v20 = vpack.c.bf16 %v280_v15, %v278_v14  ;;  %v356_v57 = vpack.c.bf16 %v324_v53, %v322_v52 }
  0x77   : > { %576 = vmatpush1.bf16.msra.mxu0 %v3706_v21  ;;  %3610 = vmatpush1.bf16.msra.mxu1 %v3706_v21  ;;  %v350_v21 = vpack.c.bf16 %v312_v17, %v310_v16 }
  0x78   : > { %577 = vmatprep.subr.bf16.mxu0 %v3707_v22  ;;  %3595 = vmatprep.subr.bf16.mxu1 %v3707_v22  ;;  %v277_v22 = vld [vmem:[%s4366_s12 + $0x80] sm:$0xff] }
  0x7b   : > { %578 = vmatpush1.bf16.msra.mxu0 %v3709_v23  ;;  %3611 = vmatpush1.bf16.msra.mxu1 %v3709_v23  ;;  %v279_v23 = vld [vmem:[%s4366_s12 + $0x90] sm:$0xff] }
  0x7c   : > { %579 = vmatprep.subr.bf16.mxu0 %v3710_v24  ;;  %3596 = vmatprep.subr.bf16.mxu1 %v3710_v24  ;;  %v309_v24 = vld [vmem:[%s4366_s12 + $0x180] sm:$0xff] }
  0x7f   : > { %580 = vmatpush1.bf16.msra.mxu0 %v3712_v25  ;;  %3612 = vmatpush1.bf16.msra.mxu1 %v3712_v25  ;;  %v311_v25 = vld [vmem:[%s4366_s12 + $0x190] sm:$0xff] }
  0x80   : > { %581 = vmatprep.subr.bf16.mxu0 %v3713_v26  ;;  %3597 = vmatprep.subr.bf16.mxu1 %v3713_v26  ;;  %v282_v26 = vld [vmem:[%s4366_s12 + $0xa8] sm:$0xff] }
  0x83   : > { %582 = vmatpush1.bf16.msra.mxu0 %v3715_v27  ;;  %3613 = vmatpush1.bf16.msra.mxu1 %v3715_v27  ;;  %v284_v27 = vld [vmem:[%s4366_s12 + $0xb8] sm:$0xff] }
  0x84   : > { %583 = vmatprep.subr.bf16.mxu0 %v3716_v28  ;;  %3598 = vmatprep.subr.bf16.mxu1 %v3716_v28  ;;  %v314_v28 = vld [vmem:[%s4366_s12 + $0x1a8] sm:$0xff] }
  0x87   : > { %584 = vmatpush1.bf16.msra.mxu0 %v3718_v29  ;;  %3614 = vmatpush1.bf16.msra.mxu1 %v3718_v29  ;;  %v316_v29 = vld [vmem:[%s4366_s12 + $0x1b8] sm:$0xff] }
  0x88   : > { %585 = vmatprep.subr.bf16.mxu0 %v3719_v30  ;;  %3599 = vmatprep.subr.bf16.mxu1 %v3719_v30  ;;  %v333_v30 = vpack.c.bf16 %v279_v23, %v277_v22  ;;  %v391_v22 = vlaneseq }
  0x8b   : > { %586 = vmatpush1.bf16.msra.mxu0 %v3721_v31  ;;  %3615 = vmatpush1.bf16.msra.mxu1 %v3721_v31  ;;  %v349_v31 = vpack.c.bf16 %v311_v25, %v309_v24  ;;  %v392_v25 = vshrl.u32 %v391_v22, 7 }
  0x8c   : > { %587 = vmatprep.subr.bf16.mxu0 %v3722_v32  ;;  %3600 = vmatprep.subr.bf16.mxu1 %v3722_v32  ;;  %v336_v32 = vpack.c.bf16 %v284_v27, %v282_v26 }
  0x8f   : > { %588 = vmatpush1.bf16.msra.mxu0 %v3724_v33  ;;  %3616 = vmatpush1.bf16.msra.mxu1 %v3724_v33  ;;  %v352_v33 = vpack.c.bf16 %v316_v29, %v314_v28  ;;  %v4476_v28 = vsub.s32 0, %v392_v25  ;;  %v389_v29 = vld [vmem:[%s7647_s2] sm:$0x3] }
  0x90   : > { %589 = vmatprep.subr.bf16.mxu0 %v3725_v34  ;;  %3601 = vmatprep.subr.bf16.mxu1 %v3725_v34  ;;  %v281_v34 = vld [vmem:[%s4366_s12 + $0xa0] sm:$0xff] }
  0x91   : > { %7797 = vst [vmem:[#allocation20_spill] sm:$0xff] %v4476_v28 }
  0x93   : > { %590 = vmatpush1.bf16.msra.mxu0 %v3727_v35  ;;  %3617 = vmatpush1.bf16.msra.mxu1 %v3727_v35  ;;  %v283_v35 = vld [vmem:[%s4366_s12 + $0xb0] sm:$0xff] }
  0x94   : > { %591 = vmatprep.subr.bf16.mxu0 %v3728_v36  ;;  %3602 = vmatprep.subr.bf16.mxu1 %v3728_v36  ;;  %v313_v36 = vld [vmem:[%s4366_s12 + $0x1a0] sm:$0xff]  ;;  %v335_v42 = vpack.c.bf16 %v283_v35, %v281_v34 }
  0x97   : > { %592 = vmatpush1.bf16.msra.mxu0 %v3730_v37  ;;  %3618 = vmatpush1.bf16.msra.mxu1 %v3730_v37  ;;  %v315_v37 = vld [vmem:[%s4366_s12 + $0x1b0] sm:$0xff] }
  0x98   : > { %v351_v43 = vpack.c.bf16 %v315_v37, %v313_v36 }
  0x9a   : > { %594 = vmatmul.mubr.bf16.vlgmr.msra.gmra.mrb[0].mxu0 %v325_v46  ;;  %674 = vmatmul.mubr.bf16.vlgmr.msra.gmra.mrb[0].mxu1 %v341_v47  ;;  %v285_v46 = vld [vmem:[%s4366_s12 + $0xc0] sm:$0xff]  ;;  %v287_v47 = vld [vmem:[%s4366_s12 + $0xd0] sm:$0xff] }
  0x9b   : > { %603 = vmatprep.mubr.bf16.mxu0 %v328_v48  ;;  %683 = vmatprep.mubr.bf16.mxu1 %v344_v49  ;;  %v317_v48 = vld [vmem:[%s4366_s12 + $0x1c0] sm:$0xff]  ;;  %v319_v49 = vld [vmem:[%s4366_s12 + $0x1d0] sm:$0xff]  ;;  %v337_v54 = vpack.c.bf16 %v287_v47, %v285_v46 }
  0x9c   : > { %v353_v55 = vpack.c.bf16 %v319_v49, %v317_v48 }
  0xa2   : > { %604 = vmatmul.mubr.bf16.gmra.mrb[4].mxu0 %v327_v58  ;;  %684 = vmatmul.mubr.bf16.gmra.mrb[4].mxu1 %v343_v59  ;;  %v289_v58 = vld [vmem:[%s4366_s12 + $0xe0] sm:$0xff]  ;;  %v291_v59 = vld [vmem:[%s4366_s12 + $0xf0] sm:$0xff] }
  0xa3   : > { %613 = vmatprep.mubr.bf16.mxu0 %v330_v60  ;;  %693 = vmatprep.mubr.bf16.mxu1 %v346_v61  ;;  %v321_v60 = vld [vmem:[%s4366_s12 + $0x1e0] sm:$0xff]  ;;  %v323_v61 = vld [vmem:[%s4366_s12 + $0x1f0] sm:$0xff]  ;;  %v339_v62 = vpack.c.bf16 %v291_v59, %v289_v58  ;;  %s4113_s12 = sshll.u32 %s4188_s11, 4  ;;  %s4114_s12 = int_to_ptr.vmem [resolvable:$false] %s4113_s12 }
  0xa4   : > { %v355_v63 = vpack.c.bf16 %v323_v61, %v321_v60  ;;  %s4115_s24 = scalar_lea.vmem %s4114_s12, 16384  ;;  %p4116_p10 = scmp.lt.s32.totalorder %s7595_s13, %s4114_s12 }
  0xa5   : > { %p4117_p13 = scmp.lt.s32.totalorder %s4115_s24, %s4109_s27 }
  0xa7   : > { %p4118_p3 = por %p4117_p13, %p4116_p10 }
  0xa9   : > { %p4119_p7 = pnand %p4118_p3, %p4112_p8 }
  0xaa   : > { %614 = vmatmul.mubr.bf16.gmra.mrb[8].mxu0 %v329_v6  ;;  %694 = vmatmul.mubr.bf16.gmra.mrb[8].mxu1 %v345_v7 }
  0xab   : > { %623 = vmatprep.mubr.bf16.mxu0 %v332_v8  ;;  %703 = vmatprep.mubr.bf16.mxu1 %v348_v9 }
  0xb2   : > { %624 = vmatmul.mubr.bf16.gmra.mrb[12].mxu0 %v331_v18  ;;  %704 = vmatmul.mubr.bf16.gmra.mrb[12].mxu1 %v347_v19 }
  0xb3   : > { %633 = vmatprep.mubr.bf16.mxu0 %v334_v20  ;;  %713 = vmatprep.mubr.bf16.mxu1 %v350_v21 }
  0xba   : > { %634 = vmatmul.mubr.bf16.gmra.mrb[16].mxu0 %v333_v30  ;;  %714 = vmatmul.mubr.bf16.gmra.mrb[16].mxu1 %v349_v31  ;;  %v4482_v30 = vrot.slane %v389_v29, %v4476_v28  ;;  %v4484_v31 = vsub.s32 1, %v392_v25 }
  0xbb   : > { %643 = vmatprep.mubr.bf16.mxu0 %v336_v32  ;;  %723 = vmatprep.mubr.bf16.mxu1 %v352_v33 }
  0xbc   : > { %7798 = vst [vmem:[#allocation21_spill] sm:$0xff] %v4484_v31  ;;  %v4492_v34 = vrot.slane %v389_v29, %v4484_v31 }
  0xbe   : > { %7800 = vst [vmem:[#allocation23_spill] sm:$0xff] %v4492_v34 }
  0xc2   : > { %644 = vmatmul.mubr.bf16.gmra.mrb[20].mxu0 %v335_v42  ;;  %724 = vmatmul.mubr.bf16.gmra.mrb[20].mxu1 %v351_v43 }
  0xc3   : > { %653 = vmatprep.mubr.bf16.mxu0 %v338_v44  ;;  %733 = vmatprep.mubr.bf16.mxu1 %v354_v45 }
  0xca   : > { %654 = vmatmul.mubr.bf16.gmra.mrb[24].mxu0 %v337_v54  ;;  %734 = vmatmul.mubr.bf16.gmra.mrb[24].mxu1 %v353_v55 }
  0xcb   : > { %663 = vmatprep.mubr.bf16.mxu0 %v340_v56  ;;  %743 = vmatprep.mubr.bf16.mxu1 %v356_v57 }
  0xd2   : > { %664 = vmatmul.mubr.bf16.gmra.mrb[28].mxu0 %v339_v62  ;;  %744 = vmatmul.mubr.bf16.gmra.mrb[28].mxu1 %v355_v63 }
 0x16d   : > { %v595_v0 = vpop.f32.mrb[0].mxu0  ;;  %v675_v1 = vpop.f32.mrb[0].mxu1 }
 0x16e   : > { %v597_v2 = vpop.f32.mrb[1].mxu0  ;;  %v677_v3 = vpop.f32.mrb[1].mxu1  ;;  %v4489_v33 = vadd.f32 %v675_v1, %v4482_v30  ;;  %v4495_v35 = vadd.f32 %v595_v0, %v4482_v30 }
 0x16f   : > { %v599_v4 = vpop.f32.mrb[2].mxu0  ;;  %v679_v5 = vpop.f32.mrb[2].mxu1  ;;  %v4501_v37 = vadd.f32 %v677_v3, %v4492_v34  ;;  %v4510_v40 = vadd.f32 %v597_v2, %v4492_v34 }
 0x170   : > { %v601_v6 = vpop.f32.mrb[3].mxu0  ;;  %v681_v7 = vpop.f32.mrb[3].mxu1  ;;  %v4498_v36 = vmul.f32 0.70710677, %v4489_v33  ;;  %v4504_v38 = vadd.f32 %v599_v4, %v4482_v30  ;;  %v4507_v39 = vmul.f32 0.70710677, %v4495_v35  ;;  %v4538_v51 = vadd.f32 %v679_v5, %v4482_v30 }
 0x171   : > { %v4516_v42 = vmul.f32 0.70710677, %v4501_v37  ;;  %v4522_v44 = vadd.f32 %v601_v6, %v4492_v34  ;;  %v4526_v46 = vmul.f32 0.70710677, %v4510_v40  ;;  %v4555_v61 = vadd.f32 %v681_v7, %v4492_v34 }
 0x172   : > { %v4513_v41 = vand.u32 2147483647, %v4498_v36  ;;  %v4519_v43 = vmul.f32 0.70710677, %v4504_v38  ;;  %v1010_v45 = vand.u32 2147483647, %v4507_v39 }
 0x173   : > { %v4530_v48 = vand.u32 2147483647, %v4516_v42  ;;  %v4541_v52 = vmul.f32 0.70710677, %v4522_v44  ;;  %v4544_v55 = vand.u32 2147483647, %v4526_v46 }
 0x174   : > { %v1106_v47 = vmul.f32 0.3275911, %v4513_v41  ;;  %v4535_v50 = vand.u32 2147483647, %v4519_v43  ;;  %v1074_v53 = vmul.f32 0.3275911, %v1010_v45 }
 0x175   : > { %v4440_v8 = vpop.f32.mrb[4].mxu0  ;;  %v4442_v9 = vpop.f32.mrb[4].mxu1  ;;  %v1107_v56 = vmul.f32 0.3275911, %v4530_v48  ;;  %v4549_v58 = vmul.f32 0.70710677, %v4538_v51 }
 0x176   : > { %v4444_v10 = vpop.f32.mrb[5].mxu0  ;;  %v4446_v11 = vpop.f32.mrb[5].mxu1  ;;  %v1170_v54 = vadd.f32 1.0, %v1106_v47  ;;  %v1076_v57 = vmul.f32 0.3275911, %v4535_v50  ;;  %v1138_v60 = vadd.f32 1.0, %v1074_v53  ;;  %v4570_v22 = vadd.f32 %v4440_v8, %v4482_v30 }
 0x177   : > { %v4448_v12 = vpop.f32.mrb[6].mxu0  ;;  %v4450_v13 = vpop.f32.mrb[6].mxu1  ;;  %v4552_v59 = vand.u32 2147483647, %v4541_v52  ;;  %v1075_v62 = vmul.f32 0.3275911, %v4544_v55 }
 0x178   : > { %v4452_v14 = vpop.f32.mrb[7].mxu0  ;;  %v4454_v15 = vpop.f32.mrb[7].mxu1  ;;  %3731 = vrcp.f32 %v1170_v54  ;;  %v1171_v63 = vadd.f32 1.0, %v1107_v56  ;;  %v1140_v0 = vadd.f32 1.0, %v1076_v57  ;;  %v4559_v1 = vand.u32 2147483647, %v4549_v58 }
 0x179   : > { %v1077_v2 = vmul.f32 0.3275911, %v4552_v59  ;;  %3733 = vrcp.f32 %v1138_v60  ;;  %v4563_v3 = vmul.f32 0.70710677, %v4555_v61  ;;  %v1139_v5 = vadd.f32 1.0, %v1075_v62 }
 0x17a   : > { %3735 = vrcp.f32 %v1171_v63  ;;  %v1108_v6 = vmul.f32 0.3275911, %v4559_v1  ;;  %v4578_v56 = vmul.f32 0.70710677, %v4570_v22  ;;  %vm882_vm0 = vcmp.lt.f32.partialorder %v4507_v39, 0.0 }
 0x17b   : > { %3737 = vrcp.f32 %v1140_v0  ;;  %v1141_v7 = vadd.f32 1.0, %v1077_v2  ;;  %v4573_v25 = vand.u32 2147483647, %v4563_v3  ;;  %vm914_vm1 = vcmp.lt.f32.partialorder %v4498_v36, 0.0 }
 0x17c   : > { %3739 = vrcp.f32 %v1139_v5  ;;  %v1172_v47 = vadd.f32 1.0, %v1108_v6  ;;  %v4582_v8 = vand.u32 2147483647, %v4578_v56  ;;  %v2066_v6 = vsub.f32 0.0, %v4513_v41 }
 0x17d   : > { %v4456_v16 = vpop.f32.mrb[8].mxu0  ;;  %v4458_v17 = vpop.f32.mrb[8].mxu1  ;;  %3741 = vrcp.f32 %v1141_v7  ;;  %v1109_v57 = vmul.f32 0.3275911, %v4573_v25  ;;  %vm883_vm2 = vcmp.lt.f32.partialorder %v4526_v46, 0.0  ;;  %vm915_vm3 = vcmp.lt.f32.partialorder %v4516_v42, 0.0 }
 0x17e   : > { %7788 = vst [vmem:[#allocation11_spill] sm:$0xff] %v4458_v17  ;;  %v4460_v18 = vpop.f32.mrb[9].mxu0  ;;  %v4462_v19 = vpop.f32.mrb[9].mxu1  ;;  %3743 = vrcp.f32 %v1172_v47  ;;  %v7658_v17 = vmov 1.0   ;;  %vm884_vm4 = vcmp.lt.f32.partialorder %v4519_v43, 0.0  ;;  %vm916_vm5 = vcmp.lt.f32.partialorder %v4549_v58, 0.0 }
 0x17f   : > { %7789 = vst [vmem:[#allocation12_spill] sm:$0xff] %v4460_v18  ;;  %7790 = vst [vmem:[#allocation13_spill] sm:$0xff] %v4462_v19  ;;  %v4464_v20 = vpop.f32.mrb[10].mxu0  ;;  %v4466_v21 = vpop.f32.mrb[10].mxu1  ;;  %v4634_v36 = vsel %vm883_vm2, -1.0, %v7658_v17  ;;  %vm885_vm6 = vcmp.lt.f32.partialorder %v4541_v52, 0.0 }
 0x180   : > { %7791 = vst [vmem:[#allocation14_spill] sm:$0xff] %v4464_v20  ;;  %7792 = vst [vmem:[#allocation15_spill] sm:$0xff] %v4466_v21  ;;  %v4468_v23 = vpop.f32.mrb[11].mxu0  ;;  %v4470_v24 = vpop.f32.mrb[11].mxu1  ;;  %v1078_v20 = vmul.f32 0.3275911, %v4582_v8 }
 0x181   : > { %7793 = vst [vmem:[#allocation16_spill] sm:$0xff] %v4468_v23  ;;  %7794 = vst [vmem:[#allocation17_spill] sm:$0xff] %v4470_v24  ;;  %v4684_v43 = vsel %vm885_vm6, -1.0, %v7658_v17  ;;  %vm917_vm7 = vcmp.lt.f32.partialorder %v4563_v3, 0.0  ;;  %vm886_vm8 = vcmp.lt.f32.partialorder %v4578_v56, 0.0 }
 0x182   : > { %v3732_v53 = vpop.eup %3731 }
 0x183   : > { %v3734_v62 = vpop.eup %3733  ;;  %v1298_v2 = vmul.f32 %v3732_v53, %v1170_v54  ;;  %v4592_v54 = vmul.f32 0.5, %v4495_v35  ;;  %v4604_v35 = vmul.f32 0.5, %v4510_v40 }
 0x184   : > { %v3736_v31 = vpop.eup %3735 }
 0x185   : > { %v4472_v26 = vpop.f32.mrb[12].mxu0  ;;  %v4474_v27 = vpop.f32.mrb[12].mxu1  ;;  %7806 = vst [vmem:[#allocation29_spill] sm:$0xff] %v4592_v54  ;;  %7808 = vst [vmem:[#allocation31_spill] sm:$0xff] %v4604_v35 }
 0x186   : > { %7795 = vst [vmem:[#allocation18_spill] sm:$0xff] %v4472_v26  ;;  %7796 = vst [vmem:[#allocation19_spill] sm:$0xff] %v4474_v27  ;;  %v4486_v32 = vpop.f32.mrb[13].mxu0  ;;  %v4532_v49 = vpop.f32.mrb[13].mxu1  ;;  %v1362_v27 = vsub.f32 2.0, %v1298_v2  ;;  %v1299_v26 = vmul.f32 %v3736_v31, %v1171_v63 }
 0x187   : > { %7799 = vst [vmem:[#allocation22_spill] sm:$0xff] %v4486_v32  ;;  %7801 = vst [vmem:[#allocation24_spill] sm:$0xff] %v4532_v49  ;;  %v4565_v4 = vpop.f32.mrb[14].mxu0  ;;  %v4575_v29 = vpop.f32.mrb[14].mxu1  ;;  %v4584_v49 = vadd.f32 1.0, %v1109_v57  ;;  %v1266_v32 = vmul.f32 %v3734_v62, %v1138_v60  ;;  %v4596_v57 = vmul.f32 0.5, %v4489_v33  ;;  %v2130_v60 = vmul.f32 %v2066_v6, %v4513_v41 }
 0x188   : > { %7802 = vst [vmem:[#allocation25_spill] sm:$0xff] %v4565_v4  ;;  %7803 = vst [vmem:[#allocation26_spill] sm:$0xff] %v4575_v29  ;;  %v3738_v28 = vpop.eup %3737  ;;  %v2034_v4 = vsub.f32 0.0, %v1010_v45  ;;  %v4586_v29 = vpop.f32.mrb[15].mxu0  ;;  %v4609_v33 = vmul.f32 0.5, %v4501_v37 }
 0x189   : > { %7804 = vst [vmem:[#allocation27_spill] sm:$0xff] %v4586_v29  ;;  %v4589_v24 = vpop.f32.mrb[15].mxu1  ;;  %v3740_v23 = vpop.eup %3739  ;;  %v1268_v21 = vmul.f32 %v3738_v28, %v1140_v0  ;;  %7807 = vst [vmem:[#allocation30_spill] sm:$0xff] %v4596_v57  ;;  %v2035_v29 = vsub.f32 0.0, %v4544_v55  ;;  %3745 = vrcp.f32 %v4584_v49  ;;  %v1330_v63 = vsub.f32 2.0, %v1266_v32 }
 0x18a   : > { %7805 = vst [vmem:[#allocation28_spill] sm:$0xff] %v4589_v24  ;;  %v3742_v19 = vpop.eup %3741  ;;  %v2098_v18 = vmul.f32 %v2034_v4, %v1010_v45  ;;  %v4606_v0 = vmul.f32 %v3732_v53, %v1362_v27  ;;  %v1267_v45 = vmul.f32 %v3740_v23, %v1139_v5  ;;  %v1363_v4 = vsub.f32 2.0, %v1299_v26 }
 0x18b   : > { %v1332_v2 = vsub.f32 2.0, %v1268_v21  ;;  %v1269_v54 = vmul.f32 %v3742_v19, %v1141_v7  ;;  %v4611_v24 = vadd.f32 1.0, %v1078_v20  ;;  %v3744_v39 = vpop.eup %3743  ;;  %v4614_v57 = vsel %vm882_vm0, -1.0, %v7658_v17 }
 0x18c   : > { %v2162_v41 = vmul.f32 1.442695, %v2098_v18  ;;  %v2099_v40 = vmul.f32 %v2035_v29, %v4544_v55  ;;  %v2067_v27 = vsub.f32 0.0, %v4530_v48  ;;  %v4621_v26 = vsel %vm914_vm1, -1.0, %v7658_v17 }
 0x18d   : > { %v2226_v32 = vmul.f32 1.442695, %v2130_v60  ;;  %v4625_v20 = vmul.f32 %v3734_v62, %v1330_v63  ;;  %v1490_v21 = vmul.f32 1.0614054, %v4606_v0  ;;  %v1331_v37 = vsub.f32 2.0, %v1267_v45 }
 0x18e   : > { %v4628_v18 = vmul.f32 %v3736_v31, %v1363_v4  ;;  %v4630_v55 = vmul.f32 %v3738_v28, %v1332_v2  ;;  %v1300_v5 = vmul.f32 %v3744_v39, %v1172_v47  ;;  %v1333_v7 = vsub.f32 2.0, %v1269_v54  ;;  %v4656_v2 = vpop.f32.mrb[16].mxu0 }
 0x18f   : > { %3747 = vrcp.f32 %v4611_v24  ;;  %v2164_v46 = vmul.f32 1.442695, %v2099_v40  ;;  %v2131_v42 = vmul.f32 %v2067_v27, %v4530_v48  ;;  %v4638_v29 = vsel %vm915_vm3, -1.0, %v7658_v17  ;;  %7810 = vst [vmem:[#allocation33_spill] sm:$0xff] %v4656_v2  ;;  %v4662_v40 = vpop.f32.mrb[16].mxu1 }
 0x190   : > { %3749 = vpow2.f32 %v2162_v41  ;;  %v4641_v31 = vmul.f32 0.5, %v4504_v38  ;;  %v2036_v28 = vsub.f32 0.0, %v4535_v50  ;;  %v1458_v53 = vmul.f32 1.0614054, %v4625_v20  ;;  %7811 = vst [vmem:[#allocation34_spill] sm:$0xff] %v4662_v40 }
 0x191   : > { %3751 = vpow2.f32 %v2226_v32  ;;  %v1554_v62 = vadd.f32 -1.4531521, %v1490_v21  ;;  %v4645_v6 = vmul.f32 %v3740_v23, %v1331_v37  ;;  %v1491_v54 = vmul.f32 1.0614054, %v4628_v18 }
 0x192   : > { %v1460_v48 = vmul.f32 1.0614054, %v4630_v55  ;;  %v1364_v60 = vsub.f32 2.0, %v1300_v5  ;;  %v4650_v63 = vmul.f32 %v3742_v19, %v1333_v7  ;;  %3753 = vpow2.f32 %v2164_v46 }
 0x193   : > { %v3746_v47 = vpop.eup %3745  ;;  %v2228_v38 = vmul.f32 1.442695, %v2131_v42  ;;  %v4653_v45 = vmul.f32 0.5, %v4538_v51  ;;  %v2068_v4 = vsub.f32 0.0, %v4559_v1  ;;  %v2100_v23 = vmul.f32 %v2036_v28, %v4535_v50 }
 0x194   : > { %v1301_v41 = vmul.f32 %v3746_v47, %v4584_v49  ;;  %v1522_v19 = vadd.f32 -1.4531521, %v1458_v53  ;;  %v1618_v27 = vmul.f32 %v1554_v62, %v4606_v0  ;;  %v1459_v51 = vmul.f32 1.0614054, %v4645_v6 }
 0x195   : > { %7809 = vst [vmem:[#allocation32_spill] sm:$0xff] %v4653_v45  ;;  %v1555_v32 = vadd.f32 -1.4531521, %v1491_v54  ;;  %v4669_v21 = vsel %vm884_vm4, -1.0, %v7658_v17  ;;  %v1524_v50 = vadd.f32 -1.4531521, %v1460_v48  ;;  %v4671_v37 = vmul.f32 %v3744_v39, %v1364_v60 }
 0x196   : > { %v1461_v58 = vmul.f32 1.0614054, %v4650_v63  ;;  %3755 = vpow2.f32 %v2228_v38  ;;  %v4675_v49 = vsel %vm916_vm5, -1.0, %v7658_v17  ;;  %v2132_v5 = vmul.f32 %v2068_v4, %v4559_v1 }
 0x197   : > { %v4679_v7 = vmul.f32 0.5, %v4522_v44  ;;  %v2166_v42 = vmul.f32 1.442695, %v2100_v23  ;;  %v4687_v39 = vmul.f32 0.5, %v4555_v61  ;;  %v1365_v28 = vsub.f32 2.0, %v1301_v41 }
 0x198   : > { %v1586_v62 = vmul.f32 %v1522_v19, %v4625_v20  ;;  %v1682_v54 = vadd.f32 1.4214138, %v1618_v27  ;;  %v1523_v1 = vadd.f32 -1.4531521, %v1459_v51  ;;  %v1619_v44 = vmul.f32 %v1555_v32, %v4628_v18  ;;  %v4707_v27 = vpop.f32.mrb[17].mxu0 }
 0x199   : > { %7812 = vst [vmem:[#allocation35_spill] sm:$0xff] %v4679_v7  ;;  %v3748_v46 = vpop.eup %3747  ;;  %7813 = vst [vmem:[#allocation36_spill] sm:$0xff] %v4687_v39  ;;  %v1588_v60 = vmul.f32 %v1524_v50, %v4630_v55  ;;  %v1492_v52 = vmul.f32 1.0614054, %v4671_v37  ;;  %v1525_v38 = vadd.f32 -1.4531521, %v1461_v58  ;;  %v4699_v61 = vadd.f32 %v4442_v9, %v4482_v30 }
 0x19a   : > { %v4689_v53 = vpop.eup %3749  ;;  %v2230_v4 = vmul.f32 1.442695, %v2132_v5  ;;  %v2037_v23 = vsub.f32 0.0, %v4552_v59  ;;  %v1270_v41 = vmul.f32 %v3748_v46, %v4611_v24  ;;  %v4705_v19 = vadd.f32 %v4444_v10, %v4492_v34  ;;  %7815 = vst [vmem:[#allocation38_spill] sm:$0xff] %v4707_v27  ;;  %v4747_v27 = vpop.f32.mrb[17].mxu1 }
 0x19b   : > { %v4693_v48 = vpop.eup %3751  ;;  %3757 = vpow2.f32 %v2166_v42  ;;  %v4710_v51 = vmul.f32 %v3746_v47, %v1365_v28  ;;  %v4714_v9 = vadd.f32 %v4446_v11, %v4492_v34  ;;  %v1650_v50 = vadd.f32 1.4214138, %v1586_v62  ;;  %7820 = vst [vmem:[#allocation42_spill] sm:$0xff] %v4747_v27 }
 0x19c   : > { %7814 = vst [vmem:[#allocation37_spill] sm:$0xff] %v4705_v19  ;;  %v4716_v32 = vpop.eup %3753  ;;  %v1746_v24 = vmul.f32 %v1682_v54, %v4606_v0  ;;  %v1587_v58 = vmul.f32 %v1523_v1, %v4645_v6  ;;  %v1683_v10 = vadd.f32 1.4214138, %v1619_v44  ;;  %v1652_v5 = vadd.f32 1.4214138, %v1588_v60 }
 0x19d   : > { %7816 = vst [vmem:[#allocation39_spill] sm:$0xff] %v4714_v9  ;;  %v1556_v17 = vadd.f32 -1.4531521, %v1492_v52  ;;  %v1589_v42 = vmul.f32 %v1525_v38, %v4650_v63  ;;  %v4722_v39 = vmul.f32 0.70710677, %v4699_v61  ;;  %3759 = vpow2.f32 %v2230_v4 }
 0x19e   : > { %v2101_v47 = vmul.f32 %v2037_v23, %v4552_v59  ;;  %v1334_v11 = vsub.f32 2.0, %v1270_v41  ;;  %v4726_v28 = vmul.f32 0.70710677, %v4705_v19  ;;  %v7817_v62 = vmov 1.0  }
 0x19f   : > { %v4731_v54 = vsel %vm917_vm7, -1.0, %v7817_v62  ;;  %v1493_v1 = vmul.f32 1.0614054, %v4710_v51  ;;  %v2069_v44 = vsub.f32 0.0, %v4573_v25  ;;  %v4736_v60 = vmul.f32 0.70710677, %v4714_v9 }
 0x1a0   : > { %7818 = vst [vmem:[#allocation40_spill] sm:$0xff] %v4731_v54  ;;  %v4738_v52 = vpop.eup %3755  ;;  %v1714_v59 = vmul.f32 %v1650_v50, %v4625_v20  ;;  %v1810_v38 = vadd.f32 -0.28449672, %v1746_v24  ;;  %v1651_v4 = vadd.f32 1.4214138, %v1587_v58  ;;  %v1747_v23 = vmul.f32 %v1683_v10, %v4628_v18 }
 0x1a1   : > { %7819 = vst [vmem:[#allocation41_spill] sm:$0xff] %v4736_v60  ;;  %v1716_v41 = vmul.f32 %v1652_v5, %v4630_v55  ;;  %v1620_v3 = vmul.f32 %v1556_v17, %v4671_v37  ;;  %v1653_v45 = vadd.f32 1.4214138, %v1589_v42  ;;  %v4745_v35 = vand.u32 2147483647, %v4722_v39 }
 0x1a2   : > { %v2168_v40 = vmul.f32 1.442695, %v2101_v47  ;;  %v4749_v2 = vmul.f32 %v3748_v46, %v1334_v11  ;;  %v4752_v54 = vand.u32 2147483647, %v4726_v28  ;;  %v4756_v50 = vadd.f32 %v4448_v12, %v4482_v30 }
 0x1a3   : > { %v1557_v24 = vadd.f32 -1.4531521, %v1493_v1  ;;  %v2133_v58 = vmul.f32 %v2069_v44, %v4573_v25  ;;  %v4760_v17 = vmul.f32 0.5, %v4570_v22  ;;  %v4763_v10 = vand.u32 2147483647, %v4736_v60 }
 0x1a4   : > { %7821 = vst [vmem:[#allocation43_spill] sm:$0xff] %v4756_v50  ;;  %v1778_v5 = vadd.f32 -0.28449672, %v1714_v59  ;;  %v1874_v46 = vmul.f32 %v1810_v38, %v4606_v0  ;;  %v1715_v42 = vmul.f32 %v1651_v4, %v4645_v6  ;;  %v1811_v47 = vadd.f32 -0.28449672, %v1747_v23 }
 0x1a5   : > { %7822 = vst [vmem:[#allocation44_spill] sm:$0xff] %v4760_v17  ;;  %v4767_v11 = vpop.eup %3757  ;;  %v1780_v27 = vadd.f32 -0.28449672, %v1716_v41  ;;  %v1684_v12 = vadd.f32 1.4214138, %v1620_v3  ;;  %v1717_v1 = vmul.f32 %v1653_v45, %v4650_v63  ;;  %3761 = vpow2.f32 %v2168_v40 }
 0x1a6   : > { %v1110_v25 = vmul.f32 0.3275911, %v4745_v35  ;;  %v1462_v22 = vmul.f32 1.0614054, %v4749_v2  ;;  %v1079_v44 = vmul.f32 0.3275911, %v4752_v54  ;;  %v1621_v38 = vmul.f32 %v1557_v24, %v4710_v51 }
 0x1a7   : > { %v4774_v59 = vmul.f32 0.70710677, %v4756_v50  ;;  %v2232_v4 = vmul.f32 1.442695, %v2133_v58  ;;  %v1111_v23 = vmul.f32 0.3275911, %v4763_v10  ;;  %v4780_v41 = vadd.f32 %v4450_v13, %v4482_v30  ;;  %v4782_v45 = vpop.eup %3759 }
 0x1a8   : > { %v1842_v40 = vmul.f32 %v1778_v5, %v4625_v20  ;;  %v1938_v3 = vadd.f32 0.2548296, %v1874_v46  ;;  %v1779_v17 = vadd.f32 -0.28449672, %v1715_v42  ;;  %v1875_v60 = vmul.f32 %v1811_v47, %v4628_v18 }
 0x1a9   : > { %7823 = vst [vmem:[#allocation45_spill] sm:$0xff] %v4774_v59  ;;  %7824 = vst [vmem:[#allocation46_spill] sm:$0xff] %v4780_v41  ;;  %v1844_v50 = vmul.f32 %v1780_v27, %v4630_v55  ;;  %v1748_v7 = vmul.f32 %v1684_v12, %v4671_v37  ;;  %v1781_v24 = vadd.f32 -0.28449672, %v1717_v1  ;;  %v4788_v58 = vadd.f32 1.0, %v1110_v25 }
 0x1aa   : > { %v1526_v9 = vadd.f32 -1.4531521, %v1462_v22  ;;  %v4790_v19 = vadd.f32 1.0, %v1079_v44  ;;  %v4793_v13 = vand.u32 2147483647, %v4774_v59  ;;  %v4797_v5 = vadd.f32 %v4452_v14, %v4492_v34 }
 0x1ab   : > { %v1685_v46 = vadd.f32 1.4214138, %v1621_v38  ;;  %v4799_v42 = vadd.f32 1.0, %v1111_v23  ;;  %v4802_v27 = vmul.f32 0.70710677, %v4780_v41  ;;  %v4806_v47 = vadd.f32 %v4454_v15, %v4492_v34 }
 0x1ac   : > { %7825 = vst [vmem:[#allocation47_spill] sm:$0xff] %v4797_v5  ;;  %v1906_v12 = vadd.f32 0.2548296, %v1842_v40  ;;  %v2002_v1 = vmul.f32 %v1938_v3, %v4606_v0  ;;  %v1843_v25 = vmul.f32 %v1779_v17, %v4645_v6  ;;  %v1939_v22 = vadd.f32 0.2548296, %v1875_v60 }
 0x1ad   : > { %7826 = vst [vmem:[#allocation48_spill] sm:$0xff] %v4802_v27  ;;  %7827 = vst [vmem:[#allocation49_spill] sm:$0xff] %v4806_v47  ;;  %v1908_v44 = vadd.f32 0.2548296, %v1844_v50  ;;  %v1812_v59 = vadd.f32 -0.28449672, %v1748_v7  ;;  %v1845_v14 = vmul.f32 %v1781_v24, %v4650_v63  ;;  %3763 = vrcp.f32 %v4788_v58 }
 0x1ae   : > { %v1590_v38 = vmul.f32 %v1526_v9, %v4749_v2  ;;  %3765 = vrcp.f32 %v4790_v19  ;;  %v1080_v23 = vmul.f32 0.3275911, %v4793_v13  ;;  %v4816_v15 = vmul.f32 0.70710677, %v4797_v5  ;;  %v4829_v24 = vpop.f32.mrb[18].mxu0 }
 0x1af   : > { %v1749_v0 = vmul.f32 %v1685_v46, %v4710_v51  ;;  %3767 = vrcp.f32 %v4799_v42  ;;  %v4821_v60 = vand.u32 2147483647, %v4802_v27  ;;  %v4824_v7 = vmul.f32 0.70710677, %v4806_v47  ;;  %v3762_v50 = vpop.eup %3761  ;;  %7828 = vst [vmem:[#allocation50_spill] sm:$0xff] %v4829_v24 }
 0x1b0   : > { %v1970_v9 = vmul.f32 %v1906_v12, %v4625_v20  ;;  %v2322_v17 = vmul.f32 %v4693_v48, %v2002_v1  ;;  %v1907_v40 = vadd.f32 0.2548296, %v1843_v25  ;;  %v2003_v3 = vmul.f32 %v1939_v22, %v4628_v18 }
 0x1b1   : > { %v1972_v46 = vmul.f32 %v1908_v44, %v4630_v55  ;;  %v1876_v5 = vmul.f32 %v1812_v59, %v4671_v37  ;;  %v1909_v34 = vadd.f32 0.2548296, %v1845_v14  ;;  %v2038_v27 = vsub.f32 0.0, %v4582_v8 }
 0x1b2   : > { %v1654_v47 = vadd.f32 1.4214138, %v1590_v38  ;;  %v4835_v41 = vadd.f32 1.0, %v1080_v23  ;;  %v4838_v20 = vand.u32 2147483647, %v4816_v15  ;;  %3769 = vpow2.f32 %v2232_v4 }
 0x1b3   : > { %v1813_v48 = vadd.f32 -0.28449672, %v1749_v0  ;;  %v1112_v18 = vmul.f32 0.3275911, %v4821_v60  ;;  %v4842_v12 = vand.u32 2147483647, %v4824_v7  ;;  %v2290_v55 = vmul.f32 %v4689_v53, %v1970_v9 }
 0x1b4   : > { %v1971_v59 = vmul.f32 %v1907_v40, %v4645_v6  ;;  %v2323_v1 = vmul.f32 %v4738_v52, %v2003_v3  ;;  %v4849_v25 = vadd.f32 %v4456_v16, %v4482_v30  ;;  %v2386_v22 = vsub.f32 1.0, %v2322_v17 }
 0x1b5   : > { %v2292_v44 = vmul.f32 %v4767_v11, %v1972_v46  ;;  %v1940_v14 = vadd.f32 0.2548296, %v1876_v5  ;;  %v2102_v4 = vmul.f32 %v2038_v27, %v4582_v8  ;;  %v1973_v38 = vmul.f32 %v1909_v34, %v4650_v63  ;;  %v4866_v5 = vpop.f32.mrb[18].mxu1 }
 0x1b6   : > { %v1718_v23 = vmul.f32 %v1654_v47, %v4749_v2  ;;  %3771 = vrcp.f32 %v4835_v41  ;;  %v1081_v6 = vmul.f32 0.3275911, %v4838_v20  ;;  %v1877_v52 = vmul.f32 %v1813_v48, %v4710_v51  ;;  %7829 = vst [vmem:[#allocation51_spill] sm:$0xff] %v4866_v5 }
 0x1b7   : > { %v3764_v53 = vpop.eup %3763  ;;  %v4861_v16 = vsel %vm886_vm8, -1.0, %v7817_v62  ;;  %v4863_v11 = vadd.f32 1.0, %v1112_v18  ;;  %v1113_v8 = vmul.f32 0.3275911, %v4842_v12  ;;  %v2354_v63 = vsub.f32 1.0, %v2290_v55 }
 0x1b8   : > { %v3766_v34 = vpop.eup %3765  ;;  %v2291_v27 = vmul.f32 %v4716_v32, %v1971_v59  ;;  %v2387_v47 = vsub.f32 1.0, %v2323_v1  ;;  %v4870_v0 = vmul.f32 0.70710677, %v4849_v25  ;;  %v2450_v17 = vmul.f32 %v2386_v22, %v4621_v26 }
 0x1b9   : > { %v3768_v9 = vpop.eup %3767  ;;  %v2356_v56 = vsub.f32 1.0, %v2292_v44  ;;  %v2004_v40 = vmul.f32 %v1940_v14, %v4671_v37  ;;  %v2170_v3 = vmul.f32 1.442695, %v2102_v4  ;;  %v2293_v46 = vmul.f32 %v3762_v50, %v1973_v38 }
 0x1ba   : > { %v1782_v48 = vadd.f32 -0.28449672, %v1718_v23  ;;  %v1302_v18 = vmul.f32 %v3764_v53, %v4788_v58  ;;  %v4875_v5 = vadd.f32 1.0, %v1081_v6  ;;  %v1941_v55 = vadd.f32 0.2548296, %v1877_v52  ;;  %v4895_v6 = vpop.f32.mrb[19].mxu0 }
 0x1bb   : > { %v1271_v32 = vmul.f32 %v3766_v34, %v4790_v19  ;;  %3773 = vrcp.f32 %v4863_v11  ;;  %v4879_v59 = vadd.f32 1.0, %v1113_v8  ;;  %v2355_v1 = vsub.f32 1.0, %v2291_v27  ;;  %7831 = vst [vmem:[#allocation53_spill] sm:$0xff] %v4895_v6  ;;  %v7868_v6 = vld [vmem:[#allocation44_spill] sm:$0xff] }
 0x1bc   : > { %v2451_v26 = vmul.f32 %v2387_v47, %v4638_v29  ;;  %v1303_v22 = vmul.f32 %v3768_v9, %v4799_v42  ;;  %v4884_v37 = vand.u32 2147483647, %v4870_v0  ;;  %v3770_v50 = vpop.eup %3769  ;;  %v2514_v44 = vadd.f32 1.0, %v2450_v17 }
 0x1bd   : > { %v2420_v58 = vmul.f32 %v2356_v56, %v4669_v21  ;;  %v2324_v14 = vmul.f32 %v4782_v45, %v2004_v40  ;;  %3775 = vpow2.f32 %v2170_v3  ;;  %v2357_v19 = vsub.f32 1.0, %v2293_v46 }
 0x1be   : > { %v1846_v4 = vmul.f32 %v1782_v48, %v4749_v2  ;;  %v1366_v38 = vsub.f32 2.0, %v1302_v18  ;;  %3777 = vrcp.f32 %v4875_v5  ;;  %v4891_v29 = vmul.f32 %v2354_v63, %v4614_v57 }
 0x1bf   : > { %v2005_v42 = vmul.f32 %v1941_v55, %v4710_v51  ;;  %v1335_v23 = vsub.f32 2.0, %v1271_v32  ;;  %3779 = vrcp.f32 %v4879_v59  ;;  %v4898_v45 = vmul.f32 %v2355_v1, %v4634_v36  ;;  %v7833_v51 = vld [vmem:[#allocation30_spill] sm:$0xff]  ;;  %v4915_v55 = vpop.f32.mrb[19].mxu1 }
 0x1c0   : > { %7830 = vst [vmem:[#allocation52_spill] sm:$0xff] %v4891_v29  ;;  %v3772_v21 = vpop.eup %3771  ;;  %v2515_v52 = vadd.f32 1.0, %v2451_v26  ;;  %v1367_v8 = vsub.f32 2.0, %v1303_v22  ;;  %v1082_v27 = vmul.f32 0.3275911, %v4884_v37  ;;  %v2484_v47 = vadd.f32 1.0, %v2420_v58 }
 0x1c1   : > { %7832 = vst [vmem:[#allocation54_spill] sm:$0xff] %v4898_v45  ;;  %v2388_v17 = vsub.f32 1.0, %v2324_v14  ;;  %vm918_vm9 = vcmp.lt.f32.partialorder %v4722_v39, 0.0  ;;  %v2070_v57 = vsub.f32 0.0, %v4745_v35  ;;  %v4904_v63 = vmul.f32 %v2514_v44, %v7833_v51  ;;  %7835 = vst [vmem:[#allocation55_spill] sm:$0xff] %v4915_v55 }
 0x1c2   : > { %v2421_v56 = vmul.f32 %v2357_v19, %v4684_v43  ;;  %v1910_v40 = vadd.f32 0.2548296, %v1846_v4  ;;  %v4907_v3 = vmul.f32 %v3764_v53, %v1366_v38  ;;  %v2325_v36 = vmul.f32 %v3770_v50, %v2005_v42  ;;  %v7839_v19 = vld [vmem:[#allocation37_spill] sm:$0xff] }
 0x1c3   : > { %7834 = vst [vmem:[#allocation30_spill] sm:$0xff] %v4904_v63  ;;  %v4910_v46 = vmul.f32 0.5, %v4699_v61  ;;  %v4912_v48 = vmul.f32 %v3766_v34, %v1335_v23  ;;  %v1272_v18 = vmul.f32 %v3772_v21, %v4835_v41  ;;  %v4918_v39 = vmul.f32 %v2515_v52, %v4609_v33  ;;  %v7840_v52 = vld [vmem:[#allocation39_spill] sm:$0xff] }
 0x1c4   : > { %v4921_v32 = vsel %vm918_vm9, -1.0, %v7817_v62  ;;  %v4923_v43 = vmul.f32 %v3768_v9, %v1367_v8  ;;  %v4925_v53 = vadd.f32 1.0, %v1082_v27  ;;  %v4928_v61 = vmul.f32 %v2484_v47, %v4641_v31  ;;  %v7841_v27 = vld [vmem:[#allocation11_spill] sm:$0xff] }
 0x1c5   : > { %7836 = vst [vmem:[#allocation56_spill] sm:$0xff] %v4918_v39  ;;  %v3774_v1 = vpop.eup %3773  ;;  %v4931_v34 = vmul.f32 %v2388_v17, %v4675_v49  ;;  %v2134_v41 = vmul.f32 %v2070_v57, %v4745_v35  ;;  %v2039_v26 = vsub.f32 0.0, %v4752_v54  ;;  %v2485_v33 = vadd.f32 1.0, %v2421_v56  ;;  %v7842_v17 = vld [vmem:[#allocation35_spill] sm:$0xff] }
 0x1c6   : > { %7837 = vst [vmem:[#allocation57_spill] sm:$0xff] %v4928_v61  ;;  %v1974_v22 = vmul.f32 %v1910_v40, %v4749_v2  ;;  %v1494_v50 = vmul.f32 1.0614054, %v4907_v3  ;;  %vm887_vm10 = vcmp.lt.f32.partialorder %v4726_v28, 0.0  ;;  %v2389_v44 = vsub.f32 1.0, %v2325_v36  ;;  %v7844_v40 = vld [vmem:[#allocation40_spill] sm:$0xff] }
 0x1c7   : > { %7838 = vst [vmem:[#allocation58_spill] sm:$0xff] %v4931_v34  ;;  %v3776_v9 = vpop.eup %3775  ;;  %v1463_v58 = vmul.f32 1.0614054, %v4912_v48  ;;  %v2071_v31 = vsub.f32 0.0, %v4763_v10  ;;  %v1336_v14 = vsub.f32 2.0, %v1272_v18  ;;  %v4941_v4 = vmul.f32 0.5, %v7839_v19 }
 0x1c8   : > { %v3778_v49 = vpop.eup %3777  ;;  %v1495_v35 = vmul.f32 1.0614054, %v4923_v43  ;;  %v1304_v38 = vmul.f32 %v3774_v1, %v4863_v11  ;;  %3781 = vrcp.f32 %v4925_v53  ;;  %v2234_v42 = vmul.f32 1.442695, %v2134_v41  ;;  %v7859_v34 = vld [vmem:[#allocation49_spill] sm:$0xff] }
 0x1c9   : > { %v3780_v2 = vpop.eup %3779  ;;  %v2103_v23 = vmul.f32 %v2039_v26, %v4752_v54  ;;  %v4948_v8 = vmul.f32 0.5, %v7840_v52  ;;  %v4952_v47 = vadd.f32 %v7841_v27, %v4482_v30  ;;  %v4955_v57 = vmul.f32 %v2485_v33, %v7842_v17  ;;  %v7846_v52 = vld [vmem:[#allocation41_spill] sm:$0xff] }
 0x1ca   : > { %v2294_v51 = vmul.f32 %v3776_v9, %v1974_v22  ;;  %v1558_v56 = vadd.f32 -1.4531521, %v1494_v50  ;;  %v4960_v11 = vsel %vm887_vm10, -1.0, %v7817_v62  ;;  %v4963_v36 = vmul.f32 %v2389_v44, %v7844_v40  ;;  %v4994_v40 = vpop.f32.mrb[20].mxu1 }
 0x1cb   : > { %7843 = vst [vmem:[#allocation37_spill] sm:$0xff] %v4955_v57  ;;  %v1527_v54 = vadd.f32 -1.4531521, %v1463_v58  ;;  %v2135_v18 = vmul.f32 %v2071_v31, %v4763_v10  ;;  %v4966_v41 = vmul.f32 %v3772_v21, %v1336_v14  ;;  %v1559_v26 = vadd.f32 -1.4531521, %v1495_v35  ;;  %v7847_v10 = vld [vmem:[#allocation43_spill] sm:$0xff] }
 0x1cc   : > { %7845 = vst [vmem:[#allocation39_spill] sm:$0xff] %v4963_v36  ;;  %v1368_v19 = vsub.f32 2.0, %v1304_v38  ;;  %v1273_v33 = vmul.f32 %v3778_v49, %v4875_v5  ;;  %v1305_v22 = vmul.f32 %v3780_v2, %v4879_v59  ;;  %3783 = vpow2.f32 %v2234_v42  ;;  %v4979_v31 = vpop.f32.mrb[20].mxu0  ;;  %v7849_v14 = vld [vmem:[#allocation45_spill] sm:$0xff]  ;;  %7850 = vst [vmem:[#allocation35_spill] sm:$0xff] %v4994_v40  ;;  %v7854_v57 = vld [vmem:[#allocation23_spill] sm:$0xff] }
 0x1cd   : > { %v2172_v50 = vmul.f32 1.442695, %v2103_v23  ;;  %v2040_v28 = vsub.f32 0.0, %v4793_v13  ;;  %v4972_v9 = vmul.f32 0.70710677, %v4952_v47  ;;  %v2358_v44 = vsub.f32 1.0, %v2294_v51 }
 0x1ce   : > { %v1622_v58 = vmul.f32 %v1558_v56, %v4907_v3  ;;  %vm919_vm11 = vcmp.lt.f32.partialorder %v7846_v52, 0.0  ;;  %v4977_v21 = vmul.f32 0.5, %v7847_v10  ;;  %7848 = vst [vmem:[#allocation11_spill] sm:$0xff] %v4979_v31  ;;  %v1591_v5 = vmul.f32 %v1527_v54, %v4912_v48 }
 0x1cf   : > { %v2236_v59 = vmul.f32 1.442695, %v2135_v18  ;;  %vm888_vm12 = vcmp.lt.f32.partialorder %v7849_v14, 0.0  ;;  %v1464_v35 = vmul.f32 1.0614054, %v4966_v41  ;;  %v1623_v38 = vmul.f32 %v1559_v26, %v4923_v43  ;;  %v7851_v26 = vld [vmem:[#allocation46_spill] sm:$0xff] }
 0x1d0   : > { %v4985_v42 = vmul.f32 %v3774_v1, %v1368_v19  ;;  %v1337_v23 = vsub.f32 2.0, %v1273_v33  ;;  %v1369_v27 = vsub.f32 2.0, %v1305_v22  ;;  %3785 = vpow2.f32 %v2172_v50  ;;  %v7853_v50 = vld [vmem:[#allocation48_spill] sm:$0xff] }
 0x1d1   : > { %v4988_v17 = vsel %vm919_vm11, -1.0, %v7817_v62  ;;  %v2104_v51 = vmul.f32 %v2040_v28, %v4793_v13  ;;  %v4992_v56 = vand.u32 2147483647, %v4972_v9  ;;  %v2422_v18 = vmul.f32 %v2358_v44, %v4861_v16 }
 0x1d2   : > { %v3782_v54 = vpop.eup %3781  ;;  %v1686_v52 = vadd.f32 1.4214138, %v1622_v58  ;;  %v4998_v1 = vsel %vm888_vm12, -1.0, %v7817_v62  ;;  %v5001_v19 = vmul.f32 0.5, %v7851_v26  ;;  %v1655_v33 = vadd.f32 1.4214138, %v1591_v5 }
 0x1d3   : > { %3787 = vpow2.f32 %v2236_v59  ;;  %v1528_v22 = vadd.f32 -1.4531521, %v1464_v35  ;;  %vm920_vm13 = vcmp.lt.f32.partialorder %v7853_v50, 0.0  ;;  %v1687_v13 = vadd.f32 1.4214138, %v1623_v38  ;;  %v7855_v26 = vld [vmem:[#allocation12_spill] sm:$0xff] }
 0x1d4   : > { %7852 = vst [vmem:[#allocation40_spill] sm:$0xff] %v5001_v19  ;;  %v1496_v28 = vmul.f32 1.0614054, %v4985_v42  ;;  %v5005_v10 = vmul.f32 %v3778_v49, %v1337_v23  ;;  %v5007_v14 = vmul.f32 %v3780_v2, %v1369_v27  ;;  %v2174_v16 = vmul.f32 1.442695, %v2104_v51  ;;  %v7856_v49 = vld [vmem:[#allocation47_spill] sm:$0xff] }
 0x1d5   : > { %v1274_v44 = vmul.f32 %v3782_v54, %v4925_v53  ;;  %v1114_v58 = vmul.f32 0.3275911, %v4992_v56  ;;  %v5013_v61 = vadd.f32 %v7855_v26, %v7854_v57  ;;  %v1750_v5 = vmul.f32 %v1686_v52, %v4907_v3  ;;  %v5028_v51 = vpop.f32.mrb[21].mxu0 }
 0x1d6   : > { %v5017_v59 = vsel %vm920_vm13, -1.0, %v7817_v62  ;;  %v2072_v35 = vsub.f32 0.0, %v4821_v60  ;;  %v5021_v38 = vmul.f32 0.5, %v7856_v49  ;;  %v5023_v2 = vpop.eup %3783  ;;  %v2486_v23 = vadd.f32 1.0, %v2422_v18  ;;  %7858 = vst [vmem:[#allocation43_spill] sm:$0xff] %v5028_v51 }
 0x1d7   : > { %v1719_v53 = vmul.f32 %v1655_v33, %v4912_v48  ;;  %v1592_v27 = vmul.f32 %v1528_v22, %v4966_v41  ;;  %vm889_vm14 = vcmp.lt.f32.partialorder %v4816_v15, 0.0  ;;  %v1751_v52 = vmul.f32 %v1687_v13, %v4923_v43 }
 0x1d8   : > { %7857 = vst [vmem:[#allocation41_spill] sm:$0xff] %v5021_v38  ;;  %v1560_v50 = vadd.f32 -1.4531521, %v1496_v28  ;;  %v1465_v26 = vmul.f32 1.0614054, %v5005_v10  ;;  %3789 = vpow2.f32 %v2174_v16  ;;  %v1338_v49 = vsub.f32 2.0, %v1274_v44 }
 0x1d9   : > { %v1497_v39 = vmul.f32 1.0614054, %v5007_v14  ;;  %v5033_v63 = vadd.f32 1.0, %v1114_v58  ;;  %v5036_v18 = vmul.f32 0.70710677, %v5013_v61  ;;  %v2136_v22 = vmul.f32 %v2072_v35, %v4821_v60  ;;  %v7861_v44 = vld [vmem:[#allocation13_spill] sm:$0xff] }
 0x1da   : > { %v1814_v33 = vadd.f32 -0.28449672, %v1750_v5  ;;  %v2041_v36 = vsub.f32 0.0, %v4838_v20  ;;  %v5041_v45 = vmul.f32 0.5, %v7859_v34  ;;  %v5043_v13 = vpop.eup %3785  ;;  %v1783_v28 = vadd.f32 -0.28449672, %v1719_v53 }
 0x1db   : > { %v1656_v29 = vadd.f32 1.4214138, %v1592_v27  ;;  %v5048_v16 = vsel %vm889_vm14, -1.0, %v7817_v62  ;;  %v5052_v58 = vadd.f32 %v7861_v44, %v7854_v57  ;;  %v1815_v5 = vadd.f32 -0.28449672, %v1751_v52  ;;  %v5064_v27 = vpop.f32.mrb[21].mxu1 }
 0x1dc   : > { %7860 = vst [vmem:[#allocation45_spill] sm:$0xff] %v5041_v45  ;;  %v1624_v60 = vmul.f32 %v1560_v50, %v4985_v42  ;;  %v1529_v35 = vadd.f32 -1.4531521, %v1465_v26  ;;  %v1561_v51 = vadd.f32 -1.4531521, %v1497_v39  ;;  %vm921_vm15 = vcmp.lt.f32.partialorder %v4824_v7, 0.0 }
 0x1dd   : > { %7862 = vst [vmem:[#allocation46_spill] sm:$0xff] %v5052_v58  ;;  %v5055_v34 = vpop.eup %3787  ;;  %v5058_v53 = vmul.f32 %v3782_v54, %v1338_v49  ;;  %3791 = vrcp.f32 %v5033_v63  ;;  %v5062_v15 = vand.u32 2147483647, %v5036_v18  ;;  %7863 = vst [vmem:[#allocation48_spill] sm:$0xff] %v5064_v27  ;;  %v1878_v44 = vmul.f32 %v1814_v33, %v4907_v3  ;;  %v7864_v39 = vld [vmem:[#allocation14_spill] sm:$0xff] }
 0x1de   : > { %v2238_v52 = vmul.f32 1.442695, %v2136_v22  ;;  %v2105_v50 = vmul.f32 %v2041_v36, %v4838_v20  ;;  %v5070_v26 = vadd.f32 %v7864_v39, %v4482_v30  ;;  %v1847_v40 = vmul.f32 %v1783_v28, %v4912_v48  ;;  %v7866_v28 = vld [vmem:[#allocation15_spill] sm:$0xff] }
 0x1df   : > { %v1720_v54 = vmul.f32 %v1656_v29, %v4966_v41  ;;  %v2073_v49 = vsub.f32 0.0, %v4842_v12  ;;  %v5076_v31 = vmul.f32 0.70710677, %v5052_v58  ;;  %v1879_v27 = vmul.f32 %v1815_v5, %v4923_v43 }
 0x1e0   : > { %v1688_v55 = vadd.f32 1.4214138, %v1624_v60  ;;  %v1593_v33 = vmul.f32 %v1529_v35, %v5005_v10  ;;  %v1625_v20 = vmul.f32 %v1561_v51, %v5007_v14  ;;  %v5084_v36 = vsel %vm921_vm15, -1.0, %v7817_v62 }
 0x1e1   : > { %7865 = vst [vmem:[#allocation23_spill] sm:$0xff] %v5084_v36  ;;  %v1466_v22 = vmul.f32 1.0614054, %v5058_v53  ;;  %v1083_v29 = vmul.f32 0.3275911, %v5062_v15  ;;  %v5090_v39 = vadd.f32 %v7866_v28, %v4482_v30  ;;  %v5093_v5 = vmul.f32 %v2486_v23, %v7868_v6 }
 0x1e2   : > { %v1942_v60 = vadd.f32 0.2548296, %v1878_v44  ;;  %v2176_v35 = vmul.f32 1.442695, %v2105_v50  ;;  %v5096_v51 = vmul.f32 0.70710677, %v5070_v26  ;;  %v5098_v24 = vpop.eup %3789  ;;  %v2137_v38 = vmul.f32 %v2073_v49, %v4842_v12 }
 0x1e3   : > { %7867 = vst [vmem:[#allocation12_spill] sm:$0xff] %v5090_v39  ;;  %7869 = vst [vmem:[#allocation47_spill] sm:$0xff] %v5093_v5  ;;  %v1911_v7 = vadd.f32 0.2548296, %v1847_v40  ;;  %v1784_v45 = vadd.f32 -0.28449672, %v1720_v54  ;;  %v1752_v28 = vmul.f32 %v1688_v55, %v4985_v42  ;;  %3793 = vpow2.f32 %v2238_v52 }
 0x1e4   : > { %v5102_v19 = vand.u32 2147483647, %v5076_v31  ;;  %v1943_v58 = vadd.f32 0.2548296, %v1879_v27  ;;  %v1657_v36 = vadd.f32 1.4214138, %v1593_v33  ;;  %v2006_v40 = vmul.f32 %v1942_v60, %v4907_v3 }
 0x1e5   : > { %v1689_v6 = vadd.f32 1.4214138, %v1625_v20  ;;  %v1530_v23 = vadd.f32 -1.4531521, %v1466_v22  ;;  %v5105_v44 = vadd.f32 1.0, %v1083_v29  ;;  %3795 = vpow2.f32 %v2176_v35  ;;  %v5117_v27 = vpop.f32.mrb[22].mxu0 }
 0x1e6   : > { %v5108_v50 = vmul.f32 0.70710677, %v5090_v39  ;;  %v5112_v12 = vmul.f32 0.5, %v4849_v25  ;;  %v5115_v54 = vand.u32 2147483647, %v5096_v51  ;;  %7872 = vst [vmem:[#allocation14_spill] sm:$0xff] %v5117_v27  ;;  %v1848_v52 = vmul.f32 %v1784_v45, %v4966_v41 }
 0x1e7   : > { %v3792_v55 = vpop.eup %3791  ;;  %v2240_v49 = vmul.f32 1.442695, %v2137_v38  ;;  %v1115_v33 = vmul.f32 0.3275911, %v5102_v19  ;;  %v7873_v20 = vld [vmem:[#allocation16_spill] sm:$0xff]  ;;  %v1975_v3 = vmul.f32 %v1911_v7, %v4912_v48  ;;  %v2007_v25 = vmul.f32 %v1943_v58, %v4923_v43 }
 0x1e8   : > { %7870 = vst [vmem:[#allocation49_spill] sm:$0xff] %v5108_v50  ;;  %7871 = vst [vmem:[#allocation13_spill] sm:$0xff] %v5112_v12  ;;  %v5123_v22 = vadd.f32 %v7873_v20, %v7854_v57  ;;  %v1816_v29 = vadd.f32 -0.28449672, %v1752_v28  ;;  %v1721_v60 = vmul.f32 %v1657_v36, %v5005_v10  ;;  %v1753_v35 = vmul.f32 %v1689_v6, %v5007_v14 }
 0x1e9   : > { %v1594_v5 = vmul.f32 %v1530_v23, %v5058_v53  ;;  %3797 = vrcp.f32 %v5105_v44  ;;  %v5132_v45 = vand.u32 2147483647, %v5108_v50  ;;  %v2326_v38 = vmul.f32 %v5023_v2, %v2006_v40 }
 0x1ea   : > { %7874 = vst [vmem:[#allocation15_spill] sm:$0xff] %v5123_v22  ;;  %vm890_vm0 = vcmp.lt.f32.partialorder %v4870_v0, 0.0  ;;  %v1306_v48 = vmul.f32 %v3792_v55, %v5033_v63  ;;  %v1084_v43 = vmul.f32 0.3275911, %v5115_v54  ;;  %v1912_v58 = vadd.f32 0.2548296, %v1848_v52 }
 0x1eb   : > { %v2042_v36 = vsub.f32 0.0, %v4884_v37  ;;  %v5139_v7 = vadd.f32 1.0, %v1115_v33  ;;  %v5142_v28 = vmul.f32 0.70710677, %v5123_v22  ;;  %v2295_v6 = vmul.f32 %v5043_v13, %v1975_v3  ;;  %v7875_v33 = vld [vmem:[#allocation17_spill] sm:$0xff] }
 0x1ec   : > { %v1880_v23 = vmul.f32 %v1816_v29, %v4985_v42  ;;  %v1785_v20 = vadd.f32 -0.28449672, %v1721_v60  ;;  %3799 = vpow2.f32 %v2240_v49  ;;  %v2327_v2 = vmul.f32 %v5055_v34, %v2007_v25 }
 0x1ed   : > { %v1817_v40 = vadd.f32 -0.28449672, %v1753_v35  ;;  %v1658_v63 = vadd.f32 1.4214138, %v1594_v5  ;;  %v1116_v27 = vmul.f32 0.3275911, %v5132_v45  ;;  %v5152_v22 = vadd.f32 %v7875_v33, %v7854_v57  ;;  %v3794_v39 = vpop.eup %3793 }
 0x1ee   : > { %v2390_v52 = vsub.f32 1.0, %v2326_v38  ;;  %v1370_v12 = vsub.f32 2.0, %v1306_v48  ;;  %v5148_v50 = vadd.f32 1.0, %v1084_v43  ;;  %v1976_v13 = vmul.f32 %v1912_v58, %v4966_v41  ;;  %v5170_v48 = vpop.f32.mrb[22].mxu1 }
 0x1ef   : > { %v2106_v3 = vmul.f32 %v2042_v36, %v4884_v37  ;;  %3801 = vrcp.f32 %v5139_v7  ;;  %v5158_v34 = vand.u32 2147483647, %v5142_v28  ;;  %v3796_v5 = vpop.eup %3795  ;;  %v2359_v49 = vsub.f32 1.0, %v2295_v6  ;;  %7876 = vst [vmem:[#allocation44_spill] sm:$0xff] %v5170_v48 }
 0x1f0   : > { %v1944_v25 = vadd.f32 0.2548296, %v1880_v23  ;;  %v1849_v29 = vmul.f32 %v1785_v20, %v5005_v10  ;;  %v5164_v60 = vsel %vm890_vm0, -1.0, %v7817_v62  ;;  %v2391_v35 = vsub.f32 1.0, %v2327_v2 }
 0x1f1   : > { %v1881_v41 = vmul.f32 %v1817_v40, %v5007_v14  ;;  %v1722_v37 = vmul.f32 %v1658_v63, %v5058_v53  ;;  %v5168_v38 = vadd.f32 1.0, %v1116_v27  ;;  %v2454_v43 = vmul.f32 %v2390_v52, %v4921_v32 }
 0x1f2   : > { %v5173_v58 = vmul.f32 %v3792_v55, %v1370_v12  ;;  %3803 = vrcp.f32 %v5148_v50  ;;  %v5177_v36 = vmul.f32 0.70710677, %v5152_v22  ;;  %v2296_v6 = vmul.f32 %v5098_v24, %v1976_v13 }
 0x1f3   : > { %v3798_v0 = vpop.eup %3797  ;;  %v2178_v23 = vmul.f32 1.442695, %v2106_v3  ;;  %v5181_v20 = vmul.f32 0.5, %v4952_v47  ;;  %v1085_v27 = vmul.f32 0.3275911, %v5158_v34  ;;  %v2423_v2 = vmul.f32 %v2359_v49, %v4960_v11 }
 0x1f4   : > { %v2008_v32 = vmul.f32 %v1944_v25, %v4985_v42  ;;  %v1913_v12 = vadd.f32 0.2548296, %v1849_v29  ;;  %vm922_vm1 = vcmp.lt.f32.partialorder %v4972_v9, 0.0  ;;  %v2455_v55 = vmul.f32 %v2391_v35, %v4988_v17  ;;  %v7877_v17 = vld [vmem:[#allocation18_spill] sm:$0xff] }
 0x1f5   : > { %v1945_v40 = vadd.f32 0.2548296, %v1881_v41  ;;  %v1786_v63 = vadd.f32 -0.28449672, %v1722_v37  ;;  %3805 = vrcp.f32 %v5168_v38  ;;  %v2518_v52 = vadd.f32 1.0, %v2454_v43 }
 0x1f6   : > { %v3800_v24 = vpop.eup %3799  ;;  %v1498_v47 = vmul.f32 1.0614054, %v5173_v58  ;;  %v1275_v33 = vmul.f32 %v3798_v0, %v5105_v44  ;;  %v5192_v13 = vand.u32 2147483647, %v5177_v36  ;;  %v2360_v11 = vsub.f32 1.0, %v2296_v6 }
 0x1f7   : > { %v2074_v42 = vsub.f32 0.0, %v4992_v56  ;;  %v5195_v3 = vadd.f32 1.0, %v1085_v27  ;;  %v5199_v49 = vadd.f32 %v7877_v17, %v4482_v30  ;;  %v2328_v25 = vmul.f32 %v3794_v39, %v2008_v32 }
 0x1f8   : > { %v1977_v29 = vmul.f32 %v1913_v12, %v5005_v10  ;;  %3807 = vpow2.f32 %v2178_v23  ;;  %v5205_v44 = vsel %vm922_vm1, -1.0, %v7817_v62  ;;  %v2487_v41 = vadd.f32 1.0, %v2423_v2  ;;  %v5213_v23 = vpop.f32.mrb[23].mxu0 }
 0x1f9   : > { %v3802_v35 = vpop.eup %3801  ;;  %v2519_v37 = vadd.f32 1.0, %v2455_v55  ;;  %v2009_v43 = vmul.f32 %v1945_v40, %v5007_v14  ;;  %v1850_v6 = vmul.f32 %v1786_v63, %v5058_v53  ;;  %v5210_v27 = vmul.f32 %v2518_v52, %v4910_v46  ;;  %7879 = vst [vmem:[#allocation17_spill] sm:$0xff] %v5213_v23  ;;  %v7880_v40 = vld [vmem:[#allocation19_spill] sm:$0xff] }
 0x1fa   : > { %v1562_v17 = vadd.f32 -1.4531521, %v1498_v47  ;;  %v1339_v39 = vsub.f32 2.0, %v1275_v33  ;;  %v1117_v10 = vmul.f32 0.3275911, %v5192_v13  ;;  %v2424_v9 = vmul.f32 %v2360_v11, %v4998_v1 }
 0x1fb   : > { %7878 = vst [vmem:[#allocation16_spill] sm:$0xff] %v5210_v27  ;;  %v2138_v32 = vmul.f32 %v2074_v42, %v4992_v56  ;;  %3809 = vrcp.f32 %v5195_v3  ;;  %v5219_v2 = vmul.f32 0.70710677, %v5199_v49  ;;  %v2392_v12 = vsub.f32 1.0, %v2328_v25 }
 0x1fc   : > { %v3804_v14 = vpop.eup %3803  ;;  %v2297_v55 = vmul.f32 %v3796_v5, %v1977_v29  ;;  %v1307_v46 = vmul.f32 %v3802_v35, %v5139_v7  ;;  %v5224_v63 = vadd.f32 %v7880_v40, %v4482_v30  ;;  %v5227_v52 = vmul.f32 %v2487_v41, %v4941_v4 }
 0x1fd   : > { %v5230_v1 = vmul.f32 %v2519_v37, %v4948_v8  ;;  %v2329_v56 = vmul.f32 %v3800_v24, %v2009_v43  ;;  %v1914_v47 = vadd.f32 0.2548296, %v1850_v6  ;;  %v1626_v33 = vmul.f32 %v1562_v17, %v5173_v58  ;;  %v5251_v17 = vpop.f32.mrb[23].mxu1 }
 0x1fe   : > { %7881 = vst [vmem:[#allocation18_spill] sm:$0xff] %v5227_v52  ;;  %v5234_v11 = vmul.f32 0.5, %v5013_v61  ;;  %v5236_v5 = vmul.f32 %v3798_v0, %v1339_v39  ;;  %v5238_v7 = vadd.f32 1.0, %v1117_v10  ;;  %v2488_v25 = vadd.f32 1.0, %v2424_v9  ;;  %7883 = vst [vmem:[#allocation59_spill] sm:$0xff] %v5251_v17 }
 0x1ff   : > { %7882 = vst [vmem:[#allocation19_spill] sm:$0xff] %v5230_v1  ;;  %v3806_v42 = vpop.eup %3805  ;;  %v2242_v29 = vmul.f32 1.442695, %v2138_v32  ;;  %v1276_v4 = vmul.f32 %v3804_v14, %v5148_v50  ;;  %v5242_v41 = vand.u32 2147483647, %v5219_v2  ;;  %v2456_v8 = vmul.f32 %v2392_v12, %v5017_v59 }
 0x200   : > { %v2361_v24 = vsub.f32 1.0, %v2297_v55  ;;  %v1371_v37 = vsub.f32 2.0, %v1307_v46  ;;  %v5246_v43 = vmul.f32 0.70710677, %v5224_v63  ;;  %v2393_v61 = vsub.f32 1.0, %v2329_v56 }
 0x201   : > { %v1978_v0 = vmul.f32 %v1914_v47, %v5058_v53  ;;  %vm891_vm2 = vcmp.lt.f32.partialorder %v5036_v18, 0.0  ;;  %v2043_v6 = vsub.f32 0.0, %v5062_v15  ;;  %v1690_v39 = vadd.f32 1.4214138, %v1626_v33  ;;  %v7885_v33 = vld [vmem:[#allocation23_spill] sm:$0xff] }
 0x202   : > { %v3808_v50 = vpop.eup %3807  ;;  %v1467_v10 = vmul.f32 1.0614054, %v5236_v5  ;;  %v1308_v59 = vmul.f32 %v3806_v42, %v5168_v38  ;;  %3811 = vrcp.f32 %v5238_v7  ;;  %v5257_v9 = vmul.f32 %v2488_v25, %v4977_v21 }
 0x203   : > { %3813 = vpow2.f32 %v2242_v29  ;;  %v1340_v32 = vsub.f32 2.0, %v1276_v4  ;;  %v1086_v53 = vmul.f32 0.3275911, %v5242_v41  ;;  %v2520_v12 = vadd.f32 1.0, %v2456_v8  ;;  %v7886_v4 = vld [vmem:[#allocation46_spill] sm:$0xff] }
 0x204   : > { %7884 = vst [vmem:[#allocation60_spill] sm:$0xff] %v5257_v9  ;;  %v2425_v55 = vmul.f32 %v2361_v24, %v5048_v16  ;;  %v5261_v46 = vmul.f32 %v3802_v35, %v1371_v37  ;;  %v5264_v40 = vand.u32 2147483647, %v5246_v43  ;;  %v2298_v47 = vmul.f32 %v3808_v50, %v1978_v0  ;;  %v7887_v50 = vld [vmem:[#allocation40_spill] sm:$0xff] }
 0x205   : > { %v3810_v56 = vpop.eup %3809  ;;  %v5269_v38 = vsel %vm891_vm2, -1.0, %v7817_v62  ;;  %v2107_v21 = vmul.f32 %v2043_v6, %v5062_v15  ;;  %vm923_vm3 = vcmp.lt.f32.partialorder %v5076_v31, 0.0  ;;  %v2457_v25 = vmul.f32 %v2393_v61, %v7885_v33 }
 0x206   : > { %v1754_v16 = vmul.f32 %v1690_v39, %v5173_v58  ;;  %v1531_v35 = vadd.f32 -1.4531521, %v1467_v10  ;;  %v1372_v29 = vsub.f32 2.0, %v1308_v59  ;;  %v5276_v8 = vmul.f32 0.5, %v7886_v4 }
 0x207   : > { %v2075_v24 = vsub.f32 0.0, %v5102_v19  ;;  %v5279_v37 = vmul.f32 %v3804_v14, %v1340_v32  ;;  %v5281_v18 = vadd.f32 1.0, %v1086_v53  ;;  %v2489_v0 = vadd.f32 1.0, %v2425_v55 }
 0x208   : > { %v1499_v15 = vmul.f32 1.0614054, %v5261_v46  ;;  %v1277_v6 = vmul.f32 %v3810_v56, %v5195_v3  ;;  %v1118_v61 = vmul.f32 0.3275911, %v5264_v40  ;;  %v5287_v39 = vmul.f32 %v2520_v12, %v7887_v50 }
 0x209   : > { %v2362_v10 = vsub.f32 1.0, %v2298_v47  ;;  %v2180_v59 = vmul.f32 1.442695, %v2107_v21  ;;  %v5292_v33 = vsel %vm923_vm3, -1.0, %v7817_v62  ;;  %v2521_v14 = vadd.f32 1.0, %v2457_v25  ;;  %v7889_v21 = vld [vmem:[#allocation41_spill] sm:$0xff] }
 0x20a   : > { %7888 = vst [vmem:[#allocation23_spill] sm:$0xff] %v5287_v39  ;;  %v1818_v32 = vadd.f32 -0.28449672, %v1754_v16  ;;  %v1595_v53 = vmul.f32 %v1531_v35, %v5236_v5  ;;  %v5295_v55 = vmul.f32 %v3806_v42, %v1372_v29  ;;  %v2139_v3 = vmul.f32 %v2075_v24, %v5102_v19  ;;  %v5306_v16 = vpop.f32.mrb[24].mxu0  ;;  %v5308_v42 = vpop.f32.mrb[24].mxu1  ;;  %v7893_v39 = vld [vmem:[#allocation45_spill] sm:$0xff] }
 0x20b   : > { %vm892_vm4 = vcmp.lt.f32.partialorder %v5096_v51, 0.0  ;;  %v1468_v12 = vmul.f32 1.0614054, %v5279_v37  ;;  %3815 = vrcp.f32 %v5281_v18  ;;  %v5302_v4 = vmul.f32 %v2489_v0, %v7889_v21  ;;  %7891 = vst [vmem:[#allocation40_spill] sm:$0xff] %v5306_v16  ;;  %7892 = vst [vmem:[#allocation41_spill] sm:$0xff] %v5308_v42 }
 0x20c   : > { %v3812_v47 = vpop.eup %3811  ;;  %v1563_v31 = vadd.f32 -1.4531521, %v1499_v15  ;;  %v1341_v50 = vsub.f32 2.0, %v1277_v6  ;;  %v5304_v25 = vadd.f32 1.0, %v1118_v61  ;;  %v2426_v19 = vmul.f32 %v2362_v10, %v5164_v60 }
 0x20d   : > { %7890 = vst [vmem:[#allocation46_spill] sm:$0xff] %v5302_v4  ;;  %v3814_v35 = vpop.eup %3813  ;;  %3817 = vpow2.f32 %v2180_v59  ;;  %v5312_v29 = vmul.f32 0.5, %v5070_v26  ;;  %v2044_v24 = vsub.f32 0.0, %v5115_v54  ;;  %v5316_v0 = vmul.f32 %v2521_v14, %v7893_v39  ;;  %v7895_v59 = vld [vmem:[#allocation12_spill] sm:$0xff] }
 0x20e   : > { %v1882_v15 = vmul.f32 %v1818_v32, %v5173_v58  ;;  %v1659_v6 = vadd.f32 1.4214138, %v1595_v53  ;;  %v1500_v61 = vmul.f32 1.0614054, %v5295_v55  ;;  %v2244_v21 = vmul.f32 1.442695, %v2139_v3 }
 0x20f   : > { %7894 = vst [vmem:[#allocation45_spill] sm:$0xff] %v5316_v0  ;;  %v5323_v1 = vsel %vm892_vm4, -1.0, %v7817_v62  ;;  %v1532_v60 = vadd.f32 -1.4531521, %v1468_v12  ;;  %v1309_v26 = vmul.f32 %v3812_v47, %v5238_v7  ;;  %v1627_v10 = vmul.f32 %v1563_v31, %v5261_v46  ;;  %v7896_v53 = vld [vmem:[#allocation49_spill] sm:$0xff]  ;;  %v5336_v3 = vpop.f32.mrb[25].mxu0 }
 0x210   : > { %v5328_v27 = vmul.f32 0.5, %v7895_v59  ;;  %v5330_v39 = vmul.f32 %v3810_v56, %v1341_v50  ;;  %3819 = vrcp.f32 %v5304_v25  ;;  %v2490_v14 = vadd.f32 1.0, %v2426_v19  ;;  %7897 = vst [vmem:[#allocation12_spill] sm:$0xff] %v5336_v3  ;;  %v7898_v19 = vld [vmem:[#allocation22_spill] sm:$0xff] }
 0x211   : > { %v2108_v32 = vmul.f32 %v2044_v24, %v5115_v54  ;;  %vm924_vm5 = vcmp.lt.f32.partialorder %v7896_v53, 0.0  ;;  %v2076_v51 = vsub.f32 0.0, %v5132_v45  ;;  %v1946_v12 = vadd.f32 0.2548296, %v1882_v15  ;;  %v7899_v53 = vld [vmem:[#allocation15_spill] sm:$0xff] }
 0x212   : > { %v1723_v7 = vmul.f32 %v1659_v6, %v5236_v5  ;;  %v1564_v31 = vadd.f32 -1.4531521, %v1500_v61  ;;  %v2045_v59 = vsub.f32 0.0, %v5158_v34  ;;  %3821 = vpow2.f32 %v2244_v21  ;;  %v7900_v61 = vld [vmem:[#allocation13_spill] sm:$0xff] }
 0x213   : > { %v1596_v56 = vmul.f32 %v1532_v60, %v5279_v37  ;;  %v1373_v50 = vsub.f32 2.0, %v1309_v26  ;;  %v5343_v0 = vadd.f32 %v7898_v19, %v7854_v57  ;;  %v1691_v54 = vadd.f32 1.4214138, %v1627_v10 }
 0x214   : > { %v5346_v24 = vsel %vm924_vm5, -1.0, %v7817_v62  ;;  %v5349_v4 = vmul.f32 0.5, %v7899_v53  ;;  %v1469_v15 = vmul.f32 1.0614054, %v5330_v39  ;;  %v5353_v9 = vmul.f32 %v2490_v14, %v7900_v61 }
 0x215   : > { %v3816_v6 = vpop.eup %3815  ;;  %v2182_v21 = vmul.f32 1.442695, %v2108_v32  ;;  %v2140_v60 = vmul.f32 %v2076_v51, %v5132_v45  ;;  %vm893_vm6 = vcmp.lt.f32.partialorder %v5142_v28, 0.0  ;;  %v2010_v26 = vmul.f32 %v1946_v12, %v5173_v58  ;;  %v7902_v51 = vld [vmem:[#allocation24_spill] sm:$0xff] }
 0x216   : > { %7901 = vst [vmem:[#allocation49_spill] sm:$0xff] %v5353_v9  ;;  %v1787_v10 = vadd.f32 -0.28449672, %v1723_v7  ;;  %v1628_v19 = vmul.f32 %v1564_v31, %v5295_v55  ;;  %v2109_v52 = vmul.f32 %v2045_v59, %v5158_v34  ;;  %v1660_v3 = vadd.f32 1.4214138, %v1596_v56 }
 0x217   : > { %v5360_v53 = vpop.eup %3817  ;;  %vm925_vm7 = vcmp.lt.f32.partialorder %v5177_v36, 0.0  ;;  %v5363_v42 = vmul.f32 %v3812_v47, %v1373_v50  ;;  %v5366_v14 = vmul.f32 0.70710677, %v5343_v0  ;;  %v1755_v45 = vmul.f32 %v1691_v54, %v5261_v46  ;;  %v5383_v54 = vpop.f32.mrb[25].mxu1 }
 0x218   : > { %v1533_v32 = vadd.f32 -1.4531521, %v1469_v15  ;;  %v1278_v58 = vmul.f32 %v3816_v6, %v5281_v18  ;;  %v5372_v12 = vadd.f32 %v7902_v51, %v7854_v57  ;;  %3823 = vpow2.f32 %v2182_v21  ;;  %7904 = vst [vmem:[#allocation15_spill] sm:$0xff] %v5383_v54 }
 0x219   : > { %v2246_v34 = vmul.f32 1.442695, %v2140_v60  ;;  %v5377_v7 = vsel %vm893_vm6, -1.0, %v7817_v62  ;;  %v5380_v47 = vmul.f32 0.5, %v5152_v22  ;;  %v2330_v59 = vmul.f32 %v3814_v35, %v2010_v26 }
 0x21a   : > { %v3820_v31 = vpop.eup %3819  ;;  %v1851_v56 = vmul.f32 %v1787_v10, %v5236_v5  ;;  %v1692_v50 = vadd.f32 1.4214138, %v1628_v19  ;;  %v2184_v18 = vmul.f32 1.442695, %v2109_v52  ;;  %v1724_v15 = vmul.f32 %v1660_v3, %v5279_v37  ;;  %v7906_v19 = vld [vmem:[#allocation25_spill] sm:$0xff] }
 0x21b   : > { %7903 = vst [vmem:[#allocation22_spill] sm:$0xff] %v5380_v47  ;;  %v5389_v61 = vsel %vm925_vm7, -1.0, %v7817_v62  ;;  %v1501_v28 = vmul.f32 1.0614054, %v5363_v42  ;;  %v5393_v22 = vand.u32 2147483647, %v5366_v14  ;;  %v1597_v35 = vmul.f32 %v1533_v32, %v5330_v39 }
 0x21c   : > { %v1819_v21 = vadd.f32 -0.28449672, %v1755_v45  ;;  %v1342_v60 = vsub.f32 2.0, %v1278_v58  ;;  %v5397_v52 = vmul.f32 0.70710677, %v5372_v12  ;;  %v5399_v26 = vpop.eup %3821  ;;  %v2077_v3 = vsub.f32 0.0, %v5192_v13 }
 0x21d   : > { %v5403_v36 = vmul.f32 0.5, %v5199_v49  ;;  %v1310_v10 = vmul.f32 %v3820_v31, %v5304_v25  ;;  %v5408_v51 = vadd.f32 %v7906_v19, %v4482_v30  ;;  %v2394_v45 = vsub.f32 1.0, %v2330_v59  ;;  %v5419_v19 = vpop.f32.mrb[26].mxu0 }
 0x21e   : > { %v1915_v9 = vadd.f32 0.2548296, %v1851_v56  ;;  %v1756_v32 = vmul.f32 %v1692_v50, %v5295_v55  ;;  %vm894_vm8 = vcmp.lt.f32.partialorder %v5219_v2, 0.0  ;;  %v1788_v58 = vadd.f32 -0.28449672, %v1724_v15  ;;  %7907 = vst [vmem:[#allocation24_spill] sm:$0xff] %v5419_v19 }
 0x21f   : > { %7905 = vst [vmem:[#allocation13_spill] sm:$0xff] %v5403_v36  ;;  %3825 = vpow2.f32 %v2246_v34  ;;  %v1565_v54 = vadd.f32 -1.4531521, %v1501_v28  ;;  %v1087_v16 = vmul.f32 0.3275911, %v5393_v22  ;;  %v1883_v49 = vmul.f32 %v1819_v21, %v5261_v46  ;;  %v7908_v34 = vld [vmem:[#allocation26_spill] sm:$0xff] }
 0x220   : > { %v1661_v17 = vadd.f32 1.4214138, %v1597_v35  ;;  %v5414_v23 = vmul.f32 %v3816_v6, %v1342_v60  ;;  %v5417_v25 = vand.u32 2147483647, %v5397_v52  ;;  %v2141_v59 = vmul.f32 %v2077_v3, %v5192_v13 }
 0x221   : > { %v1374_v56 = vsub.f32 2.0, %v1310_v10  ;;  %v5423_v50 = vmul.f32 0.70710677, %v5408_v51  ;;  %v5427_v15 = vadd.f32 %v7908_v34, %v4482_v30  ;;  %v2458_v28 = vmul.f32 %v2394_v45, %v5205_v44  ;;  %v7910_v34 = vld [vmem:[#allocation27_spill] sm:$0xff] }
 0x222   : > { %v1979_v6 = vmul.f32 %v1915_v9, %v5236_v5  ;;  %v1820_v21 = vadd.f32 -0.28449672, %v1756_v32  ;;  %v5434_v35 = vsel %vm894_vm8, -1.0, %v7817_v62  ;;  %v3824_v60 = vpop.eup %3823  ;;  %v1852_v13 = vmul.f32 %v1788_v58, %v5279_v37 }
 0x223   : > { %7909 = vst [vmem:[#allocation25_spill] sm:$0xff] %v5434_v35  ;;  %v1629_v3 = vmul.f32 %v1565_v54, %v5363_v42  ;;  %v5438_v10 = vadd.f32 1.0, %v1087_v16  ;;  %v5442_v19 = vadd.f32 %v7910_v34, %v7854_v57  ;;  %v1947_v44 = vadd.f32 0.2548296, %v1883_v49 }
 0x224   : > { %v1725_v5 = vmul.f32 %v1661_v17, %v5330_v39  ;;  %v1470_v9 = vmul.f32 1.0614054, %v5414_v23  ;;  %v1119_v2 = vmul.f32 0.3275911, %v5417_v25  ;;  %v2248_v45 = vmul.f32 1.442695, %v2141_v59 }
 0x225   : > { %7911 = vst [vmem:[#allocation26_spill] sm:$0xff] %v5442_v19  ;;  %v5447_v32 = vmul.f32 %v3820_v31, %v1374_v56  ;;  %v5450_v58 = vand.u32 2147483647, %v5423_v50  ;;  %v5453_v16 = vmul.f32 0.70710677, %v5427_v15  ;;  %v2522_v54 = vadd.f32 1.0, %v2458_v28 }
 0x226   : > { %v2299_v34 = vmul.f32 %v5360_v53, %v1979_v6  ;;  %v1884_v49 = vmul.f32 %v1820_v21, %v5295_v55  ;;  %v2046_v17 = vsub.f32 0.0, %v5242_v41  ;;  %v1916_v48 = vadd.f32 0.2548296, %v1852_v13 }
 0x227   : > { %v1693_v36 = vadd.f32 1.4214138, %v1629_v3  ;;  %3827 = vrcp.f32 %v5438_v10  ;;  %v5460_v31 = vmul.f32 0.70710677, %v5442_v19  ;;  %v2011_v59 = vmul.f32 %v1947_v44, %v5261_v46 }
 0x228   : > { %v1789_v56 = vadd.f32 -0.28449672, %v1725_v5  ;;  %v1534_v35 = vadd.f32 -1.4531521, %v1470_v9  ;;  %v5463_v47 = vadd.f32 1.0, %v1119_v2  ;;  %3829 = vpow2.f32 %v2184_v18  ;;  %v5479_v9 = vpop.f32.mrb[26].mxu1 }
 0x229   : > { %v3826_v28 = vpop.eup %3825  ;;  %v1502_v53 = vmul.f32 1.0614054, %v5447_v32  ;;  %v1088_v6 = vmul.f32 0.3275911, %v5450_v58  ;;  %v5468_v21 = vand.u32 2147483647, %v5453_v16  ;;  %3831 = vpow2.f32 %v2248_v45 }
 0x22a   : > { %v2363_v13 = vsub.f32 1.0, %v2299_v34  ;;  %v1948_v3 = vadd.f32 0.2548296, %v1884_v49  ;;  %v2110_v19 = vmul.f32 %v2046_v17, %v5242_v41  ;;  %v5472_v46 = vmul.f32 %v2522_v54, %v5181_v20  ;;  %7913 = vst [vmem:[#allocation61_spill] sm:$0xff] %v5479_v9 }
 0x22b   : > { %v1980_v44 = vmul.f32 %v1916_v48, %v5279_v37  ;;  %v1757_v5 = vmul.f32 %v1693_v36, %v5363_v42  ;;  %v5477_v18 = vand.u32 2147483647, %v5460_v31  ;;  %v2331_v2 = vmul.f32 %v5399_v26, %v2011_v59  ;;  %v7914_v37 = vld [vmem:[#allocation28_spill] sm:$0xff] }
 0x22c   : > { %7912 = vst [vmem:[#allocation27_spill] sm:$0xff] %v5472_v46  ;;  %v1853_v34 = vmul.f32 %v1789_v56, %v5330_v39  ;;  %v1598_v45 = vmul.f32 %v1534_v35, %v5414_v23  ;;  %3833 = vrcp.f32 %v5463_v47  ;;  %v1566_v41 = vadd.f32 -1.4531521, %v1502_v53 }
 0x22d   : > { %v5485_v20 = vadd.f32 1.0, %v1088_v6  ;;  %v1120_v48 = vmul.f32 0.3275911, %v5468_v21  ;;  %v5490_v36 = vadd.f32 %v7914_v37, %v7854_v57  ;;  %v2427_v54 = vmul.f32 %v2363_v13, %v5269_v38 }
 0x22e   : > { %v2012_v49 = vmul.f32 %v1948_v3, %v5295_v55  ;;  %v5495_v26 = vmul.f32 0.5, %v5224_v63  ;;  %v2078_v35 = vsub.f32 0.0, %v5264_v40  ;;  %v2300_v17 = vmul.f32 %v3824_v60, %v1980_v44  ;;  %v7916_v3 = vld [vmem:[#allocation33_spill] sm:$0xff] }
 0x22f   : > { %v1821_v59 = vadd.f32 -0.28449672, %v1757_v5  ;;  %v2186_v56 = vmul.f32 1.442695, %v2110_v19  ;;  %v1089_v53 = vmul.f32 0.3275911, %v5477_v18  ;;  %v1630_v38 = vmul.f32 %v1566_v41, %v5447_v32 }
 0x230   : > { %7915 = vst [vmem:[#allocation28_spill] sm:$0xff] %v5495_v26  ;;  %v2395_v6 = vsub.f32 1.0, %v2331_v2  ;;  %v1917_v46 = vadd.f32 0.2548296, %v1853_v34  ;;  %v1662_v9 = vadd.f32 1.4214138, %v1598_v45  ;;  %3835 = vrcp.f32 %v5485_v20 }
 0x231   : > { %vm926_vm9 = vcmp.lt.f32.partialorder %v5246_v43, 0.0  ;;  %v3828_v37 = vpop.eup %3827  ;;  %v5502_v55 = vadd.f32 1.0, %v1120_v48  ;;  %v5505_v63 = vmul.f32 0.70710677, %v5490_v36  ;;  %v2491_v60 = vadd.f32 1.0, %v2427_v54 }
 0x232   : > { %v2332_v13 = vmul.f32 %v3826_v28, %v2012_v49  ;;  %v2142_v19 = vmul.f32 %v2078_v35, %v5264_v40  ;;  %v5510_v44 = vadd.f32 %v7916_v3, %v4482_v30  ;;  %v3830_v5 = vpop.eup %3829  ;;  %v2364_v2 = vsub.f32 1.0, %v2300_v17  ;;  %v5528_v17 = vpop.f32.mrb[27].mxu0 }
 0x233   : > { %v1885_v34 = vmul.f32 %v1821_v59, %v5363_v42  ;;  %3837 = vpow2.f32 %v2186_v56  ;;  %v5513_v45 = vadd.f32 1.0, %v1089_v53  ;;  %v3832_v41 = vpop.eup %3831  ;;  %v2459_v48 = vmul.f32 %v2395_v6, %v5292_v33  ;;  %7917 = vst [vmem:[#allocation33_spill] sm:$0xff] %v5528_v17  ;;  %v7919_v56 = vld [vmem:[#allocation34_spill] sm:$0xff] }
 0x234   : > { %v1981_v26 = vmul.f32 %v1917_v46, %v5330_v39  ;;  %v5520_v40 = vsel %vm926_vm9, -1.0, %v7817_v62  ;;  %v1279_v28 = vmul.f32 %v3828_v37, %v5438_v10  ;;  %v1726_v54 = vmul.f32 %v1662_v9, %v5414_v23 }
 0x235   : > { %v1694_v49 = vadd.f32 1.4214138, %v1630_v38  ;;  %3839 = vrcp.f32 %v5502_v55  ;;  %v5526_v35 = vand.u32 2147483647, %v5505_v63  ;;  %v5531_v39 = vmul.f32 %v2491_v60, %v5234_v11 }
 0x236   : > { %v3834_v33 = vpop.eup %3833  ;;  %v2396_v46 = vsub.f32 1.0, %v2332_v13  ;;  %v2250_v43 = vmul.f32 1.442695, %v2142_v19  ;;  %v5534_v59 = vmul.f32 0.70710677, %v5510_v44  ;;  %v2428_v10 = vmul.f32 %v2364_v2, %v5323_v1 }
 0x237   : > { %7918 = vst [vmem:[#allocation62_spill] sm:$0xff] %v5531_v39  ;;  %v1949_v9 = vadd.f32 0.2548296, %v1885_v34  ;;  %3841 = vrcp.f32 %v5513_v45  ;;  %v5540_v53 = vadd.f32 %v7919_v56, %v4482_v30  ;;  %v2523_v6 = vadd.f32 1.0, %v2459_v48 }
 0x238   : > { %v2301_v38 = vmul.f32 %v3830_v5, %v1981_v26  ;;  %v1343_v3 = vsub.f32 2.0, %v1279_v28  ;;  %v2047_v11 = vsub.f32 0.0, %v5393_v22  ;;  %v1790_v60 = vadd.f32 -0.28449672, %v1726_v54 }
 0x239   : > { %v1758_v13 = vmul.f32 %v1694_v49, %v5447_v32  ;;  %v1311_v19 = vmul.f32 %v3834_v33, %v5463_v47  ;;  %v1121_v39 = vmul.f32 0.3275911, %v5526_v35  ;;  %v2460_v1 = vmul.f32 %v2396_v46, %v5346_v24 }
 0x23a   : > { %3843 = vpow2.f32 %v2250_v43  ;;  %v5548_v2 = vmul.f32 0.5, %v5343_v0  ;;  %v5551_v34 = vand.u32 2147483647, %v5534_v59  ;;  %v3836_v26 = vpop.eup %3835  ;;  %v2492_v5 = vadd.f32 1.0, %v2428_v10 }
 0x23b   : > { %v2013_v48 = vmul.f32 %v1949_v9, %v5363_v42  ;;  %vm895_vm10 = vcmp.lt.f32.partialorder %v5366_v14, 0.0  ;;  %v5556_v28 = vmul.f32 0.70710677, %v5540_v53  ;;  %v5559_v47 = vmul.f32 %v2523_v6, %v5276_v8  ;;  %v5572_v6 = vpop.f32.mrb[27].mxu1 }
 0x23c   : > { %v2365_v24 = vsub.f32 1.0, %v2301_v38  ;;  %v5561_v54 = vmul.f32 %v3828_v37, %v1343_v3  ;;  %v2111_v0 = vmul.f32 %v2047_v11, %v5393_v22  ;;  %v1854_v46 = vmul.f32 %v1790_v60, %v5414_v23  ;;  %7921 = vst [vmem:[#allocation63_spill] sm:$0xff] %v5572_v6 }
 0x23d   : > { %7920 = vst [vmem:[#allocation34_spill] sm:$0xff] %v5559_v47  ;;  %v3838_v49 = vpop.eup %3837  ;;  %v1822_v43 = vadd.f32 -0.28449672, %v1758_v13  ;;  %v1375_v10 = vsub.f32 2.0, %v1311_v19  ;;  %v5565_v56 = vadd.f32 1.0, %v1121_v39  ;;  %v2524_v42 = vadd.f32 1.0, %v2460_v1 }
 0x23e   : > { %v5568_v14 = vsel %vm895_vm10, -1.0, %v7817_v62  ;;  %v1280_v9 = vmul.f32 %v3836_v26, %v5485_v20  ;;  %v1090_v8 = vmul.f32 0.3275911, %v5551_v34  ;;  %v5575_v22 = vmul.f32 %v2492_v5, %v5312_v29  ;;  %v7923_v13 = vld [vmem:[#allocation38_spill] sm:$0xff] }
 0x23f   : > { %v3840_v37 = vpop.eup %3839  ;;  %v2333_v38 = vmul.f32 %v3832_v41, %v2013_v48  ;;  %v5578_v3 = vmul.f32 0.5, %v5372_v12  ;;  %v5581_v39 = vand.u32 2147483647, %v5556_v28  ;;  %v2429_v11 = vmul.f32 %v2365_v24, %v5377_v7 }
 0x240   : > { %7922 = vst [vmem:[#allocation64_spill] sm:$0xff] %v5575_v22  ;;  %v1471_v60 = vmul.f32 1.0614054, %v5561_v54  ;;  %v2188_v20 = vmul.f32 1.442695, %v2111_v0  ;;  %v5587_v19 = vadd.f32 %v7923_v13, %v7854_v57  ;;  %v1886_v29 = vmul.f32 %v1822_v43, %v5447_v32 }
 0x241   : > { %v3842_v1 = vpop.eup %3841  ;;  %v1918_v47 = vadd.f32 0.2548296, %v1854_v46  ;;  %v5590_v41 = vmul.f32 %v3834_v33, %v1375_v10  ;;  %3845 = vrcp.f32 %v5565_v56  ;;  %v5594_v12 = vmul.f32 %v2524_v42, %v5328_v27 }
 0x242   : > { %v1344_v5 = vsub.f32 2.0, %v1280_v9  ;;  %v1312_v7 = vmul.f32 %v3840_v37, %v5502_v55  ;;  %v5597_v48 = vadd.f32 1.0, %v1090_v8  ;;  %v2397_v24 = vsub.f32 1.0, %v2333_v38 }
 0x243   : > { %7924 = vst [vmem:[#allocation38_spill] sm:$0xff] %v5594_v12  ;;  %vm927_vm11 = vcmp.lt.f32.partialorder %v5397_v52, 0.0  ;;  %v2079_v0 = vsub.f32 0.0, %v5417_v25  ;;  %v1122_v46 = vmul.f32 0.3275911, %v5581_v39  ;;  %3847 = vpow2.f32 %v2188_v20 }
 0x244   : > { %v3844_v43 = vpop.eup %3843  ;;  %v1535_v33 = vadd.f32 -1.4531521, %v1471_v60  ;;  %v1281_v10 = vmul.f32 %v3842_v1, %v5513_v45  ;;  %v5604_v27 = vmul.f32 0.70710677, %v5587_v19  ;;  %v2493_v42 = vadd.f32 1.0, %v2429_v11 }
 0x245   : > { %v1982_v55 = vmul.f32 %v1918_v47, %v5414_v23  ;;  %v1950_v9 = vadd.f32 0.2548296, %v1886_v29  ;;  %v1503_v8 = vmul.f32 1.0614054, %v5590_v41  ;;  %v5609_v52 = vsel %vm927_vm11, -1.0, %v7817_v62 }
 0x246   : > { %v5611_v38 = vmul.f32 %v3836_v26, %v1344_v5  ;;  %v1376_v13 = vsub.f32 2.0, %v1312_v7  ;;  %3849 = vrcp.f32 %v5597_v48  ;;  %v2461_v60 = vmul.f32 %v2397_v24, %v5389_v61 }
 0x247   : > { %v2143_v45 = vmul.f32 %v2079_v0, %v5417_v25  ;;  %vm896_vm12 = vcmp.lt.f32.partialorder %v5423_v50, 0.0  ;;  %v5617_v11 = vadd.f32 1.0, %v1122_v46  ;;  %v1599_v23 = vmul.f32 %v1535_v33, %v5561_v54 }
 0x248   : > { %v5621_v47 = vmul.f32 0.5, %v5408_v51  ;;  %v1345_v20 = vsub.f32 2.0, %v1281_v10  ;;  %v5624_v26 = vand.u32 2147483647, %v5604_v27  ;;  %v5627_v29 = vmul.f32 %v2493_v42, %v5349_v4 }
 0x249   : > { %v2302_v5 = vmul.f32 %v3838_v49, %v1982_v55  ;;  %v2014_v61 = vmul.f32 %v1950_v9, %v5447_v32  ;;  %v1567_v25 = vadd.f32 -1.4531521, %v1503_v8  ;;  %v5631_v50 = vsel %vm896_vm12, -1.0, %v7817_v62 }
 0x24a   : > { %7925 = vst [vmem:[#allocation65_spill] sm:$0xff] %v5627_v29  ;;  %v1472_v7 = vmul.f32 1.0614054, %v5611_v38  ;;  %v5635_v24 = vmul.f32 0.5, %v5427_v15  ;;  %v5637_v51 = vmul.f32 %v3840_v37, %v1376_v13  ;;  %v2525_v46 = vadd.f32 1.0, %v2461_v60  ;;  %v7929_v29 = vld [vmem:[#allocation25_spill] sm:$0xff] }
 0x24b   : > { %v3846_v0 = vpop.eup %3845  ;;  %v2252_v33 = vmul.f32 1.442695, %v2143_v45  ;;  %v2048_v4 = vsub.f32 0.0, %v5450_v58  ;;  %3851 = vrcp.f32 %v5617_v11  ;;  %v1663_v49 = vadd.f32 1.4214138, %v1599_v23  ;;  %v7926_v23 = vld [vmem:[#allocation42_spill] sm:$0xff] }
 0x24c   : > { %v2080_v32 = vsub.f32 0.0, %v5468_v21  ;;  %v5642_v10 = vmul.f32 %v3842_v1, %v1345_v20  ;;  %v1091_v42 = vmul.f32 0.3275911, %v5624_v26  ;;  %v2366_v55 = vsub.f32 1.0, %v2302_v5  ;;  %v7927_v1 = vld [vmem:[#allocation22_spill] sm:$0xff] }
 0x24d   : > { %v2334_v9 = vmul.f32 %v3844_v43, %v2014_v61  ;;  %v1631_v15 = vmul.f32 %v1567_v25, %v5590_v41  ;;  %v2049_v37 = vsub.f32 0.0, %v5477_v18  ;;  %v5647_v8 = vpop.eup %3847  ;;  %v1536_v13 = vadd.f32 -1.4531521, %v1472_v7 }
 0x24e   : > { %v1504_v60 = vmul.f32 1.0614054, %v5637_v51  ;;  %v1313_v45 = vmul.f32 %v3846_v0, %v5565_v56  ;;  %v5653_v12 = vadd.f32 %v7926_v23, %v7854_v57  ;;  %v5656_v20 = vmul.f32 %v2525_v46, %v7927_v1 }
 0x24f   : > { %3853 = vpow2.f32 %v2252_v33  ;;  %v2112_v43 = vmul.f32 %v2048_v4, %v5450_v58  ;;  %vm928_vm13 = vcmp.lt.f32.partialorder %v5453_v16, 0.0  ;;  %v1727_v61 = vmul.f32 %v1663_v49, %v5561_v54  ;;  %v5667_v33 = vpop.f32.mrb[28].mxu0 }
 0x250   : > { %7928 = vst [vmem:[#allocation42_spill] sm:$0xff] %v5656_v20  ;;  %v3850_v5 = vpop.eup %3849  ;;  %v2144_v25 = vmul.f32 %v2080_v32, %v5468_v21  ;;  %v1473_v7 = vmul.f32 1.0614054, %v5642_v10  ;;  %v5663_v56 = vadd.f32 1.0, %v1091_v42  ;;  %v2430_v23 = vmul.f32 %v2366_v55, %v7929_v29  ;;  %7930 = vst [vmem:[#allocation22_spill] sm:$0xff] %v5667_v33 }
 0x251   : > { %v2398_v22 = vsub.f32 1.0, %v2334_v9  ;;  %v1695_v6 = vadd.f32 1.4214138, %v1631_v15  ;;  %v2113_v46 = vmul.f32 %v2049_v37, %v5477_v18  ;;  %v1600_v58 = vmul.f32 %v1536_v13, %v5611_v38 }
 0x252   : > { %v1568_v4 = vadd.f32 -1.4531521, %v1504_v60  ;;  %v1377_v1 = vsub.f32 2.0, %v1313_v45  ;;  %v5671_v49 = vmul.f32 0.70710677, %v5653_v12  ;;  %v5676_v32 = vsel %vm928_vm13, -1.0, %v7817_v62 }
 0x253   : > { %v2190_v21 = vmul.f32 1.442695, %v2112_v43  ;;  %vm897_vm14 = vcmp.lt.f32.partialorder %v5460_v31, 0.0  ;;  %v1282_v29 = vmul.f32 %v3850_v5, %v5597_v48  ;;  %v1791_v18 = vadd.f32 -0.28449672, %v1727_v61  ;;  %v7931_v48 = vld [vmem:[#allocation26_spill] sm:$0xff] }
 0x254   : > { %v2254_v42 = vmul.f32 1.442695, %v2144_v25  ;;  %v1537_v55 = vadd.f32 -1.4531521, %v1473_v7  ;;  %3855 = vrcp.f32 %v5663_v56  ;;  %v2494_v15 = vadd.f32 1.0, %v2430_v23  ;;  %v5700_v7 = vpop.f32.mrb[29].mxu0 }
 0x255   : > { %v3852_v9 = vpop.eup %3851  ;;  %v2462_v37 = vmul.f32 %v2398_v22, %v5520_v40  ;;  %v1759_v13 = vmul.f32 %v1695_v6, %v5590_v41  ;;  %v2192_v60 = vmul.f32 1.442695, %v2113_v46  ;;  %v1664_v45 = vadd.f32 1.4214138, %v1600_v58  ;;  %7932 = vst [vmem:[#allocation25_spill] sm:$0xff] %v5700_v7  ;;  %v7933_v46 = vld [vmem:[#allocation13_spill] sm:$0xff] }
 0x256   : > { %v1632_v16 = vmul.f32 %v1568_v4, %v5637_v51  ;;  %v5684_v43 = vmul.f32 %v3846_v0, %v1377_v1  ;;  %v5687_v20 = vand.u32 2147483647, %v5671_v49  ;;  %3857 = vpow2.f32 %v2190_v21  ;;  %v5707_v31 = vpop.f32.mrb[30].mxu0  ;;  %v7945_v7 = vld [vmem:[#allocation53_spill] sm:$0xff] }
 0x257   : > { %v5690_v61 = vmul.f32 0.5, %v7931_v48  ;;  %v5695_v25 = vsel %vm897_vm14, -1.0, %v7817_v62  ;;  %v1346_v40 = vsub.f32 2.0, %v1282_v29  ;;  %v1855_v6 = vmul.f32 %v1791_v18, %v5561_v54  ;;  %7935 = vst [vmem:[#allocation13_spill] sm:$0xff] %v5707_v31 }
 0x258   : > { %3859 = vpow2.f32 %v2254_v42  ;;  %v1601_v22 = vmul.f32 %v1537_v55, %v5642_v10  ;;  %v1314_v0 = vmul.f32 %v3852_v9, %v5617_v11  ;;  %v5705_v58 = vmul.f32 %v2494_v15, %v7933_v46 }
 0x259   : > { %v5702_v23 = vpop.eup %3853  ;;  %v2526_v4 = vadd.f32 1.0, %v2462_v37  ;;  %v1823_v1 = vadd.f32 -0.28449672, %v1759_v13  ;;  %3861 = vpow2.f32 %v2192_v60  ;;  %v1728_v21 = vmul.f32 %v1664_v45, %v5611_v38  ;;  %v7938_v37 = vld [vmem:[#allocation50_spill] sm:$0xff] }
 0x25a   : > { %7934 = vst [vmem:[#allocation26_spill] sm:$0xff] %v5705_v58  ;;  %v1696_v29 = vadd.f32 1.4214138, %v1632_v16  ;;  %v1505_v18 = vmul.f32 1.0614054, %v5684_v43  ;;  %v5713_v11 = vmul.f32 0.5, %v5490_v36  ;;  %v5718_v15 = vmul.f32 %v3850_v5, %v1346_v40 }
 0x25b   : > { %v1123_v42 = vmul.f32 0.3275911, %v5687_v20  ;;  %v5716_v55 = vmul.f32 0.5, %v5510_v44  ;;  %v5722_v13 = vadd.f32 %v7938_v37, %v4482_v30  ;;  %v1919_v60 = vadd.f32 0.2548296, %v1855_v6  ;;  %v7939_v16 = vld [vmem:[#allocation28_spill] sm:$0xff] }
 0x25c   : > { %7936 = vst [vmem:[#allocation66_spill] sm:$0xff] %v5713_v11  ;;  %v1665_v48 = vadd.f32 1.4214138, %v1601_v22  ;;  %vm929_vm15 = vcmp.lt.f32.partialorder %v5505_v63, 0.0  ;;  %v1378_v45 = vsub.f32 2.0, %v1314_v0  ;;  %v5726_v46 = vmul.f32 %v2526_v4, %v7939_v16  ;;  %v7942_v44 = vld [vmem:[#allocation51_spill] sm:$0xff] }
 0x25d   : > { %7937 = vst [vmem:[#allocation67_spill] sm:$0xff] %v5716_v55  ;;  %v1887_v36 = vmul.f32 %v1823_v1, %v5590_v41  ;;  %v5730_v58 = vmul.f32 0.5, %v5540_v53  ;;  %v5734_v5 = vadd.f32 %v7942_v44, %v4482_v30  ;;  %v5736_v40 = vpop.f32.mrb[31].mxu0  ;;  %v1792_v6 = vadd.f32 -0.28449672, %v1728_v21 }
 0x25e   : > { %7940 = vst [vmem:[#allocation50_spill] sm:$0xff] %v5726_v46  ;;  %7943 = vst [vmem:[#allocation51_spill] sm:$0xff] %v5736_v40  ;;  %v3856_v37 = vpop.eup %3855  ;;  %v1760_v22 = vmul.f32 %v1696_v29, %v5637_v51  ;;  %v1569_v31 = vadd.f32 -1.4531521, %v1505_v18  ;;  %v5739_v0 = vadd.f32 1.0, %v1123_v42  ;;  %v2081_v4 = vsub.f32 0.0, %v5526_v35 }
 0x25f   : > { %7941 = vst [vmem:[#allocation28_spill] sm:$0xff] %v5730_v58  ;;  %vm898_vm0 = vcmp.lt.f32.partialorder %v5534_v59, 0.0  ;;  %v1474_v53 = vmul.f32 1.0614054, %v5718_v15  ;;  %v5745_v1 = vmul.f32 0.70710677, %v5722_v13  ;;  %v1983_v16 = vmul.f32 %v1919_v60, %v5561_v54 }
 0x260   : > { %v1729_v44 = vmul.f32 %v1665_v48, %v5642_v10  ;;  %v2050_v21 = vsub.f32 0.0, %v5551_v34  ;;  %v5750_v46 = vmul.f32 %v3852_v9, %v1378_v45  ;;  %v3858_v29 = vpop.eup %3857  ;;  %v1951_v18 = vadd.f32 0.2548296, %v1887_v36 }
 0x261   : > { %v1283_v42 = vmul.f32 %v3856_v37, %v5663_v56  ;;  %v5754_v40 = vmul.f32 0.70710677, %v5734_v5  ;;  %v5758_v33 = vadd.f32 %v7945_v7, %v7854_v57  ;;  %v1856_v54 = vmul.f32 %v1792_v6, %v5611_v38 }
 0x262   : > { %v5760_v17 = vpop.eup %3859  ;;  %v1824_v60 = vadd.f32 -0.28449672, %v1760_v22  ;;  %v1633_v48 = vmul.f32 %v1569_v31, %v5684_v43  ;;  %3863 = vrcp.f32 %v5739_v0  ;;  %v5770_v56 = vsel %vm929_vm15, -1.0, %v7817_v62 }
 0x263   : > { %7944 = vst [vmem:[#allocation68_spill] sm:$0xff] %v5754_v40  ;;  %7946 = vst [vmem:[#allocation53_spill] sm:$0xff] %v5758_v33  ;;  %v5765_v9 = vpop.eup %3861  ;;  %v2145_v45 = vmul.f32 %v2081_v4, %v5526_v35  ;;  %v1538_v7 = vadd.f32 -1.4531521, %v1474_v53  ;;  %v5774_v36 = vand.u32 2147483647, %v5745_v1  ;;  %v2303_v6 = vmul.f32 %v5647_v8, %v1983_v16 }
 0x264   : > { %v1793_v22 = vadd.f32 -0.28449672, %v1729_v44  ;;  %v2114_v31 = vmul.f32 %v2050_v21, %v5551_v34  ;;  %v1506_v58 = vmul.f32 1.0614054, %v5750_v46  ;;  %v5782_v55 = vsel %vm898_vm0, -1.0, %v7817_v62  ;;  %v7949_v21 = vld [vmem:[#allocation55_spill] sm:$0xff] }
 0x265   : > { %7947 = vst [vmem:[#allocation69_spill] sm:$0xff] %v5782_v55  ;;  %v1347_v63 = vsub.f32 2.0, %v1283_v42  ;;  %v5785_v11 = vand.u32 2147483647, %v5754_v40  ;;  %v5788_v35 = vmul.f32 0.70710677, %v5758_v33  ;;  %v2015_v4 = vmul.f32 %v1951_v18, %v5590_v41 }
 0x266   : > { %v1920_v8 = vadd.f32 0.2548296, %v1856_v54  ;;  %v1888_v53 = vmul.f32 %v1824_v60, %v5637_v51  ;;  %v1697_v34 = vadd.f32 1.4214138, %v1633_v48  ;;  %v2256_v16 = vmul.f32 1.442695, %v2145_v45 }
 0x267   : > { %7948 = vst [vmem:[#allocation70_spill] sm:$0xff] %v5788_v35  ;;  %v1602_v44 = vmul.f32 %v1538_v7, %v5718_v15  ;;  %v1092_v59 = vmul.f32 0.3275911, %v5774_v36  ;;  %v5796_v42 = vadd.f32 %v7949_v21, %v7854_v57  ;;  %v2367_v40 = vsub.f32 1.0, %v2303_v6  ;;  %v5809_v21 = vpop.f32.mrb[28].mxu1 }
 0x268   : > { %v1857_v55 = vmul.f32 %v1793_v22, %v5642_v10  ;;  %v2194_v33 = vmul.f32 1.442695, %v2114_v31  ;;  %vm930_vm1 = vcmp.lt.f32.partialorder %v5556_v28, 0.0  ;;  %v1570_v41 = vadd.f32 -1.4531521, %v1506_v58  ;;  %7950 = vst [vmem:[#allocation55_spill] sm:$0xff] %v5809_v21 }
 0x269   : > { %v5800_v18 = vmul.f32 %v3856_v37, %v1347_v63  ;;  %v1124_v54 = vmul.f32 0.3275911, %v5785_v11  ;;  %v5804_v60 = vand.u32 2147483647, %v5788_v35  ;;  %v2335_v48 = vmul.f32 %v5702_v23, %v2015_v4  ;;  %v5816_v37 = vpop.f32.mrb[29].mxu1 }
 0x26a   : > { %v1984_v45 = vmul.f32 %v1920_v8, %v5611_v38  ;;  %v1952_v7 = vadd.f32 0.2548296, %v1888_v53  ;;  %v1761_v6 = vmul.f32 %v1697_v34, %v5684_v43  ;;  %3865 = vpow2.f32 %v2256_v16  ;;  %7951 = vst [vmem:[#allocation71_spill] sm:$0xff] %v5816_v37 }
 0x26b   : > { %v1666_v22 = vadd.f32 1.4214138, %v1602_v44  ;;  %v5811_v31 = vadd.f32 1.0, %v1092_v59  ;;  %v5814_v58 = vmul.f32 0.70710677, %v5796_v42  ;;  %v2431_v35 = vmul.f32 %v2367_v40, %v5568_v14 }
 0x26c   : > { %v3864_v63 = vpop.eup %3863  ;;  %v1921_v23 = vadd.f32 0.2548296, %v1857_v55  ;;  %3867 = vpow2.f32 %v2194_v33  ;;  %v2082_v38 = vsub.f32 0.0, %v5581_v39  ;;  %v1634_v4 = vmul.f32 %v1570_v41, %v5750_v46 }
 0x26d   : > { %v1475_v8 = vmul.f32 1.0614054, %v5800_v18  ;;  %v5822_v53 = vadd.f32 1.0, %v1124_v54  ;;  %v1093_v34 = vmul.f32 0.3275911, %v5804_v60  ;;  %v2399_v16 = vsub.f32 1.0, %v2335_v48 }
 0x26e   : > { %v2304_v44 = vmul.f32 %v3858_v29, %v1984_v45  ;;  %v2016_v59 = vmul.f32 %v1952_v7, %v5637_v51  ;;  %v1825_v37 = vadd.f32 -0.28449672, %v1761_v6  ;;  %v1730_v21 = vmul.f32 %v1666_v22, %v5718_v15 }
 0x26f   : > { %v1315_v14 = vmul.f32 %v3864_v63, %v5739_v0  ;;  %3869 = vrcp.f32 %v5811_v31  ;;  %v5830_v33 = vand.u32 2147483647, %v5814_v58  ;;  %v1985_v55 = vmul.f32 %v1921_v23, %v5642_v10 }
 0x270   : > { %v5836_v40 = vsel %vm930_vm1, -1.0, %v7817_v62  ;;  %v2146_v29 = vmul.f32 %v2082_v38, %v5581_v39  ;;  %v2051_v51 = vsub.f32 0.0, %v5624_v26  ;;  %v1698_v41 = vadd.f32 1.4214138, %v1634_v4  ;;  %v7952_v4 = vld [vmem:[#allocation11_spill] sm:$0xff] }
 0x271   : > { %v1539_v54 = vadd.f32 -1.4531521, %v1475_v8  ;;  %3871 = vrcp.f32 %v5822_v53  ;;  %v5841_v0 = vadd.f32 1.0, %v1093_v34  ;;  %v2463_v48 = vmul.f32 %v2399_v16, %v5609_v52 }
 0x272   : > { %v2368_v45 = vsub.f32 1.0, %v2304_v44  ;;  %v2336_v10 = vmul.f32 %v5760_v17, %v2016_v59  ;;  %v1889_v7 = vmul.f32 %v1825_v37, %v5684_v43  ;;  %v2495_v28 = vadd.f32 1.0, %v2431_v35 }
 0x273   : > { %v1794_v6 = vadd.f32 -0.28449672, %v1730_v21  ;;  %v1379_v22 = vsub.f32 2.0, %v1315_v14  ;;  %v1125_v39 = vmul.f32 0.3275911, %v5830_v33  ;;  %v2305_v23 = vmul.f32 %v5765_v9, %v1985_v55 }
 0x274   : > { %v2258_v38 = vmul.f32 1.442695, %v2146_v29  ;;  %vm899_vm2 = vcmp.lt.f32.partialorder %v5604_v27, 0.0  ;;  %v5851_v8 = vadd.f32 %v7952_v4, %v4482_v30  ;;  %v3866_v52 = vpop.eup %3865  ;;  %v1762_v34 = vmul.f32 %v1698_v41, %v5750_v46 }
 0x275   : > { %v1603_v17 = vmul.f32 %v1539_v54, %v5800_v18  ;;  %v2115_v35 = vmul.f32 %v2051_v51, %v5624_v26  ;;  %3873 = vrcp.f32 %v5841_v0  ;;  %v2527_v37 = vadd.f32 1.0, %v2463_v48 }
 0x276   : > { %v3868_v21 = vpop.eup %3867  ;;  %v2432_v9 = vmul.f32 %v2368_v45, %v5631_v50  ;;  %v2400_v16 = vsub.f32 1.0, %v2336_v10  ;;  %v1953_v44 = vadd.f32 0.2548296, %v1889_v7  ;;  %v5859_v59 = vmul.f32 %v2495_v28, %v5548_v2 }
 0x277   : > { %v1858_v14 = vmul.f32 %v1794_v6, %v5718_v15  ;;  %v5862_v55 = vmul.f32 %v3864_v63, %v1379_v22  ;;  %v5864_v29 = vadd.f32 1.0, %v1125_v39  ;;  %v2369_v41 = vsub.f32 1.0, %v2305_v23 }
 0x278   : > { %7953 = vst [vmem:[#allocation11_spill] sm:$0xff] %v5859_v59  ;;  %v5867_v26 = vmul.f32 0.5, %v5587_v19  ;;  %v5872_v51 = vsel %vm899_vm2, -1.0, %v7817_v62  ;;  %v5875_v50 = vmul.f32 0.70710677, %v5851_v8  ;;  %3875 = vpow2.f32 %v2258_v38  ;;  %v7955_v38 = vld [vmem:[#allocation35_spill] sm:$0xff] }
 0x279   : > { %v3870_v2 = vpop.eup %3869  ;;  %v1826_v54 = vadd.f32 -0.28449672, %v1762_v34  ;;  %v1667_v48 = vadd.f32 1.4214138, %v1603_v17  ;;  %v2196_v63 = vmul.f32 1.442695, %v2115_v35  ;;  %v5878_v45 = vmul.f32 %v2527_v37, %v5578_v3 }
 0x27a   : > { %v2496_v10 = vadd.f32 1.0, %v2432_v9  ;;  %v2464_v19 = vmul.f32 %v2400_v16, %v5676_v32  ;;  %v2017_v7 = vmul.f32 %v1953_v44, %v5684_v43  ;;  %v1922_v27 = vadd.f32 0.2548296, %v1858_v14 }
 0x27b   : > { %7954 = vst [vmem:[#allocation72_spill] sm:$0xff] %v5878_v45  ;;  %v3872_v28 = vpop.eup %3871  ;;  %v1507_v6 = vmul.f32 1.0614054, %v5862_v55  ;;  %v2083_v22 = vsub.f32 0.0, %v5687_v20  ;;  %3877 = vrcp.f32 %v5864_v29  ;;  %v2433_v39 = vmul.f32 %v2369_v41, %v5695_v25 }
 0x27c   : > { %v1284_v23 = vmul.f32 %v3870_v2, %v5811_v31  ;;  %v5888_v3 = vand.u32 2147483647, %v5875_v50  ;;  %v5892_v32 = vadd.f32 %v7955_v38, %v4482_v30  ;;  %v1890_v43 = vmul.f32 %v1826_v54, %v5750_v46  ;;  %v5901_v31 = vpop.f32.mrb[30].mxu1 }
 0x27d   : > { %v1731_v4 = vmul.f32 %v1667_v48, %v5800_v18  ;;  %3879 = vpow2.f32 %v2196_v63  ;;  %v5897_v34 = vmul.f32 0.5, %v5653_v12  ;;  %v2528_v17 = vadd.f32 1.0, %v2464_v19  ;;  %7956 = vst [vmem:[#allocation35_spill] sm:$0xff] %v5901_v31  ;;  %v5908_v41 = vpop.f32.mrb[31].mxu1 }
 0x27e   : > { %v2337_v35 = vmul.f32 %v3866_v52, %v2017_v7  ;;  %vm931_vm3 = vcmp.lt.f32.partialorder %v5671_v49, 0.0  ;;  %v1316_v25 = vmul.f32 %v3872_v28, %v5822_v53  ;;  %v5904_v9 = vmul.f32 %v2496_v10, %v5621_v47  ;;  %7958 = vst [vmem:[#allocation74_spill] sm:$0xff] %v5908_v41 }
 0x27f   : > { %v3874_v37 = vpop.eup %3873  ;;  %v1986_v16 = vmul.f32 %v1922_v27, %v5718_v15  ;;  %v1571_v44 = vadd.f32 -1.4531521, %v1507_v6  ;;  %v2147_v14 = vmul.f32 %v2083_v22, %v5687_v20  ;;  %v2497_v12 = vadd.f32 1.0, %v2433_v39 }
 0x280   : > { %7957 = vst [vmem:[#allocation73_spill] sm:$0xff] %v5904_v9  ;;  %v1348_v54 = vsub.f32 2.0, %v1284_v23  ;;  %v1094_v52 = vmul.f32 0.3275911, %v5888_v3  ;;  %v5912_v49 = vmul.f32 0.70710677, %v5892_v32  ;;  %v5921_v15 = vmul.f32 %v2528_v17, %v5635_v24 }
 0x281   : > { %v1954_v53 = vadd.f32 0.2548296, %v1890_v43  ;;  %v1795_v48 = vadd.f32 -0.28449672, %v1731_v4  ;;  %v5915_v63 = vsel %vm931_vm3, -1.0, %v7817_v62  ;;  %v5918_v47 = vmul.f32 0.5, %v5722_v13 }
 0x282   : > { %7959 = vst [vmem:[#allocation75_spill] sm:$0xff] %v5921_v15  ;;  %v2401_v20 = vsub.f32 1.0, %v2337_v35  ;;  %v1380_v10 = vsub.f32 2.0, %v1316_v25  ;;  %v1285_v19 = vmul.f32 %v3874_v37, %v5841_v0  ;;  %v3876_v7 = vpop.eup %3875  ;;  %v2306_v27 = vmul.f32 %v3868_v21, %v1986_v16  ;;  %v7961_v4 = vld [vmem:[#allocation43_spill] sm:$0xff]  ;;  %v7967_v15 = vld [vmem:[#allocation66_spill] sm:$0xff] }
 0x283   : > { %v1635_v6 = vmul.f32 %v1571_v44, %v5862_v55  ;;  %v2260_v22 = vmul.f32 1.442695, %v2147_v14  ;;  %vm900_vm4 = vcmp.lt.f32.partialorder %v5745_v1, 0.0  ;;  %v5927_v39 = vmul.f32 %v2497_v12, %v5690_v61 }
 0x284   : > { %v5929_v23 = vmul.f32 %v3870_v2, %v1348_v54  ;;  %v5931_v13 = vadd.f32 1.0, %v1094_v52  ;;  %v5934_v24 = vand.u32 2147483647, %v5912_v49  ;;  %v2018_v0 = vmul.f32 %v1954_v53, %v5750_v46 }
 0x285   : > { %7960 = vst [vmem:[#allocation76_spill] sm:$0xff] %v5927_v39  ;;  %v3878_v38 = vpop.eup %3877  ;;  %v1859_v21 = vmul.f32 %v1795_v48, %v5800_v18  ;;  %v2052_v43 = vsub.f32 0.0, %v5774_v36  ;;  %v5941_v1 = vadd.f32 %v7961_v4, %v7854_v57  ;;  %v2465_v61 = vmul.f32 %v2401_v20, %v5770_v56 }
 0x286   : > { %v5945_v2 = vsel %vm900_vm4, -1.0, %v7817_v62  ;;  %v5947_v17 = vmul.f32 %v3872_v28, %v1380_v10  ;;  %v1349_v35 = vsub.f32 2.0, %v1285_v19  ;;  %v2370_v16 = vsub.f32 1.0, %v2306_v27 }
 0x287   : > { %v3880_v25 = vpop.eup %3879  ;;  %v1699_v44 = vadd.f32 1.4214138, %v1635_v6  ;;  %3881 = vpow2.f32 %v2260_v22  ;;  %v5950_v46 = vmul.f32 0.5, %v5734_v5  ;;  %v1476_v14 = vmul.f32 1.0614054, %v5929_v23  ;;  %v7962_v5 = vld [vmem:[#allocation53_spill] sm:$0xff] }
 0x288   : > { %v1317_v12 = vmul.f32 %v3878_v38, %v5864_v29  ;;  %3883 = vrcp.f32 %v5931_v13  ;;  %v1126_v56 = vmul.f32 0.3275911, %v5934_v24  ;;  %v2338_v54 = vmul.f32 %v3876_v7, %v2018_v0  ;;  %v7963_v29 = vld [vmem:[#allocation69_spill] sm:$0xff]  ;;  %v7964_v6 = vld [vmem:[#allocation68_spill] sm:$0xff] }
 0x289   : > { %v1923_v52 = vadd.f32 0.2548296, %v1859_v21  ;;  %v2116_v28 = vmul.f32 %v2052_v43, %v5774_v36  ;;  %v5958_v53 = vmul.f32 0.70710677, %v5941_v1  ;;  %v2529_v48 = vadd.f32 1.0, %v2465_v61 }
 0x28a   : > { %v1508_v20 = vmul.f32 1.0614054, %v5947_v17  ;;  %v5962_v10 = vmul.f32 0.5, %v7962_v5  ;;  %v5964_v19 = vmul.f32 %v3874_v37, %v1349_v35  ;;  %v2434_v27 = vmul.f32 %v2370_v16, %v7963_v29 }
 0x28b   : > { %vm932_vm5 = vcmp.lt.f32.partialorder %v7964_v6, 0.0  ;;  %v2084_v7 = vsub.f32 0.0, %v5785_v11  ;;  %v2053_v22 = vsub.f32 0.0, %v5804_v60  ;;  %v1763_v36 = vmul.f32 %v1699_v44, %v5862_v55  ;;  %v7965_v6 = vld [vmem:[#allocation48_spill] sm:$0xff] }
 0x28c   : > { %v1540_v0 = vadd.f32 -1.4531521, %v1476_v14  ;;  %v1381_v21 = vsub.f32 2.0, %v1317_v12  ;;  %v5971_v43 = vadd.f32 1.0, %v1126_v56  ;;  %v2402_v4 = vsub.f32 1.0, %v2338_v54  ;;  %v7966_v56 = vld [vmem:[#allocation70_spill] sm:$0xff] }
 0x28d   : > { %v1987_v61 = vmul.f32 %v1923_v52, %v5800_v18  ;;  %v2198_v5 = vmul.f32 1.442695, %v2116_v28  ;;  %v5975_v37 = vand.u32 2147483647, %v5958_v53  ;;  %v5978_v35 = vsel %vm932_vm5, -1.0, %v7817_v62 }
 0x28e   : > { %v1572_v16 = vadd.f32 -1.4531521, %v1508_v20  ;;  %v1477_v29 = vmul.f32 1.0614054, %v5964_v19  ;;  %v5983_v44 = vadd.f32 %v7965_v6, %v7854_v57  ;;  %v2498_v14 = vadd.f32 1.0, %v2434_v27 }
 0x28f   : > { %v2148_v12 = vmul.f32 %v2084_v7, %v5785_v11  ;;  %vm901_vm6 = vcmp.lt.f32.partialorder %v7966_v56, 0.0  ;;  %v2117_v18 = vmul.f32 %v2053_v22, %v5804_v60  ;;  %v1827_v54 = vadd.f32 -0.28449672, %v1763_v36  ;;  %v7969_v36 = vld [vmem:[#allocation67_spill] sm:$0xff] }
 0x290   : > { %v1604_v52 = vmul.f32 %v1540_v0, %v5929_v23  ;;  %v5989_v28 = vmul.f32 %v3878_v38, %v1381_v21  ;;  %3885 = vrcp.f32 %v5971_v43  ;;  %v5995_v45 = vmul.f32 %v2529_v48, %v7967_v15 }
 0x291   : > { %v5992_v20 = vpop.eup %3881  ;;  %v2466_v27 = vmul.f32 %v2402_v4, %v5836_v40  ;;  %v2307_v6 = vmul.f32 %v3880_v25, %v1987_v61  ;;  %v1095_v11 = vmul.f32 0.3275911, %v5975_v37  ;;  %3887 = vpow2.f32 %v2198_v5 }
 0x292   : > { %7968 = vst [vmem:[#allocation43_spill] sm:$0xff] %v5995_v45  ;;  %v3884_v7 = vpop.eup %3883  ;;  %v1636_v60 = vmul.f32 %v1572_v16, %v5947_v17  ;;  %v1541_v22 = vadd.f32 -1.4531521, %v1477_v29  ;;  %v6001_v38 = vmul.f32 0.70710677, %v5983_v44  ;;  %v6004_v0 = vmul.f32 %v2498_v14, %v7969_v36 }
 0x293   : > { %v2262_v21 = vmul.f32 1.442695, %v2148_v12  ;;  %v6009_v15 = vsel %vm901_vm6, -1.0, %v7817_v62  ;;  %v2085_v40 = vsub.f32 0.0, %v5830_v33  ;;  %v1891_v25 = vmul.f32 %v1827_v54, %v5862_v55 }
 0x294   : > { %7970 = vst [vmem:[#allocation53_spill] sm:$0xff] %v6004_v0  ;;  %v1668_v48 = vadd.f32 1.4214138, %v1604_v52  ;;  %v2200_v4 = vmul.f32 1.442695, %v2117_v18  ;;  %v2530_v5 = vadd.f32 1.0, %v2466_v27  ;;  %v1286_v29 = vmul.f32 %v3884_v7, %v5931_v13 }
 0x295   : > { %v1509_v61 = vmul.f32 1.0614054, %v5989_v28  ;;  %v2371_v16 = vsub.f32 1.0, %v2307_v6  ;;  %v6015_v14 = vadd.f32 1.0, %v1095_v11  ;;  %v1700_v12 = vadd.f32 1.4214138, %v1636_v60 }
 0x296   : > { %v1605_v36 = vmul.f32 %v1541_v22, %v5964_v19  ;;  %v6019_v56 = vand.u32 2147483647, %v6001_v38  ;;  %v7971_v0 = vld [vmem:[#allocation14_spill] sm:$0xff]  ;;  %3889 = vpow2.f32 %v2262_v21  ;;  %v6026_v18 = vmul.f32 0.5, %v5796_v42  ;;  %v7972_v6 = vld [vmem:[#allocation28_spill] sm:$0xff] }
 0x297   : > { %v6023_v45 = vadd.f32 %v7971_v0, %v4482_v30  ;;  %vm933_vm7 = vcmp.lt.f32.partialorder %v5814_v58, 0.0  ;;  %v2149_v13 = vmul.f32 %v2085_v40, %v5830_v33  ;;  %v1955_v54 = vadd.f32 0.2548296, %v1891_v25 }
 0x298   : > { %v1732_v52 = vmul.f32 %v1668_v48, %v5929_v23  ;;  %3891 = vpow2.f32 %v2200_v4  ;;  %v1573_v27 = vadd.f32 -1.4531521, %v1509_v61  ;;  %v6032_v11 = vmul.f32 %v2530_v5, %v7972_v6 }
 0x299   : > { %v2435_v60 = vmul.f32 %v2371_v16, %v5872_v51  ;;  %v1350_v22 = vsub.f32 2.0, %v1286_v29  ;;  %3893 = vrcp.f32 %v6015_v14  ;;  %v1764_v42 = vmul.f32 %v1700_v12, %v5947_v17 }
 0x29a   : > { %7973 = vst [vmem:[#allocation69_spill] sm:$0xff] %v6032_v11  ;;  %v3886_v0 = vpop.eup %3885  ;;  %v1669_v21 = vadd.f32 1.4214138, %v1605_v36  ;;  %v1127_v58 = vmul.f32 0.3275911, %v6019_v56  ;;  %v6042_v40 = vsel %vm933_vm7, -1.0, %v7817_v62  ;;  %v2019_v61 = vmul.f32 %v1955_v54, %v5862_v55 }
 0x29b   : > { %v6039_v33 = vmul.f32 0.70710677, %v6023_v45  ;;  %v2264_v25 = vmul.f32 1.442695, %v2149_v13  ;;  %v6045_v48 = vmul.f32 0.5, %v5851_v8  ;;  %v6048_v51 = vmul.f32 0.5, %v5892_v32  ;;  %v6050_v4 = vpop.eup %3887 }
 0x29c   : > { %v1796_v5 = vadd.f32 -0.28449672, %v1732_v52  ;;  %v1637_v16 = vmul.f32 %v1573_v27, %v5989_v28  ;;  %vm902_vm8 = vcmp.lt.f32.partialorder %v5875_v50, 0.0  ;;  %v2499_v29 = vadd.f32 1.0, %v2435_v60  ;;  %v7976_v50 = vld [vmem:[#allocation44_spill] sm:$0xff] }
 0x29d   : > { %7974 = vst [vmem:[#allocation68_spill] sm:$0xff] %v6045_v48  ;;  %7975 = vst [vmem:[#allocation48_spill] sm:$0xff] %v6048_v51  ;;  %v6055_v12 = vmul.f32 %v3884_v7, %v1350_v22  ;;  %v2054_v36 = vsub.f32 0.0, %v5888_v3  ;;  %v1318_v8 = vmul.f32 %v3886_v0, %v5971_v43  ;;  %v1828_v13 = vadd.f32 -0.28449672, %v1764_v42 }
 0x29e   : > { %v1733_v32 = vmul.f32 %v1669_v21, %v5964_v19  ;;  %v6060_v6 = vadd.f32 1.0, %v1127_v58  ;;  %v6063_v11 = vand.u32 2147483647, %v6039_v33  ;;  %3895 = vpow2.f32 %v2264_v25  ;;  %v7977_v58 = vld [vmem:[#allocation17_spill] sm:$0xff] }
 0x29f   : > { %v6066_v55 = vsel %vm902_vm8, -1.0, %v7817_v62  ;;  %vm934_vm9 = vcmp.lt.f32.partialorder %v5912_v49, 0.0  ;;  %v6071_v7 = vadd.f32 %v7976_v50, %v4482_v30  ;;  %v2339_v43 = vmul.f32 %v5992_v20, %v2019_v61 }
 0x2a0   : > { %v1860_v54 = vmul.f32 %v1796_v5, %v5929_v23  ;;  %v1701_v52 = vadd.f32 1.4214138, %v1637_v16  ;;  %v2086_v27 = vsub.f32 0.0, %v5934_v24  ;;  %v3890_v60 = vpop.eup %3889  ;;  %v1478_v22 = vmul.f32 1.0614054, %v6055_v12 }
 0x2a1   : > { %v2118_v42 = vmul.f32 %v2054_v36, %v5888_v3  ;;  %v1382_v21 = vsub.f32 2.0, %v1318_v8  ;;  %v6080_v25 = vadd.f32 %v7977_v58, %v7854_v57  ;;  %v1892_v50 = vmul.f32 %v1828_v13, %v5947_v17  ;;  %v7979_v8 = vld [vmem:[#allocation59_spill] sm:$0xff] }
 0x2a2   : > { %v6082_v39 = vpop.eup %3891  ;;  %v1797_v20 = vadd.f32 -0.28449672, %v1733_v32  ;;  %3897 = vrcp.f32 %v6060_v6  ;;  %v1096_v61 = vmul.f32 0.3275911, %v6063_v11  ;;  %v6088_v16 = vmul.f32 %v2499_v29, %v5867_v26 }
 0x2a3   : > { %v3894_v5 = vpop.eup %3893  ;;  %v6093_v3 = vsel %vm934_vm9, -1.0, %v7817_v62  ;;  %v6096_v36 = vmul.f32 0.70710677, %v6071_v7  ;;  %v6100_v13 = vadd.f32 %v7979_v8, %v7854_v57  ;;  %v2403_v32 = vsub.f32 1.0, %v2339_v43 }
 0x2a4   : > { %7978 = vst [vmem:[#allocation70_spill] sm:$0xff] %v6088_v16  ;;  %v1924_v58 = vadd.f32 0.2548296, %v1860_v54  ;;  %v1765_v9 = vmul.f32 %v1701_v52, %v5989_v28  ;;  %v2150_v59 = vmul.f32 %v2086_v27, %v5934_v24  ;;  %v1542_v26 = vadd.f32 -1.4531521, %v1478_v22 }
 0x2a5   : > { %v2202_v29 = vmul.f32 1.442695, %v2118_v42  ;;  %v6104_v16 = vmul.f32 %v3886_v0, %v1382_v21  ;;  %v6107_v49 = vmul.f32 0.70710677, %v6080_v25  ;;  %v1956_v41 = vadd.f32 0.2548296, %v1892_v50 }
 0x2a6   : > { %v1861_v31 = vmul.f32 %v1797_v20, %v5964_v19  ;;  %v1287_v51 = vmul.f32 %v3894_v5, %v6015_v14  ;;  %v6111_v8 = vadd.f32 1.0, %v1096_v61  ;;  %v6114_v43 = vmul.f32 0.5, %v5941_v1  ;;  %v7982_v0 = vld [vmem:[#allocation40_spill] sm:$0xff] }
 0x2a7   : > { %v6117_v54 = vand.u32 2147483647, %v6096_v36  ;;  %v6120_v24 = vmul.f32 0.70710677, %v6100_v13  ;;  %v6124_v52 = vadd.f32 %v7982_v0, %v4482_v30  ;;  %v2467_v27 = vmul.f32 %v2403_v32, %v5915_v63 }
 0x2a8   : > { %7980 = vst [vmem:[#allocation66_spill] sm:$0xff] %v6114_v43  ;;  %v1988_v22 = vmul.f32 %v1924_v58, %v5929_v23  ;;  %v1829_v14 = vadd.f32 -0.28449672, %v1765_v9  ;;  %v2266_v42 = vmul.f32 1.442695, %v2150_v59  ;;  %v6128_v21 = vpop.eup %3895  ;;  %v1606_v1 = vmul.f32 %v1542_v26, %v6055_v12 }
 0x2a9   : > { %7981 = vst [vmem:[#allocation67_spill] sm:$0xff] %v6120_v24  ;;  %7983 = vst [vmem:[#allocation14_spill] sm:$0xff] %v6124_v52  ;;  %v1510_v50 = vmul.f32 1.0614054, %v6104_v16  ;;  %vm903_vm10 = vcmp.lt.f32.partialorder %v5958_v53, 0.0  ;;  %v2020_v61 = vmul.f32 %v1956_v41, %v5947_v17  ;;  %v1351_v43 = vsub.f32 2.0, %v1287_v51 }
 0x2aa   : > { %v6134_v20 = vand.u32 2147483647, %v6107_v49  ;;  %v1925_v0 = vadd.f32 0.2548296, %v1861_v31  ;;  %3899 = vrcp.f32 %v6111_v8  ;;  %v1128_v59 = vmul.f32 0.3275911, %v6117_v54 }
 0x2ab   : > { %3901 = vpow2.f32 %v2202_v29  ;;  %v6140_v9 = vand.u32 2147483647, %v6120_v24  ;;  %v6143_v63 = vmul.f32 0.70710677, %v6124_v52  ;;  %v2531_v32 = vadd.f32 1.0, %v2467_v27  ;;  %v7984_v31 = vld [vmem:[#allocation41_spill] sm:$0xff] }
 0x2ac   : > { %v3898_v23 = vpop.eup %3897  ;;  %v2308_v58 = vmul.f32 %v6050_v4, %v1988_v22  ;;  %v1893_v26 = vmul.f32 %v1829_v14, %v5989_v28  ;;  %v6149_v41 = vadd.f32 %v7984_v31, %v4482_v30  ;;  %v1670_v17 = vadd.f32 1.4214138, %v1606_v1 }
 0x2ad   : > { %v1574_v51 = vadd.f32 -1.4531521, %v1510_v50  ;;  %3903 = vpow2.f32 %v2266_v42  ;;  %v1097_v29 = vmul.f32 0.3275911, %v6134_v20  ;;  %v2340_v48 = vmul.f32 %v3890_v60, %v2020_v61 }
 0x2ae   : > { %v1989_v24 = vmul.f32 %v1925_v0, %v5964_v19  ;;  %v6153_v52 = vmul.f32 %v3894_v5, %v1351_v43  ;;  %v2055_v27 = vsub.f32 0.0, %v5975_v37  ;;  %v1319_v4 = vmul.f32 %v3898_v23, %v6060_v6 }
 0x2af   : > { %v6157_v22 = vadd.f32 1.0, %v1128_v59  ;;  %v1129_v14 = vmul.f32 0.3275911, %v6140_v9  ;;  %v6161_v31 = vand.u32 2147483647, %v6143_v63  ;;  %v2372_v1 = vsub.f32 1.0, %v2308_v58 }
 0x2b0   : > { %v1957_v42 = vadd.f32 0.2548296, %v1893_v26  ;;  %v6166_v60 = vsel %vm903_vm10, -1.0, %v7817_v62  ;;  %v6169_v19 = vmul.f32 0.70710677, %v6149_v41  ;;  %v6172_v5 = vmul.f32 %v2531_v32, %v5897_v34 }
 0x2b1   : > { %v1734_v6 = vmul.f32 %v1670_v17, %v6055_v12  ;;  %v1638_v43 = vmul.f32 %v1574_v51, %v6104_v16  ;;  %v6176_v50 = vadd.f32 1.0, %v1097_v29  ;;  %v2404_v61 = vsub.f32 1.0, %v2340_v48 }
 0x2b2   : > { %7985 = vst [vmem:[#allocation28_spill] sm:$0xff] %v6172_v5  ;;  %v2309_v0 = vmul.f32 %v6082_v39, %v1989_v24  ;;  %v1479_v59 = vmul.f32 1.0614054, %v6153_v52  ;;  %v2119_v53 = vmul.f32 %v2055_v27, %v5975_v37  ;;  %v1383_v58 = vsub.f32 2.0, %v1319_v4 }
 0x2b3   : > { %3905 = vrcp.f32 %v6157_v22  ;;  %v6182_v26 = vadd.f32 1.0, %v1129_v14  ;;  %v1098_v34 = vmul.f32 0.3275911, %v6161_v31  ;;  %v2436_v17 = vmul.f32 %v2372_v1, %v5945_v2 }
 0x2b4   : > { %v3900_v32 = vpop.eup %3899  ;;  %v2021_v51 = vmul.f32 %v1957_v42, %v5989_v28  ;;  %v6188_v48 = vmul.f32 0.5, %v5983_v44  ;;  %v6191_v39 = vand.u32 2147483647, %v6169_v19  ;;  %v1798_v37 = vadd.f32 -0.28449672, %v1734_v6  ;;  %v7987_v28 = vld [vmem:[#allocation12_spill] sm:$0xff] }
 0x2b5   : > { %v6193_v24 = vpop.eup %3901  ;;  %v1702_v29 = vadd.f32 1.4214138, %v1638_v43  ;;  %v2087_v27 = vsub.f32 0.0, %v6019_v56  ;;  %3907 = vrcp.f32 %v6176_v50  ;;  %v2468_v4 = vmul.f32 %v2404_v61, %v5978_v35 }
 0x2b6   : > { %7986 = vst [vmem:[#allocation44_spill] sm:$0xff] %v6188_v48  ;;  %v2373_v14 = vsub.f32 1.0, %v2309_v0  ;;  %v1543_v2 = vadd.f32 -1.4531521, %v1479_v59  ;;  %v6200_v1 = vadd.f32 %v7987_v28, %v7854_v57  ;;  %v6204_v42 = vmul.f32 %v3898_v23, %v1383_v58 }
 0x2b7   : > { %v6202_v44 = vpop.eup %3903  ;;  %v1288_v5 = vmul.f32 %v3900_v32, %v6111_v8  ;;  %3909 = vrcp.f32 %v6182_v26  ;;  %v6208_v6 = vadd.f32 1.0, %v1098_v34  ;;  %v2341_v43 = vmul.f32 %v6128_v21, %v2021_v51 }
 0x2b8   : > { %7988 = vst [vmem:[#allocation17_spill] sm:$0xff] %v6200_v1  ;;  %v2204_v48 = vmul.f32 1.442695, %v2119_v53  ;;  %vm935_vm11 = vcmp.lt.f32.partialorder %v6001_v38, 0.0  ;;  %v1130_v35 = vmul.f32 0.3275911, %v6191_v39  ;;  %v1862_v61 = vmul.f32 %v1798_v37, %v6055_v12 }
 0x2b9   : > { %v1766_v0 = vmul.f32 %v1702_v29, %v6104_v16  ;;  %v2151_v23 = vmul.f32 %v2087_v27, %v6019_v56  ;;  %v2056_v59 = vsub.f32 0.0, %v6063_v11  ;;  %v2500_v8 = vadd.f32 1.0, %v2436_v17 }
 0x2ba   : > { %v2532_v58 = vadd.f32 1.0, %v2468_v4  ;;  %v1607_v34 = vmul.f32 %v1543_v2, %v6153_v52  ;;  %v6219_v28 = vmul.f32 0.70710677, %v6200_v1  ;;  %v2437_v21 = vmul.f32 %v2373_v14, %v6009_v15 }
 0x2bb   : > { %v1511_v53 = vmul.f32 1.0614054, %v6204_v42  ;;  %v1352_v51 = vsub.f32 2.0, %v1288_v5  ;;  %3911 = vrcp.f32 %v6208_v6  ;;  %v2405_v37 = vsub.f32 1.0, %v2341_v43 }
 0x2bc   : > { %3913 = vpow2.f32 %v2204_v48  ;;  %v6227_v56 = vsel %vm935_vm11, -1.0, %v7817_v62  ;;  %v6229_v17 = vadd.f32 1.0, %v1130_v35  ;;  %v1926_v27 = vadd.f32 0.2548296, %v1862_v61 }
 0x2bd   : > { %v3906_v29 = vpop.eup %3905  ;;  %v1830_v4 = vadd.f32 -0.28449672, %v1766_v0  ;;  %v2268_v2 = vmul.f32 1.442695, %v2151_v23  ;;  %v2120_v15 = vmul.f32 %v2056_v59, %v6063_v11  ;;  %v6233_v14 = vmul.f32 %v2500_v8, %v5918_v47 }
 0x2be   : > { %v1671_v5 = vadd.f32 1.4214138, %v1607_v34  ;;  %v6236_v43 = vmul.f32 0.5, %v6023_v45  ;;  %v6239_v48 = vand.u32 2147483647, %v6219_v28  ;;  %v6242_v35 = vmul.f32 %v2532_v58, %v5950_v46 }
 0x2bf   : > { %7989 = vst [vmem:[#allocation59_spill] sm:$0xff] %v6233_v14  ;;  %v3908_v38 = vpop.eup %3907  ;;  %v2501_v1 = vadd.f32 1.0, %v2437_v21  ;;  %v1575_v61 = vadd.f32 -1.4531521, %v1511_v53  ;;  %v6244_v0 = vmul.f32 %v3900_v32, %v1352_v51  ;;  %v2469_v11 = vmul.f32 %v2405_v37, %v6042_v40 }
 0x2c0   : > { %7990 = vst [vmem:[#allocation40_spill] sm:$0xff] %v6242_v35  ;;  %vm904_vm12 = vcmp.lt.f32.partialorder %v6039_v33, 0.0  ;;  %v1320_v47 = vmul.f32 %v3906_v29, %v6157_v22  ;;  %3915 = vrcp.f32 %v6229_v17  ;;  %v1990_v23 = vmul.f32 %v1926_v27, %v6055_v12 }
 0x2c1   : > { %v3910_v45 = vpop.eup %3909  ;;  %v1894_v59 = vmul.f32 %v1830_v4, %v6104_v16  ;;  %3917 = vpow2.f32 %v2268_v2  ;;  %v2206_v46 = vmul.f32 1.442695, %v2120_v15  ;;  %v1735_v8 = vmul.f32 %v1671_v5, %v6153_v52 }
 0x2c2   : > { %v6254_v32 = vmul.f32 0.5, %v6071_v7  ;;  %v1289_v40 = vmul.f32 %v3908_v38, %v6176_v50  ;;  %v1099_v33 = vmul.f32 0.3275911, %v6239_v48  ;;  %v6259_v22 = vmul.f32 %v2501_v1, %v5962_v10  ;;  %v7992_v10 = vld [vmem:[#allocation15_spill] sm:$0xff] }
 0x2c3   : > { %v1639_v58 = vmul.f32 %v1575_v61, %v6204_v42  ;;  %v6263_v12 = vsel %vm904_vm12, -1.0, %v7817_v62  ;;  %v1480_v34 = vmul.f32 1.0614054, %v6244_v0  ;;  %v2533_v21 = vadd.f32 1.0, %v2469_v11 }
 0x2c4   : > { %7991 = vst [vmem:[#allocation41_spill] sm:$0xff] %v6259_v22  ;;  %vm936_vm13 = vcmp.lt.f32.partialorder %v6096_v36, 0.0  ;;  %v1384_v53 = vsub.f32 2.0, %v1320_v47  ;;  %v1321_v7 = vmul.f32 %v3910_v45, %v6182_v26  ;;  %v2310_v50 = vmul.f32 %v6193_v24, %v1990_v23  ;;  %v7993_v24 = vld [vmem:[#allocation52_spill] sm:$0xff]  ;;  %v8002_v22 = vld [vmem:[#allocation39_spill] sm:$0xff] }
 0x2c5   : > { %v3912_v51 = vpop.eup %3911  ;;  %v1958_v37 = vadd.f32 0.2548296, %v1894_v59  ;;  %3919 = vpow2.f32 %v2206_v46  ;;  %v6271_v1 = vadd.f32 %v7992_v10, %v7854_v57  ;;  %v1799_v4 = vadd.f32 -0.28449672, %v1735_v8  ;;  %v7994_v46 = vld [vmem:[#allocation54_spill] sm:$0xff] }
 0x2c6   : > { %v6273_v27 = vpop.eup %3913  ;;  %v2088_v2 = vsub.f32 0.0, %v6117_v54  ;;  %v1353_v15 = vsub.f32 2.0, %v1289_v40  ;;  %v6276_v5 = vadd.f32 1.0, %v1099_v33  ;;  %v1703_v36 = vadd.f32 1.4214138, %v1639_v58 }
 0x2c7   : > { %v1544_v61 = vadd.f32 -1.4531521, %v1480_v34  ;;  %v6279_v26 = vsel %vm936_vm13, -1.0, %v7817_v62  ;;  %v2482_v11 = vadd.f32 1.0, %v7993_v24  ;;  %v6282_v47 = vmul.f32 %v3906_v29, %v1384_v53 }
 0x2c8   : > { %v1385_v23 = vsub.f32 2.0, %v1321_v7  ;;  %v1290_v59 = vmul.f32 %v3912_v51, %v6208_v6  ;;  %v2483_v10 = vadd.f32 1.0, %v7994_v46  ;;  %v6287_v8 = vmul.f32 %v2533_v21, %v6026_v18  ;;  %v7996_v7 = vld [vmem:[#allocation29_spill] sm:$0xff] }
 0x2c9   : > { %v2374_v40 = vsub.f32 1.0, %v2310_v50  ;;  %v2022_v33 = vmul.f32 %v1958_v37, %v6104_v16  ;;  %v6291_v58 = vmul.f32 0.70710677, %v6271_v1  ;;  %v1863_v35 = vmul.f32 %v1799_v4, %v6153_v52 }
 0x2ca   : > { %7995 = vst [vmem:[#allocation12_spill] sm:$0xff] %v6287_v8  ;;  %v3916_v34 = vpop.eup %3915  ;;  %v2152_v29 = vmul.f32 %v2088_v2, %v6117_v54  ;;  %v6295_v53 = vmul.f32 %v3908_v38, %v1353_v15  ;;  %3921 = vrcp.f32 %v6276_v5  ;;  %v1767_v18 = vmul.f32 %v1703_v36, %v6204_v42  ;;  %v7998_v38 = vld [vmem:[#allocation31_spill] sm:$0xff] }
 0x2cb   : > { %v6298_v6 = vpop.eup %3917  ;;  %v1608_v21 = vmul.f32 %v1544_v61, %v6244_v0  ;;  %v6303_v16 = vmul.f32 0.5, %v6080_v25  ;;  %v6306_v50 = vmul.f32 %v2482_v11, %v7996_v7  ;;  %v1512_v37 = vmul.f32 1.0614054, %v6282_v47  ;;  %v8000_v25 = vld [vmem:[#allocation24_spill] sm:$0xff] }
 0x2cc   : > { %v6309_v4 = vmul.f32 %v3910_v45, %v1385_v23  ;;  %v1354_v54 = vsub.f32 2.0, %v1290_v59  ;;  %v6312_v2 = vmul.f32 %v2483_v10, %v7998_v38  ;;  %v2438_v15 = vmul.f32 %v2374_v40, %v6066_v55 }
 0x2cd   : > { %7997 = vst [vmem:[#allocation15_spill] sm:$0xff] %v6306_v50  ;;  %v1322_v36 = vmul.f32 %v3916_v34, %v6229_v17  ;;  %v6317_v61 = vand.u32 2147483647, %v6291_v58  ;;  %v6321_v24 = vadd.f32 %v8000_v25, %v4482_v30  ;;  %v2342_v11 = vmul.f32 %v6202_v44, %v2022_v33  ;;  %v8001_v17 = vld [vmem:[#allocation58_spill] sm:$0xff] }
 0x2ce   : > { %7999 = vst [vmem:[#allocation52_spill] sm:$0xff] %v6312_v2  ;;  %v1927_v46 = vadd.f32 0.2548296, %v1863_v35  ;;  %v1481_v45 = vmul.f32 1.0614054, %v6295_v53  ;;  %v2610_v23 = vadd.f32 %v6312_v2, %v6306_v50  ;;  %vm905_vm14 = vcmp.lt.f32.partialorder %v6107_v49, 0.0 }
 0x2cf   : > { %v6327_v59 = vpop.eup %3919  ;;  %v1831_v55 = vadd.f32 -0.28449672, %v1767_v18  ;;  %v2270_v10 = vmul.f32 1.442695, %v2152_v29  ;;  %v2516_v40 = vadd.f32 1.0, %v8001_v17  ;;  %v6332_v8 = vmul.f32 %v3912_v51, %v1354_v54 }
 0x2d0   : > { %v1672_v7 = vadd.f32 1.4214138, %v1608_v21  ;;  %v1576_v38 = vadd.f32 -1.4531521, %v1512_v37  ;;  %v1513_v25 = vmul.f32 1.0614054, %v6309_v4  ;;  %2611 = vadd.xlane.f32.xlu0 %v2610_v23  ;;  %v1991_v29 = vmul.f32 %v1927_v46, %v6153_v52 }
 0x2d1   : > { %v1386_v44 = vsub.f32 2.0, %v1322_v36  ;;  %v1131_v35 = vmul.f32 0.3275911, %v6317_v61  ;;  %v6336_v33 = vmul.f32 0.70710677, %v6321_v24  ;;  %v2517_v18 = vadd.f32 1.0, %v8002_v22 }
 0x2d2   : > { %v1545_v14 = vadd.f32 -1.4531521, %v1481_v45  ;;  %v6341_v17 = vmul.f32 0.5, %v6100_v13  ;;  %v8003_v21 = vld [vmem:[#allocation32_spill] sm:$0xff]  ;;  %v2502_v51 = vadd.f32 1.0, %v2438_v15  ;;  %v2406_v54 = vsub.f32 1.0, %v2342_v11 }
 0x2d3   : > { %v6344_v37 = vmul.f32 %v2516_v40, %v8003_v21  ;;  %v1895_v36 = vmul.f32 %v1831_v55, %v6204_v42  ;;  %v6350_v23 = vsel %vm905_vm14, -1.0, %v7817_v62  ;;  %v1736_v22 = vmul.f32 %v1672_v7, %v6244_v0  ;;  %v8005_v46 = vld [vmem:[#allocation36_spill] sm:$0xff] }
 0x2d4   : > { %v3922_v2 = vpop.eup %3921  ;;  %v1640_v52 = vmul.f32 %v1576_v38, %v6282_v47  ;;  %v1482_v13 = vmul.f32 1.0614054, %v6332_v8  ;;  %v6356_v45 = vmul.f32 %v2517_v18, %v8005_v46  ;;  %v1577_v40 = vadd.f32 -1.4531521, %v1513_v25  ;;  %v8007_v25 = vld [vmem:[#allocation67_spill] sm:$0xff] }
 0x2d5   : > { %8004 = vst [vmem:[#allocation54_spill] sm:$0xff] %v6344_v37  ;;  %v6358_v15 = vmul.f32 %v3916_v34, %v1386_v44  ;;  %v6360_v11 = vadd.f32 1.0, %v1131_v35  ;;  %v6363_v55 = vand.u32 2147483647, %v6336_v33  ;;  %v2311_v49 = vmul.f32 %v6273_v27, %v1991_v29 }
 0x2d6   : > { %8006 = vst [vmem:[#allocation29_spill] sm:$0xff] %v6356_v45  ;;  %v1609_v21 = vmul.f32 %v1545_v14, %v6295_v53  ;;  %v2057_v7 = vsub.f32 0.0, %v6134_v20  ;;  %v2661_v38 = vadd.f32 %v6356_v45, %v6344_v37  ;;  %v2470_v18 = vmul.f32 %v2406_v54, %v6093_v3 }
 0x2d7   : > { %v1959_v46 = vadd.f32 0.2548296, %v1895_v36  ;;  %vm937_vm15 = vcmp.lt.f32.partialorder %v8007_v25, 0.0  ;;  %v1291_v34 = vmul.f32 %v3922_v2, %v6276_v5  ;;  %v1800_v44 = vadd.f32 -0.28449672, %v1736_v22  ;;  %v8008_v5 = vld [vmem:[#allocation68_spill] sm:$0xff] }
 0x2d8   : > { %v1704_v35 = vadd.f32 1.4214138, %v1640_v52  ;;  %3923 = vpow2.f32 %v2270_v10  ;;  %v1546_v50 = vadd.f32 -1.4531521, %v1482_v13  ;;  %2662 = vadd.xlane.f32.xlu1 %v2661_v38  ;;  %v1641_v27 = vmul.f32 %v1577_v40, %v6309_v4 }
 0x2d9   : > { %v1514_v14 = vmul.f32 1.0614054, %v6358_v15  ;;  %3925 = vrcp.f32 %v6360_v11  ;;  %v1100_v29 = vmul.f32 0.3275911, %v6363_v55  ;;  %v2375_v45 = vsub.f32 1.0, %v2311_v49 }
 0x2da   : > { %v1673_v3 = vadd.f32 1.4214138, %v1609_v21  ;;  %v2121_v54 = vmul.f32 %v2057_v7, %v6134_v20  ;;  %v2089_v36 = vsub.f32 0.0, %v6140_v9  ;;  %v6380_v22 = vmul.f32 %v2502_v51, %v8008_v5  ;;  %v8010_v51 = vld [vmem:[#allocation61_spill] sm:$0xff] }
 0x2db   : > { %v2534_v10 = vadd.f32 1.0, %v2470_v18  ;;  %v2023_v52 = vmul.f32 %v1959_v46, %v6204_v42  ;;  %v1355_v13 = vsub.f32 2.0, %v1291_v34  ;;  %v1864_v40 = vmul.f32 %v1800_v44, %v6244_v0 }
 0x2dc   : > { %8009 = vst [vmem:[#allocation31_spill] sm:$0xff] %v6380_v22  ;;  %v1768_v38 = vmul.f32 %v1704_v35, %v6282_v47  ;;  %v6388_v49 = vsel %vm937_vm15, -1.0, %v7817_v62  ;;  %v1610_v20 = vmul.f32 %v1546_v50, %v6332_v8  ;;  %v1705_v21 = vadd.f32 1.4214138, %v1641_v27  ;;  %v8011_v35 = vld [vmem:[#allocation14_spill] sm:$0xff] }
 0x2dd   : > { %v1578_v7 = vadd.f32 -1.4531521, %v1514_v14  ;;  %v6391_v37 = vadd.f32 1.0, %v1100_v29  ;;  %v6395_v18 = vadd.f32 %v8010_v51, %v4482_v30  ;;  %v2439_v42 = vmul.f32 %v2375_v45, %v6166_v60  ;;  %v8012_v14 = vld [vmem:[#allocation48_spill] sm:$0xff] }
 0x2de   : > { %v1737_v46 = vmul.f32 %v1673_v3, %v6295_v53  ;;  %v2208_v34 = vmul.f32 1.442695, %v2121_v54  ;;  %v2153_v44 = vmul.f32 %v2089_v36, %v6140_v9  ;;  %v2343_v25 = vmul.f32 %v6298_v6, %v2023_v52 }
 0x2df   : > { %v6402_v5 = vmul.f32 0.5, %v8011_v35  ;;  %v2058_v50 = vsub.f32 0.0, %v6161_v31  ;;  %v6405_v27 = vmul.f32 %v3922_v2, %v1355_v13  ;;  %v6408_v29 = vmul.f32 %v2534_v10, %v8012_v14 }
 0x2e0   : > { %v1928_v51 = vadd.f32 0.2548296, %v1864_v40  ;;  %v1832_v22 = vadd.f32 -0.28449672, %v1768_v38  ;;  %v1674_v60 = vadd.f32 1.4214138, %v1610_v20  ;;  %v1769_v45 = vmul.f32 %v1705_v21, %v6309_v4 }
 0x2e1   : > { %8013 = vst [vmem:[#allocation24_spill] sm:$0xff] %v6408_v29  ;;  %v1642_v3 = vmul.f32 %v1578_v7, %v6358_v15  ;;  %3927 = vrcp.f32 %v6391_v37  ;;  %v6414_v9 = vmul.f32 0.70710677, %v6395_v18  ;;  %v2503_v54 = vadd.f32 1.0, %v2439_v42  ;;  %v8014_v38 = vld [vmem:[#allocation30_spill] sm:$0xff]  ;;  %v8015_v20 = vld [vmem:[#allocation56_spill] sm:$0xff] }
 0x2e2   : > { %v3924_v6 = vpop.eup %3923  ;;  %v1801_v36 = vadd.f32 -0.28449672, %v1737_v46  ;;  %v2272_v2 = vmul.f32 1.442695, %v2153_v44  ;;  %vm906_vm0 = vcmp.lt.f32.partialorder %v6143_v63, 0.0  ;;  %v2407_v52 = vsub.f32 1.0, %v2343_v25 }
 0x2e3   : > { %v3926_v10 = vpop.eup %3925  ;;  %v2122_v13 = vmul.f32 %v2058_v50, %v6161_v31  ;;  %v1483_v40 = vmul.f32 1.0614054, %v6405_v27  ;;  %v2658_v21 = vadd.f32 %v8015_v20, %v8014_v38  ;;  %v1992_v7 = vmul.f32 %v1928_v51, %v6244_v0  ;;  %v8016_v31 = vld [vmem:[#allocation66_spill] sm:$0xff] }
 0x2e4   : > { %v1896_v35 = vmul.f32 %v1832_v22, %v6282_v47  ;;  %v1738_v14 = vmul.f32 %v1674_v60, %v6332_v8  ;;  %v2090_v42 = vsub.f32 0.0, %v6191_v39  ;;  %3929 = vpow2.f32 %v2208_v34 }
 0x2e5   : > { %v1833_v46 = vadd.f32 -0.28449672, %v1769_v45  ;;  %v1706_v44 = vadd.f32 1.4214138, %v1642_v3  ;;  %v6426_v25 = vand.u32 2147483647, %v6414_v9  ;;  %2659 = vadd.xlane.f32.xlu0 %v2658_v21  ;;  %v6429_v50 = vmul.f32 %v2503_v54, %v8016_v31 }
 0x2e6   : > { %v1865_v29 = vmul.f32 %v1801_v36, %v6295_v53  ;;  %v6435_v0 = vsel %vm906_vm0, -1.0, %v7817_v62  ;;  %v1323_v22 = vmul.f32 %v3926_v10, %v6360_v11  ;;  %3931 = vpow2.f32 %v2272_v2 }
 0x2e7   : > { %v2210_v34 = vmul.f32 1.442695, %v2122_v13  ;;  %v6439_v51 = vmul.f32 0.5, %v6149_v41  ;;  %v1547_v60 = vadd.f32 -1.4531521, %v1483_v40  ;;  %v2312_v45 = vmul.f32 %v6327_v59, %v1992_v7  ;;  %v8017_v41 = vld [vmem:[#allocation17_spill] sm:$0xff] }
 0x2e8   : > { %v1960_v3 = vadd.f32 0.2548296, %v1896_v35  ;;  %v1802_v54 = vadd.f32 -0.28449672, %v1738_v14  ;;  %v2154_v21 = vmul.f32 %v2090_v42, %v6191_v39  ;;  %v2471_v36 = vmul.f32 %v2407_v52, %v6227_v56  ;;  %v8018_v56 = vld [vmem:[#allocation33_spill] sm:$0xff] }
 0x2e9   : > { %v1897_v63 = vmul.f32 %v1833_v46, %v6309_v4  ;;  %v1770_v31 = vmul.f32 %v1706_v44, %v6358_v15  ;;  %v1132_v11 = vmul.f32 0.3275911, %v6426_v25  ;;  %v1929_v2 = vadd.f32 0.2548296, %v1865_v29 }
 0x2ea   : > { %vm938_vm1 = vcmp.lt.f32.partialorder %v6169_v19, 0.0  ;;  %v6449_v13 = vmul.f32 0.5, %v8017_v41  ;;  %v1387_v40 = vsub.f32 2.0, %v1323_v22  ;;  %3933 = vpow2.f32 %v2210_v34 }
 0x2eb   : > { %v3928_v59 = vpop.eup %3927  ;;  %v1611_v7 = vmul.f32 %v1547_v60, %v6405_v27  ;;  %v2059_v39 = vsub.f32 0.0, %v6239_v48  ;;  %v6455_v52 = vadd.f32 %v8018_v56, %v7854_v57  ;;  %v2376_v35 = vsub.f32 1.0, %v2312_v45 }
 0x2ec   : > { %v2024_v14 = vmul.f32 %v1960_v3, %v6282_v47  ;;  %v1866_v29 = vmul.f32 %v1802_v54, %v6332_v8  ;;  %v2274_v42 = vmul.f32 1.442695, %v2154_v21  ;;  %v2535_v46 = vadd.f32 1.0, %v2471_v36 }
 0x2ed   : > { %v1961_v44 = vadd.f32 0.2548296, %v1897_v63  ;;  %v1834_v41 = vadd.f32 -0.28449672, %v1770_v31  ;;  %v6459_v22 = vadd.f32 1.0, %v1132_v11  ;;  %v1993_v34 = vmul.f32 %v1929_v2, %v6295_v53  ;;  %v8019_v31 = vld [vmem:[#allocation44_spill] sm:$0xff] }
 0x2ee   : > { %v6465_v60 = vsel %vm938_vm1, -1.0, %v7817_v62  ;;  %v6467_v56 = vmul.f32 %v3926_v10, %v1387_v40  ;;  %v1292_v45 = vmul.f32 %v3928_v59, %v6391_v37  ;;  %v3930_v47 = vpop.eup %3929  ;;  %vm907_vm2 = vcmp.lt.f32.partialorder %v6219_v28, 0.0 }
 0x2ef   : > { %v1675_v3 = vadd.f32 1.4214138, %v1611_v7  ;;  %v2123_v54 = vmul.f32 %v2059_v39, %v6239_v48  ;;  %v6473_v21 = vmul.f32 0.70710677, %v6455_v52  ;;  %v2440_v53 = vmul.f32 %v2376_v35, %v6263_v12 }
 0x2f0   : > { %v2344_v36 = vmul.f32 %v3924_v6, %v2024_v14  ;;  %v1930_v63 = vadd.f32 0.2548296, %v1866_v29  ;;  %3935 = vpow2.f32 %v2274_v42  ;;  %v3932_v19 = vpop.eup %3931  ;;  %v6477_v10 = vmul.f32 %v2535_v46, %v8019_v31 }
 0x2f1   : > { %v2025_v37 = vmul.f32 %v1961_v44, %v6309_v4  ;;  %v1898_v11 = vmul.f32 %v1834_v41, %v6358_v15  ;;  %3937 = vrcp.f32 %v6459_v22  ;;  %v2313_v28 = vmul.f32 %v3930_v47, %v1993_v34  ;;  %v8021_v41 = vld [vmem:[#allocation57_spill] sm:$0xff] }
 0x2f2   : > { %8020 = vst [vmem:[#allocation58_spill] sm:$0xff] %v6477_v10  ;;  %v6483_v48 = vsel %vm907_vm2, -1.0, %v7817_v62  ;;  %v1515_v2 = vmul.f32 1.0614054, %v6467_v56  ;;  %v1356_v12 = vsub.f32 2.0, %v1292_v45  ;;  %v1739_v6 = vmul.f32 %v1675_v3, %v6405_v27 }
 0x2f3   : > { %v2212_v40 = vmul.f32 1.442695, %v2123_v54  ;;  %v6488_v7 = vmul.f32 0.5, %v6271_v1  ;;  %v6491_v39 = vand.u32 2147483647, %v6473_v21  ;;  %v2504_v4 = vadd.f32 1.0, %v2440_v53 }
 0x2f4   : > { %v2408_v35 = vsub.f32 1.0, %v2344_v36  ;;  %v1994_v14 = vmul.f32 %v1930_v63, %v6332_v8  ;;  %v2091_v29 = vsub.f32 0.0, %v6317_v61  ;;  %v3934_v42 = vpop.eup %3933  ;;  %v2345_v46 = vmul.f32 %v3932_v19, %v2025_v37  ;;  %v8022_v8 = vld [vmem:[#allocation63_spill] sm:$0xff]  ;;  %v8023_v63 = vld [vmem:[#allocation37_spill] sm:$0xff] }
 0x2f5   : > { %v1962_v44 = vadd.f32 0.2548296, %v1898_v11  ;;  %vm939_vm3 = vcmp.lt.f32.partialorder %v6291_v58, 0.0  ;;  %v2741_v34 = vmul.f32 %v8021_v41, %v8021_v41  ;;  %v2377_v45 = vsub.f32 1.0, %v2313_v28 }
 0x2f6   : > { %v1579_v1 = vadd.f32 -1.4531521, %v1515_v2  ;;  %v6498_v47 = vmul.f32 %v3928_v59, %v1356_v12  ;;  %v2060_v3 = vsub.f32 0.0, %v6363_v55  ;;  %v1803_v54 = vadd.f32 -0.28449672, %v1739_v6 }
 0x2f7   : > { %v1101_v53 = vmul.f32 0.3275911, %v6491_v39  ;;  %v6504_v36 = vadd.f32 %v8022_v8, %v7854_v57  ;;  %v2742_v19 = vmul.f32 %v8023_v63, %v8023_v63  ;;  %v2472_v31 = vmul.f32 %v2408_v35, %v6279_v26 }
 0x2f8   : > { %v2314_v37 = vmul.f32 %v3934_v42, %v1994_v14  ;;  %3939 = vpow2.f32 %v2212_v40  ;;  %v2155_v11 = vmul.f32 %v2091_v29, %v6317_v61  ;;  %v6511_v59 = vmul.f32 %v2504_v4, %v6236_v43 }
 0x2f9   : > { %v2409_v28 = vsub.f32 1.0, %v2345_v46  ;;  %v2026_v2 = vmul.f32 %v1962_v44, %v6358_v15  ;;  %v2806_v12 = vadd.f32 %v2742_v19, %v2741_v34  ;;  %v2441_v8 = vmul.f32 %v2377_v45, %v6350_v23 }
 0x2fa   : > { %v3936_v6 = vpop.eup %3935  ;;  %v6518_v10 = vsel %vm939_vm3, -1.0, %v7817_v62  ;;  %v1643_v26 = vmul.f32 %v1579_v1, %v6467_v56  ;;  %v1484_v40 = vmul.f32 1.0614054, %v6498_v47  ;;  %v1867_v43 = vmul.f32 %v1803_v54, %v6405_v27 }
 0x2fb   : > { %v3938_v61 = vpop.eup %3937  ;;  %v2124_v4 = vmul.f32 %v2060_v3, %v6363_v55  ;;  %v6524_v35 = vadd.f32 1.0, %v1101_v53  ;;  %v6527_v15 = vmul.f32 0.70710677, %v6504_v36  ;;  %2807 = vadd.xlane.f32.xlu1 %v2806_v12  ;;  %v2536_v23 = vadd.f32 1.0, %v2472_v31 }
 0x2fc   : > { %v2378_v14 = vsub.f32 1.0, %v2314_v37  ;;  %v2276_v58 = vmul.f32 1.442695, %v2155_v11  ;;  %v2092_v29 = vsub.f32 0.0, %v6426_v25  ;;  %v2473_v42 = vmul.f32 %v2409_v28, %v6388_v49 }
 0x2fd   : > { %v2346_v46 = vmul.f32 %v3936_v6, %v2026_v2  ;;  %v6532_v44 = vmul.f32 0.5, %v6321_v24  ;;  %vm908_vm4 = vcmp.lt.f32.partialorder %v6336_v33, 0.0  ;;  %v2505_v55 = vadd.f32 1.0, %v2441_v8 }
 0x2fe   : > { %v1707_v34 = vadd.f32 1.4214138, %v1643_v26  ;;  %v1548_v45 = vadd.f32 -1.4531521, %v1484_v40  ;;  %v1324_v1 = vmul.f32 %v3938_v61, %v6459_v22  ;;  %v1931_v3 = vadd.f32 0.2548296, %v1867_v43 }
 0x2ff   : > { %v2214_v54 = vmul.f32 1.442695, %v2124_v4  ;;  %3941 = vrcp.f32 %v6524_v35  ;;  %v6538_v53 = vand.u32 2147483647, %v6527_v15  ;;  %v6541_v49 = vmul.f32 %v2536_v23, %v6254_v32 }
 0x300   : > { %v2442_v24 = vmul.f32 %v2378_v14, %v6435_v0  ;;  %3943 = vpow2.f32 %v2276_v58  ;;  %v2156_v33 = vmul.f32 %v2092_v29, %v6426_v25  ;;  %v2537_v19 = vadd.f32 1.0, %v2473_v42 }
 0x301   : > { %8024 = vst [vmem:[#allocation39_spill] sm:$0xff] %v6541_v49  ;;  %v2410_v31 = vsub.f32 1.0, %v2346_v46  ;;  %v6546_v37 = vsel %vm908_vm4, -1.0, %v7817_v62  ;;  %vm940_vm5 = vcmp.lt.f32.partialorder %v6414_v9, 0.0  ;;  %v1771_v11 = vmul.f32 %v1707_v34, %v6467_v56 }
 0x302   : > { %v3940_v22 = vpop.eup %3939  ;;  %v1612_v28 = vmul.f32 %v1548_v45, %v6498_v47  ;;  %v6552_v32 = vmul.f32 0.5, %v6395_v18  ;;  %v1388_v2 = vsub.f32 2.0, %v1324_v1  ;;  %v6555_v0 = vmul.f32 %v2505_v55, %v6303_v16  ;;  %v8028_v16 = vld [vmem:[#allocation22_spill] sm:$0xff]  ;;  %v8032_v55 = vld [vmem:[#allocation25_spill] sm:$0xff] }
 0x303   : > { %v1995_v25 = vmul.f32 %v1931_v3, %v6405_v27  ;;  %3945 = vpow2.f32 %v2214_v54  ;;  %v1133_v12 = vmul.f32 0.3275911, %v6538_v53  ;;  %v2506_v6 = vadd.f32 1.0, %v2442_v24  ;;  %v8033_v1 = vld [vmem:[#allocation54_spill] sm:$0xff] }
 0x304   : > { %8025 = vst [vmem:[#allocation32_spill] sm:$0xff] %v6552_v32  ;;  %8026 = vst [vmem:[#allocation36_spill] sm:$0xff] %v6555_v0  ;;  %v6560_v9 = vsel %vm940_vm5, -1.0, %v7817_v62  ;;  %v2278_v8 = vmul.f32 1.442695, %v2156_v33  ;;  %v2061_v26 = vsub.f32 0.0, %v6491_v39  ;;  %v6564_v40 = vmul.f32 %v2537_v19, %v6341_v17 }
 0x305   : > { %v2474_v18 = vmul.f32 %v2410_v31, %v6465_v60  ;;  %v6569_v43 = vadd.f32 %v8028_v16, %v4482_v30  ;;  %v2613_v27 = vadd.f32 %v8023_v63, %v8021_v41  ;;  %v1835_v4 = vadd.f32 -0.28449672, %v1771_v11  ;;  %v8056_v41 = vld [vmem:[#allocation16_spill] sm:$0xff] }
 0x306   : > { %8027 = vst [vmem:[#allocation67_spill] sm:$0xff] %v6564_v40  ;;  %v1676_v23 = vadd.f32 1.4214138, %v1612_v28  ;;  %v6573_v14 = vmul.f32 %v3938_v61, %v1388_v2  ;;  %vm909_vm6 = vcmp.lt.f32.partialorder %v6473_v21, 0.0  ;;  %v2315_v58 = vmul.f32 %v3940_v22, %v1995_v25  ;;  %v8035_v22 = vld [vmem:[#allocation29_spill] sm:$0xff]  ;;  %v8036_v28 = vld [vmem:[#allocation15_spill] sm:$0xff] }
 0x307   : > { %v6577_v29 = vmul.f32 0.5, %v6455_v52  ;;  %v6580_v17 = vmul.f32 0.5, %v6504_v36  ;;  %v6582_v60 = vadd.f32 1.0, %v1133_v12  ;;  %2614 = vadd.xlane.f32.xlu0 %v2613_v27  ;;  %v6585_v42 = vmul.f32 %v2506_v6, %v6402_v5 }
 0x308   : > { %3947 = vpow2.f32 %v2278_v8  ;;  %v2125_v46 = vmul.f32 %v2061_v26, %v6491_v39  ;;  %vm941_vm7 = vcmp.lt.f32.partialorder %v6527_v15, 0.0  ;;  %v6589_v21 = vadd.f32 1.0, %v2474_v18  ;;  %v8037_v8 = vld [vmem:[#allocation13_spill] sm:$0xff] }
 0x309   : > { %8029 = vst [vmem:[#allocation68_spill] sm:$0xff] %v6577_v29  ;;  %8030 = vst [vmem:[#allocation61_spill] sm:$0xff] %v6580_v17  ;;  %v3942_v61 = vpop.eup %3941  ;;  %v6592_v52 = vsel %vm909_vm6, -1.0, %v7817_v62  ;;  %v6595_v36 = vmul.f32 0.70710677, %v6569_v43  ;;  %v6599_v34 = vadd.f32 %v8032_v55, %v7854_v57  ;;  %v1899_v45 = vmul.f32 %v1835_v4, %v6467_v56  ;;  %v8040_v55 = vld [vmem:[#allocation51_spill] sm:$0xff] }
 0x30a   : > { %8031 = vst [vmem:[#allocation14_spill] sm:$0xff] %v6585_v42  ;;  %v6601_v5 = vpop.eup %3943  ;;  %v1740_v39 = vmul.f32 %v1676_v23, %v6498_v47  ;;  %v1516_v15 = vmul.f32 1.0614054, %v6573_v14  ;;  %v2773_v3 = vmul.f32 %v8033_v1, %v8033_v1  ;;  %v2379_v54 = vsub.f32 1.0, %v2315_v58  ;;  %v8059_v42 = vld [vmem:[#allocation45_spill] sm:$0xff] }
 0x30b   : > { %v6609_v24 = vsel %vm941_vm7, -1.0, %v7817_v62  ;;  %3949 = vrcp.f32 %v6582_v60  ;;  %v2093_v33 = vsub.f32 0.0, %v6538_v53  ;;  %v1293_v19 = vmul.f32 %v3942_v61, %v6524_v35  ;;  %v8039_v35 = vld [vmem:[#allocation52_spill] sm:$0xff] }
 0x30c   : > { %8034 = vst [vmem:[#allocation48_spill] sm:$0xff] %v6609_v24  ;;  %v2216_v31 = vmul.f32 1.442695, %v2125_v46  ;;  %v2774_v11 = vmul.f32 %v8035_v22, %v8035_v22  ;;  %v2739_v2 = vmul.f32 %v8036_v28, %v8036_v28  ;;  %v6621_v12 = vand.u32 2147483647, %v6595_v36 }
 0x30d   : > { %v6618_v25 = vpop.eup %3945  ;;  %v6624_v6 = vmul.f32 0.70710677, %v6599_v34  ;;  %v6628_v26 = vadd.f32 %v8037_v8, %v4482_v30  ;;  %v2740_v18 = vmul.f32 %v8039_v35, %v8039_v35  ;;  %v1963_v16 = vadd.f32 0.2548296, %v1899_v45  ;;  %v8042_v8 = vld [vmem:[#allocation55_spill] sm:$0xff] }
 0x30e   : > { %v1804_v27 = vadd.f32 -0.28449672, %v1740_v39  ;;  %v1580_v4 = vadd.f32 -1.4531521, %v1516_v15  ;;  %v2854_v23 = vadd.f32 %v2774_v11, %v2773_v3  ;;  %v2443_v58 = vmul.f32 %v2379_v54, %v6483_v48 }
 0x30f   : > { %8038 = vst [vmem:[#allocation66_spill] sm:$0xff] %v6628_v26  ;;  %v2157_v46 = vmul.f32 %v2093_v33, %v6538_v53  ;;  %v6636_v22 = vadd.f32 %v8040_v55, %v7854_v57  ;;  %v2803_v1 = vadd.f32 %v2740_v18, %v2739_v2  ;;  %v1357_v28 = vsub.f32 2.0, %v1293_v19  ;;  %v8044_v19 = vld [vmem:[#allocation71_spill] sm:$0xff]  ;;  %v8047_v2 = vld [vmem:[#allocation18_spill] sm:$0xff] }
 0x310   : > { %v6640_v63 = vadd.f32 %v8042_v8, %v4482_v30  ;;  %2855 = vadd.xlane.f32.xlu1 %v2854_v23  ;;  %v2771_v45 = vmul.f32 %v8014_v38, %v8014_v38  ;;  %v2772_v39 = vmul.f32 %v8015_v20, %v8015_v20  ;;  %3951 = vpow2.f32 %v2216_v31  ;;  %v8046_v31 = vld [vmem:[#allocation47_spill] sm:$0xff] }
 0x311   : > { %8041 = vst [vmem:[#allocation17_spill] sm:$0xff] %v6636_v22  ;;  %v1102_v48 = vmul.f32 0.3275911, %v6621_v12  ;;  %v6648_v53 = vand.u32 2147483647, %v6624_v6  ;;  %2804 = vadd.xlane.f32.xlu0 %v2803_v1  ;;  %v1868_v54 = vmul.f32 %v1804_v27, %v6498_v47  ;;  %v1644_v33 = vmul.f32 %v1580_v4, %v6573_v14 }
 0x312   : > { %8043 = vst [vmem:[#allocation33_spill] sm:$0xff] %v6640_v63  ;;  %v6651_v15 = vmul.f32 0.70710677, %v6628_v26  ;;  %v6653_v3 = vpop.eup %3947  ;;  %v6659_v11 = vadd.f32 %v8044_v19, %v7854_v57  ;;  %v2616_v18 = vadd.f32 %v8047_v2, %v8046_v31  ;;  %v6663_v23 = vadd.f32 1.0, %v2443_v58  ;;  %v8049_v19 = vld [vmem:[#allocation35_spill] sm:$0xff] }
 0x313   : > { %v2027_v55 = vmul.f32 %v1963_v16, %v6467_v56  ;;  %v6667_v8 = vmul.f32 0.70710677, %v6636_v22  ;;  %v2851_v1 = vadd.f32 %v2772_v39, %v2771_v45  ;;  %v6669_v20 = vmul.f32 %v3942_v61, %v1357_v28  ;;  %v8051_v61 = vld [vmem:[#allocation74_spill] sm:$0xff] }
 0x314   : > { %8045 = vst [vmem:[#allocation44_spill] sm:$0xff] %v6659_v11  ;;  %v2280_v27 = vmul.f32 1.442695, %v2157_v46  ;;  %v6672_v4 = vmul.f32 0.70710677, %v6640_v63  ;;  %v6676_v38 = vadd.f32 %v8049_v19, %v4482_v30  ;;  %2617 = vadd.xlane.f32.xlu1 %v2616_v18  ;;  %v6678_v58 = vadd.f32 1.0, %v1102_v48 }
 0x315   : > { %v3950_v35 = vpop.eup %3949  ;;  %v1103_v56 = vmul.f32 0.3275911, %v6648_v53  ;;  %v6682_v16 = vand.u32 2147483647, %v6651_v15  ;;  %v6686_v28 = vadd.f32 %v8051_v61, %v7854_v57  ;;  %2852 = vadd.xlane.f32.xlu0 %v2851_v1  ;;  %v1932_v46 = vadd.f32 0.2548296, %v1868_v54 }
 0x316   : > { %8048 = vst [vmem:[#allocation63_spill] sm:$0xff] %v6672_v4  ;;  %8050 = vst [vmem:[#allocation22_spill] sm:$0xff] %v6676_v38  ;;  %v1708_v45 = vadd.f32 1.4214138, %v1644_v33  ;;  %v6689_v39 = vmul.f32 0.70710677, %v6659_v11  ;;  %v2743_v26 = vmul.f32 %v8046_v31, %v8046_v31  ;;  %v2744_v57 = vmul.f32 %v8047_v2, %v8047_v2 }
 0x317   : > { %8052 = vst [vmem:[#allocation25_spill] sm:$0xff] %v6686_v28  ;;  %v8054_v30 = vld [vmem:[#allocation60_spill] sm:$0xff]  ;;  %v8055_v18 = vld [vmem:[#allocation46_spill] sm:$0xff]  ;;  %v6694_v48 = vand.u32 2147483647, %v6667_v8  ;;  %v8057_v63 = vld [vmem:[#allocation19_spill] sm:$0xff]  ;;  %v1325_v33 = vmul.f32 %v3950_v35, %v6582_v60  ;;  %3953 = vrcp.f32 %v6678_v58 }
 0x318   : > { %8053 = vst [vmem:[#allocation13_spill] sm:$0xff] %v6689_v39  ;;  %v2619_v19 = vadd.f32 %v8055_v18, %v8054_v30  ;;  %v2664_v22 = vadd.f32 %v8057_v63, %v8056_v41  ;;  %v1485_v54 = vmul.f32 1.0614054, %v6669_v20  ;;  %v6705_v1 = vand.u32 2147483647, %v6672_v4  ;;  %v8058_v60 = vld [vmem:[#allocation23_spill] sm:$0xff] }
 0x319   : > { %v6708_v61 = vmul.f32 0.70710677, %v6676_v38  ;;  %v6711_v11 = vadd.f32 1.0, %v1103_v56  ;;  %v1104_v31 = vmul.f32 0.3275911, %v6682_v16  ;;  %v2667_v29 = vadd.f32 %v8059_v42, %v8058_v60 }
 0x31a   : > { %2620 = vadd.xlane.f32.xlu1 %v2619_v19  ;;  %v6715_v17 = vmul.f32 0.70710677, %v6686_v28  ;;  %2665 = vadd.xlane.f32.xlu0 %v2664_v22  ;;  %v6718_v2 = vand.u32 2147483647, %v6689_v39  ;;  %v2745_v38 = vmul.f32 %v8054_v30, %v8054_v30  ;;  %v2746_v19 = vmul.f32 %v8055_v18, %v8055_v18  ;;  %v6726_v56 = vpop.eup %3951 }
 0x31b   : > { %v1105_v4 = vmul.f32 0.3275911, %v6694_v48  ;;  %v2809_v32 = vadd.f32 %v2744_v57, %v2743_v26  ;;  %v2775_v22 = vmul.f32 %v8056_v41, %v8056_v41  ;;  %v2776_v28 = vmul.f32 %v8057_v63, %v8057_v63 }
 0x31c   : > { %v2347_v39 = vmul.f32 %v6601_v5, %v2027_v55  ;;  %v1389_v24 = vsub.f32 2.0, %v1325_v33  ;;  %v1134_v40 = vmul.f32 0.3275911, %v6705_v1  ;;  %v6736_v30 = vand.u32 2147483647, %v6708_v61 }
 0x31d   : > { %v1772_v18 = vmul.f32 %v1708_v45, %v6573_v14  ;;  %v1549_v49 = vadd.f32 -1.4531521, %v1485_v54  ;;  %v6739_v0 = vadd.f32 1.0, %v1104_v31  ;;  %v6742_v26 = vand.u32 2147483647, %v6715_v17 }
 0x31e   : > { %2668 = vadd.xlane.f32.xlu1 %v2667_v29  ;;  %2810 = vadd.xlane.f32.xlu0 %v2809_v32  ;;  %v1135_v57 = vmul.f32 0.3275911, %v6718_v2  ;;  %v2812_v63 = vadd.f32 %v2746_v19, %v2745_v38  ;;  %v2777_v5 = vmul.f32 %v8058_v60, %v8058_v60  ;;  %v2778_v55 = vmul.f32 %v8059_v42, %v8059_v42 }
 0x31f   : > { %v1996_v29 = vmul.f32 %v1932_v46, %v6498_v47  ;;  %3955 = vrcp.f32 %v6711_v11  ;;  %v6751_v45 = vadd.f32 1.0, %v1105_v4  ;;  %v2857_v31 = vadd.f32 %v2776_v28, %v2775_v22 }
 0x320   : > { %v2411_v54 = vsub.f32 1.0, %v2347_v39  ;;  %v6753_v33 = vmul.f32 %v3950_v35, %v1389_v24  ;;  %v6755_v32 = vadd.f32 1.0, %v1134_v40  ;;  %v1136_v38 = vmul.f32 0.3275911, %v6736_v30 }
 0x321   : > { %v6760_v19 = vmul.f32 %v6589_v21, %v6439_v51  ;;  %v1836_v42 = vadd.f32 -0.28449672, %v1772_v18  ;;  %3957 = vpow2.f32 %v2280_v27  ;;  %v1137_v47 = vmul.f32 0.3275911, %v6742_v26  ;;  %v6767_v35 = vpop.eup %3953  ;;  %v8061_v21 = vld [vmem:[#allocation49_spill] sm:$0xff]  ;;  %v8062_v27 = vld [vmem:[#allocation62_spill] sm:$0xff] }
 0x322   : > { %2813 = vadd.xlane.f32.xlu1 %v2812_v63  ;;  %2858 = vadd.xlane.f32.xlu0 %v2857_v31  ;;  %v1613_v4 = vmul.f32 %v1549_v49, %v6669_v20  ;;  %3959 = vrcp.f32 %v6739_v0  ;;  %v6765_v24 = vadd.f32 1.0, %v1135_v57  ;;  %v2860_v40 = vadd.f32 %v2778_v55, %v2777_v5  ;;  %v8065_v57 = vld [vmem:[#allocation65_spill] sm:$0xff]  ;;  %v8067_v31 = vld [vmem:[#allocation34_spill] sm:$0xff] }
 0x323   : > { %8060 = vst [vmem:[#allocation51_spill] sm:$0xff] %v6760_v19  ;;  %v6771_v63 = vmul.f32 %v6663_v23, %v6449_v13  ;;  %v2316_v51 = vmul.f32 %v6618_v25, %v1996_v29  ;;  %3961 = vrcp.f32 %v6751_v45  ;;  %v2622_v28 = vadd.f32 %v8062_v27, %v8061_v21  ;;  %v8066_v29 = vld [vmem:[#allocation27_spill] sm:$0xff] }
 0x324   : > { %v2475_v49 = vmul.f32 %v2411_v54, %v6518_v10  ;;  %v1517_v46 = vmul.f32 1.0614054, %v6753_v33  ;;  %3963 = vrcp.f32 %v6755_v32  ;;  %v6780_v39 = vadd.f32 1.0, %v1136_v38  ;;  %v8064_v10 = vld [vmem:[#allocation64_spill] sm:$0xff] }
 0x325   : > { %v1900_v18 = vmul.f32 %v1836_v42, %v6573_v14  ;;  %v6784_v13 = vmul.f32 0.5, %v6569_v43  ;;  %v2062_v25 = vsub.f32 0.0, %v6621_v12  ;;  %v6787_v23 = vadd.f32 1.0, %v1137_v47 }
 0x326   : > { %2861 = vadd.xlane.f32.xlu1 %v2860_v40  ;;  %2623 = vadd.xlane.f32.xlu0 %v2622_v28  ;;  %v1677_v22 = vadd.f32 1.4214138, %v1613_v4  ;;  %vm910_vm8 = vcmp.lt.f32.partialorder %v6595_v36, 0.0  ;;  %3965 = vrcp.f32 %v6765_v24  ;;  %v2625_v5 = vadd.f32 %v8065_v57, %v8064_v10 }
 0x327   : > { %8063 = vst [vmem:[#allocation55_spill] sm:$0xff] %v6784_v13  ;;  %v2380_v55 = vsub.f32 1.0, %v2316_v51  ;;  %v2670_v42 = vadd.f32 %v8067_v31, %v8066_v29  ;;  %v2747_v43 = vmul.f32 %v8061_v21, %v8061_v21  ;;  %v2748_v54 = vmul.f32 %v8062_v27, %v8062_v27  ;;  %v8068_v27 = vld [vmem:[#allocation38_spill] sm:$0xff] }
 0x328   : > { %v2539_v38 = vadd.f32 1.0, %v2475_v49  ;;  %v1581_v47 = vadd.f32 -1.4531521, %v1517_v46  ;;  %v1294_v4 = vmul.f32 %v6767_v35, %v6678_v58  ;;  %3967 = vrcp.f32 %v6780_v39  ;;  %v8069_v49 = vld [vmem:[#allocation42_spill] sm:$0xff] }
 0x329   : > { %v3956_v40 = vpop.eup %3955  ;;  %v1964_v28 = vadd.f32 0.2548296, %v1900_v18  ;;  %v2126_v51 = vmul.f32 %v2062_v25, %v6621_v12  ;;  %v2063_v60 = vsub.f32 0.0, %v6648_v53  ;;  %3969 = vrcp.f32 %v6787_v23 }
 0x32a   : > { %2626 = vadd.xlane.f32.xlu1 %v2625_v5  ;;  %2671 = vadd.xlane.f32.xlu0 %v2670_v42  ;;  %v1741_v21 = vmul.f32 %v1677_v22, %v6669_v20  ;;  %v2673_v46 = vadd.f32 %v8069_v49, %v8068_v27  ;;  %v2749_v58 = vmul.f32 %v8064_v10, %v8064_v10  ;;  %v6825_v10 = vsel %vm910_vm8, -1.0, %v7817_v62 }
 0x32b   : > { %v2750_v5 = vmul.f32 %v8065_v57, %v8065_v57  ;;  %v6812_v41 = vpop.eup %3957  ;;  %v2444_v12 = vmul.f32 %v2380_v55, %v6546_v37  ;;  %v2815_v18 = vadd.f32 %v2748_v54, %v2747_v43  ;;  %v2779_v25 = vmul.f32 %v8066_v29, %v8066_v29 }
 0x32c   : > { %v2780_v22 = vmul.f32 %v8067_v31, %v8067_v31  ;;  %v6819_v42 = vpop.eup %3959  ;;  %v1645_v13 = vmul.f32 %v1581_v47, %v6753_v33  ;;  %v1358_v57 = vsub.f32 2.0, %v1294_v4  ;;  %v1295_v19 = vmul.f32 %v3956_v40, %v6711_v11 }
 0x32d   : > { %v3962_v37 = vpop.eup %3961  ;;  %v6829_v55 = vmul.f32 %v2539_v38, %v6488_v7  ;;  %v2028_v43 = vmul.f32 %v1964_v28, %v6573_v14  ;;  %v2218_v54 = vmul.f32 1.442695, %v2126_v51  ;;  %v6833_v31 = vmul.f32 0.5, %v6599_v34 }
 0x32e   : > { %2674 = vadd.xlane.f32.xlu1 %v2673_v46  ;;  %2816 = vadd.xlane.f32.xlu0 %v2815_v18  ;;  %v3964_v47 = vpop.eup %3963  ;;  %v1805_v29 = vadd.f32 -0.28449672, %v1741_v21  ;;  %v2818_v36 = vadd.f32 %v2750_v5, %v2749_v58  ;;  %v2781_v4 = vmul.f32 %v8068_v27, %v8068_v27  ;;  %v2782_v11 = vmul.f32 %v8069_v49, %v8069_v49  ;;  %v8071_v18 = vld [vmem:[#allocation11_spill] sm:$0xff] }
 0x32f   : > { %v2508_v46 = vadd.f32 1.0, %v2444_v12  ;;  %vm911_vm9 = vcmp.lt.f32.partialorder %v6624_v6, 0.0  ;;  %v2127_v7 = vmul.f32 %v2063_v60, %v6648_v53  ;;  %v2863_v14 = vadd.f32 %v2780_v22, %v2779_v25  ;;  %v8077_v27 = vld [vmem:[#allocation43_spill] sm:$0xff] }
 0x330   : > { %v3966_v38 = vpop.eup %3965  ;;  %v1709_v28 = vadd.f32 1.4214138, %v1645_v13  ;;  %v6842_v34 = vmul.f32 %v6767_v35, %v1358_v57  ;;  %v1359_v51 = vsub.f32 2.0, %v1295_v19  ;;  %v1296_v21 = vmul.f32 %v6819_v42, %v6739_v0 }
 0x331   : > { %v6847_v58 = vmul.f32 %v6653_v3, %v2028_v43  ;;  %3971 = vpow2.f32 %v2218_v54  ;;  %v1297_v5 = vmul.f32 %v3962_v37, %v6751_v45  ;;  %v1326_v12 = vmul.f32 %v3964_v47, %v6755_v32  ;;  %v8070_v32 = vld [vmem:[#allocation26_spill] sm:$0xff] }
 0x332   : > { %2819 = vadd.xlane.f32.xlu1 %v2818_v36  ;;  %2864 = vadd.xlane.f32.xlu0 %v2863_v14  ;;  %v3968_v53 = vpop.eup %3967  ;;  %v1869_v60 = vmul.f32 %v1805_v29, %v6669_v20  ;;  %v6855_v19 = vsel %vm911_vm9, -1.0, %v7817_v62  ;;  %v2064_v0 = vsub.f32 0.0, %v6682_v16  ;;  %v2866_v35 = vadd.f32 %v2782_v11, %v2781_v4  ;;  %v8073_v14 = vld [vmem:[#allocation76_spill] sm:$0xff] }
 0x333   : > { %v3970_v13 = vpop.eup %3969  ;;  %v6859_v3 = vmul.f32 %v2508_v46, %v6532_v44  ;;  %v2220_v57 = vmul.f32 1.442695, %v2127_v7  ;;  %v1327_v45 = vmul.f32 %v3966_v38, %v6765_v24  ;;  %v2628_v25 = vadd.f32 %v8071_v18, %v8070_v32  ;;  %v8072_v7 = vld [vmem:[#allocation73_spill] sm:$0xff] }
 0x334   : > { %v1773_v29 = vmul.f32 %v1709_v28, %v6753_v33  ;;  %v1486_v22 = vmul.f32 1.0614054, %v6842_v34  ;;  %v6866_v6 = vmul.f32 %v3956_v40, %v1359_v51  ;;  %v1360_v43 = vsub.f32 2.0, %v1296_v21  ;;  %v8074_v40 = vld [vmem:[#allocation50_spill] sm:$0xff]  ;;  %v8075_v51 = vld [vmem:[#allocation72_spill] sm:$0xff] }
 0x335   : > { %v2412_v54 = vsub.f32 1.0, %v6847_v58  ;;  %v1361_v36 = vsub.f32 2.0, %v1297_v5  ;;  %v1390_v4 = vsub.f32 2.0, %v1326_v12  ;;  %v1328_v44 = vmul.f32 %v3968_v53, %v6780_v39 }
 0x336   : > { %2867 = vadd.xlane.f32.xlu1 %v2866_v35  ;;  %2629 = vadd.xlane.f32.xlu0 %v2628_v25  ;;  %v1933_v11 = vadd.f32 0.2548296, %v1869_v60  ;;  %v2128_v24 = vmul.f32 %v2064_v0, %v6682_v16  ;;  %v1329_v46 = vmul.f32 %v3970_v13, %v6787_v23  ;;  %v2631_v28 = vadd.f32 %v8073_v14, %v8072_v7 }
 0x337   : > { %v1391_v49 = vsub.f32 2.0, %v1327_v45  ;;  %v2676_v21 = vadd.f32 %v8075_v51, %v8074_v40  ;;  %v2751_v58 = vmul.f32 %v8070_v32, %v8070_v32  ;;  %v2752_v5 = vmul.f32 %v8071_v18, %v8071_v18  ;;  %v8076_v32 = vld [vmem:[#allocation75_spill] sm:$0xff] }
 0x338   : > { %v1837_v39 = vadd.f32 -0.28449672, %v1773_v29  ;;  %v1550_v12 = vadd.f32 -1.4531521, %v1486_v22  ;;  %v1487_v60 = vmul.f32 1.0614054, %v6866_v6  ;;  %v6882_v16 = vmul.f32 %v6819_v42, %v1360_v43 }
 0x339   : > { %v6884_v23 = vmul.f32 %v3962_v37, %v1361_v36  ;;  %v2065_v0 = vsub.f32 0.0, %v6694_v48  ;;  %v6887_v35 = vmul.f32 %v3964_v47, %v1390_v4  ;;  %v1392_v45 = vsub.f32 2.0, %v1328_v44 }
 0x33a   : > { %2632 = vadd.xlane.f32.xlu1 %v2631_v28  ;;  %2677 = vadd.xlane.f32.xlu0 %v2676_v21  ;;  %v1393_v25 = vsub.f32 2.0, %v1329_v46  ;;  %v2679_v18 = vadd.f32 %v8077_v27, %v8076_v32  ;;  %v2753_v29 = vmul.f32 %v8072_v7, %v8072_v7  ;;  %v2754_v42 = vmul.f32 %v8073_v14, %v8073_v14 }
 0x33b   : > { %v6895_v22 = vpop.eup %3971  ;;  %v6897_v37 = vmul.f32 %v3966_v38, %v1391_v49  ;;  %v2821_v43 = vadd.f32 %v2752_v5, %v2751_v58  ;;  %v2783_v47 = vmul.f32 %v8074_v40, %v8074_v40  ;;  %v2784_v36 = vmul.f32 %v8075_v51, %v8075_v51 }
 0x33c   : > { %v1997_v4 = vmul.f32 %v1933_v11, %v6669_v20  ;;  %v1614_v44 = vmul.f32 %v1550_v12, %v6842_v34  ;;  %v1551_v46 = vadd.f32 -1.4531521, %v1487_v60  ;;  %v1488_v28 = vmul.f32 1.0614054, %v6882_v16 }
 0x33d   : > { %v1901_v21 = vmul.f32 %v1837_v39, %v6753_v33  ;;  %v1489_v49 = vmul.f32 1.0614054, %v6884_v23  ;;  %v1518_v38 = vmul.f32 1.0614054, %v6887_v35  ;;  %v6909_v58 = vmul.f32 %v3968_v53, %v1392_v45 }
 0x33e   : > { %2680 = vadd.xlane.f32.xlu1 %v2679_v18  ;;  %2822 = vadd.xlane.f32.xlu0 %v2821_v43  ;;  %v6911_v5 = vmul.f32 %v3970_v13, %v1393_v25  ;;  %v2824_v51 = vadd.f32 %v2754_v42, %v2753_v29  ;;  %v2785_v20 = vmul.f32 %v8076_v32, %v8076_v32  ;;  %v2222_v12 = vmul.f32 1.442695, %v2128_v24 }
 0x33f   : > { %v2786_v11 = vmul.f32 %v8077_v27, %v8077_v27  ;;  %v2476_v18 = vmul.f32 %v2412_v54, %v6560_v9  ;;  %v1519_v39 = vmul.f32 1.0614054, %v6897_v37  ;;  %v2869_v60 = vadd.f32 %v2784_v36, %v2783_v47  ;;  %v8085_v27 = vld [vmem:[#allocation12_spill] sm:$0xff] }
 0x340   : > { %v1678_v40 = vadd.f32 1.4214138, %v1614_v44  ;;  %v1615_v53 = vmul.f32 %v1551_v46, %v6866_v6  ;;  %v1552_v45 = vadd.f32 -1.4531521, %v1488_v28  ;;  %v2129_v13 = vmul.f32 %v2065_v0, %v6694_v48  ;;  %v8078_v44 = vld [vmem:[#allocation53_spill] sm:$0xff]  ;;  %v8079_v48 = vld [vmem:[#allocation70_spill] sm:$0xff] }
 0x341   : > { %3973 = vpow2.f32 %v2220_v57  ;;  %v1553_v25 = vadd.f32 -1.4531521, %v1489_v49  ;;  %v1582_v29 = vadd.f32 -1.4531521, %v1518_v38  ;;  %v1520_v42 = vmul.f32 1.0614054, %v6909_v58 }
 0x342   : > { %2825 = vadd.xlane.f32.xlu1 %v2824_v51  ;;  %2870 = vadd.xlane.f32.xlu0 %v2869_v60  ;;  %v6923_v43 = vmul.f32 %v6726_v56, %v1997_v4  ;;  %v1965_v9 = vadd.f32 0.2548296, %v1901_v21  ;;  %v1521_v54 = vmul.f32 1.0614054, %v6911_v5  ;;  %v2872_v24 = vadd.f32 %v2786_v11, %v2785_v20  ;;  %v8082_v60 = vld [vmem:[#allocation69_spill] sm:$0xff] }
 0x343   : > { %v6926_v47 = vadd.f32 1.0, %v2476_v18  ;;  %3975 = vpow2.f32 %v2222_v12  ;;  %v1583_v36 = vadd.f32 -1.4531521, %v1519_v39  ;;  %v2634_v51 = vadd.f32 %v8079_v48, %v8078_v44  ;;  %v8080_v18 = vld [vmem:[#allocation59_spill] sm:$0xff] }
 0x344   : > { %v1742_v57 = vmul.f32 %v1678_v40, %v6842_v34  ;;  %v1679_v0 = vadd.f32 1.4214138, %v1615_v53  ;;  %v1616_v46 = vmul.f32 %v1552_v45, %v6882_v16  ;;  %v2224_v28 = vmul.f32 1.442695, %v2129_v13  ;;  %v8081_v40 = vld [vmem:[#allocation41_spill] sm:$0xff]  ;;  %v8083_v53 = vld [vmem:[#allocation28_spill] sm:$0xff] }
 0x345   : > { %v1617_v56 = vmul.f32 %v1553_v25, %v6884_v23  ;;  %v1646_v4 = vmul.f32 %v1582_v29, %v6887_v35  ;;  %v2094_v21 = vsub.f32 0.0, %v6705_v1  ;;  %v1584_v49 = vadd.f32 -1.4531521, %v1520_v42 }
 0x346   : > { %2873 = vadd.xlane.f32.xlu1 %v2872_v24  ;;  %2635 = vadd.xlane.f32.xlu0 %v2634_v51  ;;  %v2381_v38 = vsub.f32 1.0, %v6923_v43  ;;  %v2029_v20 = vmul.f32 %v1965_v9, %v6753_v33  ;;  %v1585_v11 = vadd.f32 -1.4531521, %v1521_v54  ;;  %v2637_v12 = vadd.f32 %v8081_v40, %v8080_v18 }
 0x347   : > { %v1647_v39 = vmul.f32 %v1583_v36, %v6897_v37  ;;  %v2682_v45 = vadd.f32 %v8083_v53, %v8082_v60  ;;  %v2755_v13 = vmul.f32 %v8078_v44, %v8078_v44  ;;  %v2756_v25 = vmul.f32 %v8079_v48, %v8079_v48  ;;  %v8084_v44 = vld [vmem:[#allocation40_spill] sm:$0xff] }
 0x348   : > { %v1806_v29 = vadd.f32 -0.28449672, %v1742_v57  ;;  %v1743_v42 = vmul.f32 %v1679_v0, %v6866_v6  ;;  %v1680_v43 = vadd.f32 1.4214138, %v1616_v46  ;;  %v2095_v33 = vsub.f32 0.0, %v6718_v2 }
 0x349   : > { %v1681_v9 = vadd.f32 1.4214138, %v1617_v56  ;;  %v1710_v54 = vadd.f32 1.4214138, %v1646_v4  ;;  %v2158_v24 = vmul.f32 %v2094_v21, %v6705_v1  ;;  %v1648_v36 = vmul.f32 %v1584_v49, %v6909_v58 }
 0x34a   : > { %2638 = vadd.xlane.f32.xlu1 %v2637_v12  ;;  %2683 = vadd.xlane.f32.xlu0 %v2682_v45  ;;  %v1649_v51 = vmul.f32 %v1585_v11, %v6911_v5  ;;  %v2685_v32 = vadd.f32 %v8085_v27, %v8084_v44  ;;  %v2757_v57 = vmul.f32 %v8080_v18, %v8080_v18  ;;  %v1711_v56 = vadd.f32 1.4214138, %v1647_v39 }
 0x34b   : > { %v2758_v0 = vmul.f32 %v8081_v40, %v8081_v40  ;;  %v6957_v46 = vpop.eup %3973  ;;  %v2827_v4 = vadd.f32 %v2756_v25, %v2755_v13  ;;  %v2787_v1 = vmul.f32 %v8082_v60, %v8082_v60  ;;  %v2788_v21 = vmul.f32 %v8083_v53, %v8083_v53 }
 0x34c   : > { %v1807_v49 = vadd.f32 -0.28449672, %v1743_v42  ;;  %v1744_v11 = vmul.f32 %v1680_v43, %v6882_v16  ;;  %v2159_v12 = vmul.f32 %v2095_v33, %v6718_v2  ;;  %v2096_v45 = vsub.f32 0.0, %v6736_v30 }
 0x34d   : > { %v6966_v18 = vpop.eup %3975  ;;  %v1745_v40 = vmul.f32 %v1681_v9, %v6884_v23  ;;  %v1774_v39 = vmul.f32 %v1710_v54, %v6887_v35  ;;  %v1712_v13 = vadd.f32 1.4214138, %v1648_v36  ;;  %v2097_v25 = vsub.f32 0.0, %v6742_v26 }
 0x34e   : > { %2686 = vadd.xlane.f32.xlu1 %v2685_v32  ;;  %2828 = vadd.xlane.f32.xlu0 %v2827_v4  ;;  %v1713_v60 = vadd.f32 1.4214138, %v1649_v51  ;;  %v2830_v53 = vadd.f32 %v2758_v0, %v2757_v57  ;;  %v2789_v42 = vmul.f32 %v8084_v44, %v8084_v44  ;;  %v2790_v2 = vmul.f32 %v8085_v27, %v8085_v27 }
 0x34f   : > { %v1870_v32 = vmul.f32 %v1806_v29, %v6842_v34  ;;  %3977 = vpow2.f32 %v2224_v28  ;;  %v1775_v43 = vmul.f32 %v1711_v56, %v6897_v37  ;;  %v2875_v33 = vadd.f32 %v2788_v21, %v2787_v1 }
 0x350   : > { %v1871_v9 = vmul.f32 %v1807_v49, %v6866_v6  ;;  %v1808_v54 = vadd.f32 -0.28449672, %v1744_v11  ;;  %v2282_v36 = vmul.f32 1.442695, %v2158_v24  ;;  %v2160_v4 = vmul.f32 %v2096_v45, %v6736_v30  ;;  %v8086_v11 = vld [vmem:[#allocation31_spill] sm:$0xff]  ;;  %v8087_v45 = vld [vmem:[#allocation36_spill] sm:$0xff] }
 0x351   : > { %v1809_v51 = vadd.f32 -0.28449672, %v1745_v40  ;;  %v1838_v57 = vadd.f32 -0.28449672, %v1774_v39  ;;  %v1776_v0 = vmul.f32 %v1712_v13, %v6909_v58  ;;  %v2161_v44 = vmul.f32 %v2097_v25, %v6742_v26  ;;  %v8088_v25 = vld [vmem:[#allocation24_spill] sm:$0xff] }
 0x352   : > { %2831 = vadd.xlane.f32.xlu1 %v2830_v53  ;;  %2876 = vadd.xlane.f32.xlu0 %v2875_v33  ;;  %v2349_v29 = vmul.f32 %v6812_v41, %v2029_v20  ;;  %v2284_v28 = vmul.f32 1.442695, %v2159_v12  ;;  %v1777_v56 = vmul.f32 %v1713_v60, %v6911_v5  ;;  %v2878_v1 = vadd.f32 %v2790_v2, %v2789_v42  ;;  %v8089_v42 = vld [vmem:[#allocation58_spill] sm:$0xff] }
 0x353   : > { %v2445_v21 = vmul.f32 %v2381_v38, %v6592_v52  ;;  %v1934_v49 = vadd.f32 0.2548296, %v1870_v32  ;;  %v1839_v24 = vadd.f32 -0.28449672, %v1775_v43  ;;  %v2640_v30 = vadd.f32 %v6429_v50, %v8086_v11 }
 0x354   : > { %v1935_v40 = vadd.f32 0.2548296, %v1871_v9  ;;  %vm912_vm10 = vcmp.lt.f32.partialorder %v6651_v15, 0.0  ;;  %v1872_v53 = vmul.f32 %v1808_v54, %v6882_v16  ;;  %vm913_vm11 = vcmp.lt.f32.partialorder %v6667_v8, 0.0 }
 0x355   : > { %3979 = vpow2.f32 %v2282_v36  ;;  %v2286_v41 = vmul.f32 1.442695, %v2160_v4  ;;  %v1873_v26 = vmul.f32 %v1809_v51, %v6884_v23  ;;  %v1902_v20 = vmul.f32 %v1838_v57, %v6887_v35 }
 0x356   : > { %2879 = vadd.xlane.f32.xlu1 %v2878_v1  ;;  %v1840_v52 = vadd.f32 -0.28449672, %v1776_v0  ;;  %v2288_v38 = vmul.f32 1.442695, %v2161_v44  ;;  %2641 = vadd.xlane.f32.xlu0 %v2640_v30  ;;  %v2413_v60 = vsub.f32 1.0, %v2349_v29  ;;  %3981 = vpow2.f32 %v2284_v28  ;;  %v8090_v0 = vld [vmem:[#allocation39_spill] sm:$0xff] }
 0x357   : > { %v1841_v12 = vadd.f32 -0.28449672, %v1777_v56  ;;  %v2643_v39 = vadd.f32 %v8087_v45, %v6511_v59  ;;  %v1903_v13 = vmul.f32 %v1839_v24, %v6897_v37  ;;  %v2688_v2 = vadd.f32 %v8089_v42, %v8088_v25  ;;  %v8091_v29 = vld [vmem:[#allocation67_spill] sm:$0xff] }
 0x358   : > { %v2759_v32 = vmul.f32 %v8086_v11, %v8086_v11  ;;  %v2760_v43 = vmul.f32 %v6429_v50, %v6429_v50  ;;  %v1998_v44 = vmul.f32 %v1934_v49, %v6842_v34  ;;  %v1999_v33 = vmul.f32 %v1935_v40, %v6866_v6  ;;  %v8092_v40 = vld [vmem:[#allocation48_spill] sm:$0xff] }
 0x359   : > { %v1936_v9 = vadd.f32 0.2548296, %v1872_v53  ;;  %3983 = vpow2.f32 %v2286_v41  ;;  %v3978_v54 = vpop.eup %3977  ;;  %v1937_v36 = vadd.f32 0.2548296, %v1873_v26  ;;  %v1966_v4 = vadd.f32 0.2548296, %v1902_v20 }
 0x35a   : > { %2644 = vadd.xlane.f32.xlu1 %v2643_v39  ;;  %v1904_v51 = vmul.f32 %v1840_v52, %v6909_v58  ;;  %3985 = vpow2.f32 %v2288_v38  ;;  %2689 = vadd.xlane.f32.xlu0 %v2688_v2  ;;  %v1905_v57 = vmul.f32 %v1841_v12, %v6911_v5  ;;  %v2691_v28 = vadd.f32 %v8091_v29, %v8090_v0 }
 0x35b   : > { %v2761_v34 = vmul.f32 %v6511_v59, %v6511_v59  ;;  %v2762_v6 = vmul.f32 %v8087_v45, %v8087_v45  ;;  %v1967_v56 = vadd.f32 0.2548296, %v1903_v13  ;;  %v2833_v1 = vadd.f32 %v2760_v43, %v2759_v32  ;;  %v8093_v32 = vld [vmem:[#allocation32_spill] sm:$0xff] }
 0x35c   : > { %v2791_v49 = vmul.f32 %v8088_v25, %v8088_v25  ;;  %v2792_v24 = vmul.f32 %v8089_v42, %v8089_v42  ;;  %v2509_v30 = vadd.f32 1.0, %v2445_v21  ;;  %v2477_v53 = vmul.f32 %v2413_v60, %v8092_v40 }
 0x35d   : > { %v2318_v41 = vmul.f32 %v6895_v22, %v1998_v44  ;;  %v2319_v26 = vmul.f32 %v6957_v46, %v1999_v33  ;;  %v2000_v20 = vmul.f32 %v1936_v9, %v6882_v16  ;;  %v2001_v52 = vmul.f32 %v1937_v36, %v6884_v23  ;;  %v8094_v9 = vld [vmem:[#allocation63_spill] sm:$0xff] }
 0x35e   : > { %2692 = vadd.xlane.f32.xlu1 %v2691_v28  ;;  %v2030_v38 = vmul.f32 %v1966_v4, %v6887_v35  ;;  %v1968_v12 = vadd.f32 0.2548296, %v1904_v51  ;;  %2834 = vadd.xlane.f32.xlu0 %v2833_v1  ;;  %v1969_v13 = vadd.f32 0.2548296, %v1905_v57  ;;  %v2836_v2 = vadd.f32 %v2762_v6, %v2761_v34  ;;  %v8096_v1 = vld [vmem:[#allocation13_spill] sm:$0xff] }
 0x35f   : > { %v3980_v39 = vpop.eup %3979  ;;  %v2793_v21 = vmul.f32 %v8090_v0, %v8090_v0  ;;  %v2794_v22 = vmul.f32 %v8091_v29, %v8091_v29  ;;  %v976_v46 = vsel %vm912_vm10, -1.0, %v7817_v62  ;;  %v977_v16 = vsel %vm913_vm11, -1.0, %v7817_v62 }
 0x360   : > { %v2031_v23 = vmul.f32 %v1967_v56, %v6897_v37  ;;  %v2881_v35 = vadd.f32 %v2792_v24, %v2791_v49  ;;  %v3982_v60 = vpop.eup %3981  ;;  %v7033_v43 = vmul.f32 %v6926_v47, %v8093_v32  ;;  %v2382_v44 = vsub.f32 1.0, %v2318_v41  ;;  %v8095_v37 = vld [vmem:[#allocation68_spill] sm:$0xff]  ;;  %v8098_v41 = vld [vmem:[#allocation61_spill] sm:$0xff] }
 0x361   : > { %v2383_v33 = vsub.f32 1.0, %v2319_v26  ;;  %vm942_vm12 = vcmp.lt.f32.partialorder %v8094_v9, 0.0  ;;  %v2320_v15 = vmul.f32 %v6966_v18, %v2000_v20  ;;  %v2321_v36 = vmul.f32 %v3978_v54, %v2001_v52  ;;  %v8097_v18 = vld [vmem:[#allocation14_spill] sm:$0xff] }
 0x362   : > { %2837 = vadd.xlane.f32.xlu1 %v2836_v2  ;;  %v2350_v4 = vmul.f32 %v3980_v39, %v2030_v38  ;;  %v2032_v8 = vmul.f32 %v1968_v12, %v6909_v58  ;;  %2882 = vadd.xlane.f32.xlu0 %v2881_v35  ;;  %v7039_v57 = vmul.f32 %v2509_v30, %v8095_v37  ;;  %v2541_v28 = vadd.f32 1.0, %v2477_v53  ;;  %v8099_v38 = vld [vmem:[#allocation51_spill] sm:$0xff]  ;;  %v8102_v37 = vld [vmem:[#allocation33_spill] sm:$0xff] }
 0x363   : > { %v3984_v51 = vpop.eup %3983  ;;  %v2033_v47 = vmul.f32 %v1969_v13, %v6911_v5  ;;  %v2884_v34 = vadd.f32 %v2794_v22, %v2793_v21  ;;  %v1006_v56 = vsel %vm942_vm12, -1.0, %v7817_v62  ;;  %vm943_vm13 = vcmp.lt.f32.partialorder %v8096_v1, 0.0 }
 0x364   : > { %v3986_v6 = vpop.eup %3985  ;;  %v2351_v49 = vmul.f32 %v3982_v60, %v2031_v23  ;;  %v2646_v54 = vadd.f32 %v6771_v63, %v8097_v18  ;;  %v2446_v58 = vmul.f32 %v2382_v44, %v6825_v10  ;;  %v2447_v24 = vmul.f32 %v2383_v33, %v6855_v19 }
 0x365   : > { %vm944_vm14 = vcmp.lt.f32.partialorder %v6708_v61, 0.0  ;;  %vm945_vm15 = vcmp.lt.f32.partialorder %v6715_v17, 0.0  ;;  %v2384_v5 = vsub.f32 1.0, %v2320_v15  ;;  %v2385_v30 = vsub.f32 1.0, %v2321_v36 }
 0x366   : > { %2885 = vadd.xlane.f32.xlu1 %v2884_v34  ;;  %v2414_v40 = vsub.f32 1.0, %v2350_v4  ;;  %v2352_v53 = vmul.f32 %v3984_v51, %v2032_v8  ;;  %2647 = vadd.xlane.f32.xlu0 %v2646_v54  ;;  %v7051_v26 = vmul.f32 %v2541_v28, %v8098_v41  ;;  %v1007_v20 = vsel %vm943_vm13, -1.0, %v7817_v62  ;;  %v8101_v8 = vld [vmem:[#allocation17_spill] sm:$0xff] }
 0x367   : > { %v2353_v52 = vmul.f32 %v3986_v6, %v2033_v47  ;;  %v2649_v10 = vadd.f32 %v7039_v57, %v6859_v3  ;;  %v2415_v19 = vsub.f32 1.0, %v2351_v49  ;;  %v2694_v12 = vadd.f32 %v6829_v55, %v8099_v38  ;;  %v8103_v47 = vld [vmem:[#allocation44_spill] sm:$0xff]  ;;  %v8104_v6 = vld [vmem:[#allocation55_spill] sm:$0xff] }
 0x368   : > { %v2763_v39 = vmul.f32 %v8097_v18, %v8097_v18  ;;  %v2764_v13 = vmul.f32 %v6771_v63, %v6771_v63  ;;  %v2510_v2 = vadd.f32 1.0, %v2446_v58  ;;  %v2511_v21 = vadd.f32 1.0, %v2447_v24 }
 0x369   : > { %v1008_v22 = vsel %vm944_vm14, -1.0, %v7817_v62  ;;  %v1009_v23 = vsel %vm945_vm15, -1.0, %v7817_v62  ;;  %v2448_v35 = vmul.f32 %v2384_v5, %v976_v46  ;;  %v2449_v60 = vmul.f32 %v2385_v30, %v977_v16  ;;  %v8100_v46 = vld [vmem:[#allocation66_spill] sm:$0xff] }
 0x36a   : > { %2650 = vadd.xlane.f32.xlu1 %v2649_v10  ;;  %v2478_v32 = vmul.f32 %v2414_v40, %v1006_v56  ;;  %v2416_v44 = vsub.f32 1.0, %v2352_v53  ;;  %2695 = vadd.xlane.f32.xlu0 %v2694_v12  ;;  %v2417_v33 = vsub.f32 1.0, %v2353_v52  ;;  %v2697_v9 = vadd.f32 %v7051_v26, %v7033_v43  ;;  %v8105_v10 = vld [vmem:[#allocation22_spill] sm:$0xff]  ;;  %v8106_v12 = vld [vmem:[#allocation25_spill] sm:$0xff] }
 0x36b   : > { %v2765_v15 = vmul.f32 %v6859_v3, %v6859_v3  ;;  %v2766_v61 = vmul.f32 %v7039_v57, %v7039_v57  ;;  %v2479_v36 = vmul.f32 %v2415_v19, %v1007_v20  ;;  %v2839_v4 = vadd.f32 %v2764_v13, %v2763_v39 }
 0x36c   : > { %v2795_v62 = vmul.f32 %v8099_v38, %v8099_v38  ;;  %v2796_v17 = vmul.f32 %v6829_v55, %v6829_v55  ;;  %v784_v16 = vmul.f32 0.5, %v8100_v46  ;;  %v785_v51 = vmul.f32 0.5, %v8101_v8 }
 0x36d   : > { %v814_v28 = vmul.f32 0.5, %v8102_v37  ;;  %v815_v34 = vmul.f32 0.5, %v8103_v47  ;;  %v7083_v56 = vmul.f32 %v2510_v2, %v8104_v6  ;;  %v2512_v1 = vadd.f32 1.0, %v2448_v35  ;;  %v2612_v47 = vpop.xlane.xlu0 %2611 }
 0x36e   : > { %2698 = vadd.xlane.f32.xlu1 %v2697_v9  ;;  %v2513_v49 = vadd.f32 1.0, %v2449_v60  ;;  %v2480_v54 = vmul.f32 %v2416_v44, %v1008_v22  ;;  %2840 = vadd.xlane.f32.xlu0 %v2839_v4  ;;  %v2481_v58 = vmul.f32 %v2417_v33, %v1009_v23  ;;  %v2842_v24 = vadd.f32 %v2766_v61, %v2765_v15 }
 0x36f   : > { %v2797_v5 = vmul.f32 %v7033_v43, %v7033_v43  ;;  %v2798_v30 = vmul.f32 %v7051_v26, %v7051_v26  ;;  %v7090_v40 = vmul.f32 %v2511_v21, %v6833_v31  ;;  %v2542_v53 = vadd.f32 1.0, %v2478_v32 }
 0x370   : > { %v2543_v41 = vadd.f32 1.0, %v2479_v36  ;;  %v2887_v20 = vadd.f32 %v2796_v17, %v2795_v62  ;;  %v7092_v52 = vmul.f32 %v2512_v1, %v784_v16  ;;  %v816_v19 = vmul.f32 0.5, %v8105_v10 }
 0x371   : > { %v817_v39 = vmul.f32 0.5, %v8106_v12  ;;  %v7096_v13 = vmul.f32 %v2513_v49, %v785_v51  ;;  %v2544_v2 = vadd.f32 1.0, %v2480_v54  ;;  %v2545_v22 = vadd.f32 1.0, %v2481_v58 }
 0x372   : > { %2843 = vadd.xlane.f32.xlu1 %v2842_v24  ;;  %2888 = vadd.xlane.f32.xlu0 %v2887_v20  ;;  %v2890_v23 = vadd.f32 %v2798_v30, %v2797_v5  ;;  %v7098_v35 = vmul.f32 %v2542_v53, %v814_v28  ;;  %v7100_v31 = vmul.f32 %v2543_v41, %v815_v34  ;;  %v2663_v34 = vpop.xlane.xlu1 %2662  ;;  %v2660_v6 = vpop.xlane.xlu0 %2659  ;;  %v7132_v53 = vmul.f32 0.00390625, %v2612_v47 }
 0x373   : > { %v2652_v21 = vadd.f32 %v7090_v40, %v7083_v56  ;;  %v7104_v60 = vmul.f32 %v2544_v2, %v816_v19  ;;  %v7106_v32 = vmul.f32 %v2545_v22, %v817_v39  ;;  %v2655_v44 = vadd.f32 %v7096_v13, %v7092_v52 }
 0x374   : > { %v2700_v33 = vadd.f32 %v7100_v31, %v7098_v35  ;;  %v2767_v9 = vmul.f32 %v7083_v56, %v7083_v56  ;;  %v2768_v15 = vmul.f32 %v7090_v40, %v7090_v40  ;;  %v2769_v36 = vmul.f32 %v7092_v52, %v7092_v52 }
 0x375   : > { %8107 = vst [vmem:[#allocation71_spill] sm:$0xff] %v7106_v32  ;;  %v2703_v61 = vadd.f32 %v7106_v32, %v7104_v60  ;;  %v2770_v4 = vmul.f32 %v7096_v13, %v7096_v13  ;;  %v2799_v17 = vmul.f32 %v7098_v35, %v7098_v35  ;;  %v2800_v46 = vmul.f32 %v7100_v31, %v7100_v31 }
 0x376   : > { %2891 = vadd.xlane.f32.xlu1 %v2890_v23  ;;  %2653 = vadd.xlane.f32.xlu0 %v2652_v21  ;;  %v2845_v62 = vadd.f32 %v2768_v15, %v2767_v9  ;;  %v2801_v8 = vmul.f32 %v7104_v60, %v7104_v60  ;;  %v2802_v51 = vmul.f32 %v7106_v32, %v7106_v32  ;;  %v7130_v30 = vmul.f32 0.00390625, %v2663_v34  ;;  %v8108_v34 = vld [vmem:[#allocation20_spill] sm:$0xff] }
 0x377   : > { %v2848_v16 = vadd.f32 %v2770_v4, %v2769_v36  ;;  %v2893_v37 = vadd.f32 %v2800_v46, %v2799_v17  ;;  %v7136_v2 = vmul.f32 0.00390625, %v2660_v6  ;;  %v2931_v22 = vmul.f32 %v7132_v53, %v7132_v53  ;;  %v3219_v17 = vld [vmem:[%s7648_s3] sm:$0x3] }
 0x378   : > { %v2896_v28 = vadd.f32 %v2802_v51, %v2801_v8  ;;  %v2948_v19 = vmul.f32 %v7130_v30, %v7130_v30  ;;  %v3295_v51 = vld [vmem:[%s7649_s4] sm:$0x3]  ;;  %v7151_v6 = vrot.slane %v3219_v17, %v8108_v34 }
 0x379   : > { %v2947_v36 = vmul.f32 %v7136_v2, %v7136_v2 }
 0x37a   : > { %2656 = vadd.xlane.f32.xlu1 %v2655_v44  ;;  %2701 = vadd.xlane.f32.xlu0 %v2700_v33 }
 0x37e   : > { %2704 = vadd.xlane.f32.xlu1 %v2703_v61  ;;  %2846 = vadd.xlane.f32.xlu0 %v2845_v62 }
 0x382   : > { %2849 = vadd.xlane.f32.xlu1 %v2848_v16  ;;  %2894 = vadd.xlane.f32.xlu0 %v2893_v37 }
 0x386   : > { %2897 = vadd.xlane.f32.xlu1 %v2896_v28 }
 0x388   : > { %v2808_v1 = vpop.xlane.xlu1 %2807 }
 0x389   : > { %v2900_v58 = vmul.f32 0.00390625, %v2808_v1  ;;  %v8109_v1 = vld [vmem:[#allocation21_spill] sm:$0xff] }
 0x394   : > { %v2615_v49 = vpop.xlane.xlu0 %2614 }
 0x395   : > { %v2708_v54 = vmul.f32 0.00390625, %v2615_v49  ;;  %v7154_v49 = vrot.slane %v3219_v17, %v8109_v1  ;;  %v8113_v17 = vld [vmem:[#allocation52_spill] sm:$0xff] }
 0x397   : > { %v2932_v24 = vmul.f32 %v2708_v54, %v2708_v54 }
 0x399   : > { %v2964_v5 = vsub.f32 %v2900_v58, %v2932_v24  ;;  %v8110_v58 = vld [vmem:[#allocation57_spill] sm:$0xff] }
 0x39a   : > { %v3093_v24 = vsub.f32 %v8110_v58, %v2708_v54 }
 0x39b   : > { %v2996_v41 = vmax.f32 %v2964_v5, 0.0  ;;  %v8111_v5 = vld [vmem:[#allocation37_spill] sm:$0xff] }
 0x39d   : > { %v3028_v20 = vadd.f32 1e-12, %v2996_v41  ;;  %v2856_v10 = vpop.xlane.xlu1 %2855  ;;  %v3094_v41 = vsub.f32 %v8111_v5, %v2708_v54  ;;  %v8115_v5 = vld [vmem:[#allocation29_spill] sm:$0xff] }
 0x39e   : > { %v2916_v12 = vmul.f32 0.00390625, %v2856_v10  ;;  %v2805_v39 = vpop.xlane.xlu0 %2804  ;;  %v7159_v10 = vrot.slane %v3295_v51, %v8108_v34 }
 0x39f   : > { %3987 = vrsqrt.f32 %v3028_v20  ;;  %v2899_v23 = vmul.f32 0.00390625, %v2805_v39  ;;  %v7162_v39 = vrot.slane %v3295_v51, %v8109_v1 }
 0x3a0   : > { %v2980_v21 = vsub.f32 %v2916_v12, %v2948_v19 }
 0x3a1   : > { %v2963_v44 = vsub.f32 %v2899_v23, %v2931_v22  ;;  %v2618_v33 = vpop.xlane.xlu1 %2617 }
 0x3a2   : > { %v3012_v9 = vmax.f32 %v2980_v21, 0.0  ;;  %v2853_v15 = vpop.xlane.xlu0 %2852  ;;  %v7148_v28 = vmul.f32 0.00390625, %v2618_v33 }
 0x3a3   : > { %v2995_v61 = vmax.f32 %v2963_v44, 0.0  ;;  %v2915_v4 = vmul.f32 0.00390625, %v2853_v15 }
 0x3a4   : > { %v3044_v62 = vadd.f32 1e-12, %v3012_v9  ;;  %v2933_v54 = vmul.f32 %v7148_v28, %v7148_v28 }
 0x3a5   : > { %v3027_v46 = vadd.f32 1e-12, %v2995_v61  ;;  %v2979_v16 = vsub.f32 %v2915_v4, %v2947_v36  ;;  %v8112_v4 = vld [vmem:[#allocation15_spill] sm:$0xff] }
 0x3a6   : > { %3989 = vrsqrt.f32 %v3044_v62  ;;  %v3091_v62 = vsub.f32 %v8112_v4, %v7132_v53 }
 0x3a7   : > { %v2621_v8 = vpop.xlane.xlu1 %2620  ;;  %v2666_v37 = vpop.xlane.xlu0 %2665  ;;  %3991 = vrsqrt.f32 %v3027_v46  ;;  %v3011_v47 = vmax.f32 %v2979_v16, 0.0  ;;  %v3092_v46 = vsub.f32 %v8113_v17, %v7132_v53  ;;  %v8114_v16 = vld [vmem:[#allocation54_spill] sm:$0xff] }
 0x3a8   : > { %v7164_v21 = vmul.f32 0.00390625, %v2621_v8  ;;  %v7166_v33 = vmul.f32 0.00390625, %v2666_v37  ;;  %v3125_v8 = vsub.f32 %v8114_v16, %v7130_v30 }
 0x3a9   : > { %v3988_v20 = vpop.eup %3987  ;;  %v3043_v19 = vadd.f32 1e-12, %v3011_v47 }
 0x3aa   : > { %v3157_v22 = vmul.f32 %v3988_v20, %v3093_v24  ;;  %v3158_v23 = vmul.f32 %v3988_v20, %v3094_v41  ;;  %v2934_v1 = vmul.f32 %v7164_v21, %v7164_v21  ;;  %v3126_v41 = vsub.f32 %v8115_v5, %v7130_v30 }
 0x3ab   : > { %v2669_v12 = vpop.xlane.xlu1 %2668  ;;  %v2811_v44 = vpop.xlane.xlu0 %2810  ;;  %3993 = vrsqrt.f32 %v3043_v19  ;;  %v2949_v53 = vmul.f32 %v7166_v33, %v7166_v33 }
 0x3ac   : > { %v2901_v9 = vmul.f32 0.00390625, %v2811_v44  ;;  %v3233_v15 = vmul.f32 %v7151_v6, %v3157_v22  ;;  %v3234_v61 = vmul.f32 %v7154_v49, %v3158_v23  ;;  %v7172_v36 = vmul.f32 0.00390625, %v2669_v12  ;;  %v8116_v22 = vld [vmem:[#allocation30_spill] sm:$0xff]  ;;  %v8117_v44 = vld [vmem:[#allocation56_spill] sm:$0xff] }
 0x3ad   : > { %v3123_v23 = vsub.f32 %v8116_v22, %v7136_v2 }
 0x3ae   : > { %v2965_v51 = vsub.f32 %v2901_v9, %v2933_v54  ;;  %v3309_v47 = vadd.f32 %v7159_v10, %v3233_v15  ;;  %v3310_v34 = vadd.f32 %v7162_v39, %v3234_v61  ;;  %v3124_v54 = vsub.f32 %v8117_v44, %v7136_v2 }
 0x3af   : > { %v2814_v37 = vpop.xlane.xlu1 %2813  ;;  %v2859_v24 = vpop.xlane.xlu0 %2858  ;;  %v2950_v9 = vmul.f32 %v7172_v36, %v7172_v36 }
 0x3b0   : > { %v2902_v58 = vmul.f32 0.00390625, %v2814_v37  ;;  %v2997_v20 = vmax.f32 %v2965_v51, 0.0  ;;  %v2917_v19 = vmul.f32 0.00390625, %v2859_v24  ;;  %v3990_v12 = vpop.eup %3989  ;;  %3373 = vst [vmem:[%s7194_s10 + $0x10] sm:$0xff] %v3309_v47  ;;  %3374 = vst [vmem:[%s7194_s10 + $0x18] sm:$0xff] %v3310_v34 }
 0x3b1   : > { %v3992_v15 = vpop.eup %3991  ;;  %v3189_v61 = vmul.f32 %v3990_v12, %v3125_v8  ;;  %v3190_v4 = vmul.f32 %v3990_v12, %v3126_v41 }
 0x3b2   : > { %v2966_v30 = vsub.f32 %v2902_v58, %v2934_v1  ;;  %v3029_v17 = vadd.f32 1e-12, %v2997_v20  ;;  %v2981_v16 = vsub.f32 %v2917_v19, %v2949_v53  ;;  %v3155_v37 = vmul.f32 %v3992_v15, %v3091_v62 }
 0x3b3   : > { %v2862_v51 = vpop.xlane.xlu1 %2861  ;;  %v3156_v24 = vmul.f32 %v3992_v15, %v3092_v46  ;;  %v2624_v22 = vpop.xlane.xlu0 %2623  ;;  %v3265_v44 = vmul.f32 %v7151_v6, %v3189_v61  ;;  %v3266_v47 = vmul.f32 %v7154_v49, %v3190_v4 }
 0x3b4   : > { %v2998_v2 = vmax.f32 %v2966_v30, 0.0  ;;  %v2918_v5 = vmul.f32 0.00390625, %v2862_v51  ;;  %3995 = vrsqrt.f32 %v3029_v17  ;;  %v3013_v34 = vmax.f32 %v2981_v16, 0.0 }
 0x3b5   : > { %v3231_v1 = vmul.f32 %v7151_v6, %v3155_v37  ;;  %v3232_v8 = vmul.f32 %v7154_v49, %v3156_v24  ;;  %v3994_v62 = vpop.eup %3993  ;;  %v3341_v46 = vadd.f32 %v7159_v10, %v3265_v44  ;;  %v3342_v20 = vadd.f32 %v7162_v39, %v3266_v47  ;;  %v8118_v47 = vld [vmem:[#allocation47_spill] sm:$0xff] }
 0x3b6   : > { %v3030_v58 = vadd.f32 1e-12, %v2998_v2  ;;  %v2982_v41 = vsub.f32 %v2918_v5, %v2950_v9  ;;  %v3045_v53 = vadd.f32 1e-12, %v3013_v34  ;;  %v3187_v15 = vmul.f32 %v3994_v62, %v3123_v23 }
 0x3b7   : > { %v2627_v19 = vpop.xlane.xlu1 %2626  ;;  %v3307_v12 = vadd.f32 %v7159_v10, %v3231_v1  ;;  %v3308_v30 = vadd.f32 %v7162_v39, %v3232_v8  ;;  %v3188_v61 = vmul.f32 %v3994_v62, %v3124_v54  ;;  %v2672_v4 = vpop.xlane.xlu0 %2671  ;;  %3405 = vst [vmem:[%s7194_s10 + $0x110] sm:$0xff] %v3341_v46  ;;  %3406 = vst [vmem:[%s7194_s10 + $0x118] sm:$0xff] %v3342_v20  ;;  %v7214_v51 = vmul.f32 0.00390625, %v2624_v22  ;;  %v8119_v1 = vld [vmem:[#allocation18_spill] sm:$0xff]  ;;  %v8120_v62 = vld [vmem:[#allocation60_spill] sm:$0xff] }
 0x3b8   : > { %3997 = vrsqrt.f32 %v3030_v58  ;;  %v3014_v17 = vmax.f32 %v2982_v41, 0.0  ;;  %v3263_v9 = vmul.f32 %v7151_v6, %v3187_v15  ;;  %v7216_v24 = vmul.f32 0.00390625, %v2627_v19  ;;  %v8121_v20 = vld [vmem:[#allocation46_spill] sm:$0xff] }
 0x3b9   : > { %3371 = vst [vmem:[%s7194_s10] sm:$0xff] %v3307_v12  ;;  %3372 = vst [vmem:[%s7194_s10 + $0x8] sm:$0xff] %v3308_v30  ;;  %v3264_v16 = vmul.f32 %v7154_v49, %v3188_v61  ;;  %3999 = vrsqrt.f32 %v3045_v53  ;;  %v7220_v44 = vmul.f32 0.00390625, %v2672_v4  ;;  %v3095_v34 = vsub.f32 %v8118_v47, %v7148_v28 }
 0x3ba   : > { %v3046_v37 = vadd.f32 1e-12, %v3014_v17  ;;  %v3339_v54 = vadd.f32 %v7159_v10, %v3263_v9  ;;  %v3096_v8 = vsub.f32 %v8119_v1, %v7148_v28  ;;  %v2935_v22 = vmul.f32 %v7214_v51, %v7214_v51  ;;  %v8122_v9 = vld [vmem:[#allocation16_spill] sm:$0xff] }
 0x3bb   : > { %v2675_v23 = vpop.xlane.xlu1 %2674  ;;  %v3340_v2 = vadd.f32 %v7162_v39, %v3264_v16  ;;  %v2817_v5 = vpop.xlane.xlu0 %2816  ;;  %v3097_v46 = vsub.f32 %v8120_v62, %v7164_v21  ;;  %v3098_v53 = vsub.f32 %v8121_v20, %v7164_v21  ;;  %v2936_v12 = vmul.f32 %v7216_v24, %v7216_v24 }
 0x3bc   : > { %4001 = vrsqrt.f32 %v3046_v37  ;;  %3403 = vst [vmem:[%s7194_s10 + $0x100] sm:$0xff] %v3339_v54  ;;  %v2903_v58 = vmul.f32 0.00390625, %v2817_v5  ;;  %v7234_v19 = vmul.f32 0.00390625, %v2675_v23  ;;  %v3127_v16 = vsub.f32 %v8122_v9, %v7166_v33  ;;  %v8123_v37 = vld [vmem:[#allocation19_spill] sm:$0xff] }
 0x3bd   : > { %3404 = vst [vmem:[%s7194_s10 + $0x108] sm:$0xff] %v3340_v2  ;;  %v3128_v54 = vsub.f32 %v8123_v37, %v7166_v33  ;;  %v2951_v21 = vmul.f32 %v7220_v44, %v7220_v44 }
 0x3be   : > { %v3996_v41 = vpop.eup %3995  ;;  %v2967_v61 = vsub.f32 %v2903_v58, %v2935_v22  ;;  %v8125_v58 = vld [vmem:[#allocation45_spill] sm:$0xff]  ;;  %v2952_v62 = vmul.f32 %v7234_v19, %v7234_v19 }
 0x3bf   : > { %v2820_v30 = vpop.xlane.xlu1 %2819  ;;  %v3159_v28 = vmul.f32 %v3996_v41, %v3095_v34  ;;  %v3160_v15 = vmul.f32 %v3996_v41, %v3096_v8  ;;  %v2865_v17 = vpop.xlane.xlu0 %2864  ;;  %v8124_v8 = vld [vmem:[#allocation23_spill] sm:$0xff]  ;;  %v3130_v41 = vsub.f32 %v8125_v58, %v7172_v36 }
 0x3c0   : > { %v2904_v4 = vmul.f32 0.00390625, %v2820_v30  ;;  %v2919_v23 = vmul.f32 0.00390625, %v2865_v17  ;;  %v2999_v47 = vmax.f32 %v2967_v61, 0.0  ;;  %v3129_v22 = vsub.f32 %v8124_v8, %v7172_v36 }
 0x3c1   : > { %v3235_v2 = vmul.f32 %v7151_v6, %v3159_v28  ;;  %v3236_v5 = vmul.f32 %v7154_v49, %v3160_v15 }
 0x3c2   : > { %v2968_v34 = vsub.f32 %v2904_v4, %v2936_v12  ;;  %v3998_v1 = vpop.eup %3997  ;;  %v2983_v33 = vsub.f32 %v2919_v23, %v2951_v21  ;;  %v3031_v37 = vadd.f32 1e-12, %v2999_v47 }
 0x3c3   : > { %v2868_v20 = vpop.xlane.xlu1 %2867  ;;  %v4000_v30 = vpop.eup %3999  ;;  %v3311_v28 = vadd.f32 %v7159_v10, %v3235_v2  ;;  %v3312_v15 = vadd.f32 %v7162_v39, %v3236_v5  ;;  %v3161_v12 = vmul.f32 %v3998_v1, %v3097_v46  ;;  %v3162_v61 = vmul.f32 %v3998_v1, %v3098_v53 }
 0x3c4   : > { %v2630_v4 = vpop.xlane.xlu0 %2629  ;;  %v3191_v17 = vmul.f32 %v4000_v30, %v3127_v16  ;;  %v3192_v9 = vmul.f32 %v4000_v30, %v3128_v54  ;;  %v3000_v8 = vmax.f32 %v2968_v34, 0.0  ;;  %v3015_v23 = vmax.f32 %v2983_v33, 0.0 }
 0x3c5   : > { %3375 = vst [vmem:[%s7194_s10 + $0x20] sm:$0xff] %v3311_v28  ;;  %3376 = vst [vmem:[%s7194_s10 + $0x28] sm:$0xff] %v3312_v15  ;;  %v3237_v36 = vmul.f32 %v7151_v6, %v3161_v12  ;;  %v3238_v21 = vmul.f32 %v7154_v49, %v3162_v61  ;;  %v2920_v58 = vmul.f32 0.00390625, %v2868_v20  ;;  %4003 = vrsqrt.f32 %v3031_v37 }
 0x3c6   : > { %v4002_v32 = vpop.eup %4001  ;;  %v3267_v2 = vmul.f32 %v7151_v6, %v3191_v17  ;;  %v3268_v46 = vmul.f32 %v7154_v49, %v3192_v9  ;;  %v3032_v53 = vadd.f32 1e-12, %v3000_v8  ;;  %v3047_v30 = vadd.f32 1e-12, %v3015_v23 }
 0x3c7   : > { %v2633_v16 = vpop.xlane.xlu1 %2632  ;;  %v3313_v54 = vadd.f32 %v7159_v10, %v3237_v36  ;;  %v3314_v5 = vadd.f32 %v7162_v39, %v3238_v21  ;;  %v3193_v47 = vmul.f32 %v4002_v32, %v3129_v22  ;;  %v3194_v34 = vmul.f32 %v4002_v32, %v3130_v41  ;;  %v8127_v21 = vld [vmem:[#allocation62_spill] sm:$0xff] }
 0x3c8   : > { %v2678_v1 = vpop.xlane.xlu0 %2677  ;;  %v3343_v33 = vadd.f32 %v7159_v10, %v3267_v2  ;;  %v3344_v20 = vadd.f32 %v7162_v39, %v3268_v46  ;;  %4005 = vrsqrt.f32 %v3032_v53  ;;  %v2984_v12 = vsub.f32 %v2920_v58, %v2952_v62  ;;  %v8126_v62 = vld [vmem:[#allocation49_spill] sm:$0xff]  ;;  %v8128_v58 = vld [vmem:[#allocation64_spill] sm:$0xff] }
 0x3c9   : > { %3377 = vst [vmem:[%s7194_s10 + $0x30] sm:$0xff] %v3313_v54  ;;  %3378 = vst [vmem:[%s7194_s10 + $0x38] sm:$0xff] %v3314_v5  ;;  %v3269_v28 = vmul.f32 %v7151_v6, %v3193_v47  ;;  %v3270_v15 = vmul.f32 %v7154_v49, %v3194_v34  ;;  %4007 = vrsqrt.f32 %v3047_v30  ;;  %v7270_v32 = vmul.f32 0.00390625, %v2630_v4  ;;  %v8129_v5 = vld [vmem:[#allocation65_spill] sm:$0xff] }
 0x3ca   : > { %3407 = vst [vmem:[%s7194_s10 + $0x120] sm:$0xff] %v3343_v33  ;;  %3408 = vst [vmem:[%s7194_s10 + $0x128] sm:$0xff] %v3344_v20  ;;  %v3016_v17 = vmax.f32 %v2984_v12, 0.0  ;;  %v7274_v9 = vmul.f32 0.00390625, %v2633_v16  ;;  %v7276_v8 = vmul.f32 0.00390625, %v2678_v1  ;;  %v3099_v36 = vsub.f32 %v8126_v62, %v7214_v51  ;;  %v8130_v20 = vld [vmem:[#allocation27_spill] sm:$0xff] }
 0x3cb   : > { %v2681_v22 = vpop.xlane.xlu1 %2680  ;;  %v3345_v41 = vadd.f32 %v7159_v10, %v3269_v28  ;;  %v3346_v61 = vadd.f32 %v7162_v39, %v3270_v15  ;;  %v3100_v4 = vsub.f32 %v8127_v21, %v7214_v51  ;;  %v3101_v2 = vsub.f32 %v8128_v58, %v7216_v24  ;;  %v8132_v62 = vld [vmem:[#allocation38_spill] sm:$0xff] }
 0x3cc   : > { %v2823_v37 = vpop.xlane.xlu0 %2822  ;;  %v3048_v23 = vadd.f32 1e-12, %v3016_v17  ;;  %v7286_v46 = vmul.f32 0.00390625, %v2681_v22  ;;  %v2937_v53 = vmul.f32 %v7270_v32, %v7270_v32  ;;  %v3102_v47 = vsub.f32 %v8129_v5, %v7216_v24  ;;  %v8131_v22 = vld [vmem:[#allocation34_spill] sm:$0xff] }
 0x3cd   : > { %3409 = vst [vmem:[%s7194_s10 + $0x130] sm:$0xff] %v3345_v41  ;;  %3410 = vst [vmem:[%s7194_s10 + $0x138] sm:$0xff] %v3346_v61  ;;  %v2905_v16 = vmul.f32 0.00390625, %v2823_v37  ;;  %v2938_v34 = vmul.f32 %v7274_v9, %v7274_v9  ;;  %v3131_v30 = vsub.f32 %v8130_v20, %v7220_v44  ;;  %v2953_v15 = vmul.f32 %v7276_v8, %v7276_v8 }
 0x3ce   : > { %4009 = vrsqrt.f32 %v3048_v23  ;;  %v3132_v41 = vsub.f32 %v8131_v22, %v7220_v44  ;;  %v3133_v21 = vsub.f32 %v8132_v62, %v7234_v19 }
 0x3cf   : > { %v2826_v54 = vpop.xlane.xlu1 %2825  ;;  %v4004_v33 = vpop.eup %4003  ;;  %v2969_v28 = vsub.f32 %v2905_v16, %v2937_v53 }
 0x3d0   : > { %v2906_v1 = vmul.f32 0.00390625, %v2826_v54  ;;  %v2871_v51 = vpop.xlane.xlu0 %2870  ;;  %v3163_v61 = vmul.f32 %v4004_v33, %v3099_v36  ;;  %v3164_v24 = vmul.f32 %v4004_v33, %v3100_v4  ;;  %v2954_v54 = vmul.f32 %v7286_v46, %v7286_v46 }
 0x3d1   : > { %v2921_v12 = vmul.f32 0.00390625, %v2871_v51  ;;  %v3001_v23 = vmax.f32 %v2969_v28, 0.0 }
 0x3d2   : > { %v2970_v17 = vsub.f32 %v2906_v1, %v2938_v34  ;;  %v4006_v37 = vpop.eup %4005  ;;  %v3239_v16 = vmul.f32 %v7151_v6, %v3163_v61  ;;  %v3240_v5 = vmul.f32 %v7154_v49, %v3164_v24 }
 0x3d3   : > { %v2985_v58 = vsub.f32 %v2921_v12, %v2953_v15  ;;  %v2874_v53 = vpop.xlane.xlu1 %2873  ;;  %v3165_v51 = vmul.f32 %v4006_v37, %v3101_v2  ;;  %v3166_v20 = vmul.f32 %v4006_v37, %v3102_v47  ;;  %v4008_v36 = vpop.eup %4007  ;;  %v3033_v4 = vadd.f32 1e-12, %v3001_v23 }
 0x3d4   : > { %v2636_v44 = vpop.xlane.xlu0 %2635  ;;  %v3002_v34 = vmax.f32 %v2970_v17, 0.0  ;;  %v2922_v33 = vmul.f32 0.00390625, %v2874_v53  ;;  %v3315_v28 = vadd.f32 %v7159_v10, %v3239_v16  ;;  %v3316_v15 = vadd.f32 %v7162_v39, %v3240_v5  ;;  %v8133_v53 = vld [vmem:[#allocation42_spill] sm:$0xff] }
 0x3d5   : > { %v3017_v1 = vmax.f32 %v2985_v58, 0.0  ;;  %v3241_v12 = vmul.f32 %v7151_v6, %v3165_v51  ;;  %v3242_v22 = vmul.f32 %v7154_v49, %v3166_v20  ;;  %v3195_v61 = vmul.f32 %v4008_v36, %v3131_v30 }
 0x3d6   : > { %v3196_v24 = vmul.f32 %v4008_v36, %v3132_v41  ;;  %4011 = vrsqrt.f32 %v3033_v4  ;;  %v3034_v2 = vadd.f32 1e-12, %v3002_v34  ;;  %3379 = vst [vmem:[%s7194_s10 + $0x40] sm:$0xff] %v3315_v28  ;;  %3380 = vst [vmem:[%s7194_s10 + $0x48] sm:$0xff] %v3316_v15  ;;  %v2986_v23 = vsub.f32 %v2922_v33, %v2954_v54 }
 0x3d7   : > { %v2639_v47 = vpop.xlane.xlu1 %2638  ;;  %v3317_v17 = vadd.f32 %v7159_v10, %v3241_v12  ;;  %v3318_v37 = vadd.f32 %v7162_v39, %v3242_v22  ;;  %v3049_v62 = vadd.f32 1e-12, %v3017_v1  ;;  %v3134_v16 = vsub.f32 %v8133_v53, %v7234_v19 }
 0x3d8   : > { %v2684_v58 = vpop.xlane.xlu0 %2683  ;;  %v3271_v30 = vmul.f32 %v7151_v6, %v3195_v61  ;;  %v3272_v41 = vmul.f32 %v7154_v49, %v3196_v24  ;;  %4013 = vrsqrt.f32 %v3034_v2  ;;  %v4010_v5 = vpop.eup %4009  ;;  %v3018_v51 = vmax.f32 %v2986_v23, 0.0  ;;  %v8135_v24 = vld [vmem:[#allocation11_spill] sm:$0xff] }
 0x3d9   : > { %3381 = vst [vmem:[%s7194_s10 + $0x50] sm:$0xff] %v3317_v17  ;;  %3382 = vst [vmem:[%s7194_s10 + $0x58] sm:$0xff] %v3318_v37  ;;  %4015 = vrsqrt.f32 %v3049_v62  ;;  %v7320_v20 = vmul.f32 0.00390625, %v2636_v44  ;;  %v3197_v4 = vmul.f32 %v4010_v5, %v3133_v21  ;;  %v3198_v19 = vmul.f32 %v4010_v5, %v3134_v16  ;;  %v8134_v44 = vld [vmem:[#allocation26_spill] sm:$0xff] }
 0x3da   : > { %v3347_v54 = vadd.f32 %v7159_v10, %v3271_v30  ;;  %v3348_v36 = vadd.f32 %v7162_v39, %v3272_v41  ;;  %v3050_v1 = vadd.f32 1e-12, %v3018_v51  ;;  %v7324_v33 = vmul.f32 0.00390625, %v2639_v47  ;;  %v8137_v51 = vld [vmem:[#allocation72_spill] sm:$0xff] }
 0x3db   : > { %v2687_v34 = vpop.xlane.xlu1 %2686  ;;  %v3273_v15 = vmul.f32 %v7151_v6, %v3197_v4  ;;  %v3274_v12 = vmul.f32 %v7154_v49, %v3198_v19  ;;  %v3103_v22 = vsub.f32 %v8134_v44, %v7270_v32  ;;  %v7332_v61 = vmul.f32 0.00390625, %v2684_v58 }
 0x3dc   : > { %v2829_v28 = vpop.xlane.xlu0 %2828  ;;  %3411 = vst [vmem:[%s7194_s10 + $0x140] sm:$0xff] %v3347_v54  ;;  %3412 = vst [vmem:[%s7194_s10 + $0x148] sm:$0xff] %v3348_v36  ;;  %v3104_v21 = vsub.f32 %v8135_v24, %v7270_v32  ;;  %v3105_v2 = vsub.f32 %v8072_v7, %v7274_v9  ;;  %4017 = vrsqrt.f32 %v3050_v1  ;;  %v7338_v47 = vmul.f32 0.00390625, %v2687_v34  ;;  %v8136_v32 = vld [vmem:[#allocation50_spill] sm:$0xff] }
 0x3dd   : > { %v3349_v17 = vadd.f32 %v7159_v10, %v3273_v15  ;;  %v3350_v37 = vadd.f32 %v7162_v39, %v3274_v12  ;;  %v2939_v62 = vmul.f32 %v7320_v20, %v7320_v20  ;;  %v2907_v23 = vmul.f32 0.00390625, %v2829_v28  ;;  %v8139_v12 = vld [vmem:[#allocation43_spill] sm:$0xff] }
 0x3de   : > { %v3106_v53 = vsub.f32 %v8073_v14, %v7274_v9  ;;  %v3135_v16 = vsub.f32 %v8136_v32, %v7276_v8  ;;  %v2940_v7 = vmul.f32 %v7324_v33, %v7324_v33  ;;  %v3136_v54 = vsub.f32 %v8137_v51, %v7276_v8  ;;  %v8138_v14 = vld [vmem:[#allocation75_spill] sm:$0xff] }
 0x3df   : > { %v2832_v58 = vpop.xlane.xlu1 %2831  ;;  %3413 = vst [vmem:[%s7194_s10 + $0x150] sm:$0xff] %v3349_v17  ;;  %3414 = vst [vmem:[%s7194_s10 + $0x158] sm:$0xff] %v3350_v37  ;;  %v2971_v36 = vsub.f32 %v2907_v23, %v2939_v62  ;;  %v2955_v4 = vmul.f32 %v7332_v61, %v7332_v61  ;;  %v3137_v9 = vsub.f32 %v8138_v14, %v7286_v46 }
 0x3e0   : > { %v2908_v30 = vmul.f32 0.00390625, %v2832_v58  ;;  %v2877_v41 = vpop.xlane.xlu0 %2876  ;;  %v4012_v5 = vpop.eup %4011  ;;  %v3138_v44 = vsub.f32 %v8139_v12, %v7286_v46  ;;  %v2956_v8 = vmul.f32 %v7338_v47, %v7338_v47 }
 0x3e1   : > { %v2923_v19 = vmul.f32 0.00390625, %v2877_v41  ;;  %v3167_v34 = vmul.f32 %v4012_v5, %v3103_v22  ;;  %v3168_v1 = vmul.f32 %v4012_v5, %v3104_v21  ;;  %v3003_v24 = vmax.f32 %v2971_v36, 0.0 }
 0x3e2   : > { %v2972_v28 = vsub.f32 %v2908_v30, %v2940_v7  ;;  %v4014_v15 = vpop.eup %4013 }
 0x3e3   : > { %v2987_v17 = vsub.f32 %v2923_v19, %v2955_v4  ;;  %v2880_v37 = vpop.xlane.xlu1 %2879  ;;  %v4016_v62 = vpop.eup %4015  ;;  %v3243_v23 = vmul.f32 %v7151_v6, %v3167_v34  ;;  %v3244_v58 = vmul.f32 %v7154_v49, %v3168_v1  ;;  %v3169_v32 = vmul.f32 %v4014_v15, %v3105_v2 }
 0x3e4   : > { %v3170_v41 = vmul.f32 %v4014_v15, %v3106_v53  ;;  %v2642_v22 = vpop.xlane.xlu0 %2641  ;;  %v3199_v21 = vmul.f32 %v4016_v62, %v3135_v16  ;;  %v3200_v7 = vmul.f32 %v4016_v62, %v3136_v54  ;;  %v3035_v30 = vadd.f32 1e-12, %v3003_v24 }
 0x3e5   : > { %v3004_v46 = vmax.f32 %v2972_v28, 0.0  ;;  %v3319_v5 = vadd.f32 %v7159_v10, %v3243_v23  ;;  %v3320_v51 = vadd.f32 %v7162_v39, %v3244_v58  ;;  %v3245_v36 = vmul.f32 %v7151_v6, %v3169_v32 }
 0x3e6   : > { %v3246_v4 = vmul.f32 %v7154_v49, %v3170_v41  ;;  %v3275_v19 = vmul.f32 %v7151_v6, %v3199_v21  ;;  %v3276_v2 = vmul.f32 %v7154_v49, %v3200_v7  ;;  %4019 = vrsqrt.f32 %v3035_v30  ;;  %v4018_v54 = vpop.eup %4017 }
 0x3e7   : > { %v3036_v53 = vadd.f32 1e-12, %v3004_v46  ;;  %v2645_v16 = vpop.xlane.xlu1 %2644  ;;  %3383 = vst [vmem:[%s7194_s10 + $0x60] sm:$0xff] %v3319_v5  ;;  %3384 = vst [vmem:[%s7194_s10 + $0x68] sm:$0xff] %v3320_v51  ;;  %v3321_v14 = vadd.f32 %v7159_v10, %v3245_v36  ;;  %v3019_v1 = vmax.f32 %v2987_v17, 0.0  ;;  %v2924_v28 = vmul.f32 0.00390625, %v2880_v37 }
 0x3e8   : > { %v3322_v34 = vadd.f32 %v7162_v39, %v3246_v4  ;;  %v2690_v15 = vpop.xlane.xlu0 %2689  ;;  %v3351_v12 = vadd.f32 %v7159_v10, %v3275_v19  ;;  %v3352_v24 = vadd.f32 %v7162_v39, %v3276_v2  ;;  %v3201_v62 = vmul.f32 %v4018_v54, %v3137_v9  ;;  %v8140_v5 = vld [vmem:[#allocation53_spill] sm:$0xff]  ;;  %v8141_v4 = vld [vmem:[#allocation59_spill] sm:$0xff] }
 0x3e9   : > { %v3202_v23 = vmul.f32 %v4018_v54, %v3138_v44  ;;  %3385 = vst [vmem:[%s7194_s10 + $0x70] sm:$0xff] %v3321_v14  ;;  %4021 = vrsqrt.f32 %v3036_v53  ;;  %v3051_v58 = vadd.f32 1e-12, %v3019_v1  ;;  %v2988_v32 = vsub.f32 %v2924_v28, %v2956_v8  ;;  %v8142_v14 = vld [vmem:[#allocation41_spill] sm:$0xff] }
 0x3ea   : > { %3386 = vst [vmem:[%s7194_s10 + $0x78] sm:$0xff] %v3322_v34  ;;  %3415 = vst [vmem:[%s7194_s10 + $0x160] sm:$0xff] %v3351_v12  ;;  %v3277_v41 = vmul.f32 %v7151_v6, %v3201_v62  ;;  %v7382_v37 = vmul.f32 0.00390625, %v2642_v22  ;;  %v7384_v9 = vmul.f32 0.00390625, %v2645_v16  ;;  %v7388_v46 = vmul.f32 0.00390625, %v2690_v15  ;;  %v8143_v15 = vld [vmem:[#allocation69_spill] sm:$0xff] }
 0x3eb   : > { %3416 = vst [vmem:[%s7194_s10 + $0x168] sm:$0xff] %v3352_v24  ;;  %v3278_v17 = vmul.f32 %v7154_v49, %v3202_v23  ;;  %v2693_v21 = vpop.xlane.xlu1 %2692  ;;  %4023 = vrsqrt.f32 %v3051_v58  ;;  %v3020_v7 = vmax.f32 %v2988_v32, 0.0  ;;  %v3107_v51 = vsub.f32 %v8140_v5, %v7320_v20  ;;  %v8144_v58 = vld [vmem:[#allocation28_spill] sm:$0xff] }
 0x3ec   : > { %v2835_v44 = vpop.xlane.xlu0 %2834  ;;  %v3353_v30 = vadd.f32 %v7159_v10, %v3277_v41  ;;  %v3108_v36 = vsub.f32 %v8079_v48, %v7320_v20  ;;  %v3109_v19 = vsub.f32 %v8141_v4, %v7324_v33  ;;  %v7398_v2 = vmul.f32 0.00390625, %v2693_v21  ;;  %v8145_v21 = vld [vmem:[#allocation40_spill] sm:$0xff] }
 0x3ed   : > { %v3354_v8 = vadd.f32 %v7162_v39, %v3278_v17  ;;  %v3052_v22 = vadd.f32 1e-12, %v3020_v7  ;;  %v2941_v53 = vmul.f32 %v7382_v37, %v7382_v37  ;;  %v2909_v16 = vmul.f32 0.00390625, %v2835_v44 }
 0x3ee   : > { %3417 = vst [vmem:[%s7194_s10 + $0x170] sm:$0xff] %v3353_v30  ;;  %v3110_v34 = vsub.f32 %v8142_v14, %v7324_v33  ;;  %v2942_v48 = vmul.f32 %v7384_v9, %v7384_v9  ;;  %v3139_v12 = vsub.f32 %v8143_v15, %v7332_v61  ;;  %v2957_v62 = vmul.f32 %v7388_v46, %v7388_v46 }
 0x3ef   : > { %3418 = vst [vmem:[%s7194_s10 + $0x178] sm:$0xff] %v3354_v8  ;;  %v2838_v54 = vpop.xlane.xlu1 %2837  ;;  %4025 = vrsqrt.f32 %v3052_v22  ;;  %v2973_v24 = vsub.f32 %v2909_v16, %v2941_v53  ;;  %v3140_v32 = vsub.f32 %v8144_v58, %v7332_v61  ;;  %v3141_v7 = vsub.f32 %v8145_v21, %v7338_v47 }
 0x3f0   : > { %v2910_v20 = vmul.f32 0.00390625, %v2838_v54  ;;  %v2883_v1 = vpop.xlane.xlu0 %2882  ;;  %v4020_v28 = vpop.eup %4019  ;;  %v2958_v8 = vmul.f32 %v7398_v2, %v7398_v2 }
 0x3f1   : > { %v2925_v23 = vmul.f32 0.00390625, %v2883_v1  ;;  %v3171_v41 = vmul.f32 %v4020_v28, %v3107_v51  ;;  %v3172_v33 = vmul.f32 %v4020_v28, %v3108_v36  ;;  %v3005_v44 = vmax.f32 %v2973_v24, 0.0 }
 0x3f2   : > { %v2974_v17 = vsub.f32 %v2910_v20, %v2942_v48 }
 0x3f3   : > { %v2989_v30 = vsub.f32 %v2925_v23, %v2957_v62  ;;  %v2886_v5 = vpop.xlane.xlu1 %2885  ;;  %v4022_v22 = vpop.eup %4021  ;;  %v3247_v4 = vmul.f32 %v7151_v6, %v3171_v41  ;;  %v3248_v53 = vmul.f32 %v7154_v49, %v3172_v33  ;;  %v3037_v14 = vadd.f32 1e-12, %v3005_v44 }
 0x3f4   : > { %v3006_v16 = vmax.f32 %v2974_v17, 0.0  ;;  %v2926_v54 = vmul.f32 0.00390625, %v2886_v5  ;;  %v2648_v61 = vpop.xlane.xlu0 %2647  ;;  %v3173_v51 = vmul.f32 %v4022_v22, %v3109_v19  ;;  %v3174_v36 = vmul.f32 %v4022_v22, %v3110_v34 }
 0x3f5   : > { %v3021_v48 = vmax.f32 %v2989_v30, 0.0  ;;  %v4024_v20 = vpop.eup %4023  ;;  %v3323_v1 = vadd.f32 %v7159_v10, %v3247_v4  ;;  %v3324_v28 = vadd.f32 %v7162_v39, %v3248_v53  ;;  %v3142_v19 = vsub.f32 %v8085_v27, %v7338_v47 }
 0x3f6   : > { %v3038_v15 = vadd.f32 1e-12, %v3006_v16  ;;  %v2990_v24 = vsub.f32 %v2926_v54, %v2958_v8  ;;  %v3249_v62 = vmul.f32 %v7151_v6, %v3173_v51  ;;  %v3250_v23 = vmul.f32 %v7154_v49, %v3174_v36 }
 0x3f7   : > { %v3203_v58 = vmul.f32 %v4024_v20, %v3139_v12  ;;  %v3204_v41 = vmul.f32 %v4024_v20, %v3140_v32  ;;  %v2651_v33 = vpop.xlane.xlu1 %2650  ;;  %3387 = vst [vmem:[%s7194_s10 + $0x80] sm:$0xff] %v3323_v1  ;;  %3388 = vst [vmem:[%s7194_s10 + $0x88] sm:$0xff] %v3324_v28  ;;  %4027 = vrsqrt.f32 %v3037_v14  ;;  %v3053_v34 = vadd.f32 1e-12, %v3021_v48 }
 0x3f8   : > { %v3022_v17 = vmax.f32 %v2990_v24, 0.0  ;;  %v2696_v21 = vpop.xlane.xlu0 %2695  ;;  %v3325_v44 = vadd.f32 %v7159_v10, %v3249_v62  ;;  %v3326_v30 = vadd.f32 %v7162_v39, %v3250_v23  ;;  %4029 = vrsqrt.f32 %v3038_v15 }
 0x3f9   : > { %v3279_v8 = vmul.f32 %v7151_v6, %v3203_v58  ;;  %v3280_v12 = vmul.f32 %v7154_v49, %v3204_v41  ;;  %v4026_v32 = vpop.eup %4025  ;;  %4031 = vrsqrt.f32 %v3053_v34  ;;  %v7434_v16 = vmul.f32 0.00390625, %v2648_v61 }
 0x3fa   : > { %v3054_v5 = vadd.f32 1e-12, %v3022_v17  ;;  %3389 = vst [vmem:[%s7194_s10 + $0x90] sm:$0xff] %v3325_v44  ;;  %3390 = vst [vmem:[%s7194_s10 + $0x98] sm:$0xff] %v3326_v30  ;;  %v3205_v22 = vmul.f32 %v4026_v32, %v3141_v7  ;;  %v3206_v4 = vmul.f32 %v4026_v32, %v3142_v19  ;;  %v7436_v54 = vmul.f32 0.00390625, %v2651_v33 }
 0x3fb   : > { %v3355_v27 = vadd.f32 %v7159_v10, %v3279_v8  ;;  %v3356_v47 = vadd.f32 %v7162_v39, %v3280_v12  ;;  %v2699_v53 = vpop.xlane.xlu1 %2698  ;;  %v7442_v48 = vmul.f32 0.00390625, %v2696_v21  ;;  %v3111_v7 = vsub.f32 %v8086_v11, %v7382_v37 }
 0x3fc   : > { %v2841_v51 = vpop.xlane.xlu0 %2840  ;;  %v3281_v36 = vmul.f32 %v7151_v6, %v3205_v22  ;;  %v3282_v14 = vmul.f32 %v7154_v49, %v3206_v4  ;;  %4033 = vrsqrt.f32 %v3054_v5  ;;  %v3112_v61 = vsub.f32 %v6429_v50, %v7382_v37 }
 0x3fd   : > { %3419 = vst [vmem:[%s7194_s10 + $0x180] sm:$0xff] %v3355_v27  ;;  %3420 = vst [vmem:[%s7194_s10 + $0x188] sm:$0xff] %v3356_v47  ;;  %v3113_v28 = vsub.f32 %v6511_v59, %v7384_v9  ;;  %v7452_v15 = vmul.f32 0.00390625, %v2699_v53  ;;  %v2943_v62 = vmul.f32 %v7434_v16, %v7434_v16  ;;  %v2911_v23 = vmul.f32 0.00390625, %v2841_v51 }
 0x3fe   : > { %v3357_v20 = vadd.f32 %v7159_v10, %v3281_v36  ;;  %v3358_v1 = vadd.f32 %v7162_v39, %v3282_v14  ;;  %v2944_v11 = vmul.f32 %v7436_v54, %v7436_v54  ;;  %v3114_v50 = vsub.f32 %v8087_v45, %v7384_v9 }
 0x3ff   : > { %v2844_v24 = vpop.xlane.xlu1 %2843  ;;  %v3143_v59 = vsub.f32 %v8088_v25, %v7388_v46  ;;  %v2959_v37 = vmul.f32 %v7442_v48, %v7442_v48  ;;  %v3144_v34 = vsub.f32 %v8089_v42, %v7388_v46  ;;  %v3145_v17 = vsub.f32 %v8090_v0, %v7398_v2 }
 0x400   : > { %v2912_v58 = vmul.f32 0.00390625, %v2844_v24  ;;  %v2889_v41 = vpop.xlane.xlu0 %2888  ;;  %3421 = vst [vmem:[%s7194_s10 + $0x190] sm:$0xff] %v3357_v20  ;;  %3422 = vst [vmem:[%s7194_s10 + $0x198] sm:$0xff] %v3358_v1  ;;  %v2975_v21 = vsub.f32 %v2911_v23, %v2943_v62  ;;  %v3146_v30 = vsub.f32 %v8091_v29, %v7398_v2  ;;  %v2960_v27 = vmul.f32 %v7452_v15, %v7452_v15 }
 0x401   : > { %v2927_v33 = vmul.f32 0.00390625, %v2889_v41  ;;  %v4028_v19 = vpop.eup %4027 }
 0x402   : > { %v2976_v44 = vsub.f32 %v2912_v58, %v2944_v11  ;;  %v3175_v45 = vmul.f32 %v4028_v19, %v3111_v7  ;;  %v3176_v9 = vmul.f32 %v4028_v19, %v3112_v61  ;;  %v4030_v12 = vpop.eup %4029  ;;  %v3007_v32 = vmax.f32 %v2975_v21, 0.0 }
 0x403   : > { %v2991_v8 = vsub.f32 %v2927_v33, %v2959_v37  ;;  %v2892_v25 = vpop.xlane.xlu1 %2891  ;;  %v3177_v22 = vmul.f32 %v4030_v12, %v3113_v28  ;;  %v3178_v4 = vmul.f32 %v4030_v12, %v3114_v50  ;;  %v4032_v53 = vpop.eup %4031 }
 0x404   : > { %v3008_v5 = vmax.f32 %v2976_v44, 0.0  ;;  %v2928_v47 = vmul.f32 0.00390625, %v2892_v25  ;;  %v2654_v42 = vpop.xlane.xlu0 %2653  ;;  %v3251_v46 = vmul.f32 %v7151_v6, %v3175_v45  ;;  %v3252_v0 = vmul.f32 %v7154_v49, %v3176_v9 }
 0x405   : > { %v3039_v29 = vadd.f32 1e-12, %v3007_v32  ;;  %v3023_v51 = vmax.f32 %v2991_v8, 0.0  ;;  %v3253_v20 = vmul.f32 %v7151_v6, %v3177_v22  ;;  %v3254_v1 = vmul.f32 %v7154_v49, %v3178_v4 }
 0x406   : > { %v3040_v2 = vadd.f32 1e-12, %v3008_v5  ;;  %v2992_v36 = vsub.f32 %v2928_v47, %v2960_v27  ;;  %v4034_v14 = vpop.eup %4033  ;;  %v3327_v7 = vadd.f32 %v7159_v10, %v3251_v46  ;;  %v3328_v61 = vadd.f32 %v7162_v39, %v3252_v0 }
 0x407   : > { %v2657_v24 = vpop.xlane.xlu1 %2656  ;;  %v3207_v28 = vmul.f32 %v4032_v53, %v3143_v59  ;;  %v3208_v62 = vmul.f32 %v4032_v53, %v3144_v34  ;;  %v3209_v23 = vmul.f32 %v4034_v14, %v3145_v17  ;;  %v3210_v11 = vmul.f32 %v4034_v14, %v3146_v30 }
 0x408   : > { %v2702_v58 = vpop.xlane.xlu0 %2701  ;;  %3391 = vst [vmem:[%s7194_s10 + $0xa0] sm:$0xff] %v3327_v7  ;;  %3392 = vst [vmem:[%s7194_s10 + $0xa8] sm:$0xff] %v3328_v61  ;;  %v3329_v41 = vadd.f32 %v7159_v10, %v3253_v20  ;;  %v3330_v50 = vadd.f32 %v7162_v39, %v3254_v1  ;;  %4035 = vrsqrt.f32 %v3039_v29  ;;  %v3055_v37 = vadd.f32 1e-12, %v3023_v51 }
 0x409   : > { %v3283_v33 = vmul.f32 %v7151_v6, %v3207_v28  ;;  %v3284_v19 = vmul.f32 %v7154_v49, %v3208_v62  ;;  %v3285_v21 = vmul.f32 %v7151_v6, %v3209_v23  ;;  %v3286_v59 = vmul.f32 %v7154_v49, %v3210_v11 }
 0x40a   : > { %3393 = vst [vmem:[%s7194_s10 + $0xb0] sm:$0xff] %v3329_v41  ;;  %3394 = vst [vmem:[%s7194_s10 + $0xb8] sm:$0xff] %v3330_v50  ;;  %4037 = vrsqrt.f32 %v3040_v2  ;;  %v3024_v34 = vmax.f32 %v2992_v36, 0.0  ;;  %v7490_v17 = vmul.f32 0.00390625, %v2654_v42  ;;  %v7492_v44 = vmul.f32 0.00390625, %v2657_v24 }
 0x40b   : > { %v2705_v30 = vpop.xlane.xlu1 %2704  ;;  %v3359_v45 = vadd.f32 %v7159_v10, %v3283_v33  ;;  %v3360_v9 = vadd.f32 %v7162_v39, %v3284_v19  ;;  %v3361_v8 = vadd.f32 %v7159_v10, %v3285_v21  ;;  %v3362_v25 = vadd.f32 %v7162_v39, %v3286_v59 }
 0x40c   : > { %v2847_v12 = vpop.xlane.xlu0 %2846  ;;  %4039 = vrsqrt.f32 %v3055_v37  ;;  %v3056_v32 = vadd.f32 1e-12, %v3024_v34  ;;  %v7502_v5 = vmul.f32 0.00390625, %v2702_v58  ;;  %v2945_v27 = vmul.f32 %v7490_v17, %v7490_v17 }
 0x40d   : > { %3423 = vst [vmem:[%s7194_s10 + $0x1a0] sm:$0xff] %v3359_v45  ;;  %3424 = vst [vmem:[%s7194_s10 + $0x1a8] sm:$0xff] %v3360_v9  ;;  %v2913_v47 = vmul.f32 0.00390625, %v2847_v12  ;;  %v3115_v46 = vsub.f32 %v8097_v18, %v7434_v16  ;;  %v3116_v0 = vsub.f32 %v6771_v63, %v7434_v16  ;;  %v7510_v22 = vmul.f32 0.00390625, %v2705_v30 }
 0x40e   : > { %3425 = vst [vmem:[%s7194_s10 + $0x1b0] sm:$0xff] %v3361_v8  ;;  %3426 = vst [vmem:[%s7194_s10 + $0x1b8] sm:$0xff] %v3362_v25  ;;  %4041 = vrsqrt.f32 %v3056_v32  ;;  %v2946_v4 = vmul.f32 %v7492_v44, %v7492_v44  ;;  %v2961_v51 = vmul.f32 %v7502_v5, %v7502_v5  ;;  %v3117_v14 = vsub.f32 %v6859_v3, %v7436_v54 }
 0x40f   : > { %v2850_v42 = vpop.xlane.xlu1 %2849  ;;  %v2977_v29 = vsub.f32 %v2913_v47, %v2945_v27  ;;  %v3118_v18 = vsub.f32 %v7039_v57, %v7436_v54  ;;  %v3147_v63 = vsub.f32 %v8099_v38, %v7442_v48  ;;  %v3148_v16 = vsub.f32 %v6829_v55, %v7442_v48 }
 0x410   : > { %v2895_v53 = vpop.xlane.xlu0 %2894  ;;  %v2914_v2 = vmul.f32 0.00390625, %v2850_v42  ;;  %v3149_v61 = vsub.f32 %v7033_v43, %v7452_v15  ;;  %v3150_v3 = vsub.f32 %v7051_v26, %v7452_v15  ;;  %v2962_v55 = vmul.f32 %v7510_v22, %v7510_v22 }
 0x411   : > { %v2929_v36 = vmul.f32 0.00390625, %v2895_v53  ;;  %v3009_v20 = vmax.f32 %v2977_v29, 0.0 }
 0x412   : > { %v4036_v7 = vpop.eup %4035  ;;  %v2978_v1 = vsub.f32 %v2914_v2, %v2946_v4 }
 0x413   : > { %v2993_v24 = vsub.f32 %v2929_v36, %v2961_v51  ;;  %v2898_v28 = vpop.xlane.xlu1 %2897  ;;  %v3179_v62 = vmul.f32 %v4036_v7, %v3115_v46  ;;  %v3180_v23 = vmul.f32 %v4036_v7, %v3116_v0  ;;  %v3041_v11 = vadd.f32 1e-12, %v3009_v20 }
 0x414   : > { %v2930_v57 = vmul.f32 0.00390625, %v2898_v28  ;;  %v4038_v54 = vpop.eup %4037  ;;  %v3010_v38 = vmax.f32 %v2978_v1, 0.0  ;;  %v3119_v36 = vsub.f32 %v7083_v56, %v7490_v17 }
 0x415   : > { %v3025_v58 = vmax.f32 %v2993_v24, 0.0  ;;  %v3255_v48 = vmul.f32 %v7151_v6, %v3179_v62  ;;  %v3256_v43 = vmul.f32 %v7154_v49, %v3180_v23  ;;  %v3181_v41 = vmul.f32 %v4038_v54, %v3117_v14 }
 0x416   : > { %v3182_v50 = vmul.f32 %v4038_v54, %v3118_v18  ;;  %v4040_v37 = vpop.eup %4039  ;;  %4043 = vrsqrt.f32 %v3041_v11  ;;  %v3042_v26 = vadd.f32 1e-12, %v3010_v38  ;;  %v2994_v33 = vsub.f32 %v2930_v57, %v2962_v55 }
 0x417   : > { %v3057_v15 = vadd.f32 1e-12, %v3025_v58  ;;  %v3331_v19 = vadd.f32 %v7159_v10, %v3255_v48  ;;  %v3332_v21 = vadd.f32 %v7162_v39, %v3256_v43  ;;  %v3257_v59 = vmul.f32 %v7151_v6, %v3181_v41 }
 0x418   : > { %v3258_v34 = vmul.f32 %v7154_v49, %v3182_v50  ;;  %v4042_v30 = vpop.eup %4041  ;;  %v3211_v45 = vmul.f32 %v4040_v37, %v3147_v63  ;;  %v3212_v9 = vmul.f32 %v4040_v37, %v3148_v16  ;;  %4045 = vrsqrt.f32 %v3042_v26 }
 0x419   : > { %v3026_v8 = vmax.f32 %v2994_v33, 0.0  ;;  %3395 = vst [vmem:[%s7194_s10 + $0xc0] sm:$0xff] %v3331_v19  ;;  %3396 = vst [vmem:[%s7194_s10 + $0xc8] sm:$0xff] %v3332_v21  ;;  %v3333_v25 = vadd.f32 %v7159_v10, %v3257_v59  ;;  %v3213_v32 = vmul.f32 %v4042_v30, %v3149_v61  ;;  %v3214_v27 = vmul.f32 %v4042_v30, %v3150_v3 }
 0x41a   : > { %v3334_v12 = vadd.f32 %v7162_v39, %v3258_v34  ;;  %v3287_v47 = vmul.f32 %v7151_v6, %v3211_v45  ;;  %v3288_v42 = vmul.f32 %v7154_v49, %v3212_v9  ;;  %4047 = vrsqrt.f32 %v3057_v15 }
 0x41b   : > { %v3058_v46 = vadd.f32 1e-12, %v3026_v8  ;;  %3397 = vst [vmem:[%s7194_s10 + $0xd0] sm:$0xff] %v3333_v25  ;;  %v3289_v0 = vmul.f32 %v7151_v6, %v3213_v32  ;;  %v3290_v4 = vmul.f32 %v7154_v49, %v3214_v27  ;;  %v3120_v14 = vsub.f32 %v7090_v40, %v7490_v17  ;;  %v8146_v17 = vld [vmem:[#allocation71_spill] sm:$0xff] }
 0x41c   : > { %3398 = vst [vmem:[%s7194_s10 + $0xd8] sm:$0xff] %v3334_v12  ;;  %v3363_v53 = vadd.f32 %v7159_v10, %v3287_v47  ;;  %v3364_v29 = vadd.f32 %v7162_v39, %v3288_v42  ;;  %v3121_v63 = vsub.f32 %v7092_v52, %v7492_v44  ;;  %v3122_v16 = vsub.f32 %v7096_v13, %v7492_v44 }
 0x41d   : > { %4049 = vrsqrt.f32 %v3058_v46  ;;  %v3365_v2 = vadd.f32 %v7159_v10, %v3289_v0  ;;  %v3366_v51 = vadd.f32 %v7162_v39, %v3290_v4  ;;  %v3151_v40 = vsub.f32 %v7098_v35, %v7502_v5 }
 0x41e   : > { %3427 = vst [vmem:[%s7194_s10 + $0x1c0] sm:$0xff] %v3363_v53  ;;  %3428 = vst [vmem:[%s7194_s10 + $0x1c8] sm:$0xff] %v3364_v29  ;;  %v3152_v52 = vsub.f32 %v7100_v31, %v7502_v5  ;;  %v3153_v13 = vsub.f32 %v7104_v60, %v7510_v22  ;;  %v3154_v44 = vsub.f32 %v8146_v17, %v7510_v22 }
 0x41f   : > { %3429 = vst [vmem:[%s7194_s10 + $0x1d0] sm:$0xff] %v3365_v2  ;;  %3430 = vst [vmem:[%s7194_s10 + $0x1d8] sm:$0xff] %v3366_v51 }
 0x420   : > { %v4044_v18 = vpop.eup %4043 }
 0x421   : > { %v3183_v7 = vmul.f32 %v4044_v18, %v3119_v36  ;;  %v3184_v61 = vmul.f32 %v4044_v18, %v3120_v14 }
 0x422   : > { %v4046_v20 = vpop.eup %4045 }
 0x423   : > { %v3259_v1 = vmul.f32 %v7151_v6, %v3183_v7  ;;  %v3260_v24 = vmul.f32 %v7154_v49, %v3184_v61  ;;  %v3185_v56 = vmul.f32 %v4046_v20, %v3121_v63  ;;  %v3186_v28 = vmul.f32 %v4046_v20, %v3122_v16 }
 0x424   : > { %v4048_v3 = vpop.eup %4047 }
 0x425   : > { %v3335_v62 = vadd.f32 %v7159_v10, %v3259_v1  ;;  %v3336_v23 = vadd.f32 %v7162_v39, %v3260_v24  ;;  %v3261_v57 = vmul.f32 %v7151_v6, %v3185_v56  ;;  %v3262_v35 = vmul.f32 %v7154_v49, %v3186_v28 }
 0x426   : > { %v3215_v31 = vmul.f32 %v4048_v3, %v3151_v40  ;;  %v3216_v5 = vmul.f32 %v4048_v3, %v3152_v52 }
 0x427   : > { %v4050_v54 = vpop.eup %4049  ;;  %3399 = vst [vmem:[%s7194_s10 + $0xe0] sm:$0xff] %v3335_v62  ;;  %3400 = vst [vmem:[%s7194_s10 + $0xe8] sm:$0xff] %v3336_v23  ;;  %v3337_v60 = vadd.f32 %v7159_v10, %v3261_v57  ;;  %v3338_v11 = vadd.f32 %v7162_v39, %v3262_v35 }
 0x428   : > { %v3217_v22 = vmul.f32 %v4050_v54, %v3153_v13  ;;  %v3218_v38 = vmul.f32 %v4050_v54, %v3154_v44  ;;  %v3291_v58 = vmul.f32 %v7151_v6, %v3215_v31  ;;  %v3292_v55 = vmul.f32 %v7154_v49, %v3216_v5 }
 0x429   : > { %3401 = vst [vmem:[%s7194_s10 + $0xf0] sm:$0xff] %v3337_v60  ;;  %3402 = vst [vmem:[%s7194_s10 + $0xf8] sm:$0xff] %v3338_v11 }
 0x42a   : > { %v3293_v48 = vmul.f32 %v7151_v6, %v3217_v22  ;;  %v3294_v43 = vmul.f32 %v7154_v49, %v3218_v38  ;;  %v3367_v41 = vadd.f32 %v7159_v10, %v3291_v58  ;;  %v3368_v50 = vadd.f32 %v7162_v39, %v3292_v55 }
 0x42c   : > { %v3369_v37 = vadd.f32 %v7159_v10, %v3293_v48  ;;  %v3370_v6 = vadd.f32 %v7162_v39, %v3294_v43  ;;  %3431 = vst [vmem:[%s7194_s10 + $0x1e0] sm:$0xff] %v3367_v41  ;;  %3432 = vst [vmem:[%s7194_s10 + $0x1e8] sm:$0xff] %v3368_v50 }
 0x42e   : > { %3433 = vst [vmem:[%s7194_s10 + $0x1f0] sm:$0xff] %v3369_v37  ;;  %3434 = vst [vmem:[%s7194_s10 + $0x1f8] sm:$0xff] %v3370_v6 }
 0x42f   : > { %4122 = shalt.err (!%p4119_p7)
}
 0x430   : > { %s4123_s26 = scalar_lea.hbm %s7593_s16, 8192  ;;  %s4127_s7 = scalar_lea.hbm %s7650_s5, 16384 }
 0x431   : > { %p4124_p9 = scmp.ne.s32.totalorder %s7593_s16, %s4123_s26  ;;  %p4128_p5 = scmp.lt.u32.totalorder %s7593_s16, %s7650_s5 }
 0x432   : > { %p4129_p11 = scmp.lt.u32.totalorder %s4127_s7, %s4123_s26  ;;  %p4131_p4 = scmp.lt.u32.totalorder %s4123_s26, %s7593_s16 }
 0x433   : > { %p4125_p2 = pnand %p4124_p9, %p4312_p12 }
 0x434   : > { %p4130_p1 = por %p4129_p11, %p4128_p5 }
 0x435   : > { %p4126_p0 = pneg %p4125_p2 }
 0x436   : > { %p4132_p6 = por %p4131_p4, %p4130_p1 }
 0x438   : > { %p4133_p8 = pnand %p4132_p6, %p4126_p0 }
 0x43a   : > { %4136 = shalt.err (!%p4133_p8)
}
 0x43b   : > { %s4189_s29 = smov 256   ;;  %s4190_s22 = smov 16  }
 0x43c   : > { %3625 = dma.vmem_to_hbm [thread:$0]  (%p4312_p12), %s7595_s13, 8192, %s7593_s16, %s3436_s17, %s4189_s29, %s4189_s29, %s4190_s22  }
 0x43d PF: > { %s3465_s28 = sand.u32 1, %s4167_s18   ;;  %p8147_p10 = scmp.ne.s32.totalorder %s7778_s25, 0 }
 0x43e   : > { %p8148_p13 = scmp.ge.s32.totalorder %s4179_s21, 2  ;;  %s3466_s27 = scalar_lea.sflag [#allocation4], %s3465_s28 }
 0x440   : > { %p3636_p3 = pnand %p8148_p13, %p8147_p10 }
 0x442   : > { %4162 = dma.done.wait (!%p3636_p3), %s3466_s27, 8192  }
 0x443   : > { %4164 = vsyncadd (!%p3636_p3), %s3466_s27, 4294959104  ;;  %p19_p7 = scmp.ge.s32.totalorder %s4277_s30, 4   ;;  %s8149_s18 = smov %s4171_s19 }
 0x444   : > { %s8150_s19 = smov %s4175_s20  ;;  %s8151_s20 = smov %s4308_s8 }
 0x445   : > { %s8152_s21 = smov %s4277_s30  ;;  %21 = sbr.rel (!%p19_p7) target bundleno = 6 (0x6), region = 89 }
 0x44c   :  { %3471 = vsyncpa [#allocation3], 1 }
 0x44d   :  { %3473 = vsyncpa [#allocation3 + $0x1], 1 }
 0x44e   :  { %3474 = vsyncpa [#allocation6], 1 }
 0x44f   :  { %3475 = vsyncpa [#allocation4], 1 }
 0x450   :  { %3477 = vsyncpa [#allocation4 + $0x1], 1 }

// kernel: tpu_custom_call.1
= control target key start
LH: loop header
LB: loop body
LE: loop exit
PB: predicated region body
PF: predicated region fallthrough
CT: control target
= control target key end

     0   :  { %10 = vsyncpa [#allocation3], 0  ;;  %s7645_s0 = inlined_call_operand.hbm [shape: f32[512,256], index: 0, kind: input, shape index: {}]   ;;  %s7646_s1 = inlined_call_operand.hbm [shape: bf16[256,256], index: 1, kind: input, shape index: {}]   ;;  %s7647_s2 = inlined_call_operand.vmem [shape: f32[1,256], index: 2, kind: input, shape index: {}]   ;;  %s7648_s3 = inlined_call_operand.vmem [shape: f32[1,256], index: 3, kind: input, shape index: {}]   ;;  %s7649_s4 = inlined_call_operand.vmem [shape: f32[1,256], index: 4, kind: input, shape index: {}]   ;;  %s7650_s5 = inlined_call_operand.hbm [shape: f32[512,256], index: 5, kind: output, shape index: {}]  }
   0x1   :  { %12 = vsyncpa [#allocation3 + $0x1], 0 }
   0x2   :  { %13 = vsyncpa [#allocation6], 0 }
   0x3   :  { %14 = vsyncpa [#allocation4], 0 }
   0x4   :  { %16 = vsyncpa [#allocation4 + $0x1], 0  ;;  %s4221_s18 = smov 0   ;;  %s4223_s19 = smov 0  }
   0x5   :  { %s4225_s20 = smov 0   ;;  %s4227_s21 = smov 0  }
   0x6 LB: > { %s4242_s22 = sadd.s32 4294967295, %s4179_s21   ;;  %s3533_s23 = sadd.s32 4294967294, %s4179_s21   ;;  %s4179_s21 = sphi %s4227_s21, %s8152_s21   ;;  %s4175_s20 = sphi %s4225_s20, %s8151_s20   ;;  %s4171_s19 = sphi %s4223_s19, %s8150_s19   ;;  %s4167_s18 = sphi %s4221_s18, %s8149_s18  }
   0x7   : > { %p42_p0 = scmp.ne.s32.totalorder %s4171_s19, %s4167_s18  ;;  %p7651_p1 = scmp.eq.s32.totalorder %s4242_s22, 0 }
   0x8   : > { %p156_p3 = scmp.eq.s32.totalorder %s3533_s23, 1  ;;  %p3534_p5 = scmp.ge.s32.totalorder %s4179_s21, 1 }
   0x9   : > { %p4251_p4 = por %p7651_p1, %p42_p0  ;;  %p163_p7 = scmp.lt.s32.totalorder %s4179_s21, 3 }
   0xa   : > { %p4256_p6 = por %p156_p3, %p42_p0  ;;  %s4181_s27 = smov [#allocation5]  }
   0xb   : > { %s7777_s24 = scalar_select %p4251_p4, 1, 0 }
   0xc   : > { %s7778_s25 = scalar_select %p4256_p6, 1, 0 }
   0xd   : > { %p4261_p8 = pnand %p3534_p5, %p163_p7  ;;  %s175_s28 = sshll.u32 %s4181_s27, 4  ;;  %s4265_s28 = int_to_ptr.vmem [resolvable:$true] %s175_s28 }
   0xe   : > { %s4277_s30 = sadd.s32 1, %s4179_s21   ;;  %s29_s6 = sadd.s32 1, %s4175_s20 }
   0xf   : > { %s7779_s26 = scalar_select %p4261_p8, 1, 0 }
  0x10   : > { %p3627_p9 = pneg %p4261_p8  ;;  %s26_s7 = ssub.s32 %s4179_s21, %s4277_s30 }
  0x11   : > { %s4051_s10 = scalar_lea.hbm %s7646_s1, 4096 }
  0x12   : > { %p4272_p11 = pnand %p3627_p9, %p7651_p1  ;;  %p4052_p12 = scmp.ne.s32.totalorder %s7646_s1, %s4051_s10 }
  0x13   : > { %p4058_p5 = scmp.lt.u32.totalorder %s4051_s10, %s7646_s1 }
  0x14   : > { %p4053_p13 = pneg %p4272_p11 }
  0x16   : > { %p4054_p0 = pnand %p4053_p13, %p4052_p12 }
  0x18   : > { %p4055_p3 = pneg %p4054_p0 }
  0x1a   : > { %p4060_p7 = pnand %p4058_p5, %p4055_p3 }
  0x1c   : > { %4063 = shalt.err (!%p4060_p7)
}
  0x1d   : > { %s4064_s15 = scalar_lea.vmem %s4265_s28, 4096  ;;  %p4072_p2 = scmp.lt.s32.totalorder %s4265_s28, %s4265_s28 }
  0x1e   : > { %p4065_p9 = scmp.ne.s32.totalorder %s4265_s28, %s4064_s15  ;;  %p4073_p6 = scmp.lt.s32.totalorder %s4064_s15, %s4064_s15 }
  0x20   : > { %p4067_p10 = pnand %p4065_p9, %p4053_p13  ;;  %p4074_p4 = por %p4073_p6, %p4072_p2 }
  0x22   : > { %p4068_p1 = pneg %p4067_p10 }
  0x24   : > { %p4075_p8 = pnand %p4074_p4, %p4068_p1 }
  0x26   : > { %4078 = shalt.err (!%p4075_p8)
}
  0x27   : > { %s4182_s16 = smov 128   ;;  %s4183_s17 = smov 8  }
  0x28   : > { %3630 = dma.hbm_to_vmem [thread:$0]  (!%p4272_p11), %s7646_s1, 4096, %s4265_s28, [#allocation6], %s4182_s16, %s4182_s16, %s4183_s17  }
  0x29   : > { %p27_p2 = scmp.eq.s32.totalorder %s26_s7, 0  ;;  %p36_p1 = scmp.ne.s32.totalorder %s4175_s20, %s4171_s19 }
  0x2a   : > { %p37_p4 = scmp.eq.s32.totalorder %s4179_s21, 0  ;;  %p3640_p6 = scmp.lt.s32.totalorder %s4179_s21, 2 }
  0x2b   : > { %s4308_s8 = scalar_select %p27_p2, %s4175_s20, %s29_s6  }
  0x2c   : > { %p38_p8 = por %p37_p4, %p36_p1  ;;  %p7781_p10 = scmp.eq.s32.totalorder %s4242_s22, 1 }
  0x2d   : > { %s198_s10 = sand.u32 1, %s4175_s20   ;;  %s3584_s11 = sshll.u32 %s4179_s21, 13 }
  0x2e   : > { %p4312_p12 = por %p7781_p10, %p36_p1  ;;  %s3537_s12 = sshll.u32 %s198_s10, 9 }
  0x2f   : > { %s4321_s14 = scalar_lea.hbm %s7645_s0, %s3584_s11  ;;  %s202_s28 = scalar_lea.vmem [#allocation2], %s3537_s12 }
  0x30   : > { %s210_s6 = sshll.u32 %s202_s28, 4  ;;  %p4323_p11 = pnand %p3640_p6, %p38_p8  ;;  %s4327_s6 = int_to_ptr.vmem [resolvable:$true] %s210_s6 }
  0x31   : > { %s4329_s15 = scalar_lea.sflag [#allocation3], %s198_s10  ;;  %s4079_s16 = scalar_lea.hbm %s4321_s14, 8192 }
  0x32   : > { %p4080_p13 = scmp.ne.s32.totalorder %s4321_s14, %s4079_s16  ;;  %p4081_p0 = pneg %p4323_p11 }
  0x33   : > { %s4084_s27 = scalar_lea.hbm %s7645_s0, 16384  ;;  %p4085_p7 = scmp.lt.u32.totalorder %s4321_s14, %s7645_s0 }
  0x34   : > { %p4082_p3 = pnand %p4081_p0, %p4080_p13  ;;  %p4086_p9 = scmp.lt.u32.totalorder %s4084_s27, %s4079_s16 }
  0x35   : > { %p4088_p1 = scmp.lt.u32.totalorder %s4079_s16, %s4321_s14 }
  0x36   : > { %p4083_p5 = pneg %p4082_p3  ;;  %p4087_p2 = por %p4086_p9, %p4085_p7 }
  0x38   : > { %p4089_p4 = por %p4088_p1, %p4087_p2 }
  0x3a   : > { %p4090_p6 = pnand %p4089_p4, %p4083_p5 }
  0x3c   : > { %4093 = shalt.err (!%p4090_p6)
}
  0x3d   : > { %s4094_s10 = scalar_lea.vmem %s4327_s6, 8192  ;;  %s4184_s29 = smov [#allocation2]  }
  0x3e   : > { %p4095_p8 = scmp.ne.s32.totalorder %s4327_s6, %s4094_s10  ;;  %s4099_s13 = sshll.u32 %s4184_s29, 4  ;;  %s4100_s13 = int_to_ptr.vmem [resolvable:$false] %s4099_s13 }
  0x3f   : > { %s4101_s28 = scalar_lea.vmem %s4100_s13, 16384  ;;  %p4102_p3 = scmp.lt.s32.totalorder %s4327_s6, %s4100_s13 }
  0x40   : > { %p4097_p10 = pnand %p4095_p8, %p4081_p0  ;;  %p4103_p7 = scmp.lt.s32.totalorder %s4101_s28, %s4094_s10 }
  0x42   : > { %p4098_p13 = pneg %p4097_p10  ;;  %p4104_p9 = por %p4103_p7, %p4102_p3 }
  0x44   : > { %p4105_p2 = pnand %p4104_p9, %p4098_p13 }
  0x46   : > { %4108 = shalt.err (!%p4105_p2)
}
  0x47   : > { %s4185_s16 = smov 256   ;;  %s4186_s17 = smov 16  }
  0x48   : > { %3634 = dma.hbm_to_vmem [thread:$0]  (!%p4323_p11), %s4321_s14, 8192, %s4327_s6, %s4329_s15, %s4185_s16, %s4185_s16, %s4186_s17  }
  0x49   : > { %p7784_p0 = scmp.ne.s32.totalorder %s7779_s26, 0 }
  0x4b   : > { %222 = sbr.rel (%p7784_p0) target bundleno = 1085 (0x43d), region = 40 }
  0x52   : > { %s4360_s23 = sand.u32 1, %s4171_s19   ;;  %p7785_p5 = scmp.ne.s32.totalorder %s7777_s24, 0 }
  0x53   : > { %s3542_s27 = sshll.u32 %s4360_s23, 9  ;;  %s225_s11 = scalar_lea.sflag [#allocation3], %s4360_s23 }
  0x54   : > { %s4366_s12 = scalar_lea.vmem [#allocation2], %s3542_s27 }
  0x55   : > { %4154 = dma.done.wait (%p7785_p5), %s225_s11, 8192  }
  0x56   : > { %4156 = vsyncadd (%p7785_p5), %s225_s11, 4294959104  ;;  %p7786_p11 = scmp.eq.s32.totalorder %s4242_s22, 0 }
  0x58   : > { %4158 = dma.done.wait (%p7786_p11), [#allocation6], 4096   ;;  %p7787_p1 = pmov %p7786_p11 }
  0x59   : > { %v3683_v0 = vld [vmem:[#allocation5 + $0x4] ss:$8 sps:$4 sm:$0xff]   ;;  %v3685_v1 = vld [vmem:[#allocation5] ss:$8 sps:$4 sm:$0xff]   ;;  %v3686_v2 = vld [vmem:[#allocation5 + $0x14] ss:$8 sps:$4 sm:$0xff]  }
  0x5a   : > { %4160 = vsyncadd (%p7787_p1), [#allocation6], 4294963200  ;;  %561 = vmatprep.subr.bf16.mxu0 %v3683_v0  ;;  %3587 = vmatprep.subr.bf16.mxu1 %v3683_v0  ;;  %v3688_v3 = vld [vmem:[#allocation5 + $0x10] ss:$8 sps:$4 sm:$0xff]   ;;  %v3689_v4 = vld [vmem:[#allocation5 + $0x24] ss:$8 sps:$4 sm:$0xff]  }
  0x5b   : > { %562 = vmatpush1.bf16.msra.mxu0 %v3685_v1  ;;  %3603 = vmatpush1.bf16.msra.mxu1 %v3685_v1  ;;  %v3691_v5 = vld [vmem:[#allocation5 + $0x20] ss:$8 sps:$4 sm:$0xff]   ;;  %v3692_v6 = vld [vmem:[#allocation5 + $0x34] ss:$8 sps:$4 sm:$0xff]   ;;  %v3694_v7 = vld [vmem:[#allocation5 + $0x30] ss:$8 sps:$4 sm:$0xff]  }
  0x5c   : > { %563 = vmatprep.subr.bf16.mxu0 %v3686_v2  ;;  %3588 = vmatprep.subr.bf16.mxu1 %v3686_v2  ;;  %v3695_v8 = vld [vmem:[#allocation5 + $0x44] ss:$8 sps:$4 sm:$0xff]   ;;  %v3697_v9 = vld [vmem:[#allocation5 + $0x40] ss:$8 sps:$4 sm:$0xff]   ;;  %v3698_v10 = vld [vmem:[#allocation5 + $0x54] ss:$8 sps:$4 sm:$0xff]  }
  0x5d   : > { %v3700_v11 = vld [vmem:[#allocation5 + $0x50] ss:$8 sps:$4 sm:$0xff]   ;;  %v3701_v12 = vld [vmem:[#allocation5 + $0x64] ss:$8 sps:$4 sm:$0xff]   ;;  %v3703_v18 = vld [vmem:[#allocation5 + $0x60] ss:$8 sps:$4 sm:$0xff]  }
  0x5e   : > { %v262_v13 = vld [vmem:[%s4366_s12 + $0x8] sm:$0xff]  ;;  %v264_v14 = vld [vmem:[%s4366_s12 + $0x18] sm:$0xff]  ;;  %v261_v38 = vld [vmem:[%s4366_s12] sm:$0xff]  ;;  %s7194_s10 = scalar_lea.vmem [#allocation7], %s3542_s27  ;;  %s3586_s29 = sshll.u32 %s4242_s22, 13 }
  0x5f   : > { %564 = vmatpush1.bf16.msra.mxu0 %v3688_v3  ;;  %3604 = vmatpush1.bf16.msra.mxu1 %v3688_v3  ;;  %v326_v15 = vpack.c.bf16 %v264_v14, %v262_v13  ;;  %v294_v16 = vld [vmem:[%s4366_s12 + $0x108] sm:$0xff]  ;;  %v296_v17 = vld [vmem:[%s4366_s12 + $0x118] sm:$0xff]  ;;  %v263_v39 = vld [vmem:[%s4366_s12 + $0x10] sm:$0xff]  ;;  %s3450_s13 = sshll.u32 %s7194_s10, 4  ;;  %s7593_s16 = scalar_lea.hbm %s7650_s5, %s3586_s29  ;;  %s7595_s13 = int_to_ptr.vmem [resolvable:$true] %s3450_s13 }
  0x60   : > { %565 = vmatprep.subr.bf16.mxu0 %v3689_v4  ;;  %3589 = vmatprep.subr.bf16.mxu1 %v3689_v4  ;;  %v342_v19 = vpack.c.bf16 %v296_v17, %v294_v16  ;;  %v3704_v20 = vld [vmem:[#allocation5 + $0x74] ss:$8 sps:$4 sm:$0xff]   ;;  %v3706_v21 = vld [vmem:[#allocation5 + $0x70] ss:$8 sps:$4 sm:$0xff]   ;;  %v3707_v22 = vld [vmem:[#allocation5 + $0x84] ss:$8 sps:$4 sm:$0xff]   ;;  %v325_v46 = vpack.c.bf16 %v263_v39, %v261_v38 }
  0x61   : > { %593 = vmatprep.mubr.bf16.mxu0 %v326_v15  ;;  %v3709_v23 = vld [vmem:[#allocation5 + $0x80] ss:$8 sps:$4 sm:$0xff]   ;;  %v3710_v24 = vld [vmem:[#allocation5 + $0x94] ss:$8 sps:$4 sm:$0xff]   ;;  %v3712_v25 = vld [vmem:[#allocation5 + $0x90] ss:$8 sps:$4 sm:$0xff]  }
  0x62   : > { %673 = vmatprep.mubr.bf16.mxu1 %v342_v19  ;;  %v3713_v26 = vld [vmem:[#allocation5 + $0xa4] ss:$8 sps:$4 sm:$0xff]   ;;  %v3715_v27 = vld [vmem:[#allocation5 + $0xa0] ss:$8 sps:$4 sm:$0xff]   ;;  %v3716_v28 = vld [vmem:[#allocation5 + $0xb4] ss:$8 sps:$4 sm:$0xff]  }
  0x63   : > { %566 = vmatpush1.bf16.msra.mxu0 %v3691_v5  ;;  %3605 = vmatpush1.bf16.msra.mxu1 %v3691_v5  ;;  %v3718_v29 = vld [vmem:[#allocation5 + $0xb0] ss:$8 sps:$4 sm:$0xff]   ;;  %v3719_v30 = vld [vmem:[#allocation5 + $0xc4] ss:$8 sps:$4 sm:$0xff]   ;;  %v3721_v31 = vld [vmem:[#allocation5 + $0xc0] ss:$8 sps:$4 sm:$0xff]  }
  0x64   : > { %567 = vmatprep.subr.bf16.mxu0 %v3692_v6  ;;  %3590 = vmatprep.subr.bf16.mxu1 %v3692_v6  ;;  %v3722_v32 = vld [vmem:[#allocation5 + $0xd4] ss:$8 sps:$4 sm:$0xff]   ;;  %v3724_v33 = vld [vmem:[#allocation5 + $0xd0] ss:$8 sps:$4 sm:$0xff]   ;;  %v3725_v34 = vld [vmem:[#allocation5 + $0xe4] ss:$8 sps:$4 sm:$0xff]  }
  0x65   : > { %v3727_v35 = vld [vmem:[#allocation5 + $0xe0] ss:$8 sps:$4 sm:$0xff]   ;;  %v3728_v36 = vld [vmem:[#allocation5 + $0xf4] ss:$8 sps:$4 sm:$0xff]   ;;  %v3730_v37 = vld [vmem:[#allocation5 + $0xf0] ss:$8 sps:$4 sm:$0xff]  }
  0x66   : > { %v293_v40 = vld [vmem:[%s4366_s12 + $0x100] sm:$0xff]  ;;  %v295_v41 = vld [vmem:[%s4366_s12 + $0x110] sm:$0xff]  ;;  %v266_v42 = vld [vmem:[%s4366_s12 + $0x28] sm:$0xff]  ;;  %s3436_s17 = scalar_lea.sflag [#allocation4], %s4360_s23  ;;  %s4109_s27 = scalar_lea.vmem %s7595_s13, 8192 }
  0x67   : > { %568 = vmatpush1.bf16.msra.mxu0 %v3694_v7  ;;  %3606 = vmatpush1.bf16.msra.mxu1 %v3694_v7  ;;  %v268_v43 = vld [vmem:[%s4366_s12 + $0x38] sm:$0xff]  ;;  %v298_v44 = vld [vmem:[%s4366_s12 + $0x128] sm:$0xff]  ;;  %v341_v47 = vpack.c.bf16 %v295_v41, %v293_v40  ;;  %v265_v50 = vld [vmem:[%s4366_s12 + $0x20] sm:$0xff]  ;;  %p4110_p4 = scmp.ne.s32.totalorder %s7595_s13, %s4109_s27  ;;  %s4188_s11 = smov [#allocation7]  }
  0x68   : > { %569 = vmatprep.subr.bf16.mxu0 %v3695_v8  ;;  %3591 = vmatprep.subr.bf16.mxu1 %v3695_v8  ;;  %v300_v45 = vld [vmem:[%s4366_s12 + $0x138] sm:$0xff]  ;;  %v328_v48 = vpack.c.bf16 %v268_v43, %v266_v42  ;;  %v267_v51 = vld [vmem:[%s4366_s12 + $0x30] sm:$0xff]  ;;  %v297_v52 = vld [vmem:[%s4366_s12 + $0x120] sm:$0xff] }
  0x69   : > { %v344_v49 = vpack.c.bf16 %v300_v45, %v298_v44  ;;  %v299_v53 = vld [vmem:[%s4366_s12 + $0x130] sm:$0xff]  ;;  %v270_v54 = vld [vmem:[%s4366_s12 + $0x48] sm:$0xff]  ;;  %v272_v55 = vld [vmem:[%s4366_s12 + $0x58] sm:$0xff]  ;;  %v327_v58 = vpack.c.bf16 %v267_v51, %v265_v50  ;;  %p4111_p6 = pnand %p4110_p4, %p4312_p12 }
  0x6a   : > { %v302_v56 = vld [vmem:[%s4366_s12 + $0x148] sm:$0xff]  ;;  %v304_v57 = vld [vmem:[%s4366_s12 + $0x158] sm:$0xff]  ;;  %v343_v59 = vpack.c.bf16 %v299_v53, %v297_v52  ;;  %v330_v60 = vpack.c.bf16 %v272_v55, %v270_v54  ;;  %v269_v62 = vld [vmem:[%s4366_s12 + $0x40] sm:$0xff] }
  0x6b   : > { %570 = vmatpush1.bf16.msra.mxu0 %v3697_v9  ;;  %3607 = vmatpush1.bf16.msra.mxu1 %v3697_v9  ;;  %v346_v61 = vpack.c.bf16 %v304_v57, %v302_v56  ;;  %v271_v63 = vld [vmem:[%s4366_s12 + $0x50] sm:$0xff]  ;;  %v301_v0 = vld [vmem:[%s4366_s12 + $0x140] sm:$0xff]  ;;  %v274_v2 = vld [vmem:[%s4366_s12 + $0x68] sm:$0xff]  ;;  %p4112_p8 = pneg %p4111_p6 }
  0x6c   : > { %571 = vmatprep.subr.bf16.mxu0 %v3698_v10  ;;  %3592 = vmatprep.subr.bf16.mxu1 %v3698_v10  ;;  %v303_v1 = vld [vmem:[%s4366_s12 + $0x150] sm:$0xff]  ;;  %v276_v3 = vld [vmem:[%s4366_s12 + $0x78] sm:$0xff]  ;;  %v306_v4 = vld [vmem:[%s4366_s12 + $0x168] sm:$0xff]  ;;  %v329_v6 = vpack.c.bf16 %v271_v63, %v269_v62 }
  0x6d   : > { %v308_v5 = vld [vmem:[%s4366_s12 + $0x178] sm:$0xff]  ;;  %v345_v7 = vpack.c.bf16 %v303_v1, %v301_v0  ;;  %v332_v8 = vpack.c.bf16 %v276_v3, %v274_v2  ;;  %v273_v10 = vld [vmem:[%s4366_s12 + $0x60] sm:$0xff]  ;;  %v307_v13 = vld [vmem:[%s4366_s12 + $0x170] sm:$0xff] }
  0x6e   : > { %v348_v9 = vpack.c.bf16 %v308_v5, %v306_v4  ;;  %v278_v14 = vld [vmem:[%s4366_s12 + $0x88] sm:$0xff]  ;;  %v280_v15 = vld [vmem:[%s4366_s12 + $0x98] sm:$0xff] }
  0x6f   : > { %572 = vmatpush1.bf16.msra.mxu0 %v3700_v11  ;;  %3608 = vmatpush1.bf16.msra.mxu1 %v3700_v11  ;;  %v275_v11 = vld [vmem:[%s4366_s12 + $0x70] sm:$0xff]  ;;  %v310_v16 = vld [vmem:[%s4366_s12 + $0x188] sm:$0xff]  ;;  %v312_v17 = vld [vmem:[%s4366_s12 + $0x198] sm:$0xff] }
  0x70   : > { %573 = vmatprep.subr.bf16.mxu0 %v3701_v12  ;;  %3593 = vmatprep.subr.bf16.mxu1 %v3701_v12  ;;  %v305_v12 = vld [vmem:[%s4366_s12 + $0x160] sm:$0xff]  ;;  %v286_v38 = vld [vmem:[%s4366_s12 + $0xc8] sm:$0xff]  ;;  %v288_v39 = vld [vmem:[%s4366_s12 + $0xd8] sm:$0xff] }
  0x71   : > { %v347_v19 = vpack.c.bf16 %v307_v13, %v305_v12  ;;  %v318_v40 = vld [vmem:[%s4366_s12 + $0x1c8] sm:$0xff]  ;;  %v320_v41 = vld [vmem:[%s4366_s12 + $0x1d8] sm:$0xff]  ;;  %v338_v44 = vpack.c.bf16 %v288_v39, %v286_v38 }
  0x72   : > { %v354_v45 = vpack.c.bf16 %v320_v41, %v318_v40  ;;  %v290_v50 = vld [vmem:[%s4366_s12 + $0xe8] sm:$0xff]  ;;  %v292_v51 = vld [vmem:[%s4366_s12 + $0xf8] sm:$0xff] }
  0x73   : > { %574 = vmatpush1.bf16.msra.mxu0 %v3703_v18  ;;  %3609 = vmatpush1.bf16.msra.mxu1 %v3703_v18  ;;  %v331_v18 = vpack.c.bf16 %v275_v11, %v273_v10  ;;  %v322_v52 = vld [vmem:[%s4366_s12 + $0x1e8] sm:$0xff]  ;;  %v324_v53 = vld [vmem:[%s4366_s12 + $0x1f8] sm:$0xff]  ;;  %v340_v56 = vpack.c.bf16 %v292_v51, %v290_v50 }
  0x74   : > { %575 = vmatprep.subr.bf16.mxu0 %v3704_v20  ;;  %3594 = vmatprep.subr.bf16.mxu1 %v3704_v20  ;;  %v334_v20 = vpack.c.bf16 %v280_v15, %v278_v14  ;;  %v356_v57 = vpack.c.bf16 %v324_v53, %v322_v52 }
  0x77   : > { %576 = vmatpush1.bf16.msra.mxu0 %v3706_v21  ;;  %3610 = vmatpush1.bf16.msra.mxu1 %v3706_v21  ;;  %v350_v21 = vpack.c.bf16 %v312_v17, %v310_v16 }
  0x78   : > { %577 = vmatprep.subr.bf16.mxu0 %v3707_v22  ;;  %3595 = vmatprep.subr.bf16.mxu1 %v3707_v22  ;;  %v277_v22 = vld [vmem:[%s4366_s12 + $0x80] sm:$0xff] }
  0x7b   : > { %578 = vmatpush1.bf16.msra.mxu0 %v3709_v23  ;;  %3611 = vmatpush1.bf16.msra.mxu1 %v3709_v23  ;;  %v279_v23 = vld [vmem:[%s4366_s12 + $0x90] sm:$0xff] }
  0x7c   : > { %579 = vmatprep.subr.bf16.mxu0 %v3710_v24  ;;  %3596 = vmatprep.subr.bf16.mxu1 %v3710_v24  ;;  %v309_v24 = vld [vmem:[%s4366_s12 + $0x180] sm:$0xff] }
  0x7f   : > { %580 = vmatpush1.bf16.msra.mxu0 %v3712_v25  ;;  %3612 = vmatpush1.bf16.msra.mxu1 %v3712_v25  ;;  %v311_v25 = vld [vmem:[%s4366_s12 + $0x190] sm:$0xff] }
  0x80   : > { %581 = vmatprep.subr.bf16.mxu0 %v3713_v26  ;;  %3597 = vmatprep.subr.bf16.mxu1 %v3713_v26  ;;  %v282_v26 = vld [vmem:[%s4366_s12 + $0xa8] sm:$0xff] }
  0x83   : > { %582 = vmatpush1.bf16.msra.mxu0 %v3715_v27  ;;  %3613 = vmatpush1.bf16.msra.mxu1 %v3715_v27  ;;  %v284_v27 = vld [vmem:[%s4366_s12 + $0xb8] sm:$0xff] }
  0x84   : > { %583 = vmatprep.subr.bf16.mxu0 %v3716_v28  ;;  %3598 = vmatprep.subr.bf16.mxu1 %v3716_v28  ;;  %v314_v28 = vld [vmem:[%s4366_s12 + $0x1a8] sm:$0xff] }
  0x87   : > { %584 = vmatpush1.bf16.msra.mxu0 %v3718_v29  ;;  %3614 = vmatpush1.bf16.msra.mxu1 %v3718_v29  ;;  %v316_v29 = vld [vmem:[%s4366_s12 + $0x1b8] sm:$0xff] }
  0x88   : > { %585 = vmatprep.subr.bf16.mxu0 %v3719_v30  ;;  %3599 = vmatprep.subr.bf16.mxu1 %v3719_v30  ;;  %v333_v30 = vpack.c.bf16 %v279_v23, %v277_v22  ;;  %v391_v22 = vlaneseq }
  0x8b   : > { %586 = vmatpush1.bf16.msra.mxu0 %v3721_v31  ;;  %3615 = vmatpush1.bf16.msra.mxu1 %v3721_v31  ;;  %v349_v31 = vpack.c.bf16 %v311_v25, %v309_v24  ;;  %v392_v25 = vshrl.u32 %v391_v22, 7 }
  0x8c   : > { %587 = vmatprep.subr.bf16.mxu0 %v3722_v32  ;;  %3600 = vmatprep.subr.bf16.mxu1 %v3722_v32  ;;  %v336_v32 = vpack.c.bf16 %v284_v27, %v282_v26 }
  0x8f   : > { %588 = vmatpush1.bf16.msra.mxu0 %v3724_v33  ;;  %3616 = vmatpush1.bf16.msra.mxu1 %v3724_v33  ;;  %v352_v33 = vpack.c.bf16 %v316_v29, %v314_v28  ;;  %v4476_v28 = vsub.s32 0, %v392_v25  ;;  %v389_v29 = vld [vmem:[%s7647_s2] sm:$0x3] }
  0x90   : > { %589 = vmatprep.subr.bf16.mxu0 %v3725_v34  ;;  %3601 = vmatprep.subr.bf16.mxu1 %v3725_v34  ;;  %v281_v34 = vld [vmem:[%s4366_s12 + $0xa0] sm:$0xff] }
  0x91   : > { %7797 = vst [vmem:[#allocation20_spill] sm:$0xff] %v4476_v28 }
  0x93   : > { %590 = vmatpush1.bf16.msra.mxu0 %v3727_v35  ;;  %3617 = vmatpush1.bf16.msra.mxu1 %v3727_v35  ;;  %v283_v35 = vld [vmem:[%s4366_s12 + $0xb0] sm:$0xff] }
  0x94   : > { %591 = vmatprep.subr.bf16.mxu0 %v3728_v36  ;;  %3602 = vmatprep.subr.bf16.mxu1 %v3728_v36  ;;  %v313_v36 = vld [vmem:[%s4366_s12 + $0x1a0] sm:$0xff]  ;;  %v335_v42 = vpack.c.bf16 %v283_v35, %v281_v34 }
  0x97   : > { %592 = vmatpush1.bf16.msra.mxu0 %v3730_v37  ;;  %3618 = vmatpush1.bf16.msra.mxu1 %v3730_v37  ;;  %v315_v37 = vld [vmem:[%s4366_s12 + $0x1b0] sm:$0xff] }
  0x98   : > { %v351_v43 = vpack.c.bf16 %v315_v37, %v313_v36 }
  0x9a   : > { %594 = vmatmul.mubr.bf16.vlgmr.msra.gmra.mrb[0].mxu0 %v325_v46  ;;  %674 = vmatmul.mubr.bf16.vlgmr.msra.gmra.mrb[0].mxu1 %v341_v47  ;;  %v285_v46 = vld [vmem:[%s4366_s12 + $0xc0] sm:$0xff]  ;;  %v287_v47 = vld [vmem:[%s4366_s12 + $0xd0] sm:$0xff] }
  0x9b   : > { %603 = vmatprep.mubr.bf16.mxu0 %v328_v48  ;;  %683 = vmatprep.mubr.bf16.mxu1 %v344_v49  ;;  %v317_v48 = vld [vmem:[%s4366_s12 + $0x1c0] sm:$0xff]  ;;  %v319_v49 = vld [vmem:[%s4366_s12 + $0x1d0] sm:$0xff]  ;;  %v337_v54 = vpack.c.bf16 %v287_v47, %v285_v46 }
  0x9c   : > { %v353_v55 = vpack.c.bf16 %v319_v49, %v317_v48 }
  0xa2   : > { %604 = vmatmul.mubr.bf16.gmra.mrb[4].mxu0 %v327_v58  ;;  %684 = vmatmul.mubr.bf16.gmra.mrb[4].mxu1 %v343_v59  ;;  %v289_v58 = vld [vmem:[%s4366_s12 + $0xe0] sm:$0xff]  ;;  %v291_v59 = vld [vmem:[%s4366_s12 + $0xf0] sm:$0xff] }
  0xa3   : > { %613 = vmatprep.mubr.bf16.mxu0 %v330_v60  ;;  %693 = vmatprep.mubr.bf16.mxu1 %v346_v61  ;;  %v321_v60 = vld [vmem:[%s4366_s12 + $0x1e0] sm:$0xff]  ;;  %v323_v61 = vld [vmem:[%s4366_s12 + $0x1f0] sm:$0xff]  ;;  %v339_v62 = vpack.c.bf16 %v291_v59, %v289_v58  ;;  %s4113_s12 = sshll.u32 %s4188_s11, 4  ;;  %s4114_s12 = int_to_ptr.vmem [resolvable:$false] %s4113_s12 }
  0xa4   : > { %v355_v63 = vpack.c.bf16 %v323_v61, %v321_v60  ;;  %s4115_s24 = scalar_lea.vmem %s4114_s12, 16384  ;;  %p4116_p10 = scmp.lt.s32.totalorder %s7595_s13, %s4114_s12 }
  0xa5   : > { %p4117_p13 = scmp.lt.s32.totalorder %s4115_s24, %s4109_s27 }
  0xa7   : > { %p4118_p3 = por %p4117_p13, %p4116_p10 }
  0xa9   : > { %p4119_p7 = pnand %p4118_p3, %p4112_p8 }
  0xaa   : > { %614 = vmatmul.mubr.bf16.gmra.mrb[8].mxu0 %v329_v6  ;;  %694 = vmatmul.mubr.bf16.gmra.mrb[8].mxu1 %v345_v7 }
  0xab   : > { %623 = vmatprep.mubr.bf16.mxu0 %v332_v8  ;;  %703 = vmatprep.mubr.bf16.mxu1 %v348_v9 }
  0xb2   : > { %624 = vmatmul.mubr.bf16.gmra.mrb[12].mxu0 %v331_v18  ;;  %704 = vmatmul.mubr.bf16.gmra.mrb[12].mxu1 %v347_v19 }
  0xb3   : > { %633 = vmatprep.mubr.bf16.mxu0 %v334_v20  ;;  %713 = vmatprep.mubr.bf16.mxu1 %v350_v21 }
  0xba   : > { %634 = vmatmul.mubr.bf16.gmra.mrb[16].mxu0 %v333_v30  ;;  %714 = vmatmul.mubr.bf16.gmra.mrb[16].mxu1 %v349_v31  ;;  %v4482_v30 = vrot.slane %v389_v29, %v4476_v28  ;;  %v4484_v31 = vsub.s32 1, %v392_v25 }
  0xbb   : > { %643 = vmatprep.mubr.bf16.mxu0 %v336_v32  ;;  %723 = vmatprep.mubr.bf16.mxu1 %v352_v33 }
  0xbc   : > { %7798 = vst [vmem:[#allocation21_spill] sm:$0xff] %v4484_v31  ;;  %v4492_v34 = vrot.slane %v389_v29, %v4484_v31 }
  0xbe   : > { %7800 = vst [vmem:[#allocation23_spill] sm:$0xff] %v4492_v34 }
  0xc2   : > { %644 = vmatmul.mubr.bf16.gmra.mrb[20].mxu0 %v335_v42  ;;  %724 = vmatmul.mubr.bf16.gmra.mrb[20].mxu1 %v351_v43 }
  0xc3   : > { %653 = vmatprep.mubr.bf16.mxu0 %v338_v44  ;;  %733 = vmatprep.mubr.bf16.mxu1 %v354_v45 }
  0xca   : > { %654 = vmatmul.mubr.bf16.gmra.mrb[24].mxu0 %v337_v54  ;;  %734 = vmatmul.mubr.bf16.gmra.mrb[24].mxu1 %v353_v55 }
  0xcb   : > { %663 = vmatprep.mubr.bf16.mxu0 %v340_v56  ;;  %743 = vmatprep.mubr.bf16.mxu1 %v356_v57 }
  0xd2   : > { %664 = vmatmul.mubr.bf16.gmra.mrb[28].mxu0 %v339_v62  ;;  %744 = vmatmul.mubr.bf16.gmra.mrb[28].mxu1 %v355_v63 }
 0x16d   : > { %v595_v0 = vpop.f32.mrb[0].mxu0  ;;  %v675_v1 = vpop.f32.mrb[0].mxu1 }
 0x16e   : > { %v597_v2 = vpop.f32.mrb[1].mxu0  ;;  %v677_v3 = vpop.f32.mrb[1].mxu1  ;;  %v4489_v33 = vadd.f32 %v675_v1, %v4482_v30  ;;  %v4495_v35 = vadd.f32 %v595_v0, %v4482_v30 }
 0x16f   : > { %v599_v4 = vpop.f32.mrb[2].mxu0  ;;  %v679_v5 = vpop.f32.mrb[2].mxu1  ;;  %v4501_v37 = vadd.f32 %v677_v3, %v4492_v34  ;;  %v4510_v40 = vadd.f32 %v597_v2, %v4492_v34 }
 0x170   : > { %v601_v6 = vpop.f32.mrb[3].mxu0  ;;  %v681_v7 = vpop.f32.mrb[3].mxu1  ;;  %v4498_v36 = vmul.f32 0.70710677, %v4489_v33  ;;  %v4504_v38 = vadd.f32 %v599_v4, %v4482_v30  ;;  %v4507_v39 = vmul.f32 0.70710677, %v4495_v35  ;;  %v4538_v51 = vadd.f32 %v679_v5, %v4482_v30 }
 0x171   : > { %v4516_v42 = vmul.f32 0.70710677, %v4501_v37  ;;  %v4522_v44 = vadd.f32 %v601_v6, %v4492_v34  ;;  %v4526_v46 = vmul.f32 0.70710677, %v4510_v40  ;;  %v4555_v61 = vadd.f32 %v681_v7, %v4492_v34 }
 0x172   : > { %v4513_v41 = vand.u32 2147483647, %v4498_v36  ;;  %v4519_v43 = vmul.f32 0.70710677, %v4504_v38  ;;  %v1010_v45 = vand.u32 2147483647, %v4507_v39 }
 0x173   : > { %v4530_v48 = vand.u32 2147483647, %v4516_v42  ;;  %v4541_v52 = vmul.f32 0.70710677, %v4522_v44  ;;  %v4544_v55 = vand.u32 2147483647, %v4526_v46 }
 0x174   : > { %v1106_v47 = vmul.f32 0.3275911, %v4513_v41  ;;  %v4535_v50 = vand.u32 2147483647, %v4519_v43  ;;  %v1074_v53 = vmul.f32 0.3275911, %v1010_v45 }
 0x175   : > { %v4440_v8 = vpop.f32.mrb[4].mxu0  ;;  %v4442_v9 = vpop.f32.mrb[4].mxu1  ;;  %v1107_v56 = vmul.f32 0.3275911, %v4530_v48  ;;  %v4549_v58 = vmul.f32 0.70710677, %v4538_v51 }
 0x176   : > { %v4444_v10 = vpop.f32.mrb[5].mxu0  ;;  %v4446_v11 = vpop.f32.mrb[5].mxu1  ;;  %v1170_v54 = vadd.f32 1.0, %v1106_v47  ;;  %v1076_v57 = vmul.f32 0.3275911, %v4535_v50  ;;  %v1138_v60 = vadd.f32 1.0, %v1074_v53  ;;  %v4570_v22 = vadd.f32 %v4440_v8, %v4482_v30 }
 0x177   : > { %v4448_v12 = vpop.f32.mrb[6].mxu0  ;;  %v4450_v13 = vpop.f32.mrb[6].mxu1  ;;  %v4552_v59 = vand.u32 2147483647, %v4541_v52  ;;  %v1075_v62 = vmul.f32 0.3275911, %v4544_v55 }
 0x178   : > { %v4452_v14 = vpop.f32.mrb[7].mxu0  ;;  %v4454_v15 = vpop.f32.mrb[7].mxu1  ;;  %3731 = vrcp.f32 %v1170_v54  ;;  %v1171_v63 = vadd.f32 1.0, %v1107_v56  ;;  %v1140_v0 = vadd.f32 1.0, %v1076_v57  ;;  %v4559_v1 = vand.u32 2147483647, %v4549_v58 }
 0x179   : > { %v1077_v2 = vmul.f32 0.3275911, %v4552_v59  ;;  %3733 = vrcp.f32 %v1138_v60  ;;  %v4563_v3 = vmul.f32 0.70710677, %v4555_v61  ;;  %v1139_v5 = vadd.f32 1.0, %v1075_v62 }
 0x17a   : > { %3735 = vrcp.f32 %v1171_v63  ;;  %v1108_v6 = vmul.f32 0.3275911, %v4559_v1  ;;  %v4578_v56 = vmul.f32 0.70710677, %v4570_v22  ;;  %vm882_vm0 = vcmp.lt.f32.partialorder %v4507_v39, 0.0 }
 0x17b   : > { %3737 = vrcp.f32 %v1140_v0  ;;  %v1141_v7 = vadd.f32 1.0, %v1077_v2  ;;  %v4573_v25 = vand.u32 2147483647, %v4563_v3  ;;  %vm914_vm1 = vcmp.lt.f32.partialorder %v4498_v36, 0.0 }
 0x17c   : > { %3739 = vrcp.f32 %v1139_v5  ;;  %v1172_v47 = vadd.f32 1.0, %v1108_v6  ;;  %v4582_v8 = vand.u32 2147483647, %v4578_v56  ;;  %v2066_v6 = vsub.f32 0.0, %v4513_v41 }
 0x17d   : > { %v4456_v16 = vpop.f32.mrb[8].mxu0  ;;  %v4458_v17 = vpop.f32.mrb[8].mxu1  ;;  %3741 = vrcp.f32 %v1141_v7  ;;  %v1109_v57 = vmul.f32 0.3275911, %v4573_v25  ;;  %vm883_vm2 = vcmp.lt.f32.partialorder %v4526_v46, 0.0  ;;  %vm915_vm3 = vcmp.lt.f32.partialorder %v4516_v42, 0.0 }
 0x17e   : > { %7788 = vst [vmem:[#allocation11_spill] sm:$0xff] %v4458_v17  ;;  %v4460_v18 = vpop.f32.mrb[9].mxu0  ;;  %v4462_v19 = vpop.f32.mrb[9].mxu1  ;;  %3743 = vrcp.f32 %v1172_v47  ;;  %v7658_v17 = vmov 1.0   ;;  %vm884_vm4 = vcmp.lt.f32.partialorder %v4519_v43, 0.0  ;;  %vm916_vm5 = vcmp.lt.f32.partialorder %v4549_v58, 0.0 }
 0x17f   : > { %7789 = vst [vmem:[#allocation12_spill] sm:$0xff] %v4460_v18  ;;  %7790 = vst [vmem:[#allocation13_spill] sm:$0xff] %v4462_v19  ;;  %v4464_v20 = vpop.f32.mrb[10].mxu0  ;;  %v4466_v21 = vpop.f32.mrb[10].mxu1  ;;  %v4634_v36 = vsel %vm883_vm2, -1.0, %v7658_v17  ;;  %vm885_vm6 = vcmp.lt.f32.partialorder %v4541_v52, 0.0 }
 0x180   : > { %7791 = vst [vmem:[#allocation14_spill] sm:$0xff] %v4464_v20  ;;  %7792 = vst [vmem:[#allocation15_spill] sm:$0xff] %v4466_v21  ;;  %v4468_v23 = vpop.f32.mrb[11].mxu0  ;;  %v4470_v24 = vpop.f32.mrb[11].mxu1  ;;  %v1078_v20 = vmul.f32 0.3275911, %v4582_v8 }
 0x181   : > { %7793 = vst [vmem:[#allocation16_spill] sm:$0xff] %v4468_v23  ;;  %7794 = vst [vmem:[#allocation17_spill] sm:$0xff] %v4470_v24  ;;  %v4684_v43 = vsel %vm885_vm6, -1.0, %v7658_v17  ;;  %vm917_vm7 = vcmp.lt.f32.partialorder %v4563_v3, 0.0  ;;  %vm886_vm8 = vcmp.lt.f32.partialorder %v4578_v56, 0.0 }
 0x182   : > { %v3732_v53 = vpop.eup %3731 }
 0x183   : > { %v3734_v62 = vpop.eup %3733  ;;  %v1298_v2 = vmul.f32 %v3732_v53, %v1170_v54  ;;  %v4592_v54 = vmul.f32 0.5, %v4495_v35  ;;  %v4604_v35 = vmul.f32 0.5, %v4510_v40 }
 0x184   : > { %v3736_v31 = vpop.eup %3735 }
 0x185   : > { %v4472_v26 = vpop.f32.mrb[12].mxu0  ;;  %v4474_v27 = vpop.f32.mrb[12].mxu1  ;;  %7806 = vst [vmem:[#allocation29_spill] sm:$0xff] %v4592_v54  ;;  %7808 = vst [vmem:[#allocation31_spill] sm:$0xff] %v4604_v35 }
 0x186   : > { %7795 = vst [vmem:[#allocation18_spill] sm:$0xff] %v4472_v26  ;;  %7796 = vst [vmem:[#allocation19_spill] sm:$0xff] %v4474_v27  ;;  %v4486_v32 = vpop.f32.mrb[13].mxu0  ;;  %v4532_v49 = vpop.f32.mrb[13].mxu1  ;;  %v1362_v27 = vsub.f32 2.0, %v1298_v2  ;;  %v1299_v26 = vmul.f32 %v3736_v31, %v1171_v63 }
 0x187   : > { %7799 = vst [vmem:[#allocation22_spill] sm:$0xff] %v4486_v32  ;;  %7801 = vst [vmem:[#allocation24_spill] sm:$0xff] %v4532_v49  ;;  %v4565_v4 = vpop.f32.mrb[14].mxu0  ;;  %v4575_v29 = vpop.f32.mrb[14].mxu1  ;;  %v4584_v49 = vadd.f32 1.0, %v1109_v57  ;;  %v1266_v32 = vmul.f32 %v3734_v62, %v1138_v60  ;;  %v4596_v57 = vmul.f32 0.5, %v4489_v33  ;;  %v2130_v60 = vmul.f32 %v2066_v6, %v4513_v41 }
 0x188   : > { %7802 = vst [vmem:[#allocation25_spill] sm:$0xff] %v4565_v4  ;;  %7803 = vst [vmem:[#allocation26_spill] sm:$0xff] %v4575_v29  ;;  %v3738_v28 = vpop.eup %3737  ;;  %v2034_v4 = vsub.f32 0.0, %v1010_v45  ;;  %v4586_v29 = vpop.f32.mrb[15].mxu0  ;;  %v4609_v33 = vmul.f32 0.5, %v4501_v37 }
 0x189   : > { %7804 = vst [vmem:[#allocation27_spill] sm:$0xff] %v4586_v29  ;;  %v4589_v24 = vpop.f32.mrb[15].mxu1  ;;  %v3740_v23 = vpop.eup %3739  ;;  %v1268_v21 = vmul.f32 %v3738_v28, %v1140_v0  ;;  %7807 = vst [vmem:[#allocation30_spill] sm:$0xff] %v4596_v57  ;;  %v2035_v29 = vsub.f32 0.0, %v4544_v55  ;;  %3745 = vrcp.f32 %v4584_v49  ;;  %v1330_v63 = vsub.f32 2.0, %v1266_v32 }
 0x18a   : > { %7805 = vst [vmem:[#allocation28_spill] sm:$0xff] %v4589_v24  ;;  %v3742_v19 = vpop.eup %3741  ;;  %v2098_v18 = vmul.f32 %v2034_v4, %v1010_v45  ;;  %v4606_v0 = vmul.f32 %v3732_v53, %v1362_v27  ;;  %v1267_v45 = vmul.f32 %v3740_v23, %v1139_v5  ;;  %v1363_v4 = vsub.f32 2.0, %v1299_v26 }
 0x18b   : > { %v1332_v2 = vsub.f32 2.0, %v1268_v21  ;;  %v1269_v54 = vmul.f32 %v3742_v19, %v1141_v7  ;;  %v4611_v24 = vadd.f32 1.0, %v1078_v20  ;;  %v3744_v39 = vpop.eup %3743  ;;  %v4614_v57 = vsel %vm882_vm0, -1.0, %v7658_v17 }
 0x18c   : > { %v2162_v41 = vmul.f32 1.442695, %v2098_v18  ;;  %v2099_v40 = vmul.f32 %v2035_v29, %v4544_v55  ;;  %v2067_v27 = vsub.f32 0.0, %v4530_v48  ;;  %v4621_v26 = vsel %vm914_vm1, -1.0, %v7658_v17 }
 0x18d   : > { %v2226_v32 = vmul.f32 1.442695, %v2130_v60  ;;  %v4625_v20 = vmul.f32 %v3734_v62, %v1330_v63  ;;  %v1490_v21 = vmul.f32 1.0614054, %v4606_v0  ;;  %v1331_v37 = vsub.f32 2.0, %v1267_v45 }
 0x18e   : > { %v4628_v18 = vmul.f32 %v3736_v31, %v1363_v4  ;;  %v4630_v55 = vmul.f32 %v3738_v28, %v1332_v2  ;;  %v1300_v5 = vmul.f32 %v3744_v39, %v1172_v47  ;;  %v1333_v7 = vsub.f32 2.0, %v1269_v54  ;;  %v4656_v2 = vpop.f32.mrb[16].mxu0 }
 0x18f   : > { %3747 = vrcp.f32 %v4611_v24  ;;  %v2164_v46 = vmul.f32 1.442695, %v2099_v40  ;;  %v2131_v42 = vmul.f32 %v2067_v27, %v4530_v48  ;;  %v4638_v29 = vsel %vm915_vm3, -1.0, %v7658_v17  ;;  %7810 = vst [vmem:[#allocation33_spill] sm:$0xff] %v4656_v2  ;;  %v4662_v40 = vpop.f32.mrb[16].mxu1 }
 0x190   : > { %3749 = vpow2.f32 %v2162_v41  ;;  %v4641_v31 = vmul.f32 0.5, %v4504_v38  ;;  %v2036_v28 = vsub.f32 0.0, %v4535_v50  ;;  %v1458_v53 = vmul.f32 1.0614054, %v4625_v20  ;;  %7811 = vst [vmem:[#allocation34_spill] sm:$0xff] %v4662_v40 }
 0x191   : > { %3751 = vpow2.f32 %v2226_v32  ;;  %v1554_v62 = vadd.f32 -1.4531521, %v1490_v21  ;;  %v4645_v6 = vmul.f32 %v3740_v23, %v1331_v37  ;;  %v1491_v54 = vmul.f32 1.0614054, %v4628_v18 }
 0x192   : > { %v1460_v48 = vmul.f32 1.0614054, %v4630_v55  ;;  %v1364_v60 = vsub.f32 2.0, %v1300_v5  ;;  %v4650_v63 = vmul.f32 %v3742_v19, %v1333_v7  ;;  %3753 = vpow2.f32 %v2164_v46 }
 0x193   : > { %v3746_v47 = vpop.eup %3745  ;;  %v2228_v38 = vmul.f32 1.442695, %v2131_v42  ;;  %v4653_v45 = vmul.f32 0.5, %v4538_v51  ;;  %v2068_v4 = vsub.f32 0.0, %v4559_v1  ;;  %v2100_v23 = vmul.f32 %v2036_v28, %v4535_v50 }
 0x194   : > { %v1301_v41 = vmul.f32 %v3746_v47, %v4584_v49  ;;  %v1522_v19 = vadd.f32 -1.4531521, %v1458_v53  ;;  %v1618_v27 = vmul.f32 %v1554_v62, %v4606_v0  ;;  %v1459_v51 = vmul.f32 1.0614054, %v4645_v6 }
 0x195   : > { %7809 = vst [vmem:[#allocation32_spill] sm:$0xff] %v4653_v45  ;;  %v1555_v32 = vadd.f32 -1.4531521, %v1491_v54  ;;  %v4669_v21 = vsel %vm884_vm4, -1.0, %v7658_v17  ;;  %v1524_v50 = vadd.f32 -1.4531521, %v1460_v48  ;;  %v4671_v37 = vmul.f32 %v3744_v39, %v1364_v60 }
 0x196   : > { %v1461_v58 = vmul.f32 1.0614054, %v4650_v63  ;;  %3755 = vpow2.f32 %v2228_v38  ;;  %v4675_v49 = vsel %vm916_vm5, -1.0, %v7658_v17  ;;  %v2132_v5 = vmul.f32 %v2068_v4, %v4559_v1 }
 0x197   : > { %v4679_v7 = vmul.f32 0.5, %v4522_v44  ;;  %v2166_v42 = vmul.f32 1.442695, %v2100_v23  ;;  %v4687_v39 = vmul.f32 0.5, %v4555_v61  ;;  %v1365_v28 = vsub.f32 2.0, %v1301_v41 }
 0x198   : > { %v1586_v62 = vmul.f32 %v1522_v19, %v4625_v20  ;;  %v1682_v54 = vadd.f32 1.4214138, %v1618_v27  ;;  %v1523_v1 = vadd.f32 -1.4531521, %v1459_v51  ;;  %v1619_v44 = vmul.f32 %v1555_v32, %v4628_v18  ;;  %v4707_v27 = vpop.f32.mrb[17].mxu0 }
 0x199   : > { %7812 = vst [vmem:[#allocation35_spill] sm:$0xff] %v4679_v7  ;;  %v3748_v46 = vpop.eup %3747  ;;  %7813 = vst [vmem:[#allocation36_spill] sm:$0xff] %v4687_v39  ;;  %v1588_v60 = vmul.f32 %v1524_v50, %v4630_v55  ;;  %v1492_v52 = vmul.f32 1.0614054, %v4671_v37  ;;  %v1525_v38 = vadd.f32 -1.4531521, %v1461_v58  ;;  %v4699_v61 = vadd.f32 %v4442_v9, %v4482_v30 }
 0x19a   : > { %v4689_v53 = vpop.eup %3749  ;;  %v2230_v4 = vmul.f32 1.442695, %v2132_v5  ;;  %v2037_v23 = vsub.f32 0.0, %v4552_v59  ;;  %v1270_v41 = vmul.f32 %v3748_v46, %v4611_v24  ;;  %v4705_v19 = vadd.f32 %v4444_v10, %v4492_v34  ;;  %7815 = vst [vmem:[#allocation38_spill] sm:$0xff] %v4707_v27  ;;  %v4747_v27 = vpop.f32.mrb[17].mxu1 }
 0x19b   : > { %v4693_v48 = vpop.eup %3751  ;;  %3757 = vpow2.f32 %v2166_v42  ;;  %v4710_v51 = vmul.f32 %v3746_v47, %v1365_v28  ;;  %v4714_v9 = vadd.f32 %v4446_v11, %v4492_v34  ;;  %v1650_v50 = vadd.f32 1.4214138, %v1586_v62  ;;  %7820 = vst [vmem:[#allocation42_spill] sm:$0xff] %v4747_v27 }
 0x19c   : > { %7814 = vst [vmem:[#allocation37_spill] sm:$0xff] %v4705_v19  ;;  %v4716_v32 = vpop.eup %3753  ;;  %v1746_v24 = vmul.f32 %v1682_v54, %v4606_v0  ;;  %v1587_v58 = vmul.f32 %v1523_v1, %v4645_v6  ;;  %v1683_v10 = vadd.f32 1.4214138, %v1619_v44  ;;  %v1652_v5 = vadd.f32 1.4214138, %v1588_v60 }
 0x19d   : > { %7816 = vst [vmem:[#allocation39_spill] sm:$0xff] %v4714_v9  ;;  %v1556_v17 = vadd.f32 -1.4531521, %v1492_v52  ;;  %v1589_v42 = vmul.f32 %v1525_v38, %v4650_v63  ;;  %v4722_v39 = vmul.f32 0.70710677, %v4699_v61  ;;  %3759 = vpow2.f32 %v2230_v4 }
 0x19e   : > { %v2101_v47 = vmul.f32 %v2037_v23, %v4552_v59  ;;  %v1334_v11 = vsub.f32 2.0, %v1270_v41  ;;  %v4726_v28 = vmul.f32 0.70710677, %v4705_v19  ;;  %v7817_v62 = vmov 1.0  }
 0x19f   : > { %v4731_v54 = vsel %vm917_vm7, -1.0, %v7817_v62  ;;  %v1493_v1 = vmul.f32 1.0614054, %v4710_v51  ;;  %v2069_v44 = vsub.f32 0.0, %v4573_v25  ;;  %v4736_v60 = vmul.f32 0.70710677, %v4714_v9 }
 0x1a0   : > { %7818 = vst [vmem:[#allocation40_spill] sm:$0xff] %v4731_v54  ;;  %v4738_v52 = vpop.eup %3755  ;;  %v1714_v59 = vmul.f32 %v1650_v50, %v4625_v20  ;;  %v1810_v38 = vadd.f32 -0.28449672, %v1746_v24  ;;  %v1651_v4 = vadd.f32 1.4214138, %v1587_v58  ;;  %v1747_v23 = vmul.f32 %v1683_v10, %v4628_v18 }
 0x1a1   : > { %7819 = vst [vmem:[#allocation41_spill] sm:$0xff] %v4736_v60  ;;  %v1716_v41 = vmul.f32 %v1652_v5, %v4630_v55  ;;  %v1620_v3 = vmul.f32 %v1556_v17, %v4671_v37  ;;  %v1653_v45 = vadd.f32 1.4214138, %v1589_v42  ;;  %v4745_v35 = vand.u32 2147483647, %v4722_v39 }
 0x1a2   : > { %v2168_v40 = vmul.f32 1.442695, %v2101_v47  ;;  %v4749_v2 = vmul.f32 %v3748_v46, %v1334_v11  ;;  %v4752_v54 = vand.u32 2147483647, %v4726_v28  ;;  %v4756_v50 = vadd.f32 %v4448_v12, %v4482_v30 }
 0x1a3   : > { %v1557_v24 = vadd.f32 -1.4531521, %v1493_v1  ;;  %v2133_v58 = vmul.f32 %v2069_v44, %v4573_v25  ;;  %v4760_v17 = vmul.f32 0.5, %v4570_v22  ;;  %v4763_v10 = vand.u32 2147483647, %v4736_v60 }
 0x1a4   : > { %7821 = vst [vmem:[#allocation43_spill] sm:$0xff] %v4756_v50  ;;  %v1778_v5 = vadd.f32 -0.28449672, %v1714_v59  ;;  %v1874_v46 = vmul.f32 %v1810_v38, %v4606_v0  ;;  %v1715_v42 = vmul.f32 %v1651_v4, %v4645_v6  ;;  %v1811_v47 = vadd.f32 -0.28449672, %v1747_v23 }
 0x1a5   : > { %7822 = vst [vmem:[#allocation44_spill] sm:$0xff] %v4760_v17  ;;  %v4767_v11 = vpop.eup %3757  ;;  %v1780_v27 = vadd.f32 -0.28449672, %v1716_v41  ;;  %v1684_v12 = vadd.f32 1.4214138, %v1620_v3  ;;  %v1717_v1 = vmul.f32 %v1653_v45, %v4650_v63  ;;  %3761 = vpow2.f32 %v2168_v40 }
 0x1a6   : > { %v1110_v25 = vmul.f32 0.3275911, %v4745_v35  ;;  %v1462_v22 = vmul.f32 1.0614054, %v4749_v2  ;;  %v1079_v44 = vmul.f32 0.3275911, %v4752_v54  ;;  %v1621_v38 = vmul.f32 %v1557_v24, %v4710_v51 }
 0x1a7   : > { %v4774_v59 = vmul.f32 0.70710677, %v4756_v50  ;;  %v2232_v4 = vmul.f32 1.442695, %v2133_v58  ;;  %v1111_v23 = vmul.f32 0.3275911, %v4763_v10  ;;  %v4780_v41 = vadd.f32 %v4450_v13, %v4482_v30  ;;  %v4782_v45 = vpop.eup %3759 }
 0x1a8   : > { %v1842_v40 = vmul.f32 %v1778_v5, %v4625_v20  ;;  %v1938_v3 = vadd.f32 0.2548296, %v1874_v46  ;;  %v1779_v17 = vadd.f32 -0.28449672, %v1715_v42  ;;  %v1875_v60 = vmul.f32 %v1811_v47, %v4628_v18 }
 0x1a9   : > { %7823 = vst [vmem:[#allocation45_spill] sm:$0xff] %v4774_v59  ;;  %7824 = vst [vmem:[#allocation46_spill] sm:$0xff] %v4780_v41  ;;  %v1844_v50 = vmul.f32 %v1780_v27, %v4630_v55  ;;  %v1748_v7 = vmul.f32 %v1684_v12, %v4671_v37  ;;  %v1781_v24 = vadd.f32 -0.28449672, %v1717_v1  ;;  %v4788_v58 = vadd.f32 1.0, %v1110_v25 }
 0x1aa   : > { %v1526_v9 = vadd.f32 -1.4531521, %v1462_v22  ;;  %v4790_v19 = vadd.f32 1.0, %v1079_v44  ;;  %v4793_v13 = vand.u32 2147483647, %v4774_v59  ;;  %v4797_v5 = vadd.f32 %v4452_v14, %v4492_v34 }
 0x1ab   : > { %v1685_v46 = vadd.f32 1.4214138, %v1621_v38  ;;  %v4799_v42 = vadd.f32 1.0, %v1111_v23  ;;  %v4802_v27 = vmul.f32 0.70710677, %v4780_v41  ;;  %v4806_v47 = vadd.f32 %v4454_v15, %v4492_v34 }
 0x1ac   : > { %7825 = vst [vmem:[#allocation47_spill] sm:$0xff] %v4797_v5  ;;  %v1906_v12 = vadd.f32 0.2548296, %v1842_v40  ;;  %v2002_v1 = vmul.f32 %v1938_v3, %v4606_v0  ;;  %v1843_v25 = vmul.f32 %v1779_v17, %v4645_v6  ;;  %v1939_v22 = vadd.f32 0.2548296, %v1875_v60 }
 0x1ad   : > { %7826 = vst [vmem:[#allocation48_spill] sm:$0xff] %v4802_v27  ;;  %7827 = vst [vmem:[#allocation49_spill] sm:$0xff] %v4806_v47  ;;  %v1908_v44 = vadd.f32 0.2548296, %v1844_v50  ;;  %v1812_v59 = vadd.f32 -0.28449672, %v1748_v7  ;;  %v1845_v14 = vmul.f32 %v1781_v24, %v4650_v63  ;;  %3763 = vrcp.f32 %v4788_v58 }
 0x1ae   : > { %v1590_v38 = vmul.f32 %v1526_v9, %v4749_v2  ;;  %3765 = vrcp.f32 %v4790_v19  ;;  %v1080_v23 = vmul.f32 0.3275911, %v4793_v13  ;;  %v4816_v15 = vmul.f32 0.70710677, %v4797_v5  ;;  %v4829_v24 = vpop.f32.mrb[18].mxu0 }
 0x1af   : > { %v1749_v0 = vmul.f32 %v1685_v46, %v4710_v51  ;;  %3767 = vrcp.f32 %v4799_v42  ;;  %v4821_v60 = vand.u32 2147483647, %v4802_v27  ;;  %v4824_v7 = vmul.f32 0.70710677, %v4806_v47  ;;  %v3762_v50 = vpop.eup %3761  ;;  %7828 = vst [vmem:[#allocation50_spill] sm:$0xff] %v4829_v24 }
 0x1b0   : > { %v1970_v9 = vmul.f32 %v1906_v12, %v4625_v20  ;;  %v2322_v17 = vmul.f32 %v4693_v48, %v2002_v1  ;;  %v1907_v40 = vadd.f32 0.2548296, %v1843_v25  ;;  %v2003_v3 = vmul.f32 %v1939_v22, %v4628_v18 }
 0x1b1   : > { %v1972_v46 = vmul.f32 %v1908_v44, %v4630_v55  ;;  %v1876_v5 = vmul.f32 %v1812_v59, %v4671_v37  ;;  %v1909_v34 = vadd.f32 0.2548296, %v1845_v14  ;;  %v2038_v27 = vsub.f32 0.0, %v4582_v8 }
 0x1b2   : > { %v1654_v47 = vadd.f32 1.4214138, %v1590_v38  ;;  %v4835_v41 = vadd.f32 1.0, %v1080_v23  ;;  %v4838_v20 = vand.u32 2147483647, %v4816_v15  ;;  %3769 = vpow2.f32 %v2232_v4 }
 0x1b3   : > { %v1813_v48 = vadd.f32 -0.28449672, %v1749_v0  ;;  %v1112_v18 = vmul.f32 0.3275911, %v4821_v60  ;;  %v4842_v12 = vand.u32 2147483647, %v4824_v7  ;;  %v2290_v55 = vmul.f32 %v4689_v53, %v1970_v9 }
 0x1b4   : > { %v1971_v59 = vmul.f32 %v1907_v40, %v4645_v6  ;;  %v2323_v1 = vmul.f32 %v4738_v52, %v2003_v3  ;;  %v4849_v25 = vadd.f32 %v4456_v16, %v4482_v30  ;;  %v2386_v22 = vsub.f32 1.0, %v2322_v17 }
 0x1b5   : > { %v2292_v44 = vmul.f32 %v4767_v11, %v1972_v46  ;;  %v1940_v14 = vadd.f32 0.2548296, %v1876_v5  ;;  %v2102_v4 = vmul.f32 %v2038_v27, %v4582_v8  ;;  %v1973_v38 = vmul.f32 %v1909_v34, %v4650_v63  ;;  %v4866_v5 = vpop.f32.mrb[18].mxu1 }
 0x1b6   : > { %v1718_v23 = vmul.f32 %v1654_v47, %v4749_v2  ;;  %3771 = vrcp.f32 %v4835_v41  ;;  %v1081_v6 = vmul.f32 0.3275911, %v4838_v20  ;;  %v1877_v52 = vmul.f32 %v1813_v48, %v4710_v51  ;;  %7829 = vst [vmem:[#allocation51_spill] sm:$0xff] %v4866_v5 }
 0x1b7   : > { %v3764_v53 = vpop.eup %3763  ;;  %v4861_v16 = vsel %vm886_vm8, -1.0, %v7817_v62  ;;  %v4863_v11 = vadd.f32 1.0, %v1112_v18  ;;  %v1113_v8 = vmul.f32 0.3275911, %v4842_v12  ;;  %v2354_v63 = vsub.f32 1.0, %v2290_v55 }
 0x1b8   : > { %v3766_v34 = vpop.eup %3765  ;;  %v2291_v27 = vmul.f32 %v4716_v32, %v1971_v59  ;;  %v2387_v47 = vsub.f32 1.0, %v2323_v1  ;;  %v4870_v0 = vmul.f32 0.70710677, %v4849_v25  ;;  %v2450_v17 = vmul.f32 %v2386_v22, %v4621_v26 }
 0x1b9   : > { %v3768_v9 = vpop.eup %3767  ;;  %v2356_v56 = vsub.f32 1.0, %v2292_v44  ;;  %v2004_v40 = vmul.f32 %v1940_v14, %v4671_v37  ;;  %v2170_v3 = vmul.f32 1.442695, %v2102_v4  ;;  %v2293_v46 = vmul.f32 %v3762_v50, %v1973_v38 }
 0x1ba   : > { %v1782_v48 = vadd.f32 -0.28449672, %v1718_v23  ;;  %v1302_v18 = vmul.f32 %v3764_v53, %v4788_v58  ;;  %v4875_v5 = vadd.f32 1.0, %v1081_v6  ;;  %v1941_v55 = vadd.f32 0.2548296, %v1877_v52  ;;  %v4895_v6 = vpop.f32.mrb[19].mxu0 }
 0x1bb   : > { %v1271_v32 = vmul.f32 %v3766_v34, %v4790_v19  ;;  %3773 = vrcp.f32 %v4863_v11  ;;  %v4879_v59 = vadd.f32 1.0, %v1113_v8  ;;  %v2355_v1 = vsub.f32 1.0, %v2291_v27  ;;  %7831 = vst [vmem:[#allocation53_spill] sm:$0xff] %v4895_v6  ;;  %v7868_v6 = vld [vmem:[#allocation44_spill] sm:$0xff] }
 0x1bc   : > { %v2451_v26 = vmul.f32 %v2387_v47, %v4638_v29  ;;  %v1303_v22 = vmul.f32 %v3768_v9, %v4799_v42  ;;  %v4884_v37 = vand.u32 2147483647, %v4870_v0  ;;  %v3770_v50 = vpop.eup %3769  ;;  %v2514_v44 = vadd.f32 1.0, %v2450_v17 }
 0x1bd   : > { %v2420_v58 = vmul.f32 %v2356_v56, %v4669_v21  ;;  %v2324_v14 = vmul.f32 %v4782_v45, %v2004_v40  ;;  %3775 = vpow2.f32 %v2170_v3  ;;  %v2357_v19 = vsub.f32 1.0, %v2293_v46 }
 0x1be   : > { %v1846_v4 = vmul.f32 %v1782_v48, %v4749_v2  ;;  %v1366_v38 = vsub.f32 2.0, %v1302_v18  ;;  %3777 = vrcp.f32 %v4875_v5  ;;  %v4891_v29 = vmul.f32 %v2354_v63, %v4614_v57 }
 0x1bf   : > { %v2005_v42 = vmul.f32 %v1941_v55, %v4710_v51  ;;  %v1335_v23 = vsub.f32 2.0, %v1271_v32  ;;  %3779 = vrcp.f32 %v4879_v59  ;;  %v4898_v45 = vmul.f32 %v2355_v1, %v4634_v36  ;;  %v7833_v51 = vld [vmem:[#allocation30_spill] sm:$0xff]  ;;  %v4915_v55 = vpop.f32.mrb[19].mxu1 }
 0x1c0   : > { %7830 = vst [vmem:[#allocation52_spill] sm:$0xff] %v4891_v29  ;;  %v3772_v21 = vpop.eup %3771  ;;  %v2515_v52 = vadd.f32 1.0, %v2451_v26  ;;  %v1367_v8 = vsub.f32 2.0, %v1303_v22  ;;  %v1082_v27 = vmul.f32 0.3275911, %v4884_v37  ;;  %v2484_v47 = vadd.f32 1.0, %v2420_v58 }
 0x1c1   : > { %7832 = vst [vmem:[#allocation54_spill] sm:$0xff] %v4898_v45  ;;  %v2388_v17 = vsub.f32 1.0, %v2324_v14  ;;  %vm918_vm9 = vcmp.lt.f32.partialorder %v4722_v39, 0.0  ;;  %v2070_v57 = vsub.f32 0.0, %v4745_v35  ;;  %v4904_v63 = vmul.f32 %v2514_v44, %v7833_v51  ;;  %7835 = vst [vmem:[#allocation55_spill] sm:$0xff] %v4915_v55 }
 0x1c2   : > { %v2421_v56 = vmul.f32 %v2357_v19, %v4684_v43  ;;  %v1910_v40 = vadd.f32 0.2548296, %v1846_v4  ;;  %v4907_v3 = vmul.f32 %v3764_v53, %v1366_v38  ;;  %v2325_v36 = vmul.f32 %v3770_v50, %v2005_v42  ;;  %v7839_v19 = vld [vmem:[#allocation37_spill] sm:$0xff] }
 0x1c3   : > { %7834 = vst [vmem:[#allocation30_spill] sm:$0xff] %v4904_v63  ;;  %v4910_v46 = vmul.f32 0.5, %v4699_v61  ;;  %v4912_v48 = vmul.f32 %v3766_v34, %v1335_v23  ;;  %v1272_v18 = vmul.f32 %v3772_v21, %v4835_v41  ;;  %v4918_v39 = vmul.f32 %v2515_v52, %v4609_v33  ;;  %v7840_v52 = vld [vmem:[#allocation39_spill] sm:$0xff] }
 0x1c4   : > { %v4921_v32 = vsel %vm918_vm9, -1.0, %v7817_v62  ;;  %v4923_v43 = vmul.f32 %v3768_v9, %v1367_v8  ;;  %v4925_v53 = vadd.f32 1.0, %v1082_v27  ;;  %v4928_v61 = vmul.f32 %v2484_v47, %v4641_v31  ;;  %v7841_v27 = vld [vmem:[#allocation11_spill] sm:$0xff] }
 0x1c5   : > { %7836 = vst [vmem:[#allocation56_spill] sm:$0xff] %v4918_v39  ;;  %v3774_v1 = vpop.eup %3773  ;;  %v4931_v34 = vmul.f32 %v2388_v17, %v4675_v49  ;;  %v2134_v41 = vmul.f32 %v2070_v57, %v4745_v35  ;;  %v2039_v26 = vsub.f32 0.0, %v4752_v54  ;;  %v2485_v33 = vadd.f32 1.0, %v2421_v56  ;;  %v7842_v17 = vld [vmem:[#allocation35_spill] sm:$0xff] }
 0x1c6   : > { %7837 = vst [vmem:[#allocation57_spill] sm:$0xff] %v4928_v61  ;;  %v1974_v22 = vmul.f32 %v1910_v40, %v4749_v2  ;;  %v1494_v50 = vmul.f32 1.0614054, %v4907_v3  ;;  %vm887_vm10 = vcmp.lt.f32.partialorder %v4726_v28, 0.0  ;;  %v2389_v44 = vsub.f32 1.0, %v2325_v36  ;;  %v7844_v40 = vld [vmem:[#allocation40_spill] sm:$0xff] }
 0x1c7   : > { %7838 = vst [vmem:[#allocation58_spill] sm:$0xff] %v4931_v34  ;;  %v3776_v9 = vpop.eup %3775  ;;  %v1463_v58 = vmul.f32 1.0614054, %v4912_v48  ;;  %v2071_v31 = vsub.f32 0.0, %v4763_v10  ;;  %v1336_v14 = vsub.f32 2.0, %v1272_v18  ;;  %v4941_v4 = vmul.f32 0.5, %v7839_v19 }
 0x1c8   : > { %v3778_v49 = vpop.eup %3777  ;;  %v1495_v35 = vmul.f32 1.0614054, %v4923_v43  ;;  %v1304_v38 = vmul.f32 %v3774_v1, %v4863_v11  ;;  %3781 = vrcp.f32 %v4925_v53  ;;  %v2234_v42 = vmul.f32 1.442695, %v2134_v41  ;;  %v7859_v34 = vld [vmem:[#allocation49_spill] sm:$0xff] }
 0x1c9   : > { %v3780_v2 = vpop.eup %3779  ;;  %v2103_v23 = vmul.f32 %v2039_v26, %v4752_v54  ;;  %v4948_v8 = vmul.f32 0.5, %v7840_v52  ;;  %v4952_v47 = vadd.f32 %v7841_v27, %v4482_v30  ;;  %v4955_v57 = vmul.f32 %v2485_v33, %v7842_v17  ;;  %v7846_v52 = vld [vmem:[#allocation41_spill] sm:$0xff] }
 0x1ca   : > { %v2294_v51 = vmul.f32 %v3776_v9, %v1974_v22  ;;  %v1558_v56 = vadd.f32 -1.4531521, %v1494_v50  ;;  %v4960_v11 = vsel %vm887_vm10, -1.0, %v7817_v62  ;;  %v4963_v36 = vmul.f32 %v2389_v44, %v7844_v40  ;;  %v4994_v40 = vpop.f32.mrb[20].mxu1 }
 0x1cb   : > { %7843 = vst [vmem:[#allocation37_spill] sm:$0xff] %v4955_v57  ;;  %v1527_v54 = vadd.f32 -1.4531521, %v1463_v58  ;;  %v2135_v18 = vmul.f32 %v2071_v31, %v4763_v10  ;;  %v4966_v41 = vmul.f32 %v3772_v21, %v1336_v14  ;;  %v1559_v26 = vadd.f32 -1.4531521, %v1495_v35  ;;  %v7847_v10 = vld [vmem:[#allocation43_spill] sm:$0xff] }
 0x1cc   : > { %7845 = vst [vmem:[#allocation39_spill] sm:$0xff] %v4963_v36  ;;  %v1368_v19 = vsub.f32 2.0, %v1304_v38  ;;  %v1273_v33 = vmul.f32 %v3778_v49, %v4875_v5  ;;  %v1305_v22 = vmul.f32 %v3780_v2, %v4879_v59  ;;  %3783 = vpow2.f32 %v2234_v42  ;;  %v4979_v31 = vpop.f32.mrb[20].mxu0  ;;  %v7849_v14 = vld [vmem:[#allocation45_spill] sm:$0xff]  ;;  %7850 = vst [vmem:[#allocation35_spill] sm:$0xff] %v4994_v40  ;;  %v7854_v57 = vld [vmem:[#allocation23_spill] sm:$0xff] }
 0x1cd   : > { %v2172_v50 = vmul.f32 1.442695, %v2103_v23  ;;  %v2040_v28 = vsub.f32 0.0, %v4793_v13  ;;  %v4972_v9 = vmul.f32 0.70710677, %v4952_v47  ;;  %v2358_v44 = vsub.f32 1.0, %v2294_v51 }
 0x1ce   : > { %v1622_v58 = vmul.f32 %v1558_v56, %v4907_v3  ;;  %vm919_vm11 = vcmp.lt.f32.partialorder %v7846_v52, 0.0  ;;  %v4977_v21 = vmul.f32 0.5, %v7847_v10  ;;  %7848 = vst [vmem:[#allocation11_spill] sm:$0xff] %v4979_v31  ;;  %v1591_v5 = vmul.f32 %v1527_v54, %v4912_v48 }
 0x1cf   : > { %v2236_v59 = vmul.f32 1.442695, %v2135_v18  ;;  %vm888_vm12 = vcmp.lt.f32.partialorder %v7849_v14, 0.0  ;;  %v1464_v35 = vmul.f32 1.0614054, %v4966_v41  ;;  %v1623_v38 = vmul.f32 %v1559_v26, %v4923_v43  ;;  %v7851_v26 = vld [vmem:[#allocation46_spill] sm:$0xff] }
 0x1d0   : > { %v4985_v42 = vmul.f32 %v3774_v1, %v1368_v19  ;;  %v1337_v23 = vsub.f32 2.0, %v1273_v33  ;;  %v1369_v27 = vsub.f32 2.0, %v1305_v22  ;;  %3785 = vpow2.f32 %v2172_v50  ;;  %v7853_v50 = vld [vmem:[#allocation48_spill] sm:$0xff] }
 0x1d1   : > { %v4988_v17 = vsel %vm919_vm11, -1.0, %v7817_v62  ;;  %v2104_v51 = vmul.f32 %v2040_v28, %v4793_v13  ;;  %v4992_v56 = vand.u32 2147483647, %v4972_v9  ;;  %v2422_v18 = vmul.f32 %v2358_v44, %v4861_v16 }
 0x1d2   : > { %v3782_v54 = vpop.eup %3781  ;;  %v1686_v52 = vadd.f32 1.4214138, %v1622_v58  ;;  %v4998_v1 = vsel %vm888_vm12, -1.0, %v7817_v62  ;;  %v5001_v19 = vmul.f32 0.5, %v7851_v26  ;;  %v1655_v33 = vadd.f32 1.4214138, %v1591_v5 }
 0x1d3   : > { %3787 = vpow2.f32 %v2236_v59  ;;  %v1528_v22 = vadd.f32 -1.4531521, %v1464_v35  ;;  %vm920_vm13 = vcmp.lt.f32.partialorder %v7853_v50, 0.0  ;;  %v1687_v13 = vadd.f32 1.4214138, %v1623_v38  ;;  %v7855_v26 = vld [vmem:[#allocation12_spill] sm:$0xff] }
 0x1d4   : > { %7852 = vst [vmem:[#allocation40_spill] sm:$0xff] %v5001_v19  ;;  %v1496_v28 = vmul.f32 1.0614054, %v4985_v42  ;;  %v5005_v10 = vmul.f32 %v3778_v49, %v1337_v23  ;;  %v5007_v14 = vmul.f32 %v3780_v2, %v1369_v27  ;;  %v2174_v16 = vmul.f32 1.442695, %v2104_v51  ;;  %v7856_v49 = vld [vmem:[#allocation47_spill] sm:$0xff] }
 0x1d5   : > { %v1274_v44 = vmul.f32 %v3782_v54, %v4925_v53  ;;  %v1114_v58 = vmul.f32 0.3275911, %v4992_v56  ;;  %v5013_v61 = vadd.f32 %v7855_v26, %v7854_v57  ;;  %v1750_v5 = vmul.f32 %v1686_v52, %v4907_v3  ;;  %v5028_v51 = vpop.f32.mrb[21].mxu0 }
 0x1d6   : > { %v5017_v59 = vsel %vm920_vm13, -1.0, %v7817_v62  ;;  %v2072_v35 = vsub.f32 0.0, %v4821_v60  ;;  %v5021_v38 = vmul.f32 0.5, %v7856_v49  ;;  %v5023_v2 = vpop.eup %3783  ;;  %v2486_v23 = vadd.f32 1.0, %v2422_v18  ;;  %7858 = vst [vmem:[#allocation43_spill] sm:$0xff] %v5028_v51 }
 0x1d7   : > { %v1719_v53 = vmul.f32 %v1655_v33, %v4912_v48  ;;  %v1592_v27 = vmul.f32 %v1528_v22, %v4966_v41  ;;  %vm889_vm14 = vcmp.lt.f32.partialorder %v4816_v15, 0.0  ;;  %v1751_v52 = vmul.f32 %v1687_v13, %v4923_v43 }
 0x1d8   : > { %7857 = vst [vmem:[#allocation41_spill] sm:$0xff] %v5021_v38  ;;  %v1560_v50 = vadd.f32 -1.4531521, %v1496_v28  ;;  %v1465_v26 = vmul.f32 1.0614054, %v5005_v10  ;;  %3789 = vpow2.f32 %v2174_v16  ;;  %v1338_v49 = vsub.f32 2.0, %v1274_v44 }
 0x1d9   : > { %v1497_v39 = vmul.f32 1.0614054, %v5007_v14  ;;  %v5033_v63 = vadd.f32 1.0, %v1114_v58  ;;  %v5036_v18 = vmul.f32 0.70710677, %v5013_v61  ;;  %v2136_v22 = vmul.f32 %v2072_v35, %v4821_v60  ;;  %v7861_v44 = vld [vmem:[#allocation13_spill] sm:$0xff] }
 0x1da   : > { %v1814_v33 = vadd.f32 -0.28449672, %v1750_v5  ;;  %v2041_v36 = vsub.f32 0.0, %v4838_v20  ;;  %v5041_v45 = vmul.f32 0.5, %v7859_v34  ;;  %v5043_v13 = vpop.eup %3785  ;;  %v1783_v28 = vadd.f32 -0.28449672, %v1719_v53 }
 0x1db   : > { %v1656_v29 = vadd.f32 1.4214138, %v1592_v27  ;;  %v5048_v16 = vsel %vm889_vm14, -1.0, %v7817_v62  ;;  %v5052_v58 = vadd.f32 %v7861_v44, %v7854_v57  ;;  %v1815_v5 = vadd.f32 -0.28449672, %v1751_v52  ;;  %v5064_v27 = vpop.f32.mrb[21].mxu1 }
 0x1dc   : > { %7860 = vst [vmem:[#allocation45_spill] sm:$0xff] %v5041_v45  ;;  %v1624_v60 = vmul.f32 %v1560_v50, %v4985_v42  ;;  %v1529_v35 = vadd.f32 -1.4531521, %v1465_v26  ;;  %v1561_v51 = vadd.f32 -1.4531521, %v1497_v39  ;;  %vm921_vm15 = vcmp.lt.f32.partialorder %v4824_v7, 0.0 }
 0x1dd   : > { %7862 = vst [vmem:[#allocation46_spill] sm:$0xff] %v5052_v58  ;;  %v5055_v34 = vpop.eup %3787  ;;  %v5058_v53 = vmul.f32 %v3782_v54, %v1338_v49  ;;  %3791 = vrcp.f32 %v5033_v63  ;;  %v5062_v15 = vand.u32 2147483647, %v5036_v18  ;;  %7863 = vst [vmem:[#allocation48_spill] sm:$0xff] %v5064_v27  ;;  %v1878_v44 = vmul.f32 %v1814_v33, %v4907_v3  ;;  %v7864_v39 = vld [vmem:[#allocation14_spill] sm:$0xff] }
 0x1de   : > { %v2238_v52 = vmul.f32 1.442695, %v2136_v22  ;;  %v2105_v50 = vmul.f32 %v2041_v36, %v4838_v20  ;;  %v5070_v26 = vadd.f32 %v7864_v39, %v4482_v30  ;;  %v1847_v40 = vmul.f32 %v1783_v28, %v4912_v48  ;;  %v7866_v28 = vld [vmem:[#allocation15_spill] sm:$0xff] }
 0x1df   : > { %v1720_v54 = vmul.f32 %v1656_v29, %v4966_v41  ;;  %v2073_v49 = vsub.f32 0.0, %v4842_v12  ;;  %v5076_v31 = vmul.f32 0.70710677, %v5052_v58  ;;  %v1879_v27 = vmul.f32 %v1815_v5, %v4923_v43 }
 0x1e0   : > { %v1688_v55 = vadd.f32 1.4214138, %v1624_v60  ;;  %v1593_v33 = vmul.f32 %v1529_v35, %v5005_v10  ;;  %v1625_v20 = vmul.f32 %v1561_v51, %v5007_v14  ;;  %v5084_v36 = vsel %vm921_vm15, -1.0, %v7817_v62 }
 0x1e1   : > { %7865 = vst [vmem:[#allocation23_spill] sm:$0xff] %v5084_v36  ;;  %v1466_v22 = vmul.f32 1.0614054, %v5058_v53  ;;  %v1083_v29 = vmul.f32 0.3275911, %v5062_v15  ;;  %v5090_v39 = vadd.f32 %v7866_v28, %v4482_v30  ;;  %v5093_v5 = vmul.f32 %v2486_v23, %v7868_v6 }
 0x1e2   : > { %v1942_v60 = vadd.f32 0.2548296, %v1878_v44  ;;  %v2176_v35 = vmul.f32 1.442695, %v2105_v50  ;;  %v5096_v51 = vmul.f32 0.70710677, %v5070_v26  ;;  %v5098_v24 = vpop.eup %3789  ;;  %v2137_v38 = vmul.f32 %v2073_v49, %v4842_v12 }
 0x1e3   : > { %7867 = vst [vmem:[#allocation12_spill] sm:$0xff] %v5090_v39  ;;  %7869 = vst [vmem:[#allocation47_spill] sm:$0xff] %v5093_v5  ;;  %v1911_v7 = vadd.f32 0.2548296, %v1847_v40  ;;  %v1784_v45 = vadd.f32 -0.28449672, %v1720_v54  ;;  %v1752_v28 = vmul.f32 %v1688_v55, %v4985_v42  ;;  %3793 = vpow2.f32 %v2238_v52 }
 0x1e4   : > { %v5102_v19 = vand.u32 2147483647, %v5076_v31  ;;  %v1943_v58 = vadd.f32 0.2548296, %v1879_v27  ;;  %v1657_v36 = vadd.f32 1.4214138, %v1593_v33  ;;  %v2006_v40 = vmul.f32 %v1942_v60, %v4907_v3 }
 0x1e5   : > { %v1689_v6 = vadd.f32 1.4214138, %v1625_v20  ;;  %v1530_v23 = vadd.f32 -1.4531521, %v1466_v22  ;;  %v5105_v44 = vadd.f32 1.0, %v1083_v29  ;;  %3795 = vpow2.f32 %v2176_v35  ;;  %v5117_v27 = vpop.f32.mrb[22].mxu0 }
 0x1e6   : > { %v5108_v50 = vmul.f32 0.70710677, %v5090_v39  ;;  %v5112_v12 = vmul.f32 0.5, %v4849_v25  ;;  %v5115_v54 = vand.u32 2147483647, %v5096_v51  ;;  %7872 = vst [vmem:[#allocation14_spill] sm:$0xff] %v5117_v27  ;;  %v1848_v52 = vmul.f32 %v1784_v45, %v4966_v41 }
 0x1e7   : > { %v3792_v55 = vpop.eup %3791  ;;  %v2240_v49 = vmul.f32 1.442695, %v2137_v38  ;;  %v1115_v33 = vmul.f32 0.3275911, %v5102_v19  ;;  %v7873_v20 = vld [vmem:[#allocation16_spill] sm:$0xff]  ;;  %v1975_v3 = vmul.f32 %v1911_v7, %v4912_v48  ;;  %v2007_v25 = vmul.f32 %v1943_v58, %v4923_v43 }
 0x1e8   : > { %7870 = vst [vmem:[#allocation49_spill] sm:$0xff] %v5108_v50  ;;  %7871 = vst [vmem:[#allocation13_spill] sm:$0xff] %v5112_v12  ;;  %v5123_v22 = vadd.f32 %v7873_v20, %v7854_v57  ;;  %v1816_v29 = vadd.f32 -0.28449672, %v1752_v28  ;;  %v1721_v60 = vmul.f32 %v1657_v36, %v5005_v10  ;;  %v1753_v35 = vmul.f32 %v1689_v6, %v5007_v14 }
 0x1e9   : > { %v1594_v5 = vmul.f32 %v1530_v23, %v5058_v53  ;;  %3797 = vrcp.f32 %v5105_v44  ;;  %v5132_v45 = vand.u32 2147483647, %v5108_v50  ;;  %v2326_v38 = vmul.f32 %v5023_v2, %v2006_v40 }
 0x1ea   : > { %7874 = vst [vmem:[#allocation15_spill] sm:$0xff] %v5123_v22  ;;  %vm890_vm0 = vcmp.lt.f32.partialorder %v4870_v0, 0.0  ;;  %v1306_v48 = vmul.f32 %v3792_v55, %v5033_v63  ;;  %v1084_v43 = vmul.f32 0.3275911, %v5115_v54  ;;  %v1912_v58 = vadd.f32 0.2548296, %v1848_v52 }
 0x1eb   : > { %v2042_v36 = vsub.f32 0.0, %v4884_v37  ;;  %v5139_v7 = vadd.f32 1.0, %v1115_v33  ;;  %v5142_v28 = vmul.f32 0.70710677, %v5123_v22  ;;  %v2295_v6 = vmul.f32 %v5043_v13, %v1975_v3  ;;  %v7875_v33 = vld [vmem:[#allocation17_spill] sm:$0xff] }
 0x1ec   : > { %v1880_v23 = vmul.f32 %v1816_v29, %v4985_v42  ;;  %v1785_v20 = vadd.f32 -0.28449672, %v1721_v60  ;;  %3799 = vpow2.f32 %v2240_v49  ;;  %v2327_v2 = vmul.f32 %v5055_v34, %v2007_v25 }
 0x1ed   : > { %v1817_v40 = vadd.f32 -0.28449672, %v1753_v35  ;;  %v1658_v63 = vadd.f32 1.4214138, %v1594_v5  ;;  %v1116_v27 = vmul.f32 0.3275911, %v5132_v45  ;;  %v5152_v22 = vadd.f32 %v7875_v33, %v7854_v57  ;;  %v3794_v39 = vpop.eup %3793 }
 0x1ee   : > { %v2390_v52 = vsub.f32 1.0, %v2326_v38  ;;  %v1370_v12 = vsub.f32 2.0, %v1306_v48  ;;  %v5148_v50 = vadd.f32 1.0, %v1084_v43  ;;  %v1976_v13 = vmul.f32 %v1912_v58, %v4966_v41  ;;  %v5170_v48 = vpop.f32.mrb[22].mxu1 }
 0x1ef   : > { %v2106_v3 = vmul.f32 %v2042_v36, %v4884_v37  ;;  %3801 = vrcp.f32 %v5139_v7  ;;  %v5158_v34 = vand.u32 2147483647, %v5142_v28  ;;  %v3796_v5 = vpop.eup %3795  ;;  %v2359_v49 = vsub.f32 1.0, %v2295_v6  ;;  %7876 = vst [vmem:[#allocation44_spill] sm:$0xff] %v5170_v48 }
 0x1f0   : > { %v1944_v25 = vadd.f32 0.2548296, %v1880_v23  ;;  %v1849_v29 = vmul.f32 %v1785_v20, %v5005_v10  ;;  %v5164_v60 = vsel %vm890_vm0, -1.0, %v7817_v62  ;;  %v2391_v35 = vsub.f32 1.0, %v2327_v2 }
 0x1f1   : > { %v1881_v41 = vmul.f32 %v1817_v40, %v5007_v14  ;;  %v1722_v37 = vmul.f32 %v1658_v63, %v5058_v53  ;;  %v5168_v38 = vadd.f32 1.0, %v1116_v27  ;;  %v2454_v43 = vmul.f32 %v2390_v52, %v4921_v32 }
 0x1f2   : > { %v5173_v58 = vmul.f32 %v3792_v55, %v1370_v12  ;;  %3803 = vrcp.f32 %v5148_v50  ;;  %v5177_v36 = vmul.f32 0.70710677, %v5152_v22  ;;  %v2296_v6 = vmul.f32 %v5098_v24, %v1976_v13 }
 0x1f3   : > { %v3798_v0 = vpop.eup %3797  ;;  %v2178_v23 = vmul.f32 1.442695, %v2106_v3  ;;  %v5181_v20 = vmul.f32 0.5, %v4952_v47  ;;  %v1085_v27 = vmul.f32 0.3275911, %v5158_v34  ;;  %v2423_v2 = vmul.f32 %v2359_v49, %v4960_v11 }
 0x1f4   : > { %v2008_v32 = vmul.f32 %v1944_v25, %v4985_v42  ;;  %v1913_v12 = vadd.f32 0.2548296, %v1849_v29  ;;  %vm922_vm1 = vcmp.lt.f32.partialorder %v4972_v9, 0.0  ;;  %v2455_v55 = vmul.f32 %v2391_v35, %v4988_v17  ;;  %v7877_v17 = vld [vmem:[#allocation18_spill] sm:$0xff] }
 0x1f5   : > { %v1945_v40 = vadd.f32 0.2548296, %v1881_v41  ;;  %v1786_v63 = vadd.f32 -0.28449672, %v1722_v37  ;;  %3805 = vrcp.f32 %v5168_v38  ;;  %v2518_v52 = vadd.f32 1.0, %v2454_v43 }
 0x1f6   : > { %v3800_v24 = vpop.eup %3799  ;;  %v1498_v47 = vmul.f32 1.0614054, %v5173_v58  ;;  %v1275_v33 = vmul.f32 %v3798_v0, %v5105_v44  ;;  %v5192_v13 = vand.u32 2147483647, %v5177_v36  ;;  %v2360_v11 = vsub.f32 1.0, %v2296_v6 }
 0x1f7   : > { %v2074_v42 = vsub.f32 0.0, %v4992_v56  ;;  %v5195_v3 = vadd.f32 1.0, %v1085_v27  ;;  %v5199_v49 = vadd.f32 %v7877_v17, %v4482_v30  ;;  %v2328_v25 = vmul.f32 %v3794_v39, %v2008_v32 }
 0x1f8   : > { %v1977_v29 = vmul.f32 %v1913_v12, %v5005_v10  ;;  %3807 = vpow2.f32 %v2178_v23  ;;  %v5205_v44 = vsel %vm922_vm1, -1.0, %v7817_v62  ;;  %v2487_v41 = vadd.f32 1.0, %v2423_v2  ;;  %v5213_v23 = vpop.f32.mrb[23].mxu0 }
 0x1f9   : > { %v3802_v35 = vpop.eup %3801  ;;  %v2519_v37 = vadd.f32 1.0, %v2455_v55  ;;  %v2009_v43 = vmul.f32 %v1945_v40, %v5007_v14  ;;  %v1850_v6 = vmul.f32 %v1786_v63, %v5058_v53  ;;  %v5210_v27 = vmul.f32 %v2518_v52, %v4910_v46  ;;  %7879 = vst [vmem:[#allocation17_spill] sm:$0xff] %v5213_v23  ;;  %v7880_v40 = vld [vmem:[#allocation19_spill] sm:$0xff] }
 0x1fa   : > { %v1562_v17 = vadd.f32 -1.4531521, %v1498_v47  ;;  %v1339_v39 = vsub.f32 2.0, %v1275_v33  ;;  %v1117_v10 = vmul.f32 0.3275911, %v5192_v13  ;;  %v2424_v9 = vmul.f32 %v2360_v11, %v4998_v1 }
 0x1fb   : > { %7878 = vst [vmem:[#allocation16_spill] sm:$0xff] %v5210_v27  ;;  %v2138_v32 = vmul.f32 %v2074_v42, %v4992_v56  ;;  %3809 = vrcp.f32 %v5195_v3  ;;  %v5219_v2 = vmul.f32 0.70710677, %v5199_v49  ;;  %v2392_v12 = vsub.f32 1.0, %v2328_v25 }
 0x1fc   : > { %v3804_v14 = vpop.eup %3803  ;;  %v2297_v55 = vmul.f32 %v3796_v5, %v1977_v29  ;;  %v1307_v46 = vmul.f32 %v3802_v35, %v5139_v7  ;;  %v5224_v63 = vadd.f32 %v7880_v40, %v4482_v30  ;;  %v5227_v52 = vmul.f32 %v2487_v41, %v4941_v4 }
 0x1fd   : > { %v5230_v1 = vmul.f32 %v2519_v37, %v4948_v8  ;;  %v2329_v56 = vmul.f32 %v3800_v24, %v2009_v43  ;;  %v1914_v47 = vadd.f32 0.2548296, %v1850_v6  ;;  %v1626_v33 = vmul.f32 %v1562_v17, %v5173_v58  ;;  %v5251_v17 = vpop.f32.mrb[23].mxu1 }
 0x1fe   : > { %7881 = vst [vmem:[#allocation18_spill] sm:$0xff] %v5227_v52  ;;  %v5234_v11 = vmul.f32 0.5, %v5013_v61  ;;  %v5236_v5 = vmul.f32 %v3798_v0, %v1339_v39  ;;  %v5238_v7 = vadd.f32 1.0, %v1117_v10  ;;  %v2488_v25 = vadd.f32 1.0, %v2424_v9  ;;  %7883 = vst [vmem:[#allocation59_spill] sm:$0xff] %v5251_v17 }
 0x1ff   : > { %7882 = vst [vmem:[#allocation19_spill] sm:$0xff] %v5230_v1  ;;  %v3806_v42 = vpop.eup %3805  ;;  %v2242_v29 = vmul.f32 1.442695, %v2138_v32  ;;  %v1276_v4 = vmul.f32 %v3804_v14, %v5148_v50  ;;  %v5242_v41 = vand.u32 2147483647, %v5219_v2  ;;  %v2456_v8 = vmul.f32 %v2392_v12, %v5017_v59 }
 0x200   : > { %v2361_v24 = vsub.f32 1.0, %v2297_v55  ;;  %v1371_v37 = vsub.f32 2.0, %v1307_v46  ;;  %v5246_v43 = vmul.f32 0.70710677, %v5224_v63  ;;  %v2393_v61 = vsub.f32 1.0, %v2329_v56 }
 0x201   : > { %v1978_v0 = vmul.f32 %v1914_v47, %v5058_v53  ;;  %vm891_vm2 = vcmp.lt.f32.partialorder %v5036_v18, 0.0  ;;  %v2043_v6 = vsub.f32 0.0, %v5062_v15  ;;  %v1690_v39 = vadd.f32 1.4214138, %v1626_v33  ;;  %v7885_v33 = vld [vmem:[#allocation23_spill] sm:$0xff] }
 0x202   : > { %v3808_v50 = vpop.eup %3807  ;;  %v1467_v10 = vmul.f32 1.0614054, %v5236_v5  ;;  %v1308_v59 = vmul.f32 %v3806_v42, %v5168_v38  ;;  %3811 = vrcp.f32 %v5238_v7  ;;  %v5257_v9 = vmul.f32 %v2488_v25, %v4977_v21 }
 0x203   : > { %3813 = vpow2.f32 %v2242_v29  ;;  %v1340_v32 = vsub.f32 2.0, %v1276_v4  ;;  %v1086_v53 = vmul.f32 0.3275911, %v5242_v41  ;;  %v2520_v12 = vadd.f32 1.0, %v2456_v8  ;;  %v7886_v4 = vld [vmem:[#allocation46_spill] sm:$0xff] }
 0x204   : > { %7884 = vst [vmem:[#allocation60_spill] sm:$0xff] %v5257_v9  ;;  %v2425_v55 = vmul.f32 %v2361_v24, %v5048_v16  ;;  %v5261_v46 = vmul.f32 %v3802_v35, %v1371_v37  ;;  %v5264_v40 = vand.u32 2147483647, %v5246_v43  ;;  %v2298_v47 = vmul.f32 %v3808_v50, %v1978_v0  ;;  %v7887_v50 = vld [vmem:[#allocation40_spill] sm:$0xff] }
 0x205   : > { %v3810_v56 = vpop.eup %3809  ;;  %v5269_v38 = vsel %vm891_vm2, -1.0, %v7817_v62  ;;  %v2107_v21 = vmul.f32 %v2043_v6, %v5062_v15  ;;  %vm923_vm3 = vcmp.lt.f32.partialorder %v5076_v31, 0.0  ;;  %v2457_v25 = vmul.f32 %v2393_v61, %v7885_v33 }
 0x206   : > { %v1754_v16 = vmul.f32 %v1690_v39, %v5173_v58  ;;  %v1531_v35 = vadd.f32 -1.4531521, %v1467_v10  ;;  %v1372_v29 = vsub.f32 2.0, %v1308_v59  ;;  %v5276_v8 = vmul.f32 0.5, %v7886_v4 }
 0x207   : > { %v2075_v24 = vsub.f32 0.0, %v5102_v19  ;;  %v5279_v37 = vmul.f32 %v3804_v14, %v1340_v32  ;;  %v5281_v18 = vadd.f32 1.0, %v1086_v53  ;;  %v2489_v0 = vadd.f32 1.0, %v2425_v55 }
 0x208   : > { %v1499_v15 = vmul.f32 1.0614054, %v5261_v46  ;;  %v1277_v6 = vmul.f32 %v3810_v56, %v5195_v3  ;;  %v1118_v61 = vmul.f32 0.3275911, %v5264_v40  ;;  %v5287_v39 = vmul.f32 %v2520_v12, %v7887_v50 }
 0x209   : > { %v2362_v10 = vsub.f32 1.0, %v2298_v47  ;;  %v2180_v59 = vmul.f32 1.442695, %v2107_v21  ;;  %v5292_v33 = vsel %vm923_vm3, -1.0, %v7817_v62  ;;  %v2521_v14 = vadd.f32 1.0, %v2457_v25  ;;  %v7889_v21 = vld [vmem:[#allocation41_spill] sm:$0xff] }
 0x20a   : > { %7888 = vst [vmem:[#allocation23_spill] sm:$0xff] %v5287_v39  ;;  %v1818_v32 = vadd.f32 -0.28449672, %v1754_v16  ;;  %v1595_v53 = vmul.f32 %v1531_v35, %v5236_v5  ;;  %v5295_v55 = vmul.f32 %v3806_v42, %v1372_v29  ;;  %v2139_v3 = vmul.f32 %v2075_v24, %v5102_v19  ;;  %v5306_v16 = vpop.f32.mrb[24].mxu0  ;;  %v5308_v42 = vpop.f32.mrb[24].mxu1  ;;  %v7893_v39 = vld [vmem:[#allocation45_spill] sm:$0xff] }
 0x20b   : > { %vm892_vm4 = vcmp.lt.f32.partialorder %v5096_v51, 0.0  ;;  %v1468_v12 = vmul.f32 1.0614054, %v5279_v37  ;;  %3815 = vrcp.f32 %v5281_v18  ;;  %v5302_v4 = vmul.f32 %v2489_v0, %v7889_v21  ;;  %7891 = vst [vmem:[#allocation40_spill] sm:$0xff] %v5306_v16  ;;  %7892 = vst [vmem:[#allocation41_spill] sm:$0xff] %v5308_v42 }
 0x20c   : > { %v3812_v47 = vpop.eup %3811  ;;  %v1563_v31 = vadd.f32 -1.4531521, %v1499_v15  ;;  %v1341_v50 = vsub.f32 2.0, %v1277_v6  ;;  %v5304_v25 = vadd.f32 1.0, %v1118_v61  ;;  %v2426_v19 = vmul.f32 %v2362_v10, %v5164_v60 }
 0x20d   : > { %7890 = vst [vmem:[#allocation46_spill] sm:$0xff] %v5302_v4  ;;  %v3814_v35 = vpop.eup %3813  ;;  %3817 = vpow2.f32 %v2180_v59  ;;  %v5312_v29 = vmul.f32 0.5, %v5070_v26  ;;  %v2044_v24 = vsub.f32 0.0, %v5115_v54  ;;  %v5316_v0 = vmul.f32 %v2521_v14, %v7893_v39  ;;  %v7895_v59 = vld [vmem:[#allocation12_spill] sm:$0xff] }
 0x20e   : > { %v1882_v15 = vmul.f32 %v1818_v32, %v5173_v58  ;;  %v1659_v6 = vadd.f32 1.4214138, %v1595_v53  ;;  %v1500_v61 = vmul.f32 1.0614054, %v5295_v55  ;;  %v2244_v21 = vmul.f32 1.442695, %v2139_v3 }
 0x20f   : > { %7894 = vst [vmem:[#allocation45_spill] sm:$0xff] %v5316_v0  ;;  %v5323_v1 = vsel %vm892_vm4, -1.0, %v7817_v62  ;;  %v1532_v60 = vadd.f32 -1.4531521, %v1468_v12  ;;  %v1309_v26 = vmul.f32 %v3812_v47, %v5238_v7  ;;  %v1627_v10 = vmul.f32 %v1563_v31, %v5261_v46  ;;  %v7896_v53 = vld [vmem:[#allocation49_spill] sm:$0xff]  ;;  %v5336_v3 = vpop.f32.mrb[25].mxu0 }
 0x210   : > { %v5328_v27 = vmul.f32 0.5, %v7895_v59  ;;  %v5330_v39 = vmul.f32 %v3810_v56, %v1341_v50  ;;  %3819 = vrcp.f32 %v5304_v25  ;;  %v2490_v14 = vadd.f32 1.0, %v2426_v19  ;;  %7897 = vst [vmem:[#allocation12_spill] sm:$0xff] %v5336_v3  ;;  %v7898_v19 = vld [vmem:[#allocation22_spill] sm:$0xff] }
 0x211   : > { %v2108_v32 = vmul.f32 %v2044_v24, %v5115_v54  ;;  %vm924_vm5 = vcmp.lt.f32.partialorder %v7896_v53, 0.0  ;;  %v2076_v51 = vsub.f32 0.0, %v5132_v45  ;;  %v1946_v12 = vadd.f32 0.2548296, %v1882_v15  ;;  %v7899_v53 = vld [vmem:[#allocation15_spill] sm:$0xff] }
 0x212   : > { %v1723_v7 = vmul.f32 %v1659_v6, %v5236_v5  ;;  %v1564_v31 = vadd.f32 -1.4531521, %v1500_v61  ;;  %v2045_v59 = vsub.f32 0.0, %v5158_v34  ;;  %3821 = vpow2.f32 %v2244_v21  ;;  %v7900_v61 = vld [vmem:[#allocation13_spill] sm:$0xff] }
 0x213   : > { %v1596_v56 = vmul.f32 %v1532_v60, %v5279_v37  ;;  %v1373_v50 = vsub.f32 2.0, %v1309_v26  ;;  %v5343_v0 = vadd.f32 %v7898_v19, %v7854_v57  ;;  %v1691_v54 = vadd.f32 1.4214138, %v1627_v10 }
 0x214   : > { %v5346_v24 = vsel %vm924_vm5, -1.0, %v7817_v62  ;;  %v5349_v4 = vmul.f32 0.5, %v7899_v53  ;;  %v1469_v15 = vmul.f32 1.0614054, %v5330_v39  ;;  %v5353_v9 = vmul.f32 %v2490_v14, %v7900_v61 }
 0x215   : > { %v3816_v6 = vpop.eup %3815  ;;  %v2182_v21 = vmul.f32 1.442695, %v2108_v32  ;;  %v2140_v60 = vmul.f32 %v2076_v51, %v5132_v45  ;;  %vm893_vm6 = vcmp.lt.f32.partialorder %v5142_v28, 0.0  ;;  %v2010_v26 = vmul.f32 %v1946_v12, %v5173_v58  ;;  %v7902_v51 = vld [vmem:[#allocation24_spill] sm:$0xff] }
 0x216   : > { %7901 = vst [vmem:[#allocation49_spill] sm:$0xff] %v5353_v9  ;;  %v1787_v10 = vadd.f32 -0.28449672, %v1723_v7  ;;  %v1628_v19 = vmul.f32 %v1564_v31, %v5295_v55  ;;  %v2109_v52 = vmul.f32 %v2045_v59, %v5158_v34  ;;  %v1660_v3 = vadd.f32 1.4214138, %v1596_v56 }
 0x217   : > { %v5360_v53 = vpop.eup %3817  ;;  %vm925_vm7 = vcmp.lt.f32.partialorder %v5177_v36, 0.0  ;;  %v5363_v42 = vmul.f32 %v3812_v47, %v1373_v50  ;;  %v5366_v14 = vmul.f32 0.70710677, %v5343_v0  ;;  %v1755_v45 = vmul.f32 %v1691_v54, %v5261_v46  ;;  %v5383_v54 = vpop.f32.mrb[25].mxu1 }
 0x218   : > { %v1533_v32 = vadd.f32 -1.4531521, %v1469_v15  ;;  %v1278_v58 = vmul.f32 %v3816_v6, %v5281_v18  ;;  %v5372_v12 = vadd.f32 %v7902_v51, %v7854_v57  ;;  %3823 = vpow2.f32 %v2182_v21  ;;  %7904 = vst [vmem:[#allocation15_spill] sm:$0xff] %v5383_v54 }
 0x219   : > { %v2246_v34 = vmul.f32 1.442695, %v2140_v60  ;;  %v5377_v7 = vsel %vm893_vm6, -1.0, %v7817_v62  ;;  %v5380_v47 = vmul.f32 0.5, %v5152_v22  ;;  %v2330_v59 = vmul.f32 %v3814_v35, %v2010_v26 }
 0x21a   : > { %v3820_v31 = vpop.eup %3819  ;;  %v1851_v56 = vmul.f32 %v1787_v10, %v5236_v5  ;;  %v1692_v50 = vadd.f32 1.4214138, %v1628_v19  ;;  %v2184_v18 = vmul.f32 1.442695, %v2109_v52  ;;  %v1724_v15 = vmul.f32 %v1660_v3, %v5279_v37  ;;  %v7906_v19 = vld [vmem:[#allocation25_spill] sm:$0xff] }
 0x21b   : > { %7903 = vst [vmem:[#allocation22_spill] sm:$0xff] %v5380_v47  ;;  %v5389_v61 = vsel %vm925_vm7, -1.0, %v7817_v62  ;;  %v1501_v28 = vmul.f32 1.0614054, %v5363_v42  ;;  %v5393_v22 = vand.u32 2147483647, %v5366_v14  ;;  %v1597_v35 = vmul.f32 %v1533_v32, %v5330_v39 }
 0x21c   : > { %v1819_v21 = vadd.f32 -0.28449672, %v1755_v45  ;;  %v1342_v60 = vsub.f32 2.0, %v1278_v58  ;;  %v5397_v52 = vmul.f32 0.70710677, %v5372_v12  ;;  %v5399_v26 = vpop.eup %3821  ;;  %v2077_v3 = vsub.f32 0.0, %v5192_v13 }
 0x21d   : > { %v5403_v36 = vmul.f32 0.5, %v5199_v49  ;;  %v1310_v10 = vmul.f32 %v3820_v31, %v5304_v25  ;;  %v5408_v51 = vadd.f32 %v7906_v19, %v4482_v30  ;;  %v2394_v45 = vsub.f32 1.0, %v2330_v59  ;;  %v5419_v19 = vpop.f32.mrb[26].mxu0 }
 0x21e   : > { %v1915_v9 = vadd.f32 0.2548296, %v1851_v56  ;;  %v1756_v32 = vmul.f32 %v1692_v50, %v5295_v55  ;;  %vm894_vm8 = vcmp.lt.f32.partialorder %v5219_v2, 0.0  ;;  %v1788_v58 = vadd.f32 -0.28449672, %v1724_v15  ;;  %7907 = vst [vmem:[#allocation24_spill] sm:$0xff] %v5419_v19 }
 0x21f   : > { %7905 = vst [vmem:[#allocation13_spill] sm:$0xff] %v5403_v36  ;;  %3825 = vpow2.f32 %v2246_v34  ;;  %v1565_v54 = vadd.f32 -1.4531521, %v1501_v28  ;;  %v1087_v16 = vmul.f32 0.3275911, %v5393_v22  ;;  %v1883_v49 = vmul.f32 %v1819_v21, %v5261_v46  ;;  %v7908_v34 = vld [vmem:[#allocation26_spill] sm:$0xff] }
 0x220   : > { %v1661_v17 = vadd.f32 1.4214138, %v1597_v35  ;;  %v5414_v23 = vmul.f32 %v3816_v6, %v1342_v60  ;;  %v5417_v25 = vand.u32 2147483647, %v5397_v52  ;;  %v2141_v59 = vmul.f32 %v2077_v3, %v5192_v13 }
 0x221   : > { %v1374_v56 = vsub.f32 2.0, %v1310_v10  ;;  %v5423_v50 = vmul.f32 0.70710677, %v5408_v51  ;;  %v5427_v15 = vadd.f32 %v7908_v34, %v4482_v30  ;;  %v2458_v28 = vmul.f32 %v2394_v45, %v5205_v44  ;;  %v7910_v34 = vld [vmem:[#allocation27_spill] sm:$0xff] }
 0x222   : > { %v1979_v6 = vmul.f32 %v1915_v9, %v5236_v5  ;;  %v1820_v21 = vadd.f32 -0.28449672, %v1756_v32  ;;  %v5434_v35 = vsel %vm894_vm8, -1.0, %v7817_v62  ;;  %v3824_v60 = vpop.eup %3823  ;;  %v1852_v13 = vmul.f32 %v1788_v58, %v5279_v37 }
 0x223   : > { %7909 = vst [vmem:[#allocation25_spill] sm:$0xff] %v5434_v35  ;;  %v1629_v3 = vmul.f32 %v1565_v54, %v5363_v42  ;;  %v5438_v10 = vadd.f32 1.0, %v1087_v16  ;;  %v5442_v19 = vadd.f32 %v7910_v34, %v7854_v57  ;;  %v1947_v44 = vadd.f32 0.2548296, %v1883_v49 }
 0x224   : > { %v1725_v5 = vmul.f32 %v1661_v17, %v5330_v39  ;;  %v1470_v9 = vmul.f32 1.0614054, %v5414_v23  ;;  %v1119_v2 = vmul.f32 0.3275911, %v5417_v25  ;;  %v2248_v45 = vmul.f32 1.442695, %v2141_v59 }
 0x225   : > { %7911 = vst [vmem:[#allocation26_spill] sm:$0xff] %v5442_v19  ;;  %v5447_v32 = vmul.f32 %v3820_v31, %v1374_v56  ;;  %v5450_v58 = vand.u32 2147483647, %v5423_v50  ;;  %v5453_v16 = vmul.f32 0.70710677, %v5427_v15  ;;  %v2522_v54 = vadd.f32 1.0, %v2458_v28 }
 0x226   : > { %v2299_v34 = vmul.f32 %v5360_v53, %v1979_v6  ;;  %v1884_v49 = vmul.f32 %v1820_v21, %v5295_v55  ;;  %v2046_v17 = vsub.f32 0.0, %v5242_v41  ;;  %v1916_v48 = vadd.f32 0.2548296, %v1852_v13 }
 0x227   : > { %v1693_v36 = vadd.f32 1.4214138, %v1629_v3  ;;  %3827 = vrcp.f32 %v5438_v10  ;;  %v5460_v31 = vmul.f32 0.70710677, %v5442_v19  ;;  %v2011_v59 = vmul.f32 %v1947_v44, %v5261_v46 }
 0x228   : > { %v1789_v56 = vadd.f32 -0.28449672, %v1725_v5  ;;  %v1534_v35 = vadd.f32 -1.4531521, %v1470_v9  ;;  %v5463_v47 = vadd.f32 1.0, %v1119_v2  ;;  %3829 = vpow2.f32 %v2184_v18  ;;  %v5479_v9 = vpop.f32.mrb[26].mxu1 }
 0x229   : > { %v3826_v28 = vpop.eup %3825  ;;  %v1502_v53 = vmul.f32 1.0614054, %v5447_v32  ;;  %v1088_v6 = vmul.f32 0.3275911, %v5450_v58  ;;  %v5468_v21 = vand.u32 2147483647, %v5453_v16  ;;  %3831 = vpow2.f32 %v2248_v45 }
 0x22a   : > { %v2363_v13 = vsub.f32 1.0, %v2299_v34  ;;  %v1948_v3 = vadd.f32 0.2548296, %v1884_v49  ;;  %v2110_v19 = vmul.f32 %v2046_v17, %v5242_v41  ;;  %v5472_v46 = vmul.f32 %v2522_v54, %v5181_v20  ;;  %7913 = vst [vmem:[#allocation61_spill] sm:$0xff] %v5479_v9 }
 0x22b   : > { %v1980_v44 = vmul.f32 %v1916_v48, %v5279_v37  ;;  %v1757_v5 = vmul.f32 %v1693_v36, %v5363_v42  ;;  %v5477_v18 = vand.u32 2147483647, %v5460_v31  ;;  %v2331_v2 = vmul.f32 %v5399_v26, %v2011_v59  ;;  %v7914_v37 = vld [vmem:[#allocation28_spill] sm:$0xff] }
 0x22c   : > { %7912 = vst [vmem:[#allocation27_spill] sm:$0xff] %v5472_v46  ;;  %v1853_v34 = vmul.f32 %v1789_v56, %v5330_v39  ;;  %v1598_v45 = vmul.f32 %v1534_v35, %v5414_v23  ;;  %3833 = vrcp.f32 %v5463_v47  ;;  %v1566_v41 = vadd.f32 -1.4531521, %v1502_v53 }
 0x22d   : > { %v5485_v20 = vadd.f32 1.0, %v1088_v6  ;;  %v1120_v48 = vmul.f32 0.3275911, %v5468_v21  ;;  %v5490_v36 = vadd.f32 %v7914_v37, %v7854_v57  ;;  %v2427_v54 = vmul.f32 %v2363_v13, %v5269_v38 }
 0x22e   : > { %v2012_v49 = vmul.f32 %v1948_v3, %v5295_v55  ;;  %v5495_v26 = vmul.f32 0.5, %v5224_v63  ;;  %v2078_v35 = vsub.f32 0.0, %v5264_v40  ;;  %v2300_v17 = vmul.f32 %v3824_v60, %v1980_v44  ;;  %v7916_v3 = vld [vmem:[#allocation33_spill] sm:$0xff] }
 0x22f   : > { %v1821_v59 = vadd.f32 -0.28449672, %v1757_v5  ;;  %v2186_v56 = vmul.f32 1.442695, %v2110_v19  ;;  %v1089_v53 = vmul.f32 0.3275911, %v5477_v18  ;;  %v1630_v38 = vmul.f32 %v1566_v41, %v5447_v32 }
 0x230   : > { %7915 = vst [vmem:[#allocation28_spill] sm:$0xff] %v5495_v26  ;;  %v2395_v6 = vsub.f32 1.0, %v2331_v2  ;;  %v1917_v46 = vadd.f32 0.2548296, %v1853_v34  ;;  %v1662_v9 = vadd.f32 1.4214138, %v1598_v45  ;;  %3835 = vrcp.f32 %v5485_v20 }
 0x231   : > { %vm926_vm9 = vcmp.lt.f32.partialorder %v5246_v43, 0.0  ;;  %v3828_v37 = vpop.eup %3827  ;;  %v5502_v55 = vadd.f32 1.0, %v1120_v48  ;;  %v5505_v63 = vmul.f32 0.70710677, %v5490_v36  ;;  %v2491_v60 = vadd.f32 1.0, %v2427_v54 }
 0x232   : > { %v2332_v13 = vmul.f32 %v3826_v28, %v2012_v49  ;;  %v2142_v19 = vmul.f32 %v2078_v35, %v5264_v40  ;;  %v5510_v44 = vadd.f32 %v7916_v3, %v4482_v30  ;;  %v3830_v5 = vpop.eup %3829  ;;  %v2364_v2 = vsub.f32 1.0, %v2300_v17  ;;  %v5528_v17 = vpop.f32.mrb[27].mxu0 }
 0x233   : > { %v1885_v34 = vmul.f32 %v1821_v59, %v5363_v42  ;;  %3837 = vpow2.f32 %v2186_v56  ;;  %v5513_v45 = vadd.f32 1.0, %v1089_v53  ;;  %v3832_v41 = vpop.eup %3831  ;;  %v2459_v48 = vmul.f32 %v2395_v6, %v5292_v33  ;;  %7917 = vst [vmem:[#allocation33_spill] sm:$0xff] %v5528_v17  ;;  %v7919_v56 = vld [vmem:[#allocation34_spill] sm:$0xff] }
 0x234   : > { %v1981_v26 = vmul.f32 %v1917_v46, %v5330_v39  ;;  %v5520_v40 = vsel %vm926_vm9, -1.0, %v7817_v62  ;;  %v1279_v28 = vmul.f32 %v3828_v37, %v5438_v10  ;;  %v1726_v54 = vmul.f32 %v1662_v9, %v5414_v23 }
 0x235   : > { %v1694_v49 = vadd.f32 1.4214138, %v1630_v38  ;;  %3839 = vrcp.f32 %v5502_v55  ;;  %v5526_v35 = vand.u32 2147483647, %v5505_v63  ;;  %v5531_v39 = vmul.f32 %v2491_v60, %v5234_v11 }
 0x236   : > { %v3834_v33 = vpop.eup %3833  ;;  %v2396_v46 = vsub.f32 1.0, %v2332_v13  ;;  %v2250_v43 = vmul.f32 1.442695, %v2142_v19  ;;  %v5534_v59 = vmul.f32 0.70710677, %v5510_v44  ;;  %v2428_v10 = vmul.f32 %v2364_v2, %v5323_v1 }
 0x237   : > { %7918 = vst [vmem:[#allocation62_spill] sm:$0xff] %v5531_v39  ;;  %v1949_v9 = vadd.f32 0.2548296, %v1885_v34  ;;  %3841 = vrcp.f32 %v5513_v45  ;;  %v5540_v53 = vadd.f32 %v7919_v56, %v4482_v30  ;;  %v2523_v6 = vadd.f32 1.0, %v2459_v48 }
 0x238   : > { %v2301_v38 = vmul.f32 %v3830_v5, %v1981_v26  ;;  %v1343_v3 = vsub.f32 2.0, %v1279_v28  ;;  %v2047_v11 = vsub.f32 0.0, %v5393_v22  ;;  %v1790_v60 = vadd.f32 -0.28449672, %v1726_v54 }
 0x239   : > { %v1758_v13 = vmul.f32 %v1694_v49, %v5447_v32  ;;  %v1311_v19 = vmul.f32 %v3834_v33, %v5463_v47  ;;  %v1121_v39 = vmul.f32 0.3275911, %v5526_v35  ;;  %v2460_v1 = vmul.f32 %v2396_v46, %v5346_v24 }
 0x23a   : > { %3843 = vpow2.f32 %v2250_v43  ;;  %v5548_v2 = vmul.f32 0.5, %v5343_v0  ;;  %v5551_v34 = vand.u32 2147483647, %v5534_v59  ;;  %v3836_v26 = vpop.eup %3835  ;;  %v2492_v5 = vadd.f32 1.0, %v2428_v10 }
 0x23b   : > { %v2013_v48 = vmul.f32 %v1949_v9, %v5363_v42  ;;  %vm895_vm10 = vcmp.lt.f32.partialorder %v5366_v14, 0.0  ;;  %v5556_v28 = vmul.f32 0.70710677, %v5540_v53  ;;  %v5559_v47 = vmul.f32 %v2523_v6, %v5276_v8  ;;  %v5572_v6 = vpop.f32.mrb[27].mxu1 }
 0x23c   : > { %v2365_v24 = vsub.f32 1.0, %v2301_v38  ;;  %v5561_v54 = vmul.f32 %v3828_v37, %v1343_v3  ;;  %v2111_v0 = vmul.f32 %v2047_v11, %v5393_v22  ;;  %v1854_v46 = vmul.f32 %v1790_v60, %v5414_v23  ;;  %7921 = vst [vmem:[#allocation63_spill] sm:$0xff] %v5572_v6 }
 0x23d   : > { %7920 = vst [vmem:[#allocation34_spill] sm:$0xff] %v5559_v47  ;;  %v3838_v49 = vpop.eup %3837  ;;  %v1822_v43 = vadd.f32 -0.28449672, %v1758_v13  ;;  %v1375_v10 = vsub.f32 2.0, %v1311_v19  ;;  %v5565_v56 = vadd.f32 1.0, %v1121_v39  ;;  %v2524_v42 = vadd.f32 1.0, %v2460_v1 }
 0x23e   : > { %v5568_v14 = vsel %vm895_vm10, -1.0, %v7817_v62  ;;  %v1280_v9 = vmul.f32 %v3836_v26, %v5485_v20  ;;  %v1090_v8 = vmul.f32 0.3275911, %v5551_v34  ;;  %v5575_v22 = vmul.f32 %v2492_v5, %v5312_v29  ;;  %v7923_v13 = vld [vmem:[#allocation38_spill] sm:$0xff] }
 0x23f   : > { %v3840_v37 = vpop.eup %3839  ;;  %v2333_v38 = vmul.f32 %v3832_v41, %v2013_v48  ;;  %v5578_v3 = vmul.f32 0.5, %v5372_v12  ;;  %v5581_v39 = vand.u32 2147483647, %v5556_v28  ;;  %v2429_v11 = vmul.f32 %v2365_v24, %v5377_v7 }
 0x240   : > { %7922 = vst [vmem:[#allocation64_spill] sm:$0xff] %v5575_v22  ;;  %v1471_v60 = vmul.f32 1.0614054, %v5561_v54  ;;  %v2188_v20 = vmul.f32 1.442695, %v2111_v0  ;;  %v5587_v19 = vadd.f32 %v7923_v13, %v7854_v57  ;;  %v1886_v29 = vmul.f32 %v1822_v43, %v5447_v32 }
 0x241   : > { %v3842_v1 = vpop.eup %3841  ;;  %v1918_v47 = vadd.f32 0.2548296, %v1854_v46  ;;  %v5590_v41 = vmul.f32 %v3834_v33, %v1375_v10  ;;  %3845 = vrcp.f32 %v5565_v56  ;;  %v5594_v12 = vmul.f32 %v2524_v42, %v5328_v27 }
 0x242   : > { %v1344_v5 = vsub.f32 2.0, %v1280_v9  ;;  %v1312_v7 = vmul.f32 %v3840_v37, %v5502_v55  ;;  %v5597_v48 = vadd.f32 1.0, %v1090_v8  ;;  %v2397_v24 = vsub.f32 1.0, %v2333_v38 }
 0x243   : > { %7924 = vst [vmem:[#allocation38_spill] sm:$0xff] %v5594_v12  ;;  %vm927_vm11 = vcmp.lt.f32.partialorder %v5397_v52, 0.0  ;;  %v2079_v0 = vsub.f32 0.0, %v5417_v25  ;;  %v1122_v46 = vmul.f32 0.3275911, %v5581_v39  ;;  %3847 = vpow2.f32 %v2188_v20 }
 0x244   : > { %v3844_v43 = vpop.eup %3843  ;;  %v1535_v33 = vadd.f32 -1.4531521, %v1471_v60  ;;  %v1281_v10 = vmul.f32 %v3842_v1, %v5513_v45  ;;  %v5604_v27 = vmul.f32 0.70710677, %v5587_v19  ;;  %v2493_v42 = vadd.f32 1.0, %v2429_v11 }
 0x245   : > { %v1982_v55 = vmul.f32 %v1918_v47, %v5414_v23  ;;  %v1950_v9 = vadd.f32 0.2548296, %v1886_v29  ;;  %v1503_v8 = vmul.f32 1.0614054, %v5590_v41  ;;  %v5609_v52 = vsel %vm927_vm11, -1.0, %v7817_v62 }
 0x246   : > { %v5611_v38 = vmul.f32 %v3836_v26, %v1344_v5  ;;  %v1376_v13 = vsub.f32 2.0, %v1312_v7  ;;  %3849 = vrcp.f32 %v5597_v48  ;;  %v2461_v60 = vmul.f32 %v2397_v24, %v5389_v61 }
 0x247   : > { %v2143_v45 = vmul.f32 %v2079_v0, %v5417_v25  ;;  %vm896_vm12 = vcmp.lt.f32.partialorder %v5423_v50, 0.0  ;;  %v5617_v11 = vadd.f32 1.0, %v1122_v46  ;;  %v1599_v23 = vmul.f32 %v1535_v33, %v5561_v54 }
 0x248   : > { %v5621_v47 = vmul.f32 0.5, %v5408_v51  ;;  %v1345_v20 = vsub.f32 2.0, %v1281_v10  ;;  %v5624_v26 = vand.u32 2147483647, %v5604_v27  ;;  %v5627_v29 = vmul.f32 %v2493_v42, %v5349_v4 }
 0x249   : > { %v2302_v5 = vmul.f32 %v3838_v49, %v1982_v55  ;;  %v2014_v61 = vmul.f32 %v1950_v9, %v5447_v32  ;;  %v1567_v25 = vadd.f32 -1.4531521, %v1503_v8  ;;  %v5631_v50 = vsel %vm896_vm12, -1.0, %v7817_v62 }
 0x24a   : > { %7925 = vst [vmem:[#allocation65_spill] sm:$0xff] %v5627_v29  ;;  %v1472_v7 = vmul.f32 1.0614054, %v5611_v38  ;;  %v5635_v24 = vmul.f32 0.5, %v5427_v15  ;;  %v5637_v51 = vmul.f32 %v3840_v37, %v1376_v13  ;;  %v2525_v46 = vadd.f32 1.0, %v2461_v60  ;;  %v7929_v29 = vld [vmem:[#allocation25_spill] sm:$0xff] }
 0x24b   : > { %v3846_v0 = vpop.eup %3845  ;;  %v2252_v33 = vmul.f32 1.442695, %v2143_v45  ;;  %v2048_v4 = vsub.f32 0.0, %v5450_v58  ;;  %3851 = vrcp.f32 %v5617_v11  ;;  %v1663_v49 = vadd.f32 1.4214138, %v1599_v23  ;;  %v7926_v23 = vld [vmem:[#allocation42_spill] sm:$0xff] }
 0x24c   : > { %v2080_v32 = vsub.f32 0.0, %v5468_v21  ;;  %v5642_v10 = vmul.f32 %v3842_v1, %v1345_v20  ;;  %v1091_v42 = vmul.f32 0.3275911, %v5624_v26  ;;  %v2366_v55 = vsub.f32 1.0, %v2302_v5  ;;  %v7927_v1 = vld [vmem:[#allocation22_spill] sm:$0xff] }
 0x24d   : > { %v2334_v9 = vmul.f32 %v3844_v43, %v2014_v61  ;;  %v1631_v15 = vmul.f32 %v1567_v25, %v5590_v41  ;;  %v2049_v37 = vsub.f32 0.0, %v5477_v18  ;;  %v5647_v8 = vpop.eup %3847  ;;  %v1536_v13 = vadd.f32 -1.4531521, %v1472_v7 }
 0x24e   : > { %v1504_v60 = vmul.f32 1.0614054, %v5637_v51  ;;  %v1313_v45 = vmul.f32 %v3846_v0, %v5565_v56  ;;  %v5653_v12 = vadd.f32 %v7926_v23, %v7854_v57  ;;  %v5656_v20 = vmul.f32 %v2525_v46, %v7927_v1 }
 0x24f   : > { %3853 = vpow2.f32 %v2252_v33  ;;  %v2112_v43 = vmul.f32 %v2048_v4, %v5450_v58  ;;  %vm928_vm13 = vcmp.lt.f32.partialorder %v5453_v16, 0.0  ;;  %v1727_v61 = vmul.f32 %v1663_v49, %v5561_v54  ;;  %v5667_v33 = vpop.f32.mrb[28].mxu0 }
 0x250   : > { %7928 = vst [vmem:[#allocation42_spill] sm:$0xff] %v5656_v20  ;;  %v3850_v5 = vpop.eup %3849  ;;  %v2144_v25 = vmul.f32 %v2080_v32, %v5468_v21  ;;  %v1473_v7 = vmul.f32 1.0614054, %v5642_v10  ;;  %v5663_v56 = vadd.f32 1.0, %v1091_v42  ;;  %v2430_v23 = vmul.f32 %v2366_v55, %v7929_v29  ;;  %7930 = vst [vmem:[#allocation22_spill] sm:$0xff] %v5667_v33 }
 0x251   : > { %v2398_v22 = vsub.f32 1.0, %v2334_v9  ;;  %v1695_v6 = vadd.f32 1.4214138, %v1631_v15  ;;  %v2113_v46 = vmul.f32 %v2049_v37, %v5477_v18  ;;  %v1600_v58 = vmul.f32 %v1536_v13, %v5611_v38 }
 0x252   : > { %v1568_v4 = vadd.f32 -1.4531521, %v1504_v60  ;;  %v1377_v1 = vsub.f32 2.0, %v1313_v45  ;;  %v5671_v49 = vmul.f32 0.70710677, %v5653_v12  ;;  %v5676_v32 = vsel %vm928_vm13, -1.0, %v7817_v62 }
 0x253   : > { %v2190_v21 = vmul.f32 1.442695, %v2112_v43  ;;  %vm897_vm14 = vcmp.lt.f32.partialorder %v5460_v31, 0.0  ;;  %v1282_v29 = vmul.f32 %v3850_v5, %v5597_v48  ;;  %v1791_v18 = vadd.f32 -0.28449672, %v1727_v61  ;;  %v7931_v48 = vld [vmem:[#allocation26_spill] sm:$0xff] }
 0x254   : > { %v2254_v42 = vmul.f32 1.442695, %v2144_v25  ;;  %v1537_v55 = vadd.f32 -1.4531521, %v1473_v7  ;;  %3855 = vrcp.f32 %v5663_v56  ;;  %v2494_v15 = vadd.f32 1.0, %v2430_v23  ;;  %v5700_v7 = vpop.f32.mrb[29].mxu0 }
 0x255   : > { %v3852_v9 = vpop.eup %3851  ;;  %v2462_v37 = vmul.f32 %v2398_v22, %v5520_v40  ;;  %v1759_v13 = vmul.f32 %v1695_v6, %v5590_v41  ;;  %v2192_v60 = vmul.f32 1.442695, %v2113_v46  ;;  %v1664_v45 = vadd.f32 1.4214138, %v1600_v58  ;;  %7932 = vst [vmem:[#allocation25_spill] sm:$0xff] %v5700_v7  ;;  %v7933_v46 = vld [vmem:[#allocation13_spill] sm:$0xff] }
 0x256   : > { %v1632_v16 = vmul.f32 %v1568_v4, %v5637_v51  ;;  %v5684_v43 = vmul.f32 %v3846_v0, %v1377_v1  ;;  %v5687_v20 = vand.u32 2147483647, %v5671_v49  ;;  %3857 = vpow2.f32 %v2190_v21  ;;  %v5707_v31 = vpop.f32.mrb[30].mxu0  ;;  %v7945_v7 = vld [vmem:[#allocation53_spill] sm:$0xff] }
 0x257   : > { %v5690_v61 = vmul.f32 0.5, %v7931_v48  ;;  %v5695_v25 = vsel %vm897_vm14, -1.0, %v7817_v62  ;;  %v1346_v40 = vsub.f32 2.0, %v1282_v29  ;;  %v1855_v6 = vmul.f32 %v1791_v18, %v5561_v54  ;;  %7935 = vst [vmem:[#allocation13_spill] sm:$0xff] %v5707_v31 }
 0x258   : > { %3859 = vpow2.f32 %v2254_v42  ;;  %v1601_v22 = vmul.f32 %v1537_v55, %v5642_v10  ;;  %v1314_v0 = vmul.f32 %v3852_v9, %v5617_v11  ;;  %v5705_v58 = vmul.f32 %v2494_v15, %v7933_v46 }
 0x259   : > { %v5702_v23 = vpop.eup %3853  ;;  %v2526_v4 = vadd.f32 1.0, %v2462_v37  ;;  %v1823_v1 = vadd.f32 -0.28449672, %v1759_v13  ;;  %3861 = vpow2.f32 %v2192_v60  ;;  %v1728_v21 = vmul.f32 %v1664_v45, %v5611_v38  ;;  %v7938_v37 = vld [vmem:[#allocation50_spill] sm:$0xff] }
 0x25a   : > { %7934 = vst [vmem:[#allocation26_spill] sm:$0xff] %v5705_v58  ;;  %v1696_v29 = vadd.f32 1.4214138, %v1632_v16  ;;  %v1505_v18 = vmul.f32 1.0614054, %v5684_v43  ;;  %v5713_v11 = vmul.f32 0.5, %v5490_v36  ;;  %v5718_v15 = vmul.f32 %v3850_v5, %v1346_v40 }
 0x25b   : > { %v1123_v42 = vmul.f32 0.3275911, %v5687_v20  ;;  %v5716_v55 = vmul.f32 0.5, %v5510_v44  ;;  %v5722_v13 = vadd.f32 %v7938_v37, %v4482_v30  ;;  %v1919_v60 = vadd.f32 0.2548296, %v1855_v6  ;;  %v7939_v16 = vld [vmem:[#allocation28_spill] sm:$0xff] }
 0x25c   : > { %7936 = vst [vmem:[#allocation66_spill] sm:$0xff] %v5713_v11  ;;  %v1665_v48 = vadd.f32 1.4214138, %v1601_v22  ;;  %vm929_vm15 = vcmp.lt.f32.partialorder %v5505_v63, 0.0  ;;  %v1378_v45 = vsub.f32 2.0, %v1314_v0  ;;  %v5726_v46 = vmul.f32 %v2526_v4, %v7939_v16  ;;  %v7942_v44 = vld [vmem:[#allocation51_spill] sm:$0xff] }
 0x25d   : > { %7937 = vst [vmem:[#allocation67_spill] sm:$0xff] %v5716_v55  ;;  %v1887_v36 = vmul.f32 %v1823_v1, %v5590_v41  ;;  %v5730_v58 = vmul.f32 0.5, %v5540_v53  ;;  %v5734_v5 = vadd.f32 %v7942_v44, %v4482_v30  ;;  %v5736_v40 = vpop.f32.mrb[31].mxu0  ;;  %v1792_v6 = vadd.f32 -0.28449672, %v1728_v21 }
 0x25e   : > { %7940 = vst [vmem:[#allocation50_spill] sm:$0xff] %v5726_v46  ;;  %7943 = vst [vmem:[#allocation51_spill] sm:$0xff] %v5736_v40  ;;  %v3856_v37 = vpop.eup %3855  ;;  %v1760_v22 = vmul.f32 %v1696_v29, %v5637_v51  ;;  %v1569_v31 = vadd.f32 -1.4531521, %v1505_v18  ;;  %v5739_v0 = vadd.f32 1.0, %v1123_v42  ;;  %v2081_v4 = vsub.f32 0.0, %v5526_v35 }
 0x25f   : > { %7941 = vst [vmem:[#allocation28_spill] sm:$0xff] %v5730_v58  ;;  %vm898_vm0 = vcmp.lt.f32.partialorder %v5534_v59, 0.0  ;;  %v1474_v53 = vmul.f32 1.0614054, %v5718_v15  ;;  %v5745_v1 = vmul.f32 0.70710677, %v5722_v13  ;;  %v1983_v16 = vmul.f32 %v1919_v60, %v5561_v54 }
 0x260   : > { %v1729_v44 = vmul.f32 %v1665_v48, %v5642_v10  ;;  %v2050_v21 = vsub.f32 0.0, %v5551_v34  ;;  %v5750_v46 = vmul.f32 %v3852_v9, %v1378_v45  ;;  %v3858_v29 = vpop.eup %3857  ;;  %v1951_v18 = vadd.f32 0.2548296, %v1887_v36 }
 0x261   : > { %v1283_v42 = vmul.f32 %v3856_v37, %v5663_v56  ;;  %v5754_v40 = vmul.f32 0.70710677, %v5734_v5  ;;  %v5758_v33 = vadd.f32 %v7945_v7, %v7854_v57  ;;  %v1856_v54 = vmul.f32 %v1792_v6, %v5611_v38 }
 0x262   : > { %v5760_v17 = vpop.eup %3859  ;;  %v1824_v60 = vadd.f32 -0.28449672, %v1760_v22  ;;  %v1633_v48 = vmul.f32 %v1569_v31, %v5684_v43  ;;  %3863 = vrcp.f32 %v5739_v0  ;;  %v5770_v56 = vsel %vm929_vm15, -1.0, %v7817_v62 }
 0x263   : > { %7944 = vst [vmem:[#allocation68_spill] sm:$0xff] %v5754_v40  ;;  %7946 = vst [vmem:[#allocation53_spill] sm:$0xff] %v5758_v33  ;;  %v5765_v9 = vpop.eup %3861  ;;  %v2145_v45 = vmul.f32 %v2081_v4, %v5526_v35  ;;  %v1538_v7 = vadd.f32 -1.4531521, %v1474_v53  ;;  %v5774_v36 = vand.u32 2147483647, %v5745_v1  ;;  %v2303_v6 = vmul.f32 %v5647_v8, %v1983_v16 }
 0x264   : > { %v1793_v22 = vadd.f32 -0.28449672, %v1729_v44  ;;  %v2114_v31 = vmul.f32 %v2050_v21, %v5551_v34  ;;  %v1506_v58 = vmul.f32 1.0614054, %v5750_v46  ;;  %v5782_v55 = vsel %vm898_vm0, -1.0, %v7817_v62  ;;  %v7949_v21 = vld [vmem:[#allocation55_spill] sm:$0xff] }
 0x265   : > { %7947 = vst [vmem:[#allocation69_spill] sm:$0xff] %v5782_v55  ;;  %v1347_v63 = vsub.f32 2.0, %v1283_v42  ;;  %v5785_v11 = vand.u32 2147483647, %v5754_v40  ;;  %v5788_v35 = vmul.f32 0.70710677, %v5758_v33  ;;  %v2015_v4 = vmul.f32 %v1951_v18, %v5590_v41 }
 0x266   : > { %v1920_v8 = vadd.f32 0.2548296, %v1856_v54  ;;  %v1888_v53 = vmul.f32 %v1824_v60, %v5637_v51  ;;  %v1697_v34 = vadd.f32 1.4214138, %v1633_v48  ;;  %v2256_v16 = vmul.f32 1.442695, %v2145_v45 }
 0x267   : > { %7948 = vst [vmem:[#allocation70_spill] sm:$0xff] %v5788_v35  ;;  %v1602_v44 = vmul.f32 %v1538_v7, %v5718_v15  ;;  %v1092_v59 = vmul.f32 0.3275911, %v5774_v36  ;;  %v5796_v42 = vadd.f32 %v7949_v21, %v7854_v57  ;;  %v2367_v40 = vsub.f32 1.0, %v2303_v6  ;;  %v5809_v21 = vpop.f32.mrb[28].mxu1 }
 0x268   : > { %v1857_v55 = vmul.f32 %v1793_v22, %v5642_v10  ;;  %v2194_v33 = vmul.f32 1.442695, %v2114_v31  ;;  %vm930_vm1 = vcmp.lt.f32.partialorder %v5556_v28, 0.0  ;;  %v1570_v41 = vadd.f32 -1.4531521, %v1506_v58  ;;  %7950 = vst [vmem:[#allocation55_spill] sm:$0xff] %v5809_v21 }
 0x269   : > { %v5800_v18 = vmul.f32 %v3856_v37, %v1347_v63  ;;  %v1124_v54 = vmul.f32 0.3275911, %v5785_v11  ;;  %v5804_v60 = vand.u32 2147483647, %v5788_v35  ;;  %v2335_v48 = vmul.f32 %v5702_v23, %v2015_v4  ;;  %v5816_v37 = vpop.f32.mrb[29].mxu1 }
 0x26a   : > { %v1984_v45 = vmul.f32 %v1920_v8, %v5611_v38  ;;  %v1952_v7 = vadd.f32 0.2548296, %v1888_v53  ;;  %v1761_v6 = vmul.f32 %v1697_v34, %v5684_v43  ;;  %3865 = vpow2.f32 %v2256_v16  ;;  %7951 = vst [vmem:[#allocation71_spill] sm:$0xff] %v5816_v37 }
 0x26b   : > { %v1666_v22 = vadd.f32 1.4214138, %v1602_v44  ;;  %v5811_v31 = vadd.f32 1.0, %v1092_v59  ;;  %v5814_v58 = vmul.f32 0.70710677, %v5796_v42  ;;  %v2431_v35 = vmul.f32 %v2367_v40, %v5568_v14 }
 0x26c   : > { %v3864_v63 = vpop.eup %3863  ;;  %v1921_v23 = vadd.f32 0.2548296, %v1857_v55  ;;  %3867 = vpow2.f32 %v2194_v33  ;;  %v2082_v38 = vsub.f32 0.0, %v5581_v39  ;;  %v1634_v4 = vmul.f32 %v1570_v41, %v5750_v46 }
 0x26d   : > { %v1475_v8 = vmul.f32 1.0614054, %v5800_v18  ;;  %v5822_v53 = vadd.f32 1.0, %v1124_v54  ;;  %v1093_v34 = vmul.f32 0.3275911, %v5804_v60  ;;  %v2399_v16 = vsub.f32 1.0, %v2335_v48 }
 0x26e   : > { %v2304_v44 = vmul.f32 %v3858_v29, %v1984_v45  ;;  %v2016_v59 = vmul.f32 %v1952_v7, %v5637_v51  ;;  %v1825_v37 = vadd.f32 -0.28449672, %v1761_v6  ;;  %v1730_v21 = vmul.f32 %v1666_v22, %v5718_v15 }
 0x26f   : > { %v1315_v14 = vmul.f32 %v3864_v63, %v5739_v0  ;;  %3869 = vrcp.f32 %v5811_v31  ;;  %v5830_v33 = vand.u32 2147483647, %v5814_v58  ;;  %v1985_v55 = vmul.f32 %v1921_v23, %v5642_v10 }
 0x270   : > { %v5836_v40 = vsel %vm930_vm1, -1.0, %v7817_v62  ;;  %v2146_v29 = vmul.f32 %v2082_v38, %v5581_v39  ;;  %v2051_v51 = vsub.f32 0.0, %v5624_v26  ;;  %v1698_v41 = vadd.f32 1.4214138, %v1634_v4  ;;  %v7952_v4 = vld [vmem:[#allocation11_spill] sm:$0xff] }
 0x271   : > { %v1539_v54 = vadd.f32 -1.4531521, %v1475_v8  ;;  %3871 = vrcp.f32 %v5822_v53  ;;  %v5841_v0 = vadd.f32 1.0, %v1093_v34  ;;  %v2463_v48 = vmul.f32 %v2399_v16, %v5609_v52 }
 0x272   : > { %v2368_v45 = vsub.f32 1.0, %v2304_v44  ;;  %v2336_v10 = vmul.f32 %v5760_v17, %v2016_v59  ;;  %v1889_v7 = vmul.f32 %v1825_v37, %v5684_v43  ;;  %v2495_v28 = vadd.f32 1.0, %v2431_v35 }
 0x273   : > { %v1794_v6 = vadd.f32 -0.28449672, %v1730_v21  ;;  %v1379_v22 = vsub.f32 2.0, %v1315_v14  ;;  %v1125_v39 = vmul.f32 0.3275911, %v5830_v33  ;;  %v2305_v23 = vmul.f32 %v5765_v9, %v1985_v55 }
 0x274   : > { %v2258_v38 = vmul.f32 1.442695, %v2146_v29  ;;  %vm899_vm2 = vcmp.lt.f32.partialorder %v5604_v27, 0.0  ;;  %v5851_v8 = vadd.f32 %v7952_v4, %v4482_v30  ;;  %v3866_v52 = vpop.eup %3865  ;;  %v1762_v34 = vmul.f32 %v1698_v41, %v5750_v46 }
 0x275   : > { %v1603_v17 = vmul.f32 %v1539_v54, %v5800_v18  ;;  %v2115_v35 = vmul.f32 %v2051_v51, %v5624_v26  ;;  %3873 = vrcp.f32 %v5841_v0  ;;  %v2527_v37 = vadd.f32 1.0, %v2463_v48 }
 0x276   : > { %v3868_v21 = vpop.eup %3867  ;;  %v2432_v9 = vmul.f32 %v2368_v45, %v5631_v50  ;;  %v2400_v16 = vsub.f32 1.0, %v2336_v10  ;;  %v1953_v44 = vadd.f32 0.2548296, %v1889_v7  ;;  %v5859_v59 = vmul.f32 %v2495_v28, %v5548_v2 }
 0x277   : > { %v1858_v14 = vmul.f32 %v1794_v6, %v5718_v15  ;;  %v5862_v55 = vmul.f32 %v3864_v63, %v1379_v22  ;;  %v5864_v29 = vadd.f32 1.0, %v1125_v39  ;;  %v2369_v41 = vsub.f32 1.0, %v2305_v23 }
 0x278   : > { %7953 = vst [vmem:[#allocation11_spill] sm:$0xff] %v5859_v59  ;;  %v5867_v26 = vmul.f32 0.5, %v5587_v19  ;;  %v5872_v51 = vsel %vm899_vm2, -1.0, %v7817_v62  ;;  %v5875_v50 = vmul.f32 0.70710677, %v5851_v8  ;;  %3875 = vpow2.f32 %v2258_v38  ;;  %v7955_v38 = vld [vmem:[#allocation35_spill] sm:$0xff] }
 0x279   : > { %v3870_v2 = vpop.eup %3869  ;;  %v1826_v54 = vadd.f32 -0.28449672, %v1762_v34  ;;  %v1667_v48 = vadd.f32 1.4214138, %v1603_v17  ;;  %v2196_v63 = vmul.f32 1.442695, %v2115_v35  ;;  %v5878_v45 = vmul.f32 %v2527_v37, %v5578_v3 }
 0x27a   : > { %v2496_v10 = vadd.f32 1.0, %v2432_v9  ;;  %v2464_v19 = vmul.f32 %v2400_v16, %v5676_v32  ;;  %v2017_v7 = vmul.f32 %v1953_v44, %v5684_v43  ;;  %v1922_v27 = vadd.f32 0.2548296, %v1858_v14 }
 0x27b   : > { %7954 = vst [vmem:[#allocation72_spill] sm:$0xff] %v5878_v45  ;;  %v3872_v28 = vpop.eup %3871  ;;  %v1507_v6 = vmul.f32 1.0614054, %v5862_v55  ;;  %v2083_v22 = vsub.f32 0.0, %v5687_v20  ;;  %3877 = vrcp.f32 %v5864_v29  ;;  %v2433_v39 = vmul.f32 %v2369_v41, %v5695_v25 }
 0x27c   : > { %v1284_v23 = vmul.f32 %v3870_v2, %v5811_v31  ;;  %v5888_v3 = vand.u32 2147483647, %v5875_v50  ;;  %v5892_v32 = vadd.f32 %v7955_v38, %v4482_v30  ;;  %v1890_v43 = vmul.f32 %v1826_v54, %v5750_v46  ;;  %v5901_v31 = vpop.f32.mrb[30].mxu1 }
 0x27d   : > { %v1731_v4 = vmul.f32 %v1667_v48, %v5800_v18  ;;  %3879 = vpow2.f32 %v2196_v63  ;;  %v5897_v34 = vmul.f32 0.5, %v5653_v12  ;;  %v2528_v17 = vadd.f32 1.0, %v2464_v19  ;;  %7956 = vst [vmem:[#allocation35_spill] sm:$0xff] %v5901_v31  ;;  %v5908_v41 = vpop.f32.mrb[31].mxu1 }
 0x27e   : > { %v2337_v35 = vmul.f32 %v3866_v52, %v2017_v7  ;;  %vm931_vm3 = vcmp.lt.f32.partialorder %v5671_v49, 0.0  ;;  %v1316_v25 = vmul.f32 %v3872_v28, %v5822_v53  ;;  %v5904_v9 = vmul.f32 %v2496_v10, %v5621_v47  ;;  %7958 = vst [vmem:[#allocation74_spill] sm:$0xff] %v5908_v41 }
 0x27f   : > { %v3874_v37 = vpop.eup %3873  ;;  %v1986_v16 = vmul.f32 %v1922_v27, %v5718_v15  ;;  %v1571_v44 = vadd.f32 -1.4531521, %v1507_v6  ;;  %v2147_v14 = vmul.f32 %v2083_v22, %v5687_v20  ;;  %v2497_v12 = vadd.f32 1.0, %v2433_v39 }
 0x280   : > { %7957 = vst [vmem:[#allocation73_spill] sm:$0xff] %v5904_v9  ;;  %v1348_v54 = vsub.f32 2.0, %v1284_v23  ;;  %v1094_v52 = vmul.f32 0.3275911, %v5888_v3  ;;  %v5912_v49 = vmul.f32 0.70710677, %v5892_v32  ;;  %v5921_v15 = vmul.f32 %v2528_v17, %v5635_v24 }
 0x281   : > { %v1954_v53 = vadd.f32 0.2548296, %v1890_v43  ;;  %v1795_v48 = vadd.f32 -0.28449672, %v1731_v4  ;;  %v5915_v63 = vsel %vm931_vm3, -1.0, %v7817_v62  ;;  %v5918_v47 = vmul.f32 0.5, %v5722_v13 }
 0x282   : > { %7959 = vst [vmem:[#allocation75_spill] sm:$0xff] %v5921_v15  ;;  %v2401_v20 = vsub.f32 1.0, %v2337_v35  ;;  %v1380_v10 = vsub.f32 2.0, %v1316_v25  ;;  %v1285_v19 = vmul.f32 %v3874_v37, %v5841_v0  ;;  %v3876_v7 = vpop.eup %3875  ;;  %v2306_v27 = vmul.f32 %v3868_v21, %v1986_v16  ;;  %v7961_v4 = vld [vmem:[#allocation43_spill] sm:$0xff]  ;;  %v7967_v15 = vld [vmem:[#allocation66_spill] sm:$0xff] }
 0x283   : > { %v1635_v6 = vmul.f32 %v1571_v44, %v5862_v55  ;;  %v2260_v22 = vmul.f32 1.442695, %v2147_v14  ;;  %vm900_vm4 = vcmp.lt.f32.partialorder %v5745_v1, 0.0  ;;  %v5927_v39 = vmul.f32 %v2497_v12, %v5690_v61 }
 0x284   : > { %v5929_v23 = vmul.f32 %v3870_v2, %v1348_v54  ;;  %v5931_v13 = vadd.f32 1.0, %v1094_v52  ;;  %v5934_v24 = vand.u32 2147483647, %v5912_v49  ;;  %v2018_v0 = vmul.f32 %v1954_v53, %v5750_v46 }
 0x285   : > { %7960 = vst [vmem:[#allocation76_spill] sm:$0xff] %v5927_v39  ;;  %v3878_v38 = vpop.eup %3877  ;;  %v1859_v21 = vmul.f32 %v1795_v48, %v5800_v18  ;;  %v2052_v43 = vsub.f32 0.0, %v5774_v36  ;;  %v5941_v1 = vadd.f32 %v7961_v4, %v7854_v57  ;;  %v2465_v61 = vmul.f32 %v2401_v20, %v5770_v56 }
 0x286   : > { %v5945_v2 = vsel %vm900_vm4, -1.0, %v7817_v62  ;;  %v5947_v17 = vmul.f32 %v3872_v28, %v1380_v10  ;;  %v1349_v35 = vsub.f32 2.0, %v1285_v19  ;;  %v2370_v16 = vsub.f32 1.0, %v2306_v27 }
 0x287   : > { %v3880_v25 = vpop.eup %3879  ;;  %v1699_v44 = vadd.f32 1.4214138, %v1635_v6  ;;  %3881 = vpow2.f32 %v2260_v22  ;;  %v5950_v46 = vmul.f32 0.5, %v5734_v5  ;;  %v1476_v14 = vmul.f32 1.0614054, %v5929_v23  ;;  %v7962_v5 = vld [vmem:[#allocation53_spill] sm:$0xff] }
 0x288   : > { %v1317_v12 = vmul.f32 %v3878_v38, %v5864_v29  ;;  %3883 = vrcp.f32 %v5931_v13  ;;  %v1126_v56 = vmul.f32 0.3275911, %v5934_v24  ;;  %v2338_v54 = vmul.f32 %v3876_v7, %v2018_v0  ;;  %v7963_v29 = vld [vmem:[#allocation69_spill] sm:$0xff]  ;;  %v7964_v6 = vld [vmem:[#allocation68_spill] sm:$0xff] }
 0x289   : > { %v1923_v52 = vadd.f32 0.2548296, %v1859_v21  ;;  %v2116_v28 = vmul.f32 %v2052_v43, %v5774_v36  ;;  %v5958_v53 = vmul.f32 0.70710677, %v5941_v1  ;;  %v2529_v48 = vadd.f32 1.0, %v2465_v61 }
 0x28a   : > { %v1508_v20 = vmul.f32 1.0614054, %v5947_v17  ;;  %v5962_v10 = vmul.f32 0.5, %v7962_v5  ;;  %v5964_v19 = vmul.f32 %v3874_v37, %v1349_v35  ;;  %v2434_v27 = vmul.f32 %v2370_v16, %v7963_v29 }
 0x28b   : > { %vm932_vm5 = vcmp.lt.f32.partialorder %v7964_v6, 0.0  ;;  %v2084_v7 = vsub.f32 0.0, %v5785_v11  ;;  %v2053_v22 = vsub.f32 0.0, %v5804_v60  ;;  %v1763_v36 = vmul.f32 %v1699_v44, %v5862_v55  ;;  %v7965_v6 = vld [vmem:[#allocation48_spill] sm:$0xff] }
 0x28c   : > { %v1540_v0 = vadd.f32 -1.4531521, %v1476_v14  ;;  %v1381_v21 = vsub.f32 2.0, %v1317_v12  ;;  %v5971_v43 = vadd.f32 1.0, %v1126_v56  ;;  %v2402_v4 = vsub.f32 1.0, %v2338_v54  ;;  %v7966_v56 = vld [vmem:[#allocation70_spill] sm:$0xff] }
 0x28d   : > { %v1987_v61 = vmul.f32 %v1923_v52, %v5800_v18  ;;  %v2198_v5 = vmul.f32 1.442695, %v2116_v28  ;;  %v5975_v37 = vand.u32 2147483647, %v5958_v53  ;;  %v5978_v35 = vsel %vm932_vm5, -1.0, %v7817_v62 }
 0x28e   : > { %v1572_v16 = vadd.f32 -1.4531521, %v1508_v20  ;;  %v1477_v29 = vmul.f32 1.0614054, %v5964_v19  ;;  %v5983_v44 = vadd.f32 %v7965_v6, %v7854_v57  ;;  %v2498_v14 = vadd.f32 1.0, %v2434_v27 }
 0x28f   : > { %v2148_v12 = vmul.f32 %v2084_v7, %v5785_v11  ;;  %vm901_vm6 = vcmp.lt.f32.partialorder %v7966_v56, 0.0  ;;  %v2117_v18 = vmul.f32 %v2053_v22, %v5804_v60  ;;  %v1827_v54 = vadd.f32 -0.28449672, %v1763_v36  ;;  %v7969_v36 = vld [vmem:[#allocation67_spill] sm:$0xff] }
 0x290   : > { %v1604_v52 = vmul.f32 %v1540_v0, %v5929_v23  ;;  %v5989_v28 = vmul.f32 %v3878_v38, %v1381_v21  ;;  %3885 = vrcp.f32 %v5971_v43  ;;  %v5995_v45 = vmul.f32 %v2529_v48, %v7967_v15 }
 0x291   : > { %v5992_v20 = vpop.eup %3881  ;;  %v2466_v27 = vmul.f32 %v2402_v4, %v5836_v40  ;;  %v2307_v6 = vmul.f32 %v3880_v25, %v1987_v61  ;;  %v1095_v11 = vmul.f32 0.3275911, %v5975_v37  ;;  %3887 = vpow2.f32 %v2198_v5 }
 0x292   : > { %7968 = vst [vmem:[#allocation43_spill] sm:$0xff] %v5995_v45  ;;  %v3884_v7 = vpop.eup %3883  ;;  %v1636_v60 = vmul.f32 %v1572_v16, %v5947_v17  ;;  %v1541_v22 = vadd.f32 -1.4531521, %v1477_v29  ;;  %v6001_v38 = vmul.f32 0.70710677, %v5983_v44  ;;  %v6004_v0 = vmul.f32 %v2498_v14, %v7969_v36 }
 0x293   : > { %v2262_v21 = vmul.f32 1.442695, %v2148_v12  ;;  %v6009_v15 = vsel %vm901_vm6, -1.0, %v7817_v62  ;;  %v2085_v40 = vsub.f32 0.0, %v5830_v33  ;;  %v1891_v25 = vmul.f32 %v1827_v54, %v5862_v55 }
 0x294   : > { %7970 = vst [vmem:[#allocation53_spill] sm:$0xff] %v6004_v0  ;;  %v1668_v48 = vadd.f32 1.4214138, %v1604_v52  ;;  %v2200_v4 = vmul.f32 1.442695, %v2117_v18  ;;  %v2530_v5 = vadd.f32 1.0, %v2466_v27  ;;  %v1286_v29 = vmul.f32 %v3884_v7, %v5931_v13 }
 0x295   : > { %v1509_v61 = vmul.f32 1.0614054, %v5989_v28  ;;  %v2371_v16 = vsub.f32 1.0, %v2307_v6  ;;  %v6015_v14 = vadd.f32 1.0, %v1095_v11  ;;  %v1700_v12 = vadd.f32 1.4214138, %v1636_v60 }
 0x296   : > { %v1605_v36 = vmul.f32 %v1541_v22, %v5964_v19  ;;  %v6019_v56 = vand.u32 2147483647, %v6001_v38  ;;  %v7971_v0 = vld [vmem:[#allocation14_spill] sm:$0xff]  ;;  %3889 = vpow2.f32 %v2262_v21  ;;  %v6026_v18 = vmul.f32 0.5, %v5796_v42  ;;  %v7972_v6 = vld [vmem:[#allocation28_spill] sm:$0xff] }
 0x297   : > { %v6023_v45 = vadd.f32 %v7971_v0, %v4482_v30  ;;  %vm933_vm7 = vcmp.lt.f32.partialorder %v5814_v58, 0.0  ;;  %v2149_v13 = vmul.f32 %v2085_v40, %v5830_v33  ;;  %v1955_v54 = vadd.f32 0.2548296, %v1891_v25 }
 0x298   : > { %v1732_v52 = vmul.f32 %v1668_v48, %v5929_v23  ;;  %3891 = vpow2.f32 %v2200_v4  ;;  %v1573_v27 = vadd.f32 -1.4531521, %v1509_v61  ;;  %v6032_v11 = vmul.f32 %v2530_v5, %v7972_v6 }
 0x299   : > { %v2435_v60 = vmul.f32 %v2371_v16, %v5872_v51  ;;  %v1350_v22 = vsub.f32 2.0, %v1286_v29  ;;  %3893 = vrcp.f32 %v6015_v14  ;;  %v1764_v42 = vmul.f32 %v1700_v12, %v5947_v17 }
 0x29a   : > { %7973 = vst [vmem:[#allocation69_spill] sm:$0xff] %v6032_v11  ;;  %v3886_v0 = vpop.eup %3885  ;;  %v1669_v21 = vadd.f32 1.4214138, %v1605_v36  ;;  %v1127_v58 = vmul.f32 0.3275911, %v6019_v56  ;;  %v6042_v40 = vsel %vm933_vm7, -1.0, %v7817_v62  ;;  %v2019_v61 = vmul.f32 %v1955_v54, %v5862_v55 }
 0x29b   : > { %v6039_v33 = vmul.f32 0.70710677, %v6023_v45  ;;  %v2264_v25 = vmul.f32 1.442695, %v2149_v13  ;;  %v6045_v48 = vmul.f32 0.5, %v5851_v8  ;;  %v6048_v51 = vmul.f32 0.5, %v5892_v32  ;;  %v6050_v4 = vpop.eup %3887 }
 0x29c   : > { %v1796_v5 = vadd.f32 -0.28449672, %v1732_v52  ;;  %v1637_v16 = vmul.f32 %v1573_v27, %v5989_v28  ;;  %vm902_vm8 = vcmp.lt.f32.partialorder %v5875_v50, 0.0  ;;  %v2499_v29 = vadd.f32 1.0, %v2435_v60  ;;  %v7976_v50 = vld [vmem:[#allocation44_spill] sm:$0xff] }
 0x29d   : > { %7974 = vst [vmem:[#allocation68_spill] sm:$0xff] %v6045_v48  ;;  %7975 = vst [vmem:[#allocation48_spill] sm:$0xff] %v6048_v51  ;;  %v6055_v12 = vmul.f32 %v3884_v7, %v1350_v22  ;;  %v2054_v36 = vsub.f32 0.0, %v5888_v3  ;;  %v1318_v8 = vmul.f32 %v3886_v0, %v5971_v43  ;;  %v1828_v13 = vadd.f32 -0.28449672, %v1764_v42 }
 0x29e   : > { %v1733_v32 = vmul.f32 %v1669_v21, %v5964_v19  ;;  %v6060_v6 = vadd.f32 1.0, %v1127_v58  ;;  %v6063_v11 = vand.u32 2147483647, %v6039_v33  ;;  %3895 = vpow2.f32 %v2264_v25  ;;  %v7977_v58 = vld [vmem:[#allocation17_spill] sm:$0xff] }
 0x29f   : > { %v6066_v55 = vsel %vm902_vm8, -1.0, %v7817_v62  ;;  %vm934_vm9 = vcmp.lt.f32.partialorder %v5912_v49, 0.0  ;;  %v6071_v7 = vadd.f32 %v7976_v50, %v4482_v30  ;;  %v2339_v43 = vmul.f32 %v5992_v20, %v2019_v61 }
 0x2a0   : > { %v1860_v54 = vmul.f32 %v1796_v5, %v5929_v23  ;;  %v1701_v52 = vadd.f32 1.4214138, %v1637_v16  ;;  %v2086_v27 = vsub.f32 0.0, %v5934_v24  ;;  %v3890_v60 = vpop.eup %3889  ;;  %v1478_v22 = vmul.f32 1.0614054, %v6055_v12 }
 0x2a1   : > { %v2118_v42 = vmul.f32 %v2054_v36, %v5888_v3  ;;  %v1382_v21 = vsub.f32 2.0, %v1318_v8  ;;  %v6080_v25 = vadd.f32 %v7977_v58, %v7854_v57  ;;  %v1892_v50 = vmul.f32 %v1828_v13, %v5947_v17  ;;  %v7979_v8 = vld [vmem:[#allocation59_spill] sm:$0xff] }
 0x2a2   : > { %v6082_v39 = vpop.eup %3891  ;;  %v1797_v20 = vadd.f32 -0.28449672, %v1733_v32  ;;  %3897 = vrcp.f32 %v6060_v6  ;;  %v1096_v61 = vmul.f32 0.3275911, %v6063_v11  ;;  %v6088_v16 = vmul.f32 %v2499_v29, %v5867_v26 }
 0x2a3   : > { %v3894_v5 = vpop.eup %3893  ;;  %v6093_v3 = vsel %vm934_vm9, -1.0, %v7817_v62  ;;  %v6096_v36 = vmul.f32 0.70710677, %v6071_v7  ;;  %v6100_v13 = vadd.f32 %v7979_v8, %v7854_v57  ;;  %v2403_v32 = vsub.f32 1.0, %v2339_v43 }
 0x2a4   : > { %7978 = vst [vmem:[#allocation70_spill] sm:$0xff] %v6088_v16  ;;  %v1924_v58 = vadd.f32 0.2548296, %v1860_v54  ;;  %v1765_v9 = vmul.f32 %v1701_v52, %v5989_v28  ;;  %v2150_v59 = vmul.f32 %v2086_v27, %v5934_v24  ;;  %v1542_v26 = vadd.f32 -1.4531521, %v1478_v22 }
 0x2a5   : > { %v2202_v29 = vmul.f32 1.442695, %v2118_v42  ;;  %v6104_v16 = vmul.f32 %v3886_v0, %v1382_v21  ;;  %v6107_v49 = vmul.f32 0.70710677, %v6080_v25  ;;  %v1956_v41 = vadd.f32 0.2548296, %v1892_v50 }
 0x2a6   : > { %v1861_v31 = vmul.f32 %v1797_v20, %v5964_v19  ;;  %v1287_v51 = vmul.f32 %v3894_v5, %v6015_v14  ;;  %v6111_v8 = vadd.f32 1.0, %v1096_v61  ;;  %v6114_v43 = vmul.f32 0.5, %v5941_v1  ;;  %v7982_v0 = vld [vmem:[#allocation40_spill] sm:$0xff] }
 0x2a7   : > { %v6117_v54 = vand.u32 2147483647, %v6096_v36  ;;  %v6120_v24 = vmul.f32 0.70710677, %v6100_v13  ;;  %v6124_v52 = vadd.f32 %v7982_v0, %v4482_v30  ;;  %v2467_v27 = vmul.f32 %v2403_v32, %v5915_v63 }
 0x2a8   : > { %7980 = vst [vmem:[#allocation66_spill] sm:$0xff] %v6114_v43  ;;  %v1988_v22 = vmul.f32 %v1924_v58, %v5929_v23  ;;  %v1829_v14 = vadd.f32 -0.28449672, %v1765_v9  ;;  %v2266_v42 = vmul.f32 1.442695, %v2150_v59  ;;  %v6128_v21 = vpop.eup %3895  ;;  %v1606_v1 = vmul.f32 %v1542_v26, %v6055_v12 }
 0x2a9   : > { %7981 = vst [vmem:[#allocation67_spill] sm:$0xff] %v6120_v24  ;;  %7983 = vst [vmem:[#allocation14_spill] sm:$0xff] %v6124_v52  ;;  %v1510_v50 = vmul.f32 1.0614054, %v6104_v16  ;;  %vm903_vm10 = vcmp.lt.f32.partialorder %v5958_v53, 0.0  ;;  %v2020_v61 = vmul.f32 %v1956_v41, %v5947_v17  ;;  %v1351_v43 = vsub.f32 2.0, %v1287_v51 }
 0x2aa   : > { %v6134_v20 = vand.u32 2147483647, %v6107_v49  ;;  %v1925_v0 = vadd.f32 0.2548296, %v1861_v31  ;;  %3899 = vrcp.f32 %v6111_v8  ;;  %v1128_v59 = vmul.f32 0.3275911, %v6117_v54 }
 0x2ab   : > { %3901 = vpow2.f32 %v2202_v29  ;;  %v6140_v9 = vand.u32 2147483647, %v6120_v24  ;;  %v6143_v63 = vmul.f32 0.70710677, %v6124_v52  ;;  %v2531_v32 = vadd.f32 1.0, %v2467_v27  ;;  %v7984_v31 = vld [vmem:[#allocation41_spill] sm:$0xff] }
 0x2ac   : > { %v3898_v23 = vpop.eup %3897  ;;  %v2308_v58 = vmul.f32 %v6050_v4, %v1988_v22  ;;  %v1893_v26 = vmul.f32 %v1829_v14, %v5989_v28  ;;  %v6149_v41 = vadd.f32 %v7984_v31, %v4482_v30  ;;  %v1670_v17 = vadd.f32 1.4214138, %v1606_v1 }
 0x2ad   : > { %v1574_v51 = vadd.f32 -1.4531521, %v1510_v50  ;;  %3903 = vpow2.f32 %v2266_v42  ;;  %v1097_v29 = vmul.f32 0.3275911, %v6134_v20  ;;  %v2340_v48 = vmul.f32 %v3890_v60, %v2020_v61 }
 0x2ae   : > { %v1989_v24 = vmul.f32 %v1925_v0, %v5964_v19  ;;  %v6153_v52 = vmul.f32 %v3894_v5, %v1351_v43  ;;  %v2055_v27 = vsub.f32 0.0, %v5975_v37  ;;  %v1319_v4 = vmul.f32 %v3898_v23, %v6060_v6 }
 0x2af   : > { %v6157_v22 = vadd.f32 1.0, %v1128_v59  ;;  %v1129_v14 = vmul.f32 0.3275911, %v6140_v9  ;;  %v6161_v31 = vand.u32 2147483647, %v6143_v63  ;;  %v2372_v1 = vsub.f32 1.0, %v2308_v58 }
 0x2b0   : > { %v1957_v42 = vadd.f32 0.2548296, %v1893_v26  ;;  %v6166_v60 = vsel %vm903_vm10, -1.0, %v7817_v62  ;;  %v6169_v19 = vmul.f32 0.70710677, %v6149_v41  ;;  %v6172_v5 = vmul.f32 %v2531_v32, %v5897_v34 }
 0x2b1   : > { %v1734_v6 = vmul.f32 %v1670_v17, %v6055_v12  ;;  %v1638_v43 = vmul.f32 %v1574_v51, %v6104_v16  ;;  %v6176_v50 = vadd.f32 1.0, %v1097_v29  ;;  %v2404_v61 = vsub.f32 1.0, %v2340_v48 }
 0x2b2   : > { %7985 = vst [vmem:[#allocation28_spill] sm:$0xff] %v6172_v5  ;;  %v2309_v0 = vmul.f32 %v6082_v39, %v1989_v24  ;;  %v1479_v59 = vmul.f32 1.0614054, %v6153_v52  ;;  %v2119_v53 = vmul.f32 %v2055_v27, %v5975_v37  ;;  %v1383_v58 = vsub.f32 2.0, %v1319_v4 }
 0x2b3   : > { %3905 = vrcp.f32 %v6157_v22  ;;  %v6182_v26 = vadd.f32 1.0, %v1129_v14  ;;  %v1098_v34 = vmul.f32 0.3275911, %v6161_v31  ;;  %v2436_v17 = vmul.f32 %v2372_v1, %v5945_v2 }
 0x2b4   : > { %v3900_v32 = vpop.eup %3899  ;;  %v2021_v51 = vmul.f32 %v1957_v42, %v5989_v28  ;;  %v6188_v48 = vmul.f32 0.5, %v5983_v44  ;;  %v6191_v39 = vand.u32 2147483647, %v6169_v19  ;;  %v1798_v37 = vadd.f32 -0.28449672, %v1734_v6  ;;  %v7987_v28 = vld [vmem:[#allocation12_spill] sm:$0xff] }
 0x2b5   : > { %v6193_v24 = vpop.eup %3901  ;;  %v1702_v29 = vadd.f32 1.4214138, %v1638_v43  ;;  %v2087_v27 = vsub.f32 0.0, %v6019_v56  ;;  %3907 = vrcp.f32 %v6176_v50  ;;  %v2468_v4 = vmul.f32 %v2404_v61, %v5978_v35 }
 0x2b6   : > { %7986 = vst [vmem:[#allocation44_spill] sm:$0xff] %v6188_v48  ;;  %v2373_v14 = vsub.f32 1.0, %v2309_v0  ;;  %v1543_v2 = vadd.f32 -1.4531521, %v1479_v59  ;;  %v6200_v1 = vadd.f32 %v7987_v28, %v7854_v57  ;;  %v6204_v42 = vmul.f32 %v3898_v23, %v1383_v58 }
 0x2b7   : > { %v6202_v44 = vpop.eup %3903  ;;  %v1288_v5 = vmul.f32 %v3900_v32, %v6111_v8  ;;  %3909 = vrcp.f32 %v6182_v26  ;;  %v6208_v6 = vadd.f32 1.0, %v1098_v34  ;;  %v2341_v43 = vmul.f32 %v6128_v21, %v2021_v51 }
 0x2b8   : > { %7988 = vst [vmem:[#allocation17_spill] sm:$0xff] %v6200_v1  ;;  %v2204_v48 = vmul.f32 1.442695, %v2119_v53  ;;  %vm935_vm11 = vcmp.lt.f32.partialorder %v6001_v38, 0.0  ;;  %v1130_v35 = vmul.f32 0.3275911, %v6191_v39  ;;  %v1862_v61 = vmul.f32 %v1798_v37, %v6055_v12 }
 0x2b9   : > { %v1766_v0 = vmul.f32 %v1702_v29, %v6104_v16  ;;  %v2151_v23 = vmul.f32 %v2087_v27, %v6019_v56  ;;  %v2056_v59 = vsub.f32 0.0, %v6063_v11  ;;  %v2500_v8 = vadd.f32 1.0, %v2436_v17 }
 0x2ba   : > { %v2532_v58 = vadd.f32 1.0, %v2468_v4  ;;  %v1607_v34 = vmul.f32 %v1543_v2, %v6153_v52  ;;  %v6219_v28 = vmul.f32 0.70710677, %v6200_v1  ;;  %v2437_v21 = vmul.f32 %v2373_v14, %v6009_v15 }
 0x2bb   : > { %v1511_v53 = vmul.f32 1.0614054, %v6204_v42  ;;  %v1352_v51 = vsub.f32 2.0, %v1288_v5  ;;  %3911 = vrcp.f32 %v6208_v6  ;;  %v2405_v37 = vsub.f32 1.0, %v2341_v43 }
 0x2bc   : > { %3913 = vpow2.f32 %v2204_v48  ;;  %v6227_v56 = vsel %vm935_vm11, -1.0, %v7817_v62  ;;  %v6229_v17 = vadd.f32 1.0, %v1130_v35  ;;  %v1926_v27 = vadd.f32 0.2548296, %v1862_v61 }
 0x2bd   : > { %v3906_v29 = vpop.eup %3905  ;;  %v1830_v4 = vadd.f32 -0.28449672, %v1766_v0  ;;  %v2268_v2 = vmul.f32 1.442695, %v2151_v23  ;;  %v2120_v15 = vmul.f32 %v2056_v59, %v6063_v11  ;;  %v6233_v14 = vmul.f32 %v2500_v8, %v5918_v47 }
 0x2be   : > { %v1671_v5 = vadd.f32 1.4214138, %v1607_v34  ;;  %v6236_v43 = vmul.f32 0.5, %v6023_v45  ;;  %v6239_v48 = vand.u32 2147483647, %v6219_v28  ;;  %v6242_v35 = vmul.f32 %v2532_v58, %v5950_v46 }
 0x2bf   : > { %7989 = vst [vmem:[#allocation59_spill] sm:$0xff] %v6233_v14  ;;  %v3908_v38 = vpop.eup %3907  ;;  %v2501_v1 = vadd.f32 1.0, %v2437_v21  ;;  %v1575_v61 = vadd.f32 -1.4531521, %v1511_v53  ;;  %v6244_v0 = vmul.f32 %v3900_v32, %v1352_v51  ;;  %v2469_v11 = vmul.f32 %v2405_v37, %v6042_v40 }
 0x2c0   : > { %7990 = vst [vmem:[#allocation40_spill] sm:$0xff] %v6242_v35  ;;  %vm904_vm12 = vcmp.lt.f32.partialorder %v6039_v33, 0.0  ;;  %v1320_v47 = vmul.f32 %v3906_v29, %v6157_v22  ;;  %3915 = vrcp.f32 %v6229_v17  ;;  %v1990_v23 = vmul.f32 %v1926_v27, %v6055_v12 }
 0x2c1   : > { %v3910_v45 = vpop.eup %3909  ;;  %v1894_v59 = vmul.f32 %v1830_v4, %v6104_v16  ;;  %3917 = vpow2.f32 %v2268_v2  ;;  %v2206_v46 = vmul.f32 1.442695, %v2120_v15  ;;  %v1735_v8 = vmul.f32 %v1671_v5, %v6153_v52 }
 0x2c2   : > { %v6254_v32 = vmul.f32 0.5, %v6071_v7  ;;  %v1289_v40 = vmul.f32 %v3908_v38, %v6176_v50  ;;  %v1099_v33 = vmul.f32 0.3275911, %v6239_v48  ;;  %v6259_v22 = vmul.f32 %v2501_v1, %v5962_v10  ;;  %v7992_v10 = vld [vmem:[#allocation15_spill] sm:$0xff] }
 0x2c3   : > { %v1639_v58 = vmul.f32 %v1575_v61, %v6204_v42  ;;  %v6263_v12 = vsel %vm904_vm12, -1.0, %v7817_v62  ;;  %v1480_v34 = vmul.f32 1.0614054, %v6244_v0  ;;  %v2533_v21 = vadd.f32 1.0, %v2469_v11 }
 0x2c4   : > { %7991 = vst [vmem:[#allocation41_spill] sm:$0xff] %v6259_v22  ;;  %vm936_vm13 = vcmp.lt.f32.partialorder %v6096_v36, 0.0  ;;  %v1384_v53 = vsub.f32 2.0, %v1320_v47  ;;  %v1321_v7 = vmul.f32 %v3910_v45, %v6182_v26  ;;  %v2310_v50 = vmul.f32 %v6193_v24, %v1990_v23  ;;  %v7993_v24 = vld [vmem:[#allocation52_spill] sm:$0xff]  ;;  %v8002_v22 = vld [vmem:[#allocation39_spill] sm:$0xff] }
 0x2c5   : > { %v3912_v51 = vpop.eup %3911  ;;  %v1958_v37 = vadd.f32 0.2548296, %v1894_v59  ;;  %3919 = vpow2.f32 %v2206_v46  ;;  %v6271_v1 = vadd.f32 %v7992_v10, %v7854_v57  ;;  %v1799_v4 = vadd.f32 -0.28449672, %v1735_v8  ;;  %v7994_v46 = vld [vmem:[#allocation54_spill] sm:$0xff] }
 0x2c6   : > { %v6273_v27 = vpop.eup %3913  ;;  %v2088_v2 = vsub.f32 0.0, %v6117_v54  ;;  %v1353_v15 = vsub.f32 2.0, %v1289_v40  ;;  %v6276_v5 = vadd.f32 1.0, %v1099_v33  ;;  %v1703_v36 = vadd.f32 1.4214138, %v1639_v58 }
 0x2c7   : > { %v1544_v61 = vadd.f32 -1.4531521, %v1480_v34  ;;  %v6279_v26 = vsel %vm936_vm13, -1.0, %v7817_v62  ;;  %v2482_v11 = vadd.f32 1.0, %v7993_v24  ;;  %v6282_v47 = vmul.f32 %v3906_v29, %v1384_v53 }
 0x2c8   : > { %v1385_v23 = vsub.f32 2.0, %v1321_v7  ;;  %v1290_v59 = vmul.f32 %v3912_v51, %v6208_v6  ;;  %v2483_v10 = vadd.f32 1.0, %v7994_v46  ;;  %v6287_v8 = vmul.f32 %v2533_v21, %v6026_v18  ;;  %v7996_v7 = vld [vmem:[#allocation29_spill] sm:$0xff] }
 0x2c9   : > { %v2374_v40 = vsub.f32 1.0, %v2310_v50  ;;  %v2022_v33 = vmul.f32 %v1958_v37, %v6104_v16  ;;  %v6291_v58 = vmul.f32 0.70710677, %v6271_v1  ;;  %v1863_v35 = vmul.f32 %v1799_v4, %v6153_v52 }
 0x2ca   : > { %7995 = vst [vmem:[#allocation12_spill] sm:$0xff] %v6287_v8  ;;  %v3916_v34 = vpop.eup %3915  ;;  %v2152_v29 = vmul.f32 %v2088_v2, %v6117_v54  ;;  %v6295_v53 = vmul.f32 %v3908_v38, %v1353_v15  ;;  %3921 = vrcp.f32 %v6276_v5  ;;  %v1767_v18 = vmul.f32 %v1703_v36, %v6204_v42  ;;  %v7998_v38 = vld [vmem:[#allocation31_spill] sm:$0xff] }
 0x2cb   : > { %v6298_v6 = vpop.eup %3917  ;;  %v1608_v21 = vmul.f32 %v1544_v61, %v6244_v0  ;;  %v6303_v16 = vmul.f32 0.5, %v6080_v25  ;;  %v6306_v50 = vmul.f32 %v2482_v11, %v7996_v7  ;;  %v1512_v37 = vmul.f32 1.0614054, %v6282_v47  ;;  %v8000_v25 = vld [vmem:[#allocation24_spill] sm:$0xff] }
 0x2cc   : > { %v6309_v4 = vmul.f32 %v3910_v45, %v1385_v23  ;;  %v1354_v54 = vsub.f32 2.0, %v1290_v59  ;;  %v6312_v2 = vmul.f32 %v2483_v10, %v7998_v38  ;;  %v2438_v15 = vmul.f32 %v2374_v40, %v6066_v55 }
 0x2cd   : > { %7997 = vst [vmem:[#allocation15_spill] sm:$0xff] %v6306_v50  ;;  %v1322_v36 = vmul.f32 %v3916_v34, %v6229_v17  ;;  %v6317_v61 = vand.u32 2147483647, %v6291_v58  ;;  %v6321_v24 = vadd.f32 %v8000_v25, %v4482_v30  ;;  %v2342_v11 = vmul.f32 %v6202_v44, %v2022_v33  ;;  %v8001_v17 = vld [vmem:[#allocation58_spill] sm:$0xff] }
 0x2ce   : > { %7999 = vst [vmem:[#allocation52_spill] sm:$0xff] %v6312_v2  ;;  %v1927_v46 = vadd.f32 0.2548296, %v1863_v35  ;;  %v1481_v45 = vmul.f32 1.0614054, %v6295_v53  ;;  %v2610_v23 = vadd.f32 %v6312_v2, %v6306_v50  ;;  %vm905_vm14 = vcmp.lt.f32.partialorder %v6107_v49, 0.0 }
 0x2cf   : > { %v6327_v59 = vpop.eup %3919  ;;  %v1831_v55 = vadd.f32 -0.28449672, %v1767_v18  ;;  %v2270_v10 = vmul.f32 1.442695, %v2152_v29  ;;  %v2516_v40 = vadd.f32 1.0, %v8001_v17  ;;  %v6332_v8 = vmul.f32 %v3912_v51, %v1354_v54 }
 0x2d0   : > { %v1672_v7 = vadd.f32 1.4214138, %v1608_v21  ;;  %v1576_v38 = vadd.f32 -1.4531521, %v1512_v37  ;;  %v1513_v25 = vmul.f32 1.0614054, %v6309_v4  ;;  %2611 = vadd.xlane.f32.xlu0 %v2610_v23  ;;  %v1991_v29 = vmul.f32 %v1927_v46, %v6153_v52 }
 0x2d1   : > { %v1386_v44 = vsub.f32 2.0, %v1322_v36  ;;  %v1131_v35 = vmul.f32 0.3275911, %v6317_v61  ;;  %v6336_v33 = vmul.f32 0.70710677, %v6321_v24  ;;  %v2517_v18 = vadd.f32 1.0, %v8002_v22 }
 0x2d2   : > { %v1545_v14 = vadd.f32 -1.4531521, %v1481_v45  ;;  %v6341_v17 = vmul.f32 0.5, %v6100_v13  ;;  %v8003_v21 = vld [vmem:[#allocation32_spill] sm:$0xff]  ;;  %v2502_v51 = vadd.f32 1.0, %v2438_v15  ;;  %v2406_v54 = vsub.f32 1.0, %v2342_v11 }
 0x2d3   : > { %v6344_v37 = vmul.f32 %v2516_v40, %v8003_v21  ;;  %v1895_v36 = vmul.f32 %v1831_v55, %v6204_v42  ;;  %v6350_v23 = vsel %vm905_vm14, -1.0, %v7817_v62  ;;  %v1736_v22 = vmul.f32 %v1672_v7, %v6244_v0  ;;  %v8005_v46 = vld [vmem:[#allocation36_spill] sm:$0xff] }
 0x2d4   : > { %v3922_v2 = vpop.eup %3921  ;;  %v1640_v52 = vmul.f32 %v1576_v38, %v6282_v47  ;;  %v1482_v13 = vmul.f32 1.0614054, %v6332_v8  ;;  %v6356_v45 = vmul.f32 %v2517_v18, %v8005_v46  ;;  %v1577_v40 = vadd.f32 -1.4531521, %v1513_v25  ;;  %v8007_v25 = vld [vmem:[#allocation67_spill] sm:$0xff] }
 0x2d5   : > { %8004 = vst [vmem:[#allocation54_spill] sm:$0xff] %v6344_v37  ;;  %v6358_v15 = vmul.f32 %v3916_v34, %v1386_v44  ;;  %v6360_v11 = vadd.f32 1.0, %v1131_v35  ;;  %v6363_v55 = vand.u32 2147483647, %v6336_v33  ;;  %v2311_v49 = vmul.f32 %v6273_v27, %v1991_v29 }
 0x2d6   : > { %8006 = vst [vmem:[#allocation29_spill] sm:$0xff] %v6356_v45  ;;  %v1609_v21 = vmul.f32 %v1545_v14, %v6295_v53  ;;  %v2057_v7 = vsub.f32 0.0, %v6134_v20  ;;  %v2661_v38 = vadd.f32 %v6356_v45, %v6344_v37  ;;  %v2470_v18 = vmul.f32 %v2406_v54, %v6093_v3 }
 0x2d7   : > { %v1959_v46 = vadd.f32 0.2548296, %v1895_v36  ;;  %vm937_vm15 = vcmp.lt.f32.partialorder %v8007_v25, 0.0  ;;  %v1291_v34 = vmul.f32 %v3922_v2, %v6276_v5  ;;  %v1800_v44 = vadd.f32 -0.28449672, %v1736_v22  ;;  %v8008_v5 = vld [vmem:[#allocation68_spill] sm:$0xff] }
 0x2d8   : > { %v1704_v35 = vadd.f32 1.4214138, %v1640_v52  ;;  %3923 = vpow2.f32 %v2270_v10  ;;  %v1546_v50 = vadd.f32 -1.4531521, %v1482_v13  ;;  %2662 = vadd.xlane.f32.xlu1 %v2661_v38  ;;  %v1641_v27 = vmul.f32 %v1577_v40, %v6309_v4 }
 0x2d9   : > { %v1514_v14 = vmul.f32 1.0614054, %v6358_v15  ;;  %3925 = vrcp.f32 %v6360_v11  ;;  %v1100_v29 = vmul.f32 0.3275911, %v6363_v55  ;;  %v2375_v45 = vsub.f32 1.0, %v2311_v49 }
 0x2da   : > { %v1673_v3 = vadd.f32 1.4214138, %v1609_v21  ;;  %v2121_v54 = vmul.f32 %v2057_v7, %v6134_v20  ;;  %v2089_v36 = vsub.f32 0.0, %v6140_v9  ;;  %v6380_v22 = vmul.f32 %v2502_v51, %v8008_v5  ;;  %v8010_v51 = vld [vmem:[#allocation61_spill] sm:$0xff] }
 0x2db   : > { %v2534_v10 = vadd.f32 1.0, %v2470_v18  ;;  %v2023_v52 = vmul.f32 %v1959_v46, %v6204_v42  ;;  %v1355_v13 = vsub.f32 2.0, %v1291_v34  ;;  %v1864_v40 = vmul.f32 %v1800_v44, %v6244_v0 }
 0x2dc   : > { %8009 = vst [vmem:[#allocation31_spill] sm:$0xff] %v6380_v22  ;;  %v1768_v38 = vmul.f32 %v1704_v35, %v6282_v47  ;;  %v6388_v49 = vsel %vm937_vm15, -1.0, %v7817_v62  ;;  %v1610_v20 = vmul.f32 %v1546_v50, %v6332_v8  ;;  %v1705_v21 = vadd.f32 1.4214138, %v1641_v27  ;;  %v8011_v35 = vld [vmem:[#allocation14_spill] sm:$0xff] }
 0x2dd   : > { %v1578_v7 = vadd.f32 -1.4531521, %v1514_v14  ;;  %v6391_v37 = vadd.f32 1.0, %v1100_v29  ;;  %v6395_v18 = vadd.f32 %v8010_v51, %v4482_v30  ;;  %v2439_v42 = vmul.f32 %v2375_v45, %v6166_v60  ;;  %v8012_v14 = vld [vmem:[#allocation48_spill] sm:$0xff] }
 0x2de   : > { %v1737_v46 = vmul.f32 %v1673_v3, %v6295_v53  ;;  %v2208_v34 = vmul.f32 1.442695, %v2121_v54  ;;  %v2153_v44 = vmul.f32 %v2089_v36, %v6140_v9  ;;  %v2343_v25 = vmul.f32 %v6298_v6, %v2023_v52 }
 0x2df   : > { %v6402_v5 = vmul.f32 0.5, %v8011_v35  ;;  %v2058_v50 = vsub.f32 0.0, %v6161_v31  ;;  %v6405_v27 = vmul.f32 %v3922_v2, %v1355_v13  ;;  %v6408_v29 = vmul.f32 %v2534_v10, %v8012_v14 }
 0x2e0   : > { %v1928_v51 = vadd.f32 0.2548296, %v1864_v40  ;;  %v1832_v22 = vadd.f32 -0.28449672, %v1768_v38  ;;  %v1674_v60 = vadd.f32 1.4214138, %v1610_v20  ;;  %v1769_v45 = vmul.f32 %v1705_v21, %v6309_v4 }
 0x2e1   : > { %8013 = vst [vmem:[#allocation24_spill] sm:$0xff] %v6408_v29  ;;  %v1642_v3 = vmul.f32 %v1578_v7, %v6358_v15  ;;  %3927 = vrcp.f32 %v6391_v37  ;;  %v6414_v9 = vmul.f32 0.70710677, %v6395_v18  ;;  %v2503_v54 = vadd.f32 1.0, %v2439_v42  ;;  %v8014_v38 = vld [vmem:[#allocation30_spill] sm:$0xff]  ;;  %v8015_v20 = vld [vmem:[#allocation56_spill] sm:$0xff] }
 0x2e2   : > { %v3924_v6 = vpop.eup %3923  ;;  %v1801_v36 = vadd.f32 -0.28449672, %v1737_v46  ;;  %v2272_v2 = vmul.f32 1.442695, %v2153_v44  ;;  %vm906_vm0 = vcmp.lt.f32.partialorder %v6143_v63, 0.0  ;;  %v2407_v52 = vsub.f32 1.0, %v2343_v25 }
 0x2e3   : > { %v3926_v10 = vpop.eup %3925  ;;  %v2122_v13 = vmul.f32 %v2058_v50, %v6161_v31  ;;  %v1483_v40 = vmul.f32 1.0614054, %v6405_v27  ;;  %v2658_v21 = vadd.f32 %v8015_v20, %v8014_v38  ;;  %v1992_v7 = vmul.f32 %v1928_v51, %v6244_v0  ;;  %v8016_v31 = vld [vmem:[#allocation66_spill] sm:$0xff] }
 0x2e4   : > { %v1896_v35 = vmul.f32 %v1832_v22, %v6282_v47  ;;  %v1738_v14 = vmul.f32 %v1674_v60, %v6332_v8  ;;  %v2090_v42 = vsub.f32 0.0, %v6191_v39  ;;  %3929 = vpow2.f32 %v2208_v34 }
 0x2e5   : > { %v1833_v46 = vadd.f32 -0.28449672, %v1769_v45  ;;  %v1706_v44 = vadd.f32 1.4214138, %v1642_v3  ;;  %v6426_v25 = vand.u32 2147483647, %v6414_v9  ;;  %2659 = vadd.xlane.f32.xlu0 %v2658_v21  ;;  %v6429_v50 = vmul.f32 %v2503_v54, %v8016_v31 }
 0x2e6   : > { %v1865_v29 = vmul.f32 %v1801_v36, %v6295_v53  ;;  %v6435_v0 = vsel %vm906_vm0, -1.0, %v7817_v62  ;;  %v1323_v22 = vmul.f32 %v3926_v10, %v6360_v11  ;;  %3931 = vpow2.f32 %v2272_v2 }
 0x2e7   : > { %v2210_v34 = vmul.f32 1.442695, %v2122_v13  ;;  %v6439_v51 = vmul.f32 0.5, %v6149_v41  ;;  %v1547_v60 = vadd.f32 -1.4531521, %v1483_v40  ;;  %v2312_v45 = vmul.f32 %v6327_v59, %v1992_v7  ;;  %v8017_v41 = vld [vmem:[#allocation17_spill] sm:$0xff] }
 0x2e8   : > { %v1960_v3 = vadd.f32 0.2548296, %v1896_v35  ;;  %v1802_v54 = vadd.f32 -0.28449672, %v1738_v14  ;;  %v2154_v21 = vmul.f32 %v2090_v42, %v6191_v39  ;;  %v2471_v36 = vmul.f32 %v2407_v52, %v6227_v56  ;;  %v8018_v56 = vld [vmem:[#allocation33_spill] sm:$0xff] }
 0x2e9   : > { %v1897_v63 = vmul.f32 %v1833_v46, %v6309_v4  ;;  %v1770_v31 = vmul.f32 %v1706_v44, %v6358_v15  ;;  %v1132_v11 = vmul.f32 0.3275911, %v6426_v25  ;;  %v1929_v2 = vadd.f32 0.2548296, %v1865_v29 }
 0x2ea   : > { %vm938_vm1 = vcmp.lt.f32.partialorder %v6169_v19, 0.0  ;;  %v6449_v13 = vmul.f32 0.5, %v8017_v41  ;;  %v1387_v40 = vsub.f32 2.0, %v1323_v22  ;;  %3933 = vpow2.f32 %v2210_v34 }
 0x2eb   : > { %v3928_v59 = vpop.eup %3927  ;;  %v1611_v7 = vmul.f32 %v1547_v60, %v6405_v27  ;;  %v2059_v39 = vsub.f32 0.0, %v6239_v48  ;;  %v6455_v52 = vadd.f32 %v8018_v56, %v7854_v57  ;;  %v2376_v35 = vsub.f32 1.0, %v2312_v45 }
 0x2ec   : > { %v2024_v14 = vmul.f32 %v1960_v3, %v6282_v47  ;;  %v1866_v29 = vmul.f32 %v1802_v54, %v6332_v8  ;;  %v2274_v42 = vmul.f32 1.442695, %v2154_v21  ;;  %v2535_v46 = vadd.f32 1.0, %v2471_v36 }
 0x2ed   : > { %v1961_v44 = vadd.f32 0.2548296, %v1897_v63  ;;  %v1834_v41 = vadd.f32 -0.28449672, %v1770_v31  ;;  %v6459_v22 = vadd.f32 1.0, %v1132_v11  ;;  %v1993_v34 = vmul.f32 %v1929_v2, %v6295_v53  ;;  %v8019_v31 = vld [vmem:[#allocation44_spill] sm:$0xff] }
 0x2ee   : > { %v6465_v60 = vsel %vm938_vm1, -1.0, %v7817_v62  ;;  %v6467_v56 = vmul.f32 %v3926_v10, %v1387_v40  ;;  %v1292_v45 = vmul.f32 %v3928_v59, %v6391_v37  ;;  %v3930_v47 = vpop.eup %3929  ;;  %vm907_vm2 = vcmp.lt.f32.partialorder %v6219_v28, 0.0 }
 0x2ef   : > { %v1675_v3 = vadd.f32 1.4214138, %v1611_v7  ;;  %v2123_v54 = vmul.f32 %v2059_v39, %v6239_v48  ;;  %v6473_v21 = vmul.f32 0.70710677, %v6455_v52  ;;  %v2440_v53 = vmul.f32 %v2376_v35, %v6263_v12 }
 0x2f0   : > { %v2344_v36 = vmul.f32 %v3924_v6, %v2024_v14  ;;  %v1930_v63 = vadd.f32 0.2548296, %v1866_v29  ;;  %3935 = vpow2.f32 %v2274_v42  ;;  %v3932_v19 = vpop.eup %3931  ;;  %v6477_v10 = vmul.f32 %v2535_v46, %v8019_v31 }
 0x2f1   : > { %v2025_v37 = vmul.f32 %v1961_v44, %v6309_v4  ;;  %v1898_v11 = vmul.f32 %v1834_v41, %v6358_v15  ;;  %3937 = vrcp.f32 %v6459_v22  ;;  %v2313_v28 = vmul.f32 %v3930_v47, %v1993_v34  ;;  %v8021_v41 = vld [vmem:[#allocation57_spill] sm:$0xff] }
 0x2f2   : > { %8020 = vst [vmem:[#allocation58_spill] sm:$0xff] %v6477_v10  ;;  %v6483_v48 = vsel %vm907_vm2, -1.0, %v7817_v62  ;;  %v1515_v2 = vmul.f32 1.0614054, %v6467_v56  ;;  %v1356_v12 = vsub.f32 2.0, %v1292_v45  ;;  %v1739_v6 = vmul.f32 %v1675_v3, %v6405_v27 }
 0x2f3   : > { %v2212_v40 = vmul.f32 1.442695, %v2123_v54  ;;  %v6488_v7 = vmul.f32 0.5, %v6271_v1  ;;  %v6491_v39 = vand.u32 2147483647, %v6473_v21  ;;  %v2504_v4 = vadd.f32 1.0, %v2440_v53 }
 0x2f4   : > { %v2408_v35 = vsub.f32 1.0, %v2344_v36  ;;  %v1994_v14 = vmul.f32 %v1930_v63, %v6332_v8  ;;  %v2091_v29 = vsub.f32 0.0, %v6317_v61  ;;  %v3934_v42 = vpop.eup %3933  ;;  %v2345_v46 = vmul.f32 %v3932_v19, %v2025_v37  ;;  %v8022_v8 = vld [vmem:[#allocation63_spill] sm:$0xff]  ;;  %v8023_v63 = vld [vmem:[#allocation37_spill] sm:$0xff] }
 0x2f5   : > { %v1962_v44 = vadd.f32 0.2548296, %v1898_v11  ;;  %vm939_vm3 = vcmp.lt.f32.partialorder %v6291_v58, 0.0  ;;  %v2741_v34 = vmul.f32 %v8021_v41, %v8021_v41  ;;  %v2377_v45 = vsub.f32 1.0, %v2313_v28 }
 0x2f6   : > { %v1579_v1 = vadd.f32 -1.4531521, %v1515_v2  ;;  %v6498_v47 = vmul.f32 %v3928_v59, %v1356_v12  ;;  %v2060_v3 = vsub.f32 0.0, %v6363_v55  ;;  %v1803_v54 = vadd.f32 -0.28449672, %v1739_v6 }
 0x2f7   : > { %v1101_v53 = vmul.f32 0.3275911, %v6491_v39  ;;  %v6504_v36 = vadd.f32 %v8022_v8, %v7854_v57  ;;  %v2742_v19 = vmul.f32 %v8023_v63, %v8023_v63  ;;  %v2472_v31 = vmul.f32 %v2408_v35, %v6279_v26 }
 0x2f8   : > { %v2314_v37 = vmul.f32 %v3934_v42, %v1994_v14  ;;  %3939 = vpow2.f32 %v2212_v40  ;;  %v2155_v11 = vmul.f32 %v2091_v29, %v6317_v61  ;;  %v6511_v59 = vmul.f32 %v2504_v4, %v6236_v43 }
 0x2f9   : > { %v2409_v28 = vsub.f32 1.0, %v2345_v46  ;;  %v2026_v2 = vmul.f32 %v1962_v44, %v6358_v15  ;;  %v2806_v12 = vadd.f32 %v2742_v19, %v2741_v34  ;;  %v2441_v8 = vmul.f32 %v2377_v45, %v6350_v23 }
 0x2fa   : > { %v3936_v6 = vpop.eup %3935  ;;  %v6518_v10 = vsel %vm939_vm3, -1.0, %v7817_v62  ;;  %v1643_v26 = vmul.f32 %v1579_v1, %v6467_v56  ;;  %v1484_v40 = vmul.f32 1.0614054, %v6498_v47  ;;  %v1867_v43 = vmul.f32 %v1803_v54, %v6405_v27 }
 0x2fb   : > { %v3938_v61 = vpop.eup %3937  ;;  %v2124_v4 = vmul.f32 %v2060_v3, %v6363_v55  ;;  %v6524_v35 = vadd.f32 1.0, %v1101_v53  ;;  %v6527_v15 = vmul.f32 0.70710677, %v6504_v36  ;;  %2807 = vadd.xlane.f32.xlu1 %v2806_v12  ;;  %v2536_v23 = vadd.f32 1.0, %v2472_v31 }
 0x2fc   : > { %v2378_v14 = vsub.f32 1.0, %v2314_v37  ;;  %v2276_v58 = vmul.f32 1.442695, %v2155_v11  ;;  %v2092_v29 = vsub.f32 0.0, %v6426_v25  ;;  %v2473_v42 = vmul.f32 %v2409_v28, %v6388_v49 }
 0x2fd   : > { %v2346_v46 = vmul.f32 %v3936_v6, %v2026_v2  ;;  %v6532_v44 = vmul.f32 0.5, %v6321_v24  ;;  %vm908_vm4 = vcmp.lt.f32.partialorder %v6336_v33, 0.0  ;;  %v2505_v55 = vadd.f32 1.0, %v2441_v8 }
 0x2fe   : > { %v1707_v34 = vadd.f32 1.4214138, %v1643_v26  ;;  %v1548_v45 = vadd.f32 -1.4531521, %v1484_v40  ;;  %v1324_v1 = vmul.f32 %v3938_v61, %v6459_v22  ;;  %v1931_v3 = vadd.f32 0.2548296, %v1867_v43 }
 0x2ff   : > { %v2214_v54 = vmul.f32 1.442695, %v2124_v4  ;;  %3941 = vrcp.f32 %v6524_v35  ;;  %v6538_v53 = vand.u32 2147483647, %v6527_v15  ;;  %v6541_v49 = vmul.f32 %v2536_v23, %v6254_v32 }
 0x300   : > { %v2442_v24 = vmul.f32 %v2378_v14, %v6435_v0  ;;  %3943 = vpow2.f32 %v2276_v58  ;;  %v2156_v33 = vmul.f32 %v2092_v29, %v6426_v25  ;;  %v2537_v19 = vadd.f32 1.0, %v2473_v42 }
 0x301   : > { %8024 = vst [vmem:[#allocation39_spill] sm:$0xff] %v6541_v49  ;;  %v2410_v31 = vsub.f32 1.0, %v2346_v46  ;;  %v6546_v37 = vsel %vm908_vm4, -1.0, %v7817_v62  ;;  %vm940_vm5 = vcmp.lt.f32.partialorder %v6414_v9, 0.0  ;;  %v1771_v11 = vmul.f32 %v1707_v34, %v6467_v56 }
 0x302   : > { %v3940_v22 = vpop.eup %3939  ;;  %v1612_v28 = vmul.f32 %v1548_v45, %v6498_v47  ;;  %v6552_v32 = vmul.f32 0.5, %v6395_v18  ;;  %v1388_v2 = vsub.f32 2.0, %v1324_v1  ;;  %v6555_v0 = vmul.f32 %v2505_v55, %v6303_v16  ;;  %v8028_v16 = vld [vmem:[#allocation22_spill] sm:$0xff]  ;;  %v8032_v55 = vld [vmem:[#allocation25_spill] sm:$0xff] }
 0x303   : > { %v1995_v25 = vmul.f32 %v1931_v3, %v6405_v27  ;;  %3945 = vpow2.f32 %v2214_v54  ;;  %v1133_v12 = vmul.f32 0.3275911, %v6538_v53  ;;  %v2506_v6 = vadd.f32 1.0, %v2442_v24  ;;  %v8033_v1 = vld [vmem:[#allocation54_spill] sm:$0xff] }
 0x304   : > { %8025 = vst [vmem:[#allocation32_spill] sm:$0xff] %v6552_v32  ;;  %8026 = vst [vmem:[#allocation36_spill] sm:$0xff] %v6555_v0  ;;  %v6560_v9 = vsel %vm940_vm5, -1.0, %v7817_v62  ;;  %v2278_v8 = vmul.f32 1.442695, %v2156_v33  ;;  %v2061_v26 = vsub.f32 0.0, %v6491_v39  ;;  %v6564_v40 = vmul.f32 %v2537_v19, %v6341_v17 }
 0x305   : > { %v2474_v18 = vmul.f32 %v2410_v31, %v6465_v60  ;;  %v6569_v43 = vadd.f32 %v8028_v16, %v4482_v30  ;;  %v2613_v27 = vadd.f32 %v8023_v63, %v8021_v41  ;;  %v1835_v4 = vadd.f32 -0.28449672, %v1771_v11  ;;  %v8056_v41 = vld [vmem:[#allocation16_spill] sm:$0xff] }
 0x306   : > { %8027 = vst [vmem:[#allocation67_spill] sm:$0xff] %v6564_v40  ;;  %v1676_v23 = vadd.f32 1.4214138, %v1612_v28  ;;  %v6573_v14 = vmul.f32 %v3938_v61, %v1388_v2  ;;  %vm909_vm6 = vcmp.lt.f32.partialorder %v6473_v21, 0.0  ;;  %v2315_v58 = vmul.f32 %v3940_v22, %v1995_v25  ;;  %v8035_v22 = vld [vmem:[#allocation29_spill] sm:$0xff]  ;;  %v8036_v28 = vld [vmem:[#allocation15_spill] sm:$0xff] }
 0x307   : > { %v6577_v29 = vmul.f32 0.5, %v6455_v52  ;;  %v6580_v17 = vmul.f32 0.5, %v6504_v36  ;;  %v6582_v60 = vadd.f32 1.0, %v1133_v12  ;;  %2614 = vadd.xlane.f32.xlu0 %v2613_v27  ;;  %v6585_v42 = vmul.f32 %v2506_v6, %v6402_v5 }
 0x308   : > { %3947 = vpow2.f32 %v2278_v8  ;;  %v2125_v46 = vmul.f32 %v2061_v26, %v6491_v39  ;;  %vm941_vm7 = vcmp.lt.f32.partialorder %v6527_v15, 0.0  ;;  %v6589_v21 = vadd.f32 1.0, %v2474_v18  ;;  %v8037_v8 = vld [vmem:[#allocation13_spill] sm:$0xff] }
 0x309   : > { %8029 = vst [vmem:[#allocation68_spill] sm:$0xff] %v6577_v29  ;;  %8030 = vst [vmem:[#allocation61_spill] sm:$0xff] %v6580_v17  ;;  %v3942_v61 = vpop.eup %3941  ;;  %v6592_v52 = vsel %vm909_vm6, -1.0, %v7817_v62  ;;  %v6595_v36 = vmul.f32 0.70710677, %v6569_v43  ;;  %v6599_v34 = vadd.f32 %v8032_v55, %v7854_v57  ;;  %v1899_v45 = vmul.f32 %v1835_v4, %v6467_v56  ;;  %v8040_v55 = vld [vmem:[#allocation51_spill] sm:$0xff] }
 0x30a   : > { %8031 = vst [vmem:[#allocation14_spill] sm:$0xff] %v6585_v42  ;;  %v6601_v5 = vpop.eup %3943  ;;  %v1740_v39 = vmul.f32 %v1676_v23, %v6498_v47  ;;  %v1516_v15 = vmul.f32 1.0614054, %v6573_v14  ;;  %v2773_v3 = vmul.f32 %v8033_v1, %v8033_v1  ;;  %v2379_v54 = vsub.f32 1.0, %v2315_v58  ;;  %v8059_v42 = vld [vmem:[#allocation45_spill] sm:$0xff] }
 0x30b   : > { %v6609_v24 = vsel %vm941_vm7, -1.0, %v7817_v62  ;;  %3949 = vrcp.f32 %v6582_v60  ;;  %v2093_v33 = vsub.f32 0.0, %v6538_v53  ;;  %v1293_v19 = vmul.f32 %v3942_v61, %v6524_v35  ;;  %v8039_v35 = vld [vmem:[#allocation52_spill] sm:$0xff] }
 0x30c   : > { %8034 = vst [vmem:[#allocation48_spill] sm:$0xff] %v6609_v24  ;;  %v2216_v31 = vmul.f32 1.442695, %v2125_v46  ;;  %v2774_v11 = vmul.f32 %v8035_v22, %v8035_v22  ;;  %v2739_v2 = vmul.f32 %v8036_v28, %v8036_v28  ;;  %v6621_v12 = vand.u32 2147483647, %v6595_v36 }
 0x30d   : > { %v6618_v25 = vpop.eup %3945  ;;  %v6624_v6 = vmul.f32 0.70710677, %v6599_v34  ;;  %v6628_v26 = vadd.f32 %v8037_v8, %v4482_v30  ;;  %v2740_v18 = vmul.f32 %v8039_v35, %v8039_v35  ;;  %v1963_v16 = vadd.f32 0.2548296, %v1899_v45  ;;  %v8042_v8 = vld [vmem:[#allocation55_spill] sm:$0xff] }
 0x30e   : > { %v1804_v27 = vadd.f32 -0.28449672, %v1740_v39  ;;  %v1580_v4 = vadd.f32 -1.4531521, %v1516_v15  ;;  %v2854_v23 = vadd.f32 %v2774_v11, %v2773_v3  ;;  %v2443_v58 = vmul.f32 %v2379_v54, %v6483_v48 }
 0x30f   : > { %8038 = vst [vmem:[#allocation66_spill] sm:$0xff] %v6628_v26  ;;  %v2157_v46 = vmul.f32 %v2093_v33, %v6538_v53  ;;  %v6636_v22 = vadd.f32 %v8040_v55, %v7854_v57  ;;  %v2803_v1 = vadd.f32 %v2740_v18, %v2739_v2  ;;  %v1357_v28 = vsub.f32 2.0, %v1293_v19  ;;  %v8044_v19 = vld [vmem:[#allocation71_spill] sm:$0xff]  ;;  %v8047_v2 = vld [vmem:[#allocation18_spill] sm:$0xff] }
 0x310   : > { %v6640_v63 = vadd.f32 %v8042_v8, %v4482_v30  ;;  %2855 = vadd.xlane.f32.xlu1 %v2854_v23  ;;  %v2771_v45 = vmul.f32 %v8014_v38, %v8014_v38  ;;  %v2772_v39 = vmul.f32 %v8015_v20, %v8015_v20  ;;  %3951 = vpow2.f32 %v2216_v31  ;;  %v8046_v31 = vld [vmem:[#allocation47_spill] sm:$0xff] }
 0x311   : > { %8041 = vst [vmem:[#allocation17_spill] sm:$0xff] %v6636_v22  ;;  %v1102_v48 = vmul.f32 0.3275911, %v6621_v12  ;;  %v6648_v53 = vand.u32 2147483647, %v6624_v6  ;;  %2804 = vadd.xlane.f32.xlu0 %v2803_v1  ;;  %v1868_v54 = vmul.f32 %v1804_v27, %v6498_v47  ;;  %v1644_v33 = vmul.f32 %v1580_v4, %v6573_v14 }
 0x312   : > { %8043 = vst [vmem:[#allocation33_spill] sm:$0xff] %v6640_v63  ;;  %v6651_v15 = vmul.f32 0.70710677, %v6628_v26  ;;  %v6653_v3 = vpop.eup %3947  ;;  %v6659_v11 = vadd.f32 %v8044_v19, %v7854_v57  ;;  %v2616_v18 = vadd.f32 %v8047_v2, %v8046_v31  ;;  %v6663_v23 = vadd.f32 1.0, %v2443_v58  ;;  %v8049_v19 = vld [vmem:[#allocation35_spill] sm:$0xff] }
 0x313   : > { %v2027_v55 = vmul.f32 %v1963_v16, %v6467_v56  ;;  %v6667_v8 = vmul.f32 0.70710677, %v6636_v22  ;;  %v2851_v1 = vadd.f32 %v2772_v39, %v2771_v45  ;;  %v6669_v20 = vmul.f32 %v3942_v61, %v1357_v28  ;;  %v8051_v61 = vld [vmem:[#allocation74_spill] sm:$0xff] }
 0x314   : > { %8045 = vst [vmem:[#allocation44_spill] sm:$0xff] %v6659_v11  ;;  %v2280_v27 = vmul.f32 1.442695, %v2157_v46  ;;  %v6672_v4 = vmul.f32 0.70710677, %v6640_v63  ;;  %v6676_v38 = vadd.f32 %v8049_v19, %v4482_v30  ;;  %2617 = vadd.xlane.f32.xlu1 %v2616_v18  ;;  %v6678_v58 = vadd.f32 1.0, %v1102_v48 }
 0x315   : > { %v3950_v35 = vpop.eup %3949  ;;  %v1103_v56 = vmul.f32 0.3275911, %v6648_v53  ;;  %v6682_v16 = vand.u32 2147483647, %v6651_v15  ;;  %v6686_v28 = vadd.f32 %v8051_v61, %v7854_v57  ;;  %2852 = vadd.xlane.f32.xlu0 %v2851_v1  ;;  %v1932_v46 = vadd.f32 0.2548296, %v1868_v54 }
 0x316   : > { %8048 = vst [vmem:[#allocation63_spill] sm:$0xff] %v6672_v4  ;;  %8050 = vst [vmem:[#allocation22_spill] sm:$0xff] %v6676_v38  ;;  %v1708_v45 = vadd.f32 1.4214138, %v1644_v33  ;;  %v6689_v39 = vmul.f32 0.70710677, %v6659_v11  ;;  %v2743_v26 = vmul.f32 %v8046_v31, %v8046_v31  ;;  %v2744_v57 = vmul.f32 %v8047_v2, %v8047_v2 }
 0x317   : > { %8052 = vst [vmem:[#allocation25_spill] sm:$0xff] %v6686_v28  ;;  %v8054_v30 = vld [vmem:[#allocation60_spill] sm:$0xff]  ;;  %v8055_v18 = vld [vmem:[#allocation46_spill] sm:$0xff]  ;;  %v6694_v48 = vand.u32 2147483647, %v6667_v8  ;;  %v8057_v63 = vld [vmem:[#allocation19_spill] sm:$0xff]  ;;  %v1325_v33 = vmul.f32 %v3950_v35, %v6582_v60  ;;  %3953 = vrcp.f32 %v6678_v58 }
 0x318   : > { %8053 = vst [vmem:[#allocation13_spill] sm:$0xff] %v6689_v39  ;;  %v2619_v19 = vadd.f32 %v8055_v18, %v8054_v30  ;;  %v2664_v22 = vadd.f32 %v8057_v63, %v8056_v41  ;;  %v1485_v54 = vmul.f32 1.0614054, %v6669_v20  ;;  %v6705_v1 = vand.u32 2147483647, %v6672_v4  ;;  %v8058_v60 = vld [vmem:[#allocation23_spill] sm:$0xff] }
 0x319   : > { %v6708_v61 = vmul.f32 0.70710677, %v6676_v38  ;;  %v6711_v11 = vadd.f32 1.0, %v1103_v56  ;;  %v1104_v31 = vmul.f32 0.3275911, %v6682_v16  ;;  %v2667_v29 = vadd.f32 %v8059_v42, %v8058_v60 }
 0x31a   : > { %2620 = vadd.xlane.f32.xlu1 %v2619_v19  ;;  %v6715_v17 = vmul.f32 0.70710677, %v6686_v28  ;;  %2665 = vadd.xlane.f32.xlu0 %v2664_v22  ;;  %v6718_v2 = vand.u32 2147483647, %v6689_v39  ;;  %v2745_v38 = vmul.f32 %v8054_v30, %v8054_v30  ;;  %v2746_v19 = vmul.f32 %v8055_v18, %v8055_v18  ;;  %v6726_v56 = vpop.eup %3951 }
 0x31b   : > { %v1105_v4 = vmul.f32 0.3275911, %v6694_v48  ;;  %v2809_v32 = vadd.f32 %v2744_v57, %v2743_v26  ;;  %v2775_v22 = vmul.f32 %v8056_v41, %v8056_v41  ;;  %v2776_v28 = vmul.f32 %v8057_v63, %v8057_v63 }
 0x31c   : > { %v2347_v39 = vmul.f32 %v6601_v5, %v2027_v55  ;;  %v1389_v24 = vsub.f32 2.0, %v1325_v33  ;;  %v1134_v40 = vmul.f32 0.3275911, %v6705_v1  ;;  %v6736_v30 = vand.u32 2147483647, %v6708_v61 }
 0x31d   : > { %v1772_v18 = vmul.f32 %v1708_v45, %v6573_v14  ;;  %v1549_v49 = vadd.f32 -1.4531521, %v1485_v54  ;;  %v6739_v0 = vadd.f32 1.0, %v1104_v31  ;;  %v6742_v26 = vand.u32 2147483647, %v6715_v17 }
 0x31e   : > { %2668 = vadd.xlane.f32.xlu1 %v2667_v29  ;;  %2810 = vadd.xlane.f32.xlu0 %v2809_v32  ;;  %v1135_v57 = vmul.f32 0.3275911, %v6718_v2  ;;  %v2812_v63 = vadd.f32 %v2746_v19, %v2745_v38  ;;  %v2777_v5 = vmul.f32 %v8058_v60, %v8058_v60  ;;  %v2778_v55 = vmul.f32 %v8059_v42, %v8059_v42 }
 0x31f   : > { %v1996_v29 = vmul.f32 %v1932_v46, %v6498_v47  ;;  %3955 = vrcp.f32 %v6711_v11  ;;  %v6751_v45 = vadd.f32 1.0, %v1105_v4  ;;  %v2857_v31 = vadd.f32 %v2776_v28, %v2775_v22 }
 0x320   : > { %v2411_v54 = vsub.f32 1.0, %v2347_v39  ;;  %v6753_v33 = vmul.f32 %v3950_v35, %v1389_v24  ;;  %v6755_v32 = vadd.f32 1.0, %v1134_v40  ;;  %v1136_v38 = vmul.f32 0.3275911, %v6736_v30 }
 0x321   : > { %v6760_v19 = vmul.f32 %v6589_v21, %v6439_v51  ;;  %v1836_v42 = vadd.f32 -0.28449672, %v1772_v18  ;;  %3957 = vpow2.f32 %v2280_v27  ;;  %v1137_v47 = vmul.f32 0.3275911, %v6742_v26  ;;  %v6767_v35 = vpop.eup %3953  ;;  %v8061_v21 = vld [vmem:[#allocation49_spill] sm:$0xff]  ;;  %v8062_v27 = vld [vmem:[#allocation62_spill] sm:$0xff] }
 0x322   : > { %2813 = vadd.xlane.f32.xlu1 %v2812_v63  ;;  %2858 = vadd.xlane.f32.xlu0 %v2857_v31  ;;  %v1613_v4 = vmul.f32 %v1549_v49, %v6669_v20  ;;  %3959 = vrcp.f32 %v6739_v0  ;;  %v6765_v24 = vadd.f32 1.0, %v1135_v57  ;;  %v2860_v40 = vadd.f32 %v2778_v55, %v2777_v5  ;;  %v8065_v57 = vld [vmem:[#allocation65_spill] sm:$0xff]  ;;  %v8067_v31 = vld [vmem:[#allocation34_spill] sm:$0xff] }
 0x323   : > { %8060 = vst [vmem:[#allocation51_spill] sm:$0xff] %v6760_v19  ;;  %v6771_v63 = vmul.f32 %v6663_v23, %v6449_v13  ;;  %v2316_v51 = vmul.f32 %v6618_v25, %v1996_v29  ;;  %3961 = vrcp.f32 %v6751_v45  ;;  %v2622_v28 = vadd.f32 %v8062_v27, %v8061_v21  ;;  %v8066_v29 = vld [vmem:[#allocation27_spill] sm:$0xff] }
 0x324   : > { %v2475_v49 = vmul.f32 %v2411_v54, %v6518_v10  ;;  %v1517_v46 = vmul.f32 1.0614054, %v6753_v33  ;;  %3963 = vrcp.f32 %v6755_v32  ;;  %v6780_v39 = vadd.f32 1.0, %v1136_v38  ;;  %v8064_v10 = vld [vmem:[#allocation64_spill] sm:$0xff] }
 0x325   : > { %v1900_v18 = vmul.f32 %v1836_v42, %v6573_v14  ;;  %v6784_v13 = vmul.f32 0.5, %v6569_v43  ;;  %v2062_v25 = vsub.f32 0.0, %v6621_v12  ;;  %v6787_v23 = vadd.f32 1.0, %v1137_v47 }
 0x326   : > { %2861 = vadd.xlane.f32.xlu1 %v2860_v40  ;;  %2623 = vadd.xlane.f32.xlu0 %v2622_v28  ;;  %v1677_v22 = vadd.f32 1.4214138, %v1613_v4  ;;  %vm910_vm8 = vcmp.lt.f32.partialorder %v6595_v36, 0.0  ;;  %3965 = vrcp.f32 %v6765_v24  ;;  %v2625_v5 = vadd.f32 %v8065_v57, %v8064_v10 }
 0x327   : > { %8063 = vst [vmem:[#allocation55_spill] sm:$0xff] %v6784_v13  ;;  %v2380_v55 = vsub.f32 1.0, %v2316_v51  ;;  %v2670_v42 = vadd.f32 %v8067_v31, %v8066_v29  ;;  %v2747_v43 = vmul.f32 %v8061_v21, %v8061_v21  ;;  %v2748_v54 = vmul.f32 %v8062_v27, %v8062_v27  ;;  %v8068_v27 = vld [vmem:[#allocation38_spill] sm:$0xff] }
 0x328   : > { %v2539_v38 = vadd.f32 1.0, %v2475_v49  ;;  %v1581_v47 = vadd.f32 -1.4531521, %v1517_v46  ;;  %v1294_v4 = vmul.f32 %v6767_v35, %v6678_v58  ;;  %3967 = vrcp.f32 %v6780_v39  ;;  %v8069_v49 = vld [vmem:[#allocation42_spill] sm:$0xff] }
 0x329   : > { %v3956_v40 = vpop.eup %3955  ;;  %v1964_v28 = vadd.f32 0.2548296, %v1900_v18  ;;  %v2126_v51 = vmul.f32 %v2062_v25, %v6621_v12  ;;  %v2063_v60 = vsub.f32 0.0, %v6648_v53  ;;  %3969 = vrcp.f32 %v6787_v23 }
 0x32a   : > { %2626 = vadd.xlane.f32.xlu1 %v2625_v5  ;;  %2671 = vadd.xlane.f32.xlu0 %v2670_v42  ;;  %v1741_v21 = vmul.f32 %v1677_v22, %v6669_v20  ;;  %v2673_v46 = vadd.f32 %v8069_v49, %v8068_v27  ;;  %v2749_v58 = vmul.f32 %v8064_v10, %v8064_v10  ;;  %v6825_v10 = vsel %vm910_vm8, -1.0, %v7817_v62 }
 0x32b   : > { %v2750_v5 = vmul.f32 %v8065_v57, %v8065_v57  ;;  %v6812_v41 = vpop.eup %3957  ;;  %v2444_v12 = vmul.f32 %v2380_v55, %v6546_v37  ;;  %v2815_v18 = vadd.f32 %v2748_v54, %v2747_v43  ;;  %v2779_v25 = vmul.f32 %v8066_v29, %v8066_v29 }
 0x32c   : > { %v2780_v22 = vmul.f32 %v8067_v31, %v8067_v31  ;;  %v6819_v42 = vpop.eup %3959  ;;  %v1645_v13 = vmul.f32 %v1581_v47, %v6753_v33  ;;  %v1358_v57 = vsub.f32 2.0, %v1294_v4  ;;  %v1295_v19 = vmul.f32 %v3956_v40, %v6711_v11 }
 0x32d   : > { %v3962_v37 = vpop.eup %3961  ;;  %v6829_v55 = vmul.f32 %v2539_v38, %v6488_v7  ;;  %v2028_v43 = vmul.f32 %v1964_v28, %v6573_v14  ;;  %v2218_v54 = vmul.f32 1.442695, %v2126_v51  ;;  %v6833_v31 = vmul.f32 0.5, %v6599_v34 }
 0x32e   : > { %2674 = vadd.xlane.f32.xlu1 %v2673_v46  ;;  %2816 = vadd.xlane.f32.xlu0 %v2815_v18  ;;  %v3964_v47 = vpop.eup %3963  ;;  %v1805_v29 = vadd.f32 -0.28449672, %v1741_v21  ;;  %v2818_v36 = vadd.f32 %v2750_v5, %v2749_v58  ;;  %v2781_v4 = vmul.f32 %v8068_v27, %v8068_v27  ;;  %v2782_v11 = vmul.f32 %v8069_v49, %v8069_v49  ;;  %v8071_v18 = vld [vmem:[#allocation11_spill] sm:$0xff] }
 0x32f   : > { %v2508_v46 = vadd.f32 1.0, %v2444_v12  ;;  %vm911_vm9 = vcmp.lt.f32.partialorder %v6624_v6, 0.0  ;;  %v2127_v7 = vmul.f32 %v2063_v60, %v6648_v53  ;;  %v2863_v14 = vadd.f32 %v2780_v22, %v2779_v25  ;;  %v8077_v27 = vld [vmem:[#allocation43_spill] sm:$0xff] }
 0x330   : > { %v3966_v38 = vpop.eup %3965  ;;  %v1709_v28 = vadd.f32 1.4214138, %v1645_v13  ;;  %v6842_v34 = vmul.f32 %v6767_v35, %v1358_v57  ;;  %v1359_v51 = vsub.f32 2.0, %v1295_v19  ;;  %v1296_v21 = vmul.f32 %v6819_v42, %v6739_v0 }
 0x331   : > { %v6847_v58 = vmul.f32 %v6653_v3, %v2028_v43  ;;  %3971 = vpow2.f32 %v2218_v54  ;;  %v1297_v5 = vmul.f32 %v3962_v37, %v6751_v45  ;;  %v1326_v12 = vmul.f32 %v3964_v47, %v6755_v32  ;;  %v8070_v32 = vld [vmem:[#allocation26_spill] sm:$0xff] }
 0x332   : > { %2819 = vadd.xlane.f32.xlu1 %v2818_v36  ;;  %2864 = vadd.xlane.f32.xlu0 %v2863_v14  ;;  %v3968_v53 = vpop.eup %3967  ;;  %v1869_v60 = vmul.f32 %v1805_v29, %v6669_v20  ;;  %v6855_v19 = vsel %vm911_vm9, -1.0, %v7817_v62  ;;  %v2064_v0 = vsub.f32 0.0, %v6682_v16  ;;  %v2866_v35 = vadd.f32 %v2782_v11, %v2781_v4  ;;  %v8073_v14 = vld [vmem:[#allocation76_spill] sm:$0xff] }
 0x333   : > { %v3970_v13 = vpop.eup %3969  ;;  %v6859_v3 = vmul.f32 %v2508_v46, %v6532_v44  ;;  %v2220_v57 = vmul.f32 1.442695, %v2127_v7  ;;  %v1327_v45 = vmul.f32 %v3966_v38, %v6765_v24  ;;  %v2628_v25 = vadd.f32 %v8071_v18, %v8070_v32  ;;  %v8072_v7 = vld [vmem:[#allocation73_spill] sm:$0xff] }
 0x334   : > { %v1773_v29 = vmul.f32 %v1709_v28, %v6753_v33  ;;  %v1486_v22 = vmul.f32 1.0614054, %v6842_v34  ;;  %v6866_v6 = vmul.f32 %v3956_v40, %v1359_v51  ;;  %v1360_v43 = vsub.f32 2.0, %v1296_v21  ;;  %v8074_v40 = vld [vmem:[#allocation50_spill] sm:$0xff]  ;;  %v8075_v51 = vld [vmem:[#allocation72_spill] sm:$0xff] }
 0x335   : > { %v2412_v54 = vsub.f32 1.0, %v6847_v58  ;;  %v1361_v36 = vsub.f32 2.0, %v1297_v5  ;;  %v1390_v4 = vsub.f32 2.0, %v1326_v12  ;;  %v1328_v44 = vmul.f32 %v3968_v53, %v6780_v39 }
 0x336   : > { %2867 = vadd.xlane.f32.xlu1 %v2866_v35  ;;  %2629 = vadd.xlane.f32.xlu0 %v2628_v25  ;;  %v1933_v11 = vadd.f32 0.2548296, %v1869_v60  ;;  %v2128_v24 = vmul.f32 %v2064_v0, %v6682_v16  ;;  %v1329_v46 = vmul.f32 %v3970_v13, %v6787_v23  ;;  %v2631_v28 = vadd.f32 %v8073_v14, %v8072_v7 }
 0x337   : > { %v1391_v49 = vsub.f32 2.0, %v1327_v45  ;;  %v2676_v21 = vadd.f32 %v8075_v51, %v8074_v40  ;;  %v2751_v58 = vmul.f32 %v8070_v32, %v8070_v32  ;;  %v2752_v5 = vmul.f32 %v8071_v18, %v8071_v18  ;;  %v8076_v32 = vld [vmem:[#allocation75_spill] sm:$0xff] }
 0x338   : > { %v1837_v39 = vadd.f32 -0.28449672, %v1773_v29  ;;  %v1550_v12 = vadd.f32 -1.4531521, %v1486_v22  ;;  %v1487_v60 = vmul.f32 1.0614054, %v6866_v6  ;;  %v6882_v16 = vmul.f32 %v6819_v42, %v1360_v43 }
 0x339   : > { %v6884_v23 = vmul.f32 %v3962_v37, %v1361_v36  ;;  %v2065_v0 = vsub.f32 0.0, %v6694_v48  ;;  %v6887_v35 = vmul.f32 %v3964_v47, %v1390_v4  ;;  %v1392_v45 = vsub.f32 2.0, %v1328_v44 }
 0x33a   : > { %2632 = vadd.xlane.f32.xlu1 %v2631_v28  ;;  %2677 = vadd.xlane.f32.xlu0 %v2676_v21  ;;  %v1393_v25 = vsub.f32 2.0, %v1329_v46  ;;  %v2679_v18 = vadd.f32 %v8077_v27, %v8076_v32  ;;  %v2753_v29 = vmul.f32 %v8072_v7, %v8072_v7  ;;  %v2754_v42 = vmul.f32 %v8073_v14, %v8073_v14 }
 0x33b   : > { %v6895_v22 = vpop.eup %3971  ;;  %v6897_v37 = vmul.f32 %v3966_v38, %v1391_v49  ;;  %v2821_v43 = vadd.f32 %v2752_v5, %v2751_v58  ;;  %v2783_v47 = vmul.f32 %v8074_v40, %v8074_v40  ;;  %v2784_v36 = vmul.f32 %v8075_v51, %v8075_v51 }
 0x33c   : > { %v1997_v4 = vmul.f32 %v1933_v11, %v6669_v20  ;;  %v1614_v44 = vmul.f32 %v1550_v12, %v6842_v34  ;;  %v1551_v46 = vadd.f32 -1.4531521, %v1487_v60  ;;  %v1488_v28 = vmul.f32 1.0614054, %v6882_v16 }
 0x33d   : > { %v1901_v21 = vmul.f32 %v1837_v39, %v6753_v33  ;;  %v1489_v49 = vmul.f32 1.0614054, %v6884_v23  ;;  %v1518_v38 = vmul.f32 1.0614054, %v6887_v35  ;;  %v6909_v58 = vmul.f32 %v3968_v53, %v1392_v45 }
 0x33e   : > { %2680 = vadd.xlane.f32.xlu1 %v2679_v18  ;;  %2822 = vadd.xlane.f32.xlu0 %v2821_v43  ;;  %v6911_v5 = vmul.f32 %v3970_v13, %v1393_v25  ;;  %v2824_v51 = vadd.f32 %v2754_v42, %v2753_v29  ;;  %v2785_v20 = vmul.f32 %v8076_v32, %v8076_v32  ;;  %v2222_v12 = vmul.f32 1.442695, %v2128_v24 }
 0x33f   : > { %v2786_v11 = vmul.f32 %v8077_v27, %v8077_v27  ;;  %v2476_v18 = vmul.f32 %v2412_v54, %v6560_v9  ;;  %v1519_v39 = vmul.f32 1.0614054, %v6897_v37  ;;  %v2869_v60 = vadd.f32 %v2784_v36, %v2783_v47  ;;  %v8085_v27 = vld [vmem:[#allocation12_spill] sm:$0xff] }
 0x340   : > { %v1678_v40 = vadd.f32 1.4214138, %v1614_v44  ;;  %v1615_v53 = vmul.f32 %v1551_v46, %v6866_v6  ;;  %v1552_v45 = vadd.f32 -1.4531521, %v1488_v28  ;;  %v2129_v13 = vmul.f32 %v2065_v0, %v6694_v48  ;;  %v8078_v44 = vld [vmem:[#allocation53_spill] sm:$0xff]  ;;  %v8079_v48 = vld [vmem:[#allocation70_spill] sm:$0xff] }
 0x341   : > { %3973 = vpow2.f32 %v2220_v57  ;;  %v1553_v25 = vadd.f32 -1.4531521, %v1489_v49  ;;  %v1582_v29 = vadd.f32 -1.4531521, %v1518_v38  ;;  %v1520_v42 = vmul.f32 1.0614054, %v6909_v58 }
 0x342   : > { %2825 = vadd.xlane.f32.xlu1 %v2824_v51  ;;  %2870 = vadd.xlane.f32.xlu0 %v2869_v60  ;;  %v6923_v43 = vmul.f32 %v6726_v56, %v1997_v4  ;;  %v1965_v9 = vadd.f32 0.2548296, %v1901_v21  ;;  %v1521_v54 = vmul.f32 1.0614054, %v6911_v5  ;;  %v2872_v24 = vadd.f32 %v2786_v11, %v2785_v20  ;;  %v8082_v60 = vld [vmem:[#allocation69_spill] sm:$0xff] }
 0x343   : > { %v6926_v47 = vadd.f32 1.0, %v2476_v18  ;;  %3975 = vpow2.f32 %v2222_v12  ;;  %v1583_v36 = vadd.f32 -1.4531521, %v1519_v39  ;;  %v2634_v51 = vadd.f32 %v8079_v48, %v8078_v44  ;;  %v8080_v18 = vld [vmem:[#allocation59_spill] sm:$0xff] }
 0x344   : > { %v1742_v57 = vmul.f32 %v1678_v40, %v6842_v34  ;;  %v1679_v0 = vadd.f32 1.4214138, %v1615_v53  ;;  %v1616_v46 = vmul.f32 %v1552_v45, %v6882_v16  ;;  %v2224_v28 = vmul.f32 1.442695, %v2129_v13  ;;  %v8081_v40 = vld [vmem:[#allocation41_spill] sm:$0xff]  ;;  %v8083_v53 = vld [vmem:[#allocation28_spill] sm:$0xff] }
 0x345   : > { %v1617_v56 = vmul.f32 %v1553_v25, %v6884_v23  ;;  %v1646_v4 = vmul.f32 %v1582_v29, %v6887_v35  ;;  %v2094_v21 = vsub.f32 0.0, %v6705_v1  ;;  %v1584_v49 = vadd.f32 -1.4531521, %v1520_v42 }
 0x346   : > { %2873 = vadd.xlane.f32.xlu1 %v2872_v24  ;;  %2635 = vadd.xlane.f32.xlu0 %v2634_v51  ;;  %v2381_v38 = vsub.f32 1.0, %v6923_v43  ;;  %v2029_v20 = vmul.f32 %v1965_v9, %v6753_v33  ;;  %v1585_v11 = vadd.f32 -1.4531521, %v1521_v54  ;;  %v2637_v12 = vadd.f32 %v8081_v40, %v8080_v18 }
 0x347   : > { %v1647_v39 = vmul.f32 %v1583_v36, %v6897_v37  ;;  %v2682_v45 = vadd.f32 %v8083_v53, %v8082_v60  ;;  %v2755_v13 = vmul.f32 %v8078_v44, %v8078_v44  ;;  %v2756_v25 = vmul.f32 %v8079_v48, %v8079_v48  ;;  %v8084_v44 = vld [vmem:[#allocation40_spill] sm:$0xff] }
 0x348   : > { %v1806_v29 = vadd.f32 -0.28449672, %v1742_v57  ;;  %v1743_v42 = vmul.f32 %v1679_v0, %v6866_v6  ;;  %v1680_v43 = vadd.f32 1.4214138, %v1616_v46  ;;  %v2095_v33 = vsub.f32 0.0, %v6718_v2 }
 0x349   : > { %v1681_v9 = vadd.f32 1.4214138, %v1617_v56  ;;  %v1710_v54 = vadd.f32 1.4214138, %v1646_v4  ;;  %v2158_v24 = vmul.f32 %v2094_v21, %v6705_v1  ;;  %v1648_v36 = vmul.f32 %v1584_v49, %v6909_v58 }
 0x34a   : > { %2638 = vadd.xlane.f32.xlu1 %v2637_v12  ;;  %2683 = vadd.xlane.f32.xlu0 %v2682_v45  ;;  %v1649_v51 = vmul.f32 %v1585_v11, %v6911_v5  ;;  %v2685_v32 = vadd.f32 %v8085_v27, %v8084_v44  ;;  %v2757_v57 = vmul.f32 %v8080_v18, %v8080_v18  ;;  %v1711_v56 = vadd.f32 1.4214138, %v1647_v39 }
 0x34b   : > { %v2758_v0 = vmul.f32 %v8081_v40, %v8081_v40  ;;  %v6957_v46 = vpop.eup %3973  ;;  %v2827_v4 = vadd.f32 %v2756_v25, %v2755_v13  ;;  %v2787_v1 = vmul.f32 %v8082_v60, %v8082_v60  ;;  %v2788_v21 = vmul.f32 %v8083_v53, %v8083_v53 }
 0x34c   : > { %v1807_v49 = vadd.f32 -0.28449672, %v1743_v42  ;;  %v1744_v11 = vmul.f32 %v1680_v43, %v6882_v16  ;;  %v2159_v12 = vmul.f32 %v2095_v33, %v6718_v2  ;;  %v2096_v45 = vsub.f32 0.0, %v6736_v30 }
 0x34d   : > { %v6966_v18 = vpop.eup %3975  ;;  %v1745_v40 = vmul.f32 %v1681_v9, %v6884_v23  ;;  %v1774_v39 = vmul.f32 %v1710_v54, %v6887_v35  ;;  %v1712_v13 = vadd.f32 1.4214138, %v1648_v36  ;;  %v2097_v25 = vsub.f32 0.0, %v6742_v26 }
 0x34e   : > { %2686 = vadd.xlane.f32.xlu1 %v2685_v32  ;;  %2828 = vadd.xlane.f32.xlu0 %v2827_v4  ;;  %v1713_v60 = vadd.f32 1.4214138, %v1649_v51  ;;  %v2830_v53 = vadd.f32 %v2758_v0, %v2757_v57  ;;  %v2789_v42 = vmul.f32 %v8084_v44, %v8084_v44  ;;  %v2790_v2 = vmul.f32 %v8085_v27, %v8085_v27 }
 0x34f   : > { %v1870_v32 = vmul.f32 %v1806_v29, %v6842_v34  ;;  %3977 = vpow2.f32 %v2224_v28  ;;  %v1775_v43 = vmul.f32 %v1711_v56, %v6897_v37  ;;  %v2875_v33 = vadd.f32 %v2788_v21, %v2787_v1 }
 0x350   : > { %v1871_v9 = vmul.f32 %v1807_v49, %v6866_v6  ;;  %v1808_v54 = vadd.f32 -0.28449672, %v1744_v11  ;;  %v2282_v36 = vmul.f32 1.442695, %v2158_v24  ;;  %v2160_v4 = vmul.f32 %v2096_v45, %v6736_v30  ;;  %v8086_v11 = vld [vmem:[#allocation31_spill] sm:$0xff]  ;;  %v8087_v45 = vld [vmem:[#allocation36_spill] sm:$0xff] }
 0x351   : > { %v1809_v51 = vadd.f32 -0.28449672, %v1745_v40  ;;  %v1838_v57 = vadd.f32 -0.28449672, %v1774_v39  ;;  %v1776_v0 = vmul.f32 %v1712_v13, %v6909_v58  ;;  %v2161_v44 = vmul.f32 %v2097_v25, %v6742_v26  ;;  %v8088_v25 = vld [vmem:[#allocation24_spill] sm:$0xff] }
 0x352   : > { %2831 = vadd.xlane.f32.xlu1 %v2830_v53  ;;  %2876 = vadd.xlane.f32.xlu0 %v2875_v33  ;;  %v2349_v29 = vmul.f32 %v6812_v41, %v2029_v20  ;;  %v2284_v28 = vmul.f32 1.442695, %v2159_v12  ;;  %v1777_v56 = vmul.f32 %v1713_v60, %v6911_v5  ;;  %v2878_v1 = vadd.f32 %v2790_v2, %v2789_v42  ;;  %v8089_v42 = vld [vmem:[#allocation58_spill] sm:$0xff] }
 0x353   : > { %v2445_v21 = vmul.f32 %v2381_v38, %v6592_v52  ;;  %v1934_v49 = vadd.f32 0.2548296, %v1870_v32  ;;  %v1839_v24 = vadd.f32 -0.28449672, %v1775_v43  ;;  %v2640_v30 = vadd.f32 %v6429_v50, %v8086_v11 }
 0x354   : > { %v1935_v40 = vadd.f32 0.2548296, %v1871_v9  ;;  %vm912_vm10 = vcmp.lt.f32.partialorder %v6651_v15, 0.0  ;;  %v1872_v53 = vmul.f32 %v1808_v54, %v6882_v16  ;;  %vm913_vm11 = vcmp.lt.f32.partialorder %v6667_v8, 0.0 }
 0x355   : > { %3979 = vpow2.f32 %v2282_v36  ;;  %v2286_v41 = vmul.f32 1.442695, %v2160_v4  ;;  %v1873_v26 = vmul.f32 %v1809_v51, %v6884_v23  ;;  %v1902_v20 = vmul.f32 %v1838_v57, %v6887_v35 }
 0x356   : > { %2879 = vadd.xlane.f32.xlu1 %v2878_v1  ;;  %v1840_v52 = vadd.f32 -0.28449672, %v1776_v0  ;;  %v2288_v38 = vmul.f32 1.442695, %v2161_v44  ;;  %2641 = vadd.xlane.f32.xlu0 %v2640_v30  ;;  %v2413_v60 = vsub.f32 1.0, %v2349_v29  ;;  %3981 = vpow2.f32 %v2284_v28  ;;  %v8090_v0 = vld [vmem:[#allocation39_spill] sm:$0xff] }
 0x357   : > { %v1841_v12 = vadd.f32 -0.28449672, %v1777_v56  ;;  %v2643_v39 = vadd.f32 %v8087_v45, %v6511_v59  ;;  %v1903_v13 = vmul.f32 %v1839_v24, %v6897_v37  ;;  %v2688_v2 = vadd.f32 %v8089_v42, %v8088_v25  ;;  %v8091_v29 = vld [vmem:[#allocation67_spill] sm:$0xff] }
 0x358   : > { %v2759_v32 = vmul.f32 %v8086_v11, %v8086_v11  ;;  %v2760_v43 = vmul.f32 %v6429_v50, %v6429_v50  ;;  %v1998_v44 = vmul.f32 %v1934_v49, %v6842_v34  ;;  %v1999_v33 = vmul.f32 %v1935_v40, %v6866_v6  ;;  %v8092_v40 = vld [vmem:[#allocation48_spill] sm:$0xff] }
 0x359   : > { %v1936_v9 = vadd.f32 0.2548296, %v1872_v53  ;;  %3983 = vpow2.f32 %v2286_v41  ;;  %v3978_v54 = vpop.eup %3977  ;;  %v1937_v36 = vadd.f32 0.2548296, %v1873_v26  ;;  %v1966_v4 = vadd.f32 0.2548296, %v1902_v20 }
 0x35a   : > { %2644 = vadd.xlane.f32.xlu1 %v2643_v39  ;;  %v1904_v51 = vmul.f32 %v1840_v52, %v6909_v58  ;;  %3985 = vpow2.f32 %v2288_v38  ;;  %2689 = vadd.xlane.f32.xlu0 %v2688_v2  ;;  %v1905_v57 = vmul.f32 %v1841_v12, %v6911_v5  ;;  %v2691_v28 = vadd.f32 %v8091_v29, %v8090_v0 }
 0x35b   : > { %v2761_v34 = vmul.f32 %v6511_v59, %v6511_v59  ;;  %v2762_v6 = vmul.f32 %v8087_v45, %v8087_v45  ;;  %v1967_v56 = vadd.f32 0.2548296, %v1903_v13  ;;  %v2833_v1 = vadd.f32 %v2760_v43, %v2759_v32  ;;  %v8093_v32 = vld [vmem:[#allocation32_spill] sm:$0xff] }
 0x35c   : > { %v2791_v49 = vmul.f32 %v8088_v25, %v8088_v25  ;;  %v2792_v24 = vmul.f32 %v8089_v42, %v8089_v42  ;;  %v2509_v30 = vadd.f32 1.0, %v2445_v21  ;;  %v2477_v53 = vmul.f32 %v2413_v60, %v8092_v40 }
 0x35d   : > { %v2318_v41 = vmul.f32 %v6895_v22, %v1998_v44  ;;  %v2319_v26 = vmul.f32 %v6957_v46, %v1999_v33  ;;  %v2000_v20 = vmul.f32 %v1936_v9, %v6882_v16  ;;  %v2001_v52 = vmul.f32 %v1937_v36, %v6884_v23  ;;  %v8094_v9 = vld [vmem:[#allocation63_spill] sm:$0xff] }
 0x35e   : > { %2692 = vadd.xlane.f32.xlu1 %v2691_v28  ;;  %v2030_v38 = vmul.f32 %v1966_v4, %v6887_v35  ;;  %v1968_v12 = vadd.f32 0.2548296, %v1904_v51  ;;  %2834 = vadd.xlane.f32.xlu0 %v2833_v1  ;;  %v1969_v13 = vadd.f32 0.2548296, %v1905_v57  ;;  %v2836_v2 = vadd.f32 %v2762_v6, %v2761_v34  ;;  %v8096_v1 = vld [vmem:[#allocation13_spill] sm:$0xff] }
 0x35f   : > { %v3980_v39 = vpop.eup %3979  ;;  %v2793_v21 = vmul.f32 %v8090_v0, %v8090_v0  ;;  %v2794_v22 = vmul.f32 %v8091_v29, %v8091_v29  ;;  %v976_v46 = vsel %vm912_vm10, -1.0, %v7817_v62  ;;  %v977_v16 = vsel %vm913_vm11, -1.0, %v7817_v62 }
 0x360   : > { %v2031_v23 = vmul.f32 %v1967_v56, %v6897_v37  ;;  %v2881_v35 = vadd.f32 %v2792_v24, %v2791_v49  ;;  %v3982_v60 = vpop.eup %3981  ;;  %v7033_v43 = vmul.f32 %v6926_v47, %v8093_v32  ;;  %v2382_v44 = vsub.f32 1.0, %v2318_v41  ;;  %v8095_v37 = vld [vmem:[#allocation68_spill] sm:$0xff]  ;;  %v8098_v41 = vld [vmem:[#allocation61_spill] sm:$0xff] }
 0x361   : > { %v2383_v33 = vsub.f32 1.0, %v2319_v26  ;;  %vm942_vm12 = vcmp.lt.f32.partialorder %v8094_v9, 0.0  ;;  %v2320_v15 = vmul.f32 %v6966_v18, %v2000_v20  ;;  %v2321_v36 = vmul.f32 %v3978_v54, %v2001_v52  ;;  %v8097_v18 = vld [vmem:[#allocation14_spill] sm:$0xff] }
 0x362   : > { %2837 = vadd.xlane.f32.xlu1 %v2836_v2  ;;  %v2350_v4 = vmul.f32 %v3980_v39, %v2030_v38  ;;  %v2032_v8 = vmul.f32 %v1968_v12, %v6909_v58  ;;  %2882 = vadd.xlane.f32.xlu0 %v2881_v35  ;;  %v7039_v57 = vmul.f32 %v2509_v30, %v8095_v37  ;;  %v2541_v28 = vadd.f32 1.0, %v2477_v53  ;;  %v8099_v38 = vld [vmem:[#allocation51_spill] sm:$0xff]  ;;  %v8102_v37 = vld [vmem:[#allocation33_spill] sm:$0xff] }
 0x363   : > { %v3984_v51 = vpop.eup %3983  ;;  %v2033_v47 = vmul.f32 %v1969_v13, %v6911_v5  ;;  %v2884_v34 = vadd.f32 %v2794_v22, %v2793_v21  ;;  %v1006_v56 = vsel %vm942_vm12, -1.0, %v7817_v62  ;;  %vm943_vm13 = vcmp.lt.f32.partialorder %v8096_v1, 0.0 }
 0x364   : > { %v3986_v6 = vpop.eup %3985  ;;  %v2351_v49 = vmul.f32 %v3982_v60, %v2031_v23  ;;  %v2646_v54 = vadd.f32 %v6771_v63, %v8097_v18  ;;  %v2446_v58 = vmul.f32 %v2382_v44, %v6825_v10  ;;  %v2447_v24 = vmul.f32 %v2383_v33, %v6855_v19 }
 0x365   : > { %vm944_vm14 = vcmp.lt.f32.partialorder %v6708_v61, 0.0  ;;  %vm945_vm15 = vcmp.lt.f32.partialorder %v6715_v17, 0.0  ;;  %v2384_v5 = vsub.f32 1.0, %v2320_v15  ;;  %v2385_v30 = vsub.f32 1.0, %v2321_v36 }
 0x366   : > { %2885 = vadd.xlane.f32.xlu1 %v2884_v34  ;;  %v2414_v40 = vsub.f32 1.0, %v2350_v4  ;;  %v2352_v53 = vmul.f32 %v3984_v51, %v2032_v8  ;;  %2647 = vadd.xlane.f32.xlu0 %v2646_v54  ;;  %v7051_v26 = vmul.f32 %v2541_v28, %v8098_v41  ;;  %v1007_v20 = vsel %vm943_vm13, -1.0, %v7817_v62  ;;  %v8101_v8 = vld [vmem:[#allocation17_spill] sm:$0xff] }
 0x367   : > { %v2353_v52 = vmul.f32 %v3986_v6, %v2033_v47  ;;  %v2649_v10 = vadd.f32 %v7039_v57, %v6859_v3  ;;  %v2415_v19 = vsub.f32 1.0, %v2351_v49  ;;  %v2694_v12 = vadd.f32 %v6829_v55, %v8099_v38  ;;  %v8103_v47 = vld [vmem:[#allocation44_spill] sm:$0xff]  ;;  %v8104_v6 = vld [vmem:[#allocation55_spill] sm:$0xff] }
 0x368   : > { %v2763_v39 = vmul.f32 %v8097_v18, %v8097_v18  ;;  %v2764_v13 = vmul.f32 %v6771_v63, %v6771_v63  ;;  %v2510_v2 = vadd.f32 1.0, %v2446_v58  ;;  %v2511_v21 = vadd.f32 1.0, %v2447_v24 }
 0x369   : > { %v1008_v22 = vsel %vm944_vm14, -1.0, %v7817_v62  ;;  %v1009_v23 = vsel %vm945_vm15, -1.0, %v7817_v62  ;;  %v2448_v35 = vmul.f32 %v2384_v5, %v976_v46  ;;  %v2449_v60 = vmul.f32 %v2385_v30, %v977_v16  ;;  %v8100_v46 = vld [vmem:[#allocation66_spill] sm:$0xff] }
 0x36a   : > { %2650 = vadd.xlane.f32.xlu1 %v2649_v10  ;;  %v2478_v32 = vmul.f32 %v2414_v40, %v1006_v56  ;;  %v2416_v44 = vsub.f32 1.0, %v2352_v53  ;;  %2695 = vadd.xlane.f32.xlu0 %v2694_v12  ;;  %v2417_v33 = vsub.f32 1.0, %v2353_v52  ;;  %v2697_v9 = vadd.f32 %v7051_v26, %v7033_v43  ;;  %v8105_v10 = vld [vmem:[#allocation22_spill] sm:$0xff]  ;;  %v8106_v12 = vld [vmem:[#allocation25_spill] sm:$0xff] }
 0x36b   : > { %v2765_v15 = vmul.f32 %v6859_v3, %v6859_v3  ;;  %v2766_v61 = vmul.f32 %v7039_v57, %v7039_v57  ;;  %v2479_v36 = vmul.f32 %v2415_v19, %v1007_v20  ;;  %v2839_v4 = vadd.f32 %v2764_v13, %v2763_v39 }
 0x36c   : > { %v2795_v62 = vmul.f32 %v8099_v38, %v8099_v38  ;;  %v2796_v17 = vmul.f32 %v6829_v55, %v6829_v55  ;;  %v784_v16 = vmul.f32 0.5, %v8100_v46  ;;  %v785_v51 = vmul.f32 0.5, %v8101_v8 }
 0x36d   : > { %v814_v28 = vmul.f32 0.5, %v8102_v37  ;;  %v815_v34 = vmul.f32 0.5, %v8103_v47  ;;  %v7083_v56 = vmul.f32 %v2510_v2, %v8104_v6  ;;  %v2512_v1 = vadd.f32 1.0, %v2448_v35  ;;  %v2612_v47 = vpop.xlane.xlu0 %2611 }
 0x36e   : > { %2698 = vadd.xlane.f32.xlu1 %v2697_v9  ;;  %v2513_v49 = vadd.f32 1.0, %v2449_v60  ;;  %v2480_v54 = vmul.f32 %v2416_v44, %v1008_v22  ;;  %2840 = vadd.xlane.f32.xlu0 %v2839_v4  ;;  %v2481_v58 = vmul.f32 %v2417_v33, %v1009_v23  ;;  %v2842_v24 = vadd.f32 %v2766_v61, %v2765_v15 }
 0x36f   : > { %v2797_v5 = vmul.f32 %v7033_v43, %v7033_v43  ;;  %v2798_v30 = vmul.f32 %v7051_v26, %v7051_v26  ;;  %v7090_v40 = vmul.f32 %v2511_v21, %v6833_v31  ;;  %v2542_v53 = vadd.f32 1.0, %v2478_v32 }
 0x370   : > { %v2543_v41 = vadd.f32 1.0, %v2479_v36  ;;  %v2887_v20 = vadd.f32 %v2796_v17, %v2795_v62  ;;  %v7092_v52 = vmul.f32 %v2512_v1, %v784_v16  ;;  %v816_v19 = vmul.f32 0.5, %v8105_v10 }
 0x371   : > { %v817_v39 = vmul.f32 0.5, %v8106_v12  ;;  %v7096_v13 = vmul.f32 %v2513_v49, %v785_v51  ;;  %v2544_v2 = vadd.f32 1.0, %v2480_v54  ;;  %v2545_v22 = vadd.f32 1.0, %v2481_v58 }
 0x372   : > { %2843 = vadd.xlane.f32.xlu1 %v2842_v24  ;;  %2888 = vadd.xlane.f32.xlu0 %v2887_v20  ;;  %v2890_v23 = vadd.f32 %v2798_v30, %v2797_v5  ;;  %v7098_v35 = vmul.f32 %v2542_v53, %v814_v28  ;;  %v7100_v31 = vmul.f32 %v2543_v41, %v815_v34  ;;  %v2663_v34 = vpop.xlane.xlu1 %2662  ;;  %v2660_v6 = vpop.xlane.xlu0 %2659  ;;  %v7132_v53 = vmul.f32 0.00390625, %v2612_v47 }
 0x373   : > { %v2652_v21 = vadd.f32 %v7090_v40, %v7083_v56  ;;  %v7104_v60 = vmul.f32 %v2544_v2, %v816_v19  ;;  %v7106_v32 = vmul.f32 %v2545_v22, %v817_v39  ;;  %v2655_v44 = vadd.f32 %v7096_v13, %v7092_v52 }
 0x374   : > { %v2700_v33 = vadd.f32 %v7100_v31, %v7098_v35  ;;  %v2767_v9 = vmul.f32 %v7083_v56, %v7083_v56  ;;  %v2768_v15 = vmul.f32 %v7090_v40, %v7090_v40  ;;  %v2769_v36 = vmul.f32 %v7092_v52, %v7092_v52 }
 0x375   : > { %8107 = vst [vmem:[#allocation71_spill] sm:$0xff] %v7106_v32  ;;  %v2703_v61 = vadd.f32 %v7106_v32, %v7104_v60  ;;  %v2770_v4 = vmul.f32 %v7096_v13, %v7096_v13  ;;  %v2799_v17 = vmul.f32 %v7098_v35, %v7098_v35  ;;  %v2800_v46 = vmul.f32 %v7100_v31, %v7100_v31 }
 0x376   : > { %2891 = vadd.xlane.f32.xlu1 %v2890_v23  ;;  %2653 = vadd.xlane.f32.xlu0 %v2652_v21  ;;  %v2845_v62 = vadd.f32 %v2768_v15, %v2767_v9  ;;  %v2801_v8 = vmul.f32 %v7104_v60, %v7104_v60  ;;  %v2802_v51 = vmul.f32 %v7106_v32, %v7106_v32  ;;  %v7130_v30 = vmul.f32 0.00390625, %v2663_v34  ;;  %v8108_v34 = vld [vmem:[#allocation20_spill] sm:$0xff] }
 0x377   : > { %v2848_v16 = vadd.f32 %v2770_v4, %v2769_v36  ;;  %v2893_v37 = vadd.f32 %v2800_v46, %v2799_v17  ;;  %v7136_v2 = vmul.f32 0.00390625, %v2660_v6  ;;  %v2931_v22 = vmul.f32 %v7132_v53, %v7132_v53  ;;  %v3219_v17 = vld [vmem:[%s7648_s3] sm:$0x3] }
 0x378   : > { %v2896_v28 = vadd.f32 %v2802_v51, %v2801_v8  ;;  %v2948_v19 = vmul.f32 %v7130_v30, %v7130_v30  ;;  %v3295_v51 = vld [vmem:[%s7649_s4] sm:$0x3]  ;;  %v7151_v6 = vrot.slane %v3219_v17, %v8108_v34 }
 0x379   : > { %v2947_v36 = vmul.f32 %v7136_v2, %v7136_v2 }
 0x37a   : > { %2656 = vadd.xlane.f32.xlu1 %v2655_v44  ;;  %2701 = vadd.xlane.f32.xlu0 %v2700_v33 }
 0x37e   : > { %2704 = vadd.xlane.f32.xlu1 %v2703_v61  ;;  %2846 = vadd.xlane.f32.xlu0 %v2845_v62 }
 0x382   : > { %2849 = vadd.xlane.f32.xlu1 %v2848_v16  ;;  %2894 = vadd.xlane.f32.xlu0 %v2893_v37 }
 0x386   : > { %2897 = vadd.xlane.f32.xlu1 %v2896_v28 }
 0x388   : > { %v2808_v1 = vpop.xlane.xlu1 %2807 }
 0x389   : > { %v2900_v58 = vmul.f32 0.00390625, %v2808_v1  ;;  %v8109_v1 = vld [vmem:[#allocation21_spill] sm:$0xff] }
 0x394   : > { %v2615_v49 = vpop.xlane.xlu0 %2614 }
 0x395   : > { %v2708_v54 = vmul.f32 0.00390625, %v2615_v49  ;;  %v7154_v49 = vrot.slane %v3219_v17, %v8109_v1  ;;  %v8113_v17 = vld [vmem:[#allocation52_spill] sm:$0xff] }
 0x397   : > { %v2932_v24 = vmul.f32 %v2708_v54, %v2708_v54 }
 0x399   : > { %v2964_v5 = vsub.f32 %v2900_v58, %v2932_v24  ;;  %v8110_v58 = vld [vmem:[#allocation57_spill] sm:$0xff] }
 0x39a   : > { %v3093_v24 = vsub.f32 %v8110_v58, %v2708_v54 }
 0x39b   : > { %v2996_v41 = vmax.f32 %v2964_v5, 0.0  ;;  %v8111_v5 = vld [vmem:[#allocation37_spill] sm:$0xff] }
 0x39d   : > { %v3028_v20 = vadd.f32 1e-12, %v2996_v41  ;;  %v2856_v10 = vpop.xlane.xlu1 %2855  ;;  %v3094_v41 = vsub.f32 %v8111_v5, %v2708_v54  ;;  %v8115_v5 = vld [vmem:[#allocation29_spill] sm:$0xff] }
 0x39e   : > { %v2916_v12 = vmul.f32 0.00390625, %v2856_v10  ;;  %v2805_v39 = vpop.xlane.xlu0 %2804  ;;  %v7159_v10 = vrot.slane %v3295_v51, %v8108_v34 }
 0x39f   : > { %3987 = vrsqrt.f32 %v3028_v20  ;;  %v2899_v23 = vmul.f32 0.00390625, %v2805_v39  ;;  %v7162_v39 = vrot.slane %v3295_v51, %v8109_v1 }
 0x3a0   : > { %v2980_v21 = vsub.f32 %v2916_v12, %v2948_v19 }
 0x3a1   : > { %v2963_v44 = vsub.f32 %v2899_v23, %v2931_v22  ;;  %v2618_v33 = vpop.xlane.xlu1 %2617 }
 0x3a2   : > { %v3012_v9 = vmax.f32 %v2980_v21, 0.0  ;;  %v2853_v15 = vpop.xlane.xlu0 %2852  ;;  %v7148_v28 = vmul.f32 0.00390625, %v2618_v33 }
 0x3a3   : > { %v2995_v61 = vmax.f32 %v2963_v44, 0.0  ;;  %v2915_v4 = vmul.f32 0.00390625, %v2853_v15 }
 0x3a4   : > { %v3044_v62 = vadd.f32 1e-12, %v3012_v9  ;;  %v2933_v54 = vmul.f32 %v7148_v28, %v7148_v28 }
 0x3a5   : > { %v3027_v46 = vadd.f32 1e-12, %v2995_v61  ;;  %v2979_v16 = vsub.f32 %v2915_v4, %v2947_v36  ;;  %v8112_v4 = vld [vmem:[#allocation15_spill] sm:$0xff] }
 0x3a6   : > { %3989 = vrsqrt.f32 %v3044_v62  ;;  %v3091_v62 = vsub.f32 %v8112_v4, %v7132_v53 }
 0x3a7   : > { %v2621_v8 = vpop.xlane.xlu1 %2620  ;;  %v2666_v37 = vpop.xlane.xlu0 %2665  ;;  %3991 = vrsqrt.f32 %v3027_v46  ;;  %v3011_v47 = vmax.f32 %v2979_v16, 0.0  ;;  %v3092_v46 = vsub.f32 %v8113_v17, %v7132_v53  ;;  %v8114_v16 = vld [vmem:[#allocation54_spill] sm:$0xff] }
 0x3a8   : > { %v7164_v21 = vmul.f32 0.00390625, %v2621_v8  ;;  %v7166_v33 = vmul.f32 0.00390625, %v2666_v37  ;;  %v3125_v8 = vsub.f32 %v8114_v16, %v7130_v30 }
 0x3a9   : > { %v3988_v20 = vpop.eup %3987  ;;  %v3043_v19 = vadd.f32 1e-12, %v3011_v47 }
 0x3aa   : > { %v3157_v22 = vmul.f32 %v3988_v20, %v3093_v24  ;;  %v3158_v23 = vmul.f32 %v3988_v20, %v3094_v41  ;;  %v2934_v1 = vmul.f32 %v7164_v21, %v7164_v21  ;;  %v3126_v41 = vsub.f32 %v8115_v5, %v7130_v30 }
 0x3ab   : > { %v2669_v12 = vpop.xlane.xlu1 %2668  ;;  %v2811_v44 = vpop.xlane.xlu0 %2810  ;;  %3993 = vrsqrt.f32 %v3043_v19  ;;  %v2949_v53 = vmul.f32 %v7166_v33, %v7166_v33 }
 0x3ac   : > { %v2901_v9 = vmul.f32 0.00390625, %v2811_v44  ;;  %v3233_v15 = vmul.f32 %v7151_v6, %v3157_v22  ;;  %v3234_v61 = vmul.f32 %v7154_v49, %v3158_v23  ;;  %v7172_v36 = vmul.f32 0.00390625, %v2669_v12  ;;  %v8116_v22 = vld [vmem:[#allocation30_spill] sm:$0xff]  ;;  %v8117_v44 = vld [vmem:[#allocation56_spill] sm:$0xff] }
 0x3ad   : > { %v3123_v23 = vsub.f32 %v8116_v22, %v7136_v2 }
 0x3ae   : > { %v2965_v51 = vsub.f32 %v2901_v9, %v2933_v54  ;;  %v3309_v47 = vadd.f32 %v7159_v10, %v3233_v15  ;;  %v3310_v34 = vadd.f32 %v7162_v39, %v3234_v61  ;;  %v3124_v54 = vsub.f32 %v8117_v44, %v7136_v2 }
 0x3af   : > { %v2814_v37 = vpop.xlane.xlu1 %2813  ;;  %v2859_v24 = vpop.xlane.xlu0 %2858  ;;  %v2950_v9 = vmul.f32 %v7172_v36, %v7172_v36 }
 0x3b0   : > { %v2902_v58 = vmul.f32 0.00390625, %v2814_v37  ;;  %v2997_v20 = vmax.f32 %v2965_v51, 0.0  ;;  %v2917_v19 = vmul.f32 0.00390625, %v2859_v24  ;;  %v3990_v12 = vpop.eup %3989  ;;  %3373 = vst [vmem:[%s7194_s10 + $0x10] sm:$0xff] %v3309_v47  ;;  %3374 = vst [vmem:[%s7194_s10 + $0x18] sm:$0xff] %v3310_v34 }
 0x3b1   : > { %v3992_v15 = vpop.eup %3991  ;;  %v3189_v61 = vmul.f32 %v3990_v12, %v3125_v8  ;;  %v3190_v4 = vmul.f32 %v3990_v12, %v3126_v41 }
 0x3b2   : > { %v2966_v30 = vsub.f32 %v2902_v58, %v2934_v1  ;;  %v3029_v17 = vadd.f32 1e-12, %v2997_v20  ;;  %v2981_v16 = vsub.f32 %v2917_v19, %v2949_v53  ;;  %v3155_v37 = vmul.f32 %v3992_v15, %v3091_v62 }
 0x3b3   : > { %v2862_v51 = vpop.xlane.xlu1 %2861  ;;  %v3156_v24 = vmul.f32 %v3992_v15, %v3092_v46  ;;  %v2624_v22 = vpop.xlane.xlu0 %2623  ;;  %v3265_v44 = vmul.f32 %v7151_v6, %v3189_v61  ;;  %v3266_v47 = vmul.f32 %v7154_v49, %v3190_v4 }
 0x3b4   : > { %v2998_v2 = vmax.f32 %v2966_v30, 0.0  ;;  %v2918_v5 = vmul.f32 0.00390625, %v2862_v51  ;;  %3995 = vrsqrt.f32 %v3029_v17  ;;  %v3013_v34 = vmax.f32 %v2981_v16, 0.0 }
 0x3b5   : > { %v3231_v1 = vmul.f32 %v7151_v6, %v3155_v37  ;;  %v3232_v8 = vmul.f32 %v7154_v49, %v3156_v24  ;;  %v3994_v62 = vpop.eup %3993  ;;  %v3341_v46 = vadd.f32 %v7159_v10, %v3265_v44  ;;  %v3342_v20 = vadd.f32 %v7162_v39, %v3266_v47  ;;  %v8118_v47 = vld [vmem:[#allocation47_spill] sm:$0xff] }
 0x3b6   : > { %v3030_v58 = vadd.f32 1e-12, %v2998_v2  ;;  %v2982_v41 = vsub.f32 %v2918_v5, %v2950_v9  ;;  %v3045_v53 = vadd.f32 1e-12, %v3013_v34  ;;  %v3187_v15 = vmul.f32 %v3994_v62, %v3123_v23 }
 0x3b7   : > { %v2627_v19 = vpop.xlane.xlu1 %2626  ;;  %v3307_v12 = vadd.f32 %v7159_v10, %v3231_v1  ;;  %v3308_v30 = vadd.f32 %v7162_v39, %v3232_v8  ;;  %v3188_v61 = vmul.f32 %v3994_v62, %v3124_v54  ;;  %v2672_v4 = vpop.xlane.xlu0 %2671  ;;  %3405 = vst [vmem:[%s7194_s10 + $0x110] sm:$0xff] %v3341_v46  ;;  %3406 = vst [vmem:[%s7194_s10 + $0x118] sm:$0xff] %v3342_v20  ;;  %v7214_v51 = vmul.f32 0.00390625, %v2624_v22  ;;  %v8119_v1 = vld [vmem:[#allocation18_spill] sm:$0xff]  ;;  %v8120_v62 = vld [vmem:[#allocation60_spill] sm:$0xff] }
 0x3b8   : > { %3997 = vrsqrt.f32 %v3030_v58  ;;  %v3014_v17 = vmax.f32 %v2982_v41, 0.0  ;;  %v3263_v9 = vmul.f32 %v7151_v6, %v3187_v15  ;;  %v7216_v24 = vmul.f32 0.00390625, %v2627_v19  ;;  %v8121_v20 = vld [vmem:[#allocation46_spill] sm:$0xff] }
 0x3b9   : > { %3371 = vst [vmem:[%s7194_s10] sm:$0xff] %v3307_v12  ;;  %3372 = vst [vmem:[%s7194_s10 + $0x8] sm:$0xff] %v3308_v30  ;;  %v3264_v16 = vmul.f32 %v7154_v49, %v3188_v61  ;;  %3999 = vrsqrt.f32 %v3045_v53  ;;  %v7220_v44 = vmul.f32 0.00390625, %v2672_v4  ;;  %v3095_v34 = vsub.f32 %v8118_v47, %v7148_v28 }
 0x3ba   : > { %v3046_v37 = vadd.f32 1e-12, %v3014_v17  ;;  %v3339_v54 = vadd.f32 %v7159_v10, %v3263_v9  ;;  %v3096_v8 = vsub.f32 %v8119_v1, %v7148_v28  ;;  %v2935_v22 = vmul.f32 %v7214_v51, %v7214_v51  ;;  %v8122_v9 = vld [vmem:[#allocation16_spill] sm:$0xff] }
 0x3bb   : > { %v2675_v23 = vpop.xlane.xlu1 %2674  ;;  %v3340_v2 = vadd.f32 %v7162_v39, %v3264_v16  ;;  %v2817_v5 = vpop.xlane.xlu0 %2816  ;;  %v3097_v46 = vsub.f32 %v8120_v62, %v7164_v21  ;;  %v3098_v53 = vsub.f32 %v8121_v20, %v7164_v21  ;;  %v2936_v12 = vmul.f32 %v7216_v24, %v7216_v24 }
 0x3bc   : > { %4001 = vrsqrt.f32 %v3046_v37  ;;  %3403 = vst [vmem:[%s7194_s10 + $0x100] sm:$0xff] %v3339_v54  ;;  %v2903_v58 = vmul.f32 0.00390625, %v2817_v5  ;;  %v7234_v19 = vmul.f32 0.00390625, %v2675_v23  ;;  %v3127_v16 = vsub.f32 %v8122_v9, %v7166_v33  ;;  %v8123_v37 = vld [vmem:[#allocation19_spill] sm:$0xff] }
 0x3bd   : > { %3404 = vst [vmem:[%s7194_s10 + $0x108] sm:$0xff] %v3340_v2  ;;  %v3128_v54 = vsub.f32 %v8123_v37, %v7166_v33  ;;  %v2951_v21 = vmul.f32 %v7220_v44, %v7220_v44 }
 0x3be   : > { %v3996_v41 = vpop.eup %3995  ;;  %v2967_v61 = vsub.f32 %v2903_v58, %v2935_v22  ;;  %v8125_v58 = vld [vmem:[#allocation45_spill] sm:$0xff]  ;;  %v2952_v62 = vmul.f32 %v7234_v19, %v7234_v19 }
 0x3bf   : > { %v2820_v30 = vpop.xlane.xlu1 %2819  ;;  %v3159_v28 = vmul.f32 %v3996_v41, %v3095_v34  ;;  %v3160_v15 = vmul.f32 %v3996_v41, %v3096_v8  ;;  %v2865_v17 = vpop.xlane.xlu0 %2864  ;;  %v8124_v8 = vld [vmem:[#allocation23_spill] sm:$0xff]  ;;  %v3130_v41 = vsub.f32 %v8125_v58, %v7172_v36 }
 0x3c0   : > { %v2904_v4 = vmul.f32 0.00390625, %v2820_v30  ;;  %v2919_v23 = vmul.f32 0.00390625, %v2865_v17  ;;  %v2999_v47 = vmax.f32 %v2967_v61, 0.0  ;;  %v3129_v22 = vsub.f32 %v8124_v8, %v7172_v36 }
 0x3c1   : > { %v3235_v2 = vmul.f32 %v7151_v6, %v3159_v28  ;;  %v3236_v5 = vmul.f32 %v7154_v49, %v3160_v15 }
 0x3c2   : > { %v2968_v34 = vsub.f32 %v2904_v4, %v2936_v12  ;;  %v3998_v1 = vpop.eup %3997  ;;  %v2983_v33 = vsub.f32 %v2919_v23, %v2951_v21  ;;  %v3031_v37 = vadd.f32 1e-12, %v2999_v47 }
 0x3c3   : > { %v2868_v20 = vpop.xlane.xlu1 %2867  ;;  %v4000_v30 = vpop.eup %3999  ;;  %v3311_v28 = vadd.f32 %v7159_v10, %v3235_v2  ;;  %v3312_v15 = vadd.f32 %v7162_v39, %v3236_v5  ;;  %v3161_v12 = vmul.f32 %v3998_v1, %v3097_v46  ;;  %v3162_v61 = vmul.f32 %v3998_v1, %v3098_v53 }
 0x3c4   : > { %v2630_v4 = vpop.xlane.xlu0 %2629  ;;  %v3191_v17 = vmul.f32 %v4000_v30, %v3127_v16  ;;  %v3192_v9 = vmul.f32 %v4000_v30, %v3128_v54  ;;  %v3000_v8 = vmax.f32 %v2968_v34, 0.0  ;;  %v3015_v23 = vmax.f32 %v2983_v33, 0.0 }
 0x3c5   : > { %3375 = vst [vmem:[%s7194_s10 + $0x20] sm:$0xff] %v3311_v28  ;;  %3376 = vst [vmem:[%s7194_s10 + $0x28] sm:$0xff] %v3312_v15  ;;  %v3237_v36 = vmul.f32 %v7151_v6, %v3161_v12  ;;  %v3238_v21 = vmul.f32 %v7154_v49, %v3162_v61  ;;  %v2920_v58 = vmul.f32 0.00390625, %v2868_v20  ;;  %4003 = vrsqrt.f32 %v3031_v37 }
 0x3c6   : > { %v4002_v32 = vpop.eup %4001  ;;  %v3267_v2 = vmul.f32 %v7151_v6, %v3191_v17  ;;  %v3268_v46 = vmul.f32 %v7154_v49, %v3192_v9  ;;  %v3032_v53 = vadd.f32 1e-12, %v3000_v8  ;;  %v3047_v30 = vadd.f32 1e-12, %v3015_v23 }
 0x3c7   : > { %v2633_v16 = vpop.xlane.xlu1 %2632  ;;  %v3313_v54 = vadd.f32 %v7159_v10, %v3237_v36  ;;  %v3314_v5 = vadd.f32 %v7162_v39, %v3238_v21  ;;  %v3193_v47 = vmul.f32 %v4002_v32, %v3129_v22  ;;  %v3194_v34 = vmul.f32 %v4002_v32, %v3130_v41  ;;  %v8127_v21 = vld [vmem:[#allocation62_spill] sm:$0xff] }
 0x3c8   : > { %v2678_v1 = vpop.xlane.xlu0 %2677  ;;  %v3343_v33 = vadd.f32 %v7159_v10, %v3267_v2  ;;  %v3344_v20 = vadd.f32 %v7162_v39, %v3268_v46  ;;  %4005 = vrsqrt.f32 %v3032_v53  ;;  %v2984_v12 = vsub.f32 %v2920_v58, %v2952_v62  ;;  %v8126_v62 = vld [vmem:[#allocation49_spill] sm:$0xff]  ;;  %v8128_v58 = vld [vmem:[#allocation64_spill] sm:$0xff] }
 0x3c9   : > { %3377 = vst [vmem:[%s7194_s10 + $0x30] sm:$0xff] %v3313_v54  ;;  %3378 = vst [vmem:[%s7194_s10 + $0x38] sm:$0xff] %v3314_v5  ;;  %v3269_v28 = vmul.f32 %v7151_v6, %v3193_v47  ;;  %v3270_v15 = vmul.f32 %v7154_v49, %v3194_v34  ;;  %4007 = vrsqrt.f32 %v3047_v30  ;;  %v7270_v32 = vmul.f32 0.00390625, %v2630_v4  ;;  %v8129_v5 = vld [vmem:[#allocation65_spill] sm:$0xff] }
 0x3ca   : > { %3407 = vst [vmem:[%s7194_s10 + $0x120] sm:$0xff] %v3343_v33  ;;  %3408 = vst [vmem:[%s7194_s10 + $0x128] sm:$0xff] %v3344_v20  ;;  %v3016_v17 = vmax.f32 %v2984_v12, 0.0  ;;  %v7274_v9 = vmul.f32 0.00390625, %v2633_v16  ;;  %v7276_v8 = vmul.f32 0.00390625, %v2678_v1  ;;  %v3099_v36 = vsub.f32 %v8126_v62, %v7214_v51  ;;  %v8130_v20 = vld [vmem:[#allocation27_spill] sm:$0xff] }
 0x3cb   : > { %v2681_v22 = vpop.xlane.xlu1 %2680  ;;  %v3345_v41 = vadd.f32 %v7159_v10, %v3269_v28  ;;  %v3346_v61 = vadd.f32 %v7162_v39, %v3270_v15  ;;  %v3100_v4 = vsub.f32 %v8127_v21, %v7214_v51  ;;  %v3101_v2 = vsub.f32 %v8128_v58, %v7216_v24  ;;  %v8132_v62 = vld [vmem:[#allocation38_spill] sm:$0xff] }
 0x3cc   : > { %v2823_v37 = vpop.xlane.xlu0 %2822  ;;  %v3048_v23 = vadd.f32 1e-12, %v3016_v17  ;;  %v7286_v46 = vmul.f32 0.00390625, %v2681_v22  ;;  %v2937_v53 = vmul.f32 %v7270_v32, %v7270_v32  ;;  %v3102_v47 = vsub.f32 %v8129_v5, %v7216_v24  ;;  %v8131_v22 = vld [vmem:[#allocation34_spill] sm:$0xff] }
 0x3cd   : > { %3409 = vst [vmem:[%s7194_s10 + $0x130] sm:$0xff] %v3345_v41  ;;  %3410 = vst [vmem:[%s7194_s10 + $0x138] sm:$0xff] %v3346_v61  ;;  %v2905_v16 = vmul.f32 0.00390625, %v2823_v37  ;;  %v2938_v34 = vmul.f32 %v7274_v9, %v7274_v9  ;;  %v3131_v30 = vsub.f32 %v8130_v20, %v7220_v44  ;;  %v2953_v15 = vmul.f32 %v7276_v8, %v7276_v8 }
 0x3ce   : > { %4009 = vrsqrt.f32 %v3048_v23  ;;  %v3132_v41 = vsub.f32 %v8131_v22, %v7220_v44  ;;  %v3133_v21 = vsub.f32 %v8132_v62, %v7234_v19 }
 0x3cf   : > { %v2826_v54 = vpop.xlane.xlu1 %2825  ;;  %v4004_v33 = vpop.eup %4003  ;;  %v2969_v28 = vsub.f32 %v2905_v16, %v2937_v53 }
 0x3d0   : > { %v2906_v1 = vmul.f32 0.00390625, %v2826_v54  ;;  %v2871_v51 = vpop.xlane.xlu0 %2870  ;;  %v3163_v61 = vmul.f32 %v4004_v33, %v3099_v36  ;;  %v3164_v24 = vmul.f32 %v4004_v33, %v3100_v4  ;;  %v2954_v54 = vmul.f32 %v7286_v46, %v7286_v46 }
 0x3d1   : > { %v2921_v12 = vmul.f32 0.00390625, %v2871_v51  ;;  %v3001_v23 = vmax.f32 %v2969_v28, 0.0 }
 0x3d2   : > { %v2970_v17 = vsub.f32 %v2906_v1, %v2938_v34  ;;  %v4006_v37 = vpop.eup %4005  ;;  %v3239_v16 = vmul.f32 %v7151_v6, %v3163_v61  ;;  %v3240_v5 = vmul.f32 %v7154_v49, %v3164_v24 }
 0x3d3   : > { %v2985_v58 = vsub.f32 %v2921_v12, %v2953_v15  ;;  %v2874_v53 = vpop.xlane.xlu1 %2873  ;;  %v3165_v51 = vmul.f32 %v4006_v37, %v3101_v2  ;;  %v3166_v20 = vmul.f32 %v4006_v37, %v3102_v47  ;;  %v4008_v36 = vpop.eup %4007  ;;  %v3033_v4 = vadd.f32 1e-12, %v3001_v23 }
 0x3d4   : > { %v2636_v44 = vpop.xlane.xlu0 %2635  ;;  %v3002_v34 = vmax.f32 %v2970_v17, 0.0  ;;  %v2922_v33 = vmul.f32 0.00390625, %v2874_v53  ;;  %v3315_v28 = vadd.f32 %v7159_v10, %v3239_v16  ;;  %v3316_v15 = vadd.f32 %v7162_v39, %v3240_v5  ;;  %v8133_v53 = vld [vmem:[#allocation42_spill] sm:$0xff] }
 0x3d5   : > { %v3017_v1 = vmax.f32 %v2985_v58, 0.0  ;;  %v3241_v12 = vmul.f32 %v7151_v6, %v3165_v51  ;;  %v3242_v22 = vmul.f32 %v7154_v49, %v3166_v20  ;;  %v3195_v61 = vmul.f32 %v4008_v36, %v3131_v30 }
 0x3d6   : > { %v3196_v24 = vmul.f32 %v4008_v36, %v3132_v41  ;;  %4011 = vrsqrt.f32 %v3033_v4  ;;  %v3034_v2 = vadd.f32 1e-12, %v3002_v34  ;;  %3379 = vst [vmem:[%s7194_s10 + $0x40] sm:$0xff] %v3315_v28  ;;  %3380 = vst [vmem:[%s7194_s10 + $0x48] sm:$0xff] %v3316_v15  ;;  %v2986_v23 = vsub.f32 %v2922_v33, %v2954_v54 }
 0x3d7   : > { %v2639_v47 = vpop.xlane.xlu1 %2638  ;;  %v3317_v17 = vadd.f32 %v7159_v10, %v3241_v12  ;;  %v3318_v37 = vadd.f32 %v7162_v39, %v3242_v22  ;;  %v3049_v62 = vadd.f32 1e-12, %v3017_v1  ;;  %v3134_v16 = vsub.f32 %v8133_v53, %v7234_v19 }
 0x3d8   : > { %v2684_v58 = vpop.xlane.xlu0 %2683  ;;  %v3271_v30 = vmul.f32 %v7151_v6, %v3195_v61  ;;  %v3272_v41 = vmul.f32 %v7154_v49, %v3196_v24  ;;  %4013 = vrsqrt.f32 %v3034_v2  ;;  %v4010_v5 = vpop.eup %4009  ;;  %v3018_v51 = vmax.f32 %v2986_v23, 0.0  ;;  %v8135_v24 = vld [vmem:[#allocation11_spill] sm:$0xff] }
 0x3d9   : > { %3381 = vst [vmem:[%s7194_s10 + $0x50] sm:$0xff] %v3317_v17  ;;  %3382 = vst [vmem:[%s7194_s10 + $0x58] sm:$0xff] %v3318_v37  ;;  %4015 = vrsqrt.f32 %v3049_v62  ;;  %v7320_v20 = vmul.f32 0.00390625, %v2636_v44  ;;  %v3197_v4 = vmul.f32 %v4010_v5, %v3133_v21  ;;  %v3198_v19 = vmul.f32 %v4010_v5, %v3134_v16  ;;  %v8134_v44 = vld [vmem:[#allocation26_spill] sm:$0xff] }
 0x3da   : > { %v3347_v54 = vadd.f32 %v7159_v10, %v3271_v30  ;;  %v3348_v36 = vadd.f32 %v7162_v39, %v3272_v41  ;;  %v3050_v1 = vadd.f32 1e-12, %v3018_v51  ;;  %v7324_v33 = vmul.f32 0.00390625, %v2639_v47  ;;  %v8137_v51 = vld [vmem:[#allocation72_spill] sm:$0xff] }
 0x3db   : > { %v2687_v34 = vpop.xlane.xlu1 %2686  ;;  %v3273_v15 = vmul.f32 %v7151_v6, %v3197_v4  ;;  %v3274_v12 = vmul.f32 %v7154_v49, %v3198_v19  ;;  %v3103_v22 = vsub.f32 %v8134_v44, %v7270_v32  ;;  %v7332_v61 = vmul.f32 0.00390625, %v2684_v58 }
 0x3dc   : > { %v2829_v28 = vpop.xlane.xlu0 %2828  ;;  %3411 = vst [vmem:[%s7194_s10 + $0x140] sm:$0xff] %v3347_v54  ;;  %3412 = vst [vmem:[%s7194_s10 + $0x148] sm:$0xff] %v3348_v36  ;;  %v3104_v21 = vsub.f32 %v8135_v24, %v7270_v32  ;;  %v3105_v2 = vsub.f32 %v8072_v7, %v7274_v9  ;;  %4017 = vrsqrt.f32 %v3050_v1  ;;  %v7338_v47 = vmul.f32 0.00390625, %v2687_v34  ;;  %v8136_v32 = vld [vmem:[#allocation50_spill] sm:$0xff] }
 0x3dd   : > { %v3349_v17 = vadd.f32 %v7159_v10, %v3273_v15  ;;  %v3350_v37 = vadd.f32 %v7162_v39, %v3274_v12  ;;  %v2939_v62 = vmul.f32 %v7320_v20, %v7320_v20  ;;  %v2907_v23 = vmul.f32 0.00390625, %v2829_v28  ;;  %v8139_v12 = vld [vmem:[#allocation43_spill] sm:$0xff] }
 0x3de   : > { %v3106_v53 = vsub.f32 %v8073_v14, %v7274_v9  ;;  %v3135_v16 = vsub.f32 %v8136_v32, %v7276_v8  ;;  %v2940_v7 = vmul.f32 %v7324_v33, %v7324_v33  ;;  %v3136_v54 = vsub.f32 %v8137_v51, %v7276_v8  ;;  %v8138_v14 = vld [vmem:[#allocation75_spill] sm:$0xff] }
 0x3df   : > { %v2832_v58 = vpop.xlane.xlu1 %2831  ;;  %3413 = vst [vmem:[%s7194_s10 + $0x150] sm:$0xff] %v3349_v17  ;;  %3414 = vst [vmem:[%s7194_s10 + $0x158] sm:$0xff] %v3350_v37  ;;  %v2971_v36 = vsub.f32 %v2907_v23, %v2939_v62  ;;  %v2955_v4 = vmul.f32 %v7332_v61, %v7332_v61  ;;  %v3137_v9 = vsub.f32 %v8138_v14, %v7286_v46 }
 0x3e0   : > { %v2908_v30 = vmul.f32 0.00390625, %v2832_v58  ;;  %v2877_v41 = vpop.xlane.xlu0 %2876  ;;  %v4012_v5 = vpop.eup %4011  ;;  %v3138_v44 = vsub.f32 %v8139_v12, %v7286_v46  ;;  %v2956_v8 = vmul.f32 %v7338_v47, %v7338_v47 }
 0x3e1   : > { %v2923_v19 = vmul.f32 0.00390625, %v2877_v41  ;;  %v3167_v34 = vmul.f32 %v4012_v5, %v3103_v22  ;;  %v3168_v1 = vmul.f32 %v4012_v5, %v3104_v21  ;;  %v3003_v24 = vmax.f32 %v2971_v36, 0.0 }
 0x3e2   : > { %v2972_v28 = vsub.f32 %v2908_v30, %v2940_v7  ;;  %v4014_v15 = vpop.eup %4013 }
 0x3e3   : > { %v2987_v17 = vsub.f32 %v2923_v19, %v2955_v4  ;;  %v2880_v37 = vpop.xlane.xlu1 %2879  ;;  %v4016_v62 = vpop.eup %4015  ;;  %v3243_v23 = vmul.f32 %v7151_v6, %v3167_v34  ;;  %v3244_v58 = vmul.f32 %v7154_v49, %v3168_v1  ;;  %v3169_v32 = vmul.f32 %v4014_v15, %v3105_v2 }
 0x3e4   : > { %v3170_v41 = vmul.f32 %v4014_v15, %v3106_v53  ;;  %v2642_v22 = vpop.xlane.xlu0 %2641  ;;  %v3199_v21 = vmul.f32 %v4016_v62, %v3135_v16  ;;  %v3200_v7 = vmul.f32 %v4016_v62, %v3136_v54  ;;  %v3035_v30 = vadd.f32 1e-12, %v3003_v24 }
 0x3e5   : > { %v3004_v46 = vmax.f32 %v2972_v28, 0.0  ;;  %v3319_v5 = vadd.f32 %v7159_v10, %v3243_v23  ;;  %v3320_v51 = vadd.f32 %v7162_v39, %v3244_v58  ;;  %v3245_v36 = vmul.f32 %v7151_v6, %v3169_v32 }
 0x3e6   : > { %v3246_v4 = vmul.f32 %v7154_v49, %v3170_v41  ;;  %v3275_v19 = vmul.f32 %v7151_v6, %v3199_v21  ;;  %v3276_v2 = vmul.f32 %v7154_v49, %v3200_v7  ;;  %4019 = vrsqrt.f32 %v3035_v30  ;;  %v4018_v54 = vpop.eup %4017 }
 0x3e7   : > { %v3036_v53 = vadd.f32 1e-12, %v3004_v46  ;;  %v2645_v16 = vpop.xlane.xlu1 %2644  ;;  %3383 = vst [vmem:[%s7194_s10 + $0x60] sm:$0xff] %v3319_v5  ;;  %3384 = vst [vmem:[%s7194_s10 + $0x68] sm:$0xff] %v3320_v51  ;;  %v3321_v14 = vadd.f32 %v7159_v10, %v3245_v36  ;;  %v3019_v1 = vmax.f32 %v2987_v17, 0.0  ;;  %v2924_v28 = vmul.f32 0.00390625, %v2880_v37 }
 0x3e8   : > { %v3322_v34 = vadd.f32 %v7162_v39, %v3246_v4  ;;  %v2690_v15 = vpop.xlane.xlu0 %2689  ;;  %v3351_v12 = vadd.f32 %v7159_v10, %v3275_v19  ;;  %v3352_v24 = vadd.f32 %v7162_v39, %v3276_v2  ;;  %v3201_v62 = vmul.f32 %v4018_v54, %v3137_v9  ;;  %v8140_v5 = vld [vmem:[#allocation53_spill] sm:$0xff]  ;;  %v8141_v4 = vld [vmem:[#allocation59_spill] sm:$0xff] }
 0x3e9   : > { %v3202_v23 = vmul.f32 %v4018_v54, %v3138_v44  ;;  %3385 = vst [vmem:[%s7194_s10 + $0x70] sm:$0xff] %v3321_v14  ;;  %4021 = vrsqrt.f32 %v3036_v53  ;;  %v3051_v58 = vadd.f32 1e-12, %v3019_v1  ;;  %v2988_v32 = vsub.f32 %v2924_v28, %v2956_v8  ;;  %v8142_v14 = vld [vmem:[#allocation41_spill] sm:$0xff] }
 0x3ea   : > { %3386 = vst [vmem:[%s7194_s10 + $0x78] sm:$0xff] %v3322_v34  ;;  %3415 = vst [vmem:[%s7194_s10 + $0x160] sm:$0xff] %v3351_v12  ;;  %v3277_v41 = vmul.f32 %v7151_v6, %v3201_v62  ;;  %v7382_v37 = vmul.f32 0.00390625, %v2642_v22  ;;  %v7384_v9 = vmul.f32 0.00390625, %v2645_v16  ;;  %v7388_v46 = vmul.f32 0.00390625, %v2690_v15  ;;  %v8143_v15 = vld [vmem:[#allocation69_spill] sm:$0xff] }
 0x3eb   : > { %3416 = vst [vmem:[%s7194_s10 + $0x168] sm:$0xff] %v3352_v24  ;;  %v3278_v17 = vmul.f32 %v7154_v49, %v3202_v23  ;;  %v2693_v21 = vpop.xlane.xlu1 %2692  ;;  %4023 = vrsqrt.f32 %v3051_v58  ;;  %v3020_v7 = vmax.f32 %v2988_v32, 0.0  ;;  %v3107_v51 = vsub.f32 %v8140_v5, %v7320_v20  ;;  %v8144_v58 = vld [vmem:[#allocation28_spill] sm:$0xff] }
 0x3ec   : > { %v2835_v44 = vpop.xlane.xlu0 %2834  ;;  %v3353_v30 = vadd.f32 %v7159_v10, %v3277_v41  ;;  %v3108_v36 = vsub.f32 %v8079_v48, %v7320_v20  ;;  %v3109_v19 = vsub.f32 %v8141_v4, %v7324_v33  ;;  %v7398_v2 = vmul.f32 0.00390625, %v2693_v21  ;;  %v8145_v21 = vld [vmem:[#allocation40_spill] sm:$0xff] }
 0x3ed   : > { %v3354_v8 = vadd.f32 %v7162_v39, %v3278_v17  ;;  %v3052_v22 = vadd.f32 1e-12, %v3020_v7  ;;  %v2941_v53 = vmul.f32 %v7382_v37, %v7382_v37  ;;  %v2909_v16 = vmul.f32 0.00390625, %v2835_v44 }
 0x3ee   : > { %3417 = vst [vmem:[%s7194_s10 + $0x170] sm:$0xff] %v3353_v30  ;;  %v3110_v34 = vsub.f32 %v8142_v14, %v7324_v33  ;;  %v2942_v48 = vmul.f32 %v7384_v9, %v7384_v9  ;;  %v3139_v12 = vsub.f32 %v8143_v15, %v7332_v61  ;;  %v2957_v62 = vmul.f32 %v7388_v46, %v7388_v46 }
 0x3ef   : > { %3418 = vst [vmem:[%s7194_s10 + $0x178] sm:$0xff] %v3354_v8  ;;  %v2838_v54 = vpop.xlane.xlu1 %2837  ;;  %4025 = vrsqrt.f32 %v3052_v22  ;;  %v2973_v24 = vsub.f32 %v2909_v16, %v2941_v53  ;;  %v3140_v32 = vsub.f32 %v8144_v58, %v7332_v61  ;;  %v3141_v7 = vsub.f32 %v8145_v21, %v7338_v47 }
 0x3f0   : > { %v2910_v20 = vmul.f32 0.00390625, %v2838_v54  ;;  %v2883_v1 = vpop.xlane.xlu0 %2882  ;;  %v4020_v28 = vpop.eup %4019  ;;  %v2958_v8 = vmul.f32 %v7398_v2, %v7398_v2 }
 0x3f1   : > { %v2925_v23 = vmul.f32 0.00390625, %v2883_v1  ;;  %v3171_v41 = vmul.f32 %v4020_v28, %v3107_v51  ;;  %v3172_v33 = vmul.f32 %v4020_v28, %v3108_v36  ;;  %v3005_v44 = vmax.f32 %v2973_v24, 0.0 }
 0x3f2   : > { %v2974_v17 = vsub.f32 %v2910_v20, %v2942_v48 }
 0x3f3   : > { %v2989_v30 = vsub.f32 %v2925_v23, %v2957_v62  ;;  %v2886_v5 = vpop.xlane.xlu1 %2885  ;;  %v4022_v22 = vpop.eup %4021  ;;  %v3247_v4 = vmul.f32 %v7151_v6, %v3171_v41  ;;  %v3248_v53 = vmul.f32 %v7154_v49, %v3172_v33  ;;  %v3037_v14 = vadd.f32 1e-12, %v3005_v44 }
 0x3f4   : > { %v3006_v16 = vmax.f32 %v2974_v17, 0.0  ;;  %v2926_v54 = vmul.f32 0.00390625, %v2886_v5  ;;  %v2648_v61 = vpop.xlane.xlu0 %2647  ;;  %v3173_v51 = vmul.f32 %v4022_v22, %v3109_v19  ;;  %v3174_v36 = vmul.f32 %v4022_v22, %v3110_v34 }
 0x3f5   : > { %v3021_v48 = vmax.f32 %v2989_v30, 0.0  ;;  %v4024_v20 = vpop.eup %4023  ;;  %v3323_v1 = vadd.f32 %v7159_v10, %v3247_v4  ;;  %v3324_v28 = vadd.f32 %v7162_v39, %v3248_v53  ;;  %v3142_v19 = vsub.f32 %v8085_v27, %v7338_v47 }
 0x3f6   : > { %v3038_v15 = vadd.f32 1e-12, %v3006_v16  ;;  %v2990_v24 = vsub.f32 %v2926_v54, %v2958_v8  ;;  %v3249_v62 = vmul.f32 %v7151_v6, %v3173_v51  ;;  %v3250_v23 = vmul.f32 %v7154_v49, %v3174_v36 }
 0x3f7   : > { %v3203_v58 = vmul.f32 %v4024_v20, %v3139_v12  ;;  %v3204_v41 = vmul.f32 %v4024_v20, %v3140_v32  ;;  %v2651_v33 = vpop.xlane.xlu1 %2650  ;;  %3387 = vst [vmem:[%s7194_s10 + $0x80] sm:$0xff] %v3323_v1  ;;  %3388 = vst [vmem:[%s7194_s10 + $0x88] sm:$0xff] %v3324_v28  ;;  %4027 = vrsqrt.f32 %v3037_v14  ;;  %v3053_v34 = vadd.f32 1e-12, %v3021_v48 }
 0x3f8   : > { %v3022_v17 = vmax.f32 %v2990_v24, 0.0  ;;  %v2696_v21 = vpop.xlane.xlu0 %2695  ;;  %v3325_v44 = vadd.f32 %v7159_v10, %v3249_v62  ;;  %v3326_v30 = vadd.f32 %v7162_v39, %v3250_v23  ;;  %4029 = vrsqrt.f32 %v3038_v15 }
 0x3f9   : > { %v3279_v8 = vmul.f32 %v7151_v6, %v3203_v58  ;;  %v3280_v12 = vmul.f32 %v7154_v49, %v3204_v41  ;;  %v4026_v32 = vpop.eup %4025  ;;  %4031 = vrsqrt.f32 %v3053_v34  ;;  %v7434_v16 = vmul.f32 0.00390625, %v2648_v61 }
 0x3fa   : > { %v3054_v5 = vadd.f32 1e-12, %v3022_v17  ;;  %3389 = vst [vmem:[%s7194_s10 + $0x90] sm:$0xff] %v3325_v44  ;;  %3390 = vst [vmem:[%s7194_s10 + $0x98] sm:$0xff] %v3326_v30  ;;  %v3205_v22 = vmul.f32 %v4026_v32, %v3141_v7  ;;  %v3206_v4 = vmul.f32 %v4026_v32, %v3142_v19  ;;  %v7436_v54 = vmul.f32 0.00390625, %v2651_v33 }
 0x3fb   : > { %v3355_v27 = vadd.f32 %v7159_v10, %v3279_v8  ;;  %v3356_v47 = vadd.f32 %v7162_v39, %v3280_v12  ;;  %v2699_v53 = vpop.xlane.xlu1 %2698  ;;  %v7442_v48 = vmul.f32 0.00390625, %v2696_v21  ;;  %v3111_v7 = vsub.f32 %v8086_v11, %v7382_v37 }
 0x3fc   : > { %v2841_v51 = vpop.xlane.xlu0 %2840  ;;  %v3281_v36 = vmul.f32 %v7151_v6, %v3205_v22  ;;  %v3282_v14 = vmul.f32 %v7154_v49, %v3206_v4  ;;  %4033 = vrsqrt.f32 %v3054_v5  ;;  %v3112_v61 = vsub.f32 %v6429_v50, %v7382_v37 }
 0x3fd   : > { %3419 = vst [vmem:[%s7194_s10 + $0x180] sm:$0xff] %v3355_v27  ;;  %3420 = vst [vmem:[%s7194_s10 + $0x188] sm:$0xff] %v3356_v47  ;;  %v3113_v28 = vsub.f32 %v6511_v59, %v7384_v9  ;;  %v7452_v15 = vmul.f32 0.00390625, %v2699_v53  ;;  %v2943_v62 = vmul.f32 %v7434_v16, %v7434_v16  ;;  %v2911_v23 = vmul.f32 0.00390625, %v2841_v51 }
 0x3fe   : > { %v3357_v20 = vadd.f32 %v7159_v10, %v3281_v36  ;;  %v3358_v1 = vadd.f32 %v7162_v39, %v3282_v14  ;;  %v2944_v11 = vmul.f32 %v7436_v54, %v7436_v54  ;;  %v3114_v50 = vsub.f32 %v8087_v45, %v7384_v9 }
 0x3ff   : > { %v2844_v24 = vpop.xlane.xlu1 %2843  ;;  %v3143_v59 = vsub.f32 %v8088_v25, %v7388_v46  ;;  %v2959_v37 = vmul.f32 %v7442_v48, %v7442_v48  ;;  %v3144_v34 = vsub.f32 %v8089_v42, %v7388_v46  ;;  %v3145_v17 = vsub.f32 %v8090_v0, %v7398_v2 }
 0x400   : > { %v2912_v58 = vmul.f32 0.00390625, %v2844_v24  ;;  %v2889_v41 = vpop.xlane.xlu0 %2888  ;;  %3421 = vst [vmem:[%s7194_s10 + $0x190] sm:$0xff] %v3357_v20  ;;  %3422 = vst [vmem:[%s7194_s10 + $0x198] sm:$0xff] %v3358_v1  ;;  %v2975_v21 = vsub.f32 %v2911_v23, %v2943_v62  ;;  %v3146_v30 = vsub.f32 %v8091_v29, %v7398_v2  ;;  %v2960_v27 = vmul.f32 %v7452_v15, %v7452_v15 }
 0x401   : > { %v2927_v33 = vmul.f32 0.00390625, %v2889_v41  ;;  %v4028_v19 = vpop.eup %4027 }
 0x402   : > { %v2976_v44 = vsub.f32 %v2912_v58, %v2944_v11  ;;  %v3175_v45 = vmul.f32 %v4028_v19, %v3111_v7  ;;  %v3176_v9 = vmul.f32 %v4028_v19, %v3112_v61  ;;  %v4030_v12 = vpop.eup %4029  ;;  %v3007_v32 = vmax.f32 %v2975_v21, 0.0 }
 0x403   : > { %v2991_v8 = vsub.f32 %v2927_v33, %v2959_v37  ;;  %v2892_v25 = vpop.xlane.xlu1 %2891  ;;  %v3177_v22 = vmul.f32 %v4030_v12, %v3113_v28  ;;  %v3178_v4 = vmul.f32 %v4030_v12, %v3114_v50  ;;  %v4032_v53 = vpop.eup %4031 }
 0x404   : > { %v3008_v5 = vmax.f32 %v2976_v44, 0.0  ;;  %v2928_v47 = vmul.f32 0.00390625, %v2892_v25  ;;  %v2654_v42 = vpop.xlane.xlu0 %2653  ;;  %v3251_v46 = vmul.f32 %v7151_v6, %v3175_v45  ;;  %v3252_v0 = vmul.f32 %v7154_v49, %v3176_v9 }
 0x405   : > { %v3039_v29 = vadd.f32 1e-12, %v3007_v32  ;;  %v3023_v51 = vmax.f32 %v2991_v8, 0.0  ;;  %v3253_v20 = vmul.f32 %v7151_v6, %v3177_v22  ;;  %v3254_v1 = vmul.f32 %v7154_v49, %v3178_v4 }
 0x406   : > { %v3040_v2 = vadd.f32 1e-12, %v3008_v5  ;;  %v2992_v36 = vsub.f32 %v2928_v47, %v2960_v27  ;;  %v4034_v14 = vpop.eup %4033  ;;  %v3327_v7 = vadd.f32 %v7159_v10, %v3251_v46  ;;  %v3328_v61 = vadd.f32 %v7162_v39, %v3252_v0 }
 0x407   : > { %v2657_v24 = vpop.xlane.xlu1 %2656  ;;  %v3207_v28 = vmul.f32 %v4032_v53, %v3143_v59  ;;  %v3208_v62 = vmul.f32 %v4032_v53, %v3144_v34  ;;  %v3209_v23 = vmul.f32 %v4034_v14, %v3145_v17  ;;  %v3210_v11 = vmul.f32 %v4034_v14, %v3146_v30 }
 0x408   : > { %v2702_v58 = vpop.xlane.xlu0 %2701  ;;  %3391 = vst [vmem:[%s7194_s10 + $0xa0] sm:$0xff] %v3327_v7  ;;  %3392 = vst [vmem:[%s7194_s10 + $0xa8] sm:$0xff] %v3328_v61  ;;  %v3329_v41 = vadd.f32 %v7159_v10, %v3253_v20  ;;  %v3330_v50 = vadd.f32 %v7162_v39, %v3254_v1  ;;  %4035 = vrsqrt.f32 %v3039_v29  ;;  %v3055_v37 = vadd.f32 1e-12, %v3023_v51 }
 0x409   : > { %v3283_v33 = vmul.f32 %v7151_v6, %v3207_v28  ;;  %v3284_v19 = vmul.f32 %v7154_v49, %v3208_v62  ;;  %v3285_v21 = vmul.f32 %v7151_v6, %v3209_v23  ;;  %v3286_v59 = vmul.f32 %v7154_v49, %v3210_v11 }
 0x40a   : > { %3393 = vst [vmem:[%s7194_s10 + $0xb0] sm:$0xff] %v3329_v41  ;;  %3394 = vst [vmem:[%s7194_s10 + $0xb8] sm:$0xff] %v3330_v50  ;;  %4037 = vrsqrt.f32 %v3040_v2  ;;  %v3024_v34 = vmax.f32 %v2992_v36, 0.0  ;;  %v7490_v17 = vmul.f32 0.00390625, %v2654_v42  ;;  %v7492_v44 = vmul.f32 0.00390625, %v2657_v24 }
 0x40b   : > { %v2705_v30 = vpop.xlane.xlu1 %2704  ;;  %v3359_v45 = vadd.f32 %v7159_v10, %v3283_v33  ;;  %v3360_v9 = vadd.f32 %v7162_v39, %v3284_v19  ;;  %v3361_v8 = vadd.f32 %v7159_v10, %v3285_v21  ;;  %v3362_v25 = vadd.f32 %v7162_v39, %v3286_v59 }
 0x40c   : > { %v2847_v12 = vpop.xlane.xlu0 %2846  ;;  %4039 = vrsqrt.f32 %v3055_v37  ;;  %v3056_v32 = vadd.f32 1e-12, %v3024_v34  ;;  %v7502_v5 = vmul.f32 0.00390625, %v2702_v58  ;;  %v2945_v27 = vmul.f32 %v7490_v17, %v7490_v17 }
 0x40d   : > { %3423 = vst [vmem:[%s7194_s10 + $0x1a0] sm:$0xff] %v3359_v45  ;;  %3424 = vst [vmem:[%s7194_s10 + $0x1a8] sm:$0xff] %v3360_v9  ;;  %v2913_v47 = vmul.f32 0.00390625, %v2847_v12  ;;  %v3115_v46 = vsub.f32 %v8097_v18, %v7434_v16  ;;  %v3116_v0 = vsub.f32 %v6771_v63, %v7434_v16  ;;  %v7510_v22 = vmul.f32 0.00390625, %v2705_v30 }
 0x40e   : > { %3425 = vst [vmem:[%s7194_s10 + $0x1b0] sm:$0xff] %v3361_v8  ;;  %3426 = vst [vmem:[%s7194_s10 + $0x1b8] sm:$0xff] %v3362_v25  ;;  %4041 = vrsqrt.f32 %v3056_v32  ;;  %v2946_v4 = vmul.f32 %v7492_v44, %v7492_v44  ;;  %v2961_v51 = vmul.f32 %v7502_v5, %v7502_v5  ;;  %v3117_v14 = vsub.f32 %v6859_v3, %v7436_v54 }
 0x40f   : > { %v2850_v42 = vpop.xlane.xlu1 %2849  ;;  %v2977_v29 = vsub.f32 %v2913_v47, %v2945_v27  ;;  %v3118_v18 = vsub.f32 %v7039_v57, %v7436_v54  ;;  %v3147_v63 = vsub.f32 %v8099_v38, %v7442_v48  ;;  %v3148_v16 = vsub.f32 %v6829_v55, %v7442_v48 }
 0x410   : > { %v2895_v53 = vpop.xlane.xlu0 %2894  ;;  %v2914_v2 = vmul.f32 0.00390625, %v2850_v42  ;;  %v3149_v61 = vsub.f32 %v7033_v43, %v7452_v15  ;;  %v3150_v3 = vsub.f32 %v7051_v26, %v7452_v15  ;;  %v2962_v55 = vmul.f32 %v7510_v22, %v7510_v22 }
 0x411   : > { %v2929_v36 = vmul.f32 0.00390625, %v2895_v53  ;;  %v3009_v20 = vmax.f32 %v2977_v29, 0.0 }
 0x412   : > { %v4036_v7 = vpop.eup %4035  ;;  %v2978_v1 = vsub.f32 %v2914_v2, %v2946_v4 }
 0x413   : > { %v2993_v24 = vsub.f32 %v2929_v36, %v2961_v51  ;;  %v2898_v28 = vpop.xlane.xlu1 %2897  ;;  %v3179_v62 = vmul.f32 %v4036_v7, %v3115_v46  ;;  %v3180_v23 = vmul.f32 %v4036_v7, %v3116_v0  ;;  %v3041_v11 = vadd.f32 1e-12, %v3009_v20 }
 0x414   : > { %v2930_v57 = vmul.f32 0.00390625, %v2898_v28  ;;  %v4038_v54 = vpop.eup %4037  ;;  %v3010_v38 = vmax.f32 %v2978_v1, 0.0  ;;  %v3119_v36 = vsub.f32 %v7083_v56, %v7490_v17 }
 0x415   : > { %v3025_v58 = vmax.f32 %v2993_v24, 0.0  ;;  %v3255_v48 = vmul.f32 %v7151_v6, %v3179_v62  ;;  %v3256_v43 = vmul.f32 %v7154_v49, %v3180_v23  ;;  %v3181_v41 = vmul.f32 %v4038_v54, %v3117_v14 }
 0x416   : > { %v3182_v50 = vmul.f32 %v4038_v54, %v3118_v18  ;;  %v4040_v37 = vpop.eup %4039  ;;  %4043 = vrsqrt.f32 %v3041_v11  ;;  %v3042_v26 = vadd.f32 1e-12, %v3010_v38  ;;  %v2994_v33 = vsub.f32 %v2930_v57, %v2962_v55 }
 0x417   : > { %v3057_v15 = vadd.f32 1e-12, %v3025_v58  ;;  %v3331_v19 = vadd.f32 %v7159_v10, %v3255_v48  ;;  %v3332_v21 = vadd.f32 %v7162_v39, %v3256_v43  ;;  %v3257_v59 = vmul.f32 %v7151_v6, %v3181_v41 }
 0x418   : > { %v3258_v34 = vmul.f32 %v7154_v49, %v3182_v50  ;;  %v4042_v30 = vpop.eup %4041  ;;  %v3211_v45 = vmul.f32 %v4040_v37, %v3147_v63  ;;  %v3212_v9 = vmul.f32 %v4040_v37, %v3148_v16  ;;  %4045 = vrsqrt.f32 %v3042_v26 }
 0x419   : > { %v3026_v8 = vmax.f32 %v2994_v33, 0.0  ;;  %3395 = vst [vmem:[%s7194_s10 + $0xc0] sm:$0xff] %v3331_v19  ;;  %3396 = vst [vmem:[%s7194_s10 + $0xc8] sm:$0xff] %v3332_v21  ;;  %v3333_v25 = vadd.f32 %v7159_v10, %v3257_v59  ;;  %v3213_v32 = vmul.f32 %v4042_v30, %v3149_v61  ;;  %v3214_v27 = vmul.f32 %v4042_v30, %v3150_v3 }
 0x41a   : > { %v3334_v12 = vadd.f32 %v7162_v39, %v3258_v34  ;;  %v3287_v47 = vmul.f32 %v7151_v6, %v3211_v45  ;;  %v3288_v42 = vmul.f32 %v7154_v49, %v3212_v9  ;;  %4047 = vrsqrt.f32 %v3057_v15 }
 0x41b   : > { %v3058_v46 = vadd.f32 1e-12, %v3026_v8  ;;  %3397 = vst [vmem:[%s7194_s10 + $0xd0] sm:$0xff] %v3333_v25  ;;  %v3289_v0 = vmul.f32 %v7151_v6, %v3213_v32  ;;  %v3290_v4 = vmul.f32 %v7154_v49, %v3214_v27  ;;  %v3120_v14 = vsub.f32 %v7090_v40, %v7490_v17  ;;  %v8146_v17 = vld [vmem:[#allocation71_spill] sm:$0xff] }
 0x41c   : > { %3398 = vst [vmem:[%s7194_s10 + $0xd8] sm:$0xff] %v3334_v12  ;;  %v3363_v53 = vadd.f32 %v7159_v10, %v3287_v47  ;;  %v3364_v29 = vadd.f32 %v7162_v39, %v3288_v42  ;;  %v3121_v63 = vsub.f32 %v7092_v52, %v7492_v44  ;;  %v3122_v16 = vsub.f32 %v7096_v13, %v7492_v44 }
 0x41d   : > { %4049 = vrsqrt.f32 %v3058_v46  ;;  %v3365_v2 = vadd.f32 %v7159_v10, %v3289_v0  ;;  %v3366_v51 = vadd.f32 %v7162_v39, %v3290_v4  ;;  %v3151_v40 = vsub.f32 %v7098_v35, %v7502_v5 }
 0x41e   : > { %3427 = vst [vmem:[%s7194_s10 + $0x1c0] sm:$0xff] %v3363_v53  ;;  %3428 = vst [vmem:[%s7194_s10 + $0x1c8] sm:$0xff] %v3364_v29  ;;  %v3152_v52 = vsub.f32 %v7100_v31, %v7502_v5  ;;  %v3153_v13 = vsub.f32 %v7104_v60, %v7510_v22  ;;  %v3154_v44 = vsub.f32 %v8146_v17, %v7510_v22 }
 0x41f   : > { %3429 = vst [vmem:[%s7194_s10 + $0x1d0] sm:$0xff] %v3365_v2  ;;  %3430 = vst [vmem:[%s7194_s10 + $0x1d8] sm:$0xff] %v3366_v51 }
 0x420   : > { %v4044_v18 = vpop.eup %4043 }
 0x421   : > { %v3183_v7 = vmul.f32 %v4044_v18, %v3119_v36  ;;  %v3184_v61 = vmul.f32 %v4044_v18, %v3120_v14 }
 0x422   : > { %v4046_v20 = vpop.eup %4045 }
 0x423   : > { %v3259_v1 = vmul.f32 %v7151_v6, %v3183_v7  ;;  %v3260_v24 = vmul.f32 %v7154_v49, %v3184_v61  ;;  %v3185_v56 = vmul.f32 %v4046_v20, %v3121_v63  ;;  %v3186_v28 = vmul.f32 %v4046_v20, %v3122_v16 }
 0x424   : > { %v4048_v3 = vpop.eup %4047 }
 0x425   : > { %v3335_v62 = vadd.f32 %v7159_v10, %v3259_v1  ;;  %v3336_v23 = vadd.f32 %v7162_v39, %v3260_v24  ;;  %v3261_v57 = vmul.f32 %v7151_v6, %v3185_v56  ;;  %v3262_v35 = vmul.f32 %v7154_v49, %v3186_v28 }
 0x426   : > { %v3215_v31 = vmul.f32 %v4048_v3, %v3151_v40  ;;  %v3216_v5 = vmul.f32 %v4048_v3, %v3152_v52 }
 0x427   : > { %v4050_v54 = vpop.eup %4049  ;;  %3399 = vst [vmem:[%s7194_s10 + $0xe0] sm:$0xff] %v3335_v62  ;;  %3400 = vst [vmem:[%s7194_s10 + $0xe8] sm:$0xff] %v3336_v23  ;;  %v3337_v60 = vadd.f32 %v7159_v10, %v3261_v57  ;;  %v3338_v11 = vadd.f32 %v7162_v39, %v3262_v35 }
 0x428   : > { %v3217_v22 = vmul.f32 %v4050_v54, %v3153_v13  ;;  %v3218_v38 = vmul.f32 %v4050_v54, %v3154_v44  ;;  %v3291_v58 = vmul.f32 %v7151_v6, %v3215_v31  ;;  %v3292_v55 = vmul.f32 %v7154_v49, %v3216_v5 }
 0x429   : > { %3401 = vst [vmem:[%s7194_s10 + $0xf0] sm:$0xff] %v3337_v60  ;;  %3402 = vst [vmem:[%s7194_s10 + $0xf8] sm:$0xff] %v3338_v11 }
 0x42a   : > { %v3293_v48 = vmul.f32 %v7151_v6, %v3217_v22  ;;  %v3294_v43 = vmul.f32 %v7154_v49, %v3218_v38  ;;  %v3367_v41 = vadd.f32 %v7159_v10, %v3291_v58  ;;  %v3368_v50 = vadd.f32 %v7162_v39, %v3292_v55 }
 0x42c   : > { %v3369_v37 = vadd.f32 %v7159_v10, %v3293_v48  ;;  %v3370_v6 = vadd.f32 %v7162_v39, %v3294_v43  ;;  %3431 = vst [vmem:[%s7194_s10 + $0x1e0] sm:$0xff] %v3367_v41  ;;  %3432 = vst [vmem:[%s7194_s10 + $0x1e8] sm:$0xff] %v3368_v50 }
 0x42e   : > { %3433 = vst [vmem:[%s7194_s10 + $0x1f0] sm:$0xff] %v3369_v37  ;;  %3434 = vst [vmem:[%s7194_s10 + $0x1f8] sm:$0xff] %v3370_v6 }
 0x42f   : > { %4122 = shalt.err (!%p4119_p7)
}
 0x430   : > { %s4123_s26 = scalar_lea.hbm %s7593_s16, 8192  ;;  %s4127_s7 = scalar_lea.hbm %s7650_s5, 16384 }
 0x431   : > { %p4124_p9 = scmp.ne.s32.totalorder %s7593_s16, %s4123_s26  ;;  %p4128_p5 = scmp.lt.u32.totalorder %s7593_s16, %s7650_s5 }
 0x432   : > { %p4129_p11 = scmp.lt.u32.totalorder %s4127_s7, %s4123_s26  ;;  %p4131_p4 = scmp.lt.u32.totalorder %s4123_s26, %s7593_s16 }
 0x433   : > { %p4125_p2 = pnand %p4124_p9, %p4312_p12 }
 0x434   : > { %p4130_p1 = por %p4129_p11, %p4128_p5 }
 0x435   : > { %p4126_p0 = pneg %p4125_p2 }
 0x436   : > { %p4132_p6 = por %p4131_p4, %p4130_p1 }
 0x438   : > { %p4133_p8 = pnand %p4132_p6, %p4126_p0 }
 0x43a   : > { %4136 = shalt.err (!%p4133_p8)
}
 0x43b   : > { %s4189_s29 = smov 256   ;;  %s4190_s22 = smov 16  }
 0x43c   : > { %3625 = dma.vmem_to_hbm [thread:$0]  (%p4312_p12), %s7595_s13, 8192, %s7593_s16, %s3436_s17, %s4189_s29, %s4189_s29, %s4190_s22  }
 0x43d PF: > { %s3465_s28 = sand.u32 1, %s4167_s18   ;;  %p8147_p10 = scmp.ne.s32.totalorder %s7778_s25, 0 }
 0x43e   : > { %p8148_p13 = scmp.ge.s32.totalorder %s4179_s21, 2  ;;  %s3466_s27 = scalar_lea.sflag [#allocation4], %s3465_s28 }
 0x440   : > { %p3636_p3 = pnand %p8148_p13, %p8147_p10 }
 0x442   : > { %4162 = dma.done.wait (!%p3636_p3), %s3466_s27, 8192  }
 0x443   : > { %4164 = vsyncadd (!%p3636_p3), %s3466_s27, 4294959104  ;;  %p19_p7 = scmp.ge.s32.totalorder %s4277_s30, 4   ;;  %s8149_s18 = smov %s4171_s19 }
 0x444   : > { %s8150_s19 = smov %s4175_s20  ;;  %s8151_s20 = smov %s4308_s8 }
 0x445   : > { %s8152_s21 = smov %s4277_s30  ;;  %21 = sbr.rel (!%p19_p7) target bundleno = 6 (0x6), region = 89 }
 0x44c   :  { %3471 = vsyncpa [#allocation3], 1 }
 0x44d   :  { %3473 = vsyncpa [#allocation3 + $0x1], 1 }
 0x44e   :  { %3474 = vsyncpa [#allocation6], 1 }
 0x44f   :  { %3475 = vsyncpa [#allocation4], 1 }
 0x450   :  { %3477 = vsyncpa [#allocation4 + $0x1], 1 }

</bundles_post_ra>
